<compile_context>
chip_gen: v5e
topology: v5e:2x2
jax: 0.10.0
libtpu: 0.0.40
codegen_flags: <defaults>
</compile_context>

<pallas_src>
import functools
import math

import jax
import jax.numpy as jnp
from jax import lax
from jax.experimental import pallas as pl
from jax.experimental.pallas import tpu as pltpu

IN_FEATURES = 962    # hard-coded in HGNN_conv_mi_sim
OUT_FEATURES = 256
K_PAD = 1024         # 962 zero-padded up to an MXU-friendly contraction length


# ----------------------------- pass 1: h = x @ W + b ----------------------- #

def _linear_kernel(x_ref, w_ref, b_ref, h_ref):
    # x_ref: (tm_lin, K_PAD) bf16, w_ref: (K_PAD, 256) bf16, b_ref: (1, 256) f32
    acc = jnp.dot(x_ref[...], w_ref[...], preferred_element_type=jnp.float32)
    h_ref[...] = (acc + b_ref[...]).astype(h_ref.dtype)


# ----------------------------- pass 2: out = G @ h ------------------------- #

def _make_propagate_kernel(n_nodes, tk, ragged_k):
    """out[i_tile] = sum_k G[i_tile, k_tile] @ h[k_tile]."""

    def kernel(g_ref, h_ref, o_ref):
        k = pl.program_id(1)

        @pl.when(k == 0)
        def _init():
            o_ref[...] = jnp.zeros_like(o_ref)

        def accumulate(g_blk, h_blk):
            o_ref[...] += jnp.dot(g_blk, h_blk,
                                  preferred_element_type=jnp.float32)

        if ragged_k:  # static Python flag: only traced when N % tk != 0
            is_last = k == pl.num_programs(1) - 1

            @pl.when(jnp.logical_not(is_last))
            def _full():
                accumulate(g_ref[...], h_ref[...])

            @pl.when(is_last)
            def _masked():
                # Zero contributions from the padded tail of the last k tile.
                g_blk = g_ref[...]
                h_blk = h_ref[...]
                col = k * tk + lax.broadcasted_iota(jnp.int32, g_blk.shape, 1)
                g_blk = jnp.where(col < n_nodes, g_blk, jnp.zeros_like(g_blk))
                row = k * tk + lax.broadcasted_iota(jnp.int32, h_blk.shape, 0)
                h_blk = jnp.where(row < n_nodes, h_blk, jnp.zeros_like(h_blk))
                accumulate(g_blk, h_blk)
        else:
            accumulate(g_ref[...], h_ref[...])

    return kernel


# ----------------------------- wrapper ------------------------------------- #

@functools.partial(jax.jit, static_argnames=("tm", "tk", "tm_lin"))
def hgnn_conv_mi_sim_forward(x, G, weight, bias, *, tm=512, tk=512, tm_lin=512):
    """Pallas implementation of HGNN_conv_mi_sim.forward: G @ (x @ W + b)."""
    N, d_in = x.shape
    assert d_in == IN_FEATURES, "x feature dim must be 962 (module hard-codes it)"
    assert weight.shape == (IN_FEATURES, OUT_FEATURES)
    assert G.shape == (N, N)
    assert bias.shape == (OUT_FEATURES,)

    # bf16 MXU operands at the kernel boundary; f32 accumulation inside.
    # Zero-pad the contraction dim 962 -> 1024 (exact zeros: result unchanged).
    x_bf = jnp.pad(x.astype(jnp.bfloat16), ((0, 0), (0, K_PAD - d_in)))
    w_bf = jnp.pad(weight.astype(jnp.bfloat16), ((0, K_PAD - d_in), (0, 0)))
    g_bf = G.astype(jnp.bfloat16)
    bias2d = bias.astype(jnp.float32).reshape(1, OUT_FEATURES)

    # ---------------- pass 1: h = x @ W + b  (computed once) --------------- #
    tm_lin = min(tm_lin, N)
    h = pl.pallas_call(
        _linear_kernel,
        out_shape=jax.ShapeDtypeStruct((N, OUT_FEATURES), jnp.bfloat16),
        grid_spec=pltpu.PrefetchScalarGridSpec(
            num_scalar_prefetch=0,
            grid=(pl.cdiv(N, tm_lin),),
            in_specs=[
                pl.BlockSpec((tm_lin, K_PAD), lambda i: (i, 0)),
                pl.BlockSpec((K_PAD, OUT_FEATURES), lambda i: (0, 0)),
                pl.BlockSpec((1, OUT_FEATURES), lambda i: (0, 0)),
            ],
            out_specs=pl.BlockSpec((tm_lin, OUT_FEATURES), lambda i: (i, 0)),
        ),
        compiler_params=pltpu.CompilerParams(
            dimension_semantics=("parallel",),
        ),
    )(x_bf, w_bf, bias2d)

    # ---------------- pass 2: out = G @ h ---------------------------------- #
    tm = min(tm, N)
    tk = min(tk, N)
    ragged_k = (N % tk) != 0

    out = pl.pallas_call(
        _make_propagate_kernel(N, tk, ragged_k),
        out_shape=jax.ShapeDtypeStruct((N, OUT_FEATURES), jnp.float32),
        grid_spec=pltpu.PrefetchScalarGridSpec(
            num_scalar_prefetch=0,
            grid=(pl.cdiv(N, tm), pl.cdiv(N, tk)),
            in_specs=[
                pl.BlockSpec((tm, tk), lambda i, k: (i, k)),            # G tile
                pl.BlockSpec((tk, OUT_FEATURES), lambda i, k: (k, 0)),  # h tile
            ],
            # k-independent index_map -> output resident across contraction axis
            out_specs=pl.BlockSpec((tm, OUT_FEATURES), lambda i, k: (i, 0)),
        ),
        compiler_params=pltpu.CompilerParams(
            dimension_semantics=("parallel", "arbitrary"),
        ),
    )(g_bf, h)

    return out


# ----------------------------- driver --------------------------------------- #

if __name__ == "__main__":
    key = jax.random.PRNGKey(0)
    k_x, k_g, k_w, k_b = jax.random.split(key, 4)

    N = 512  # number of nodes (small; exercises pass-2 grid with 512 tiles)

    # Inputs
    x = jax.random.normal(k_x, (N, IN_FEATURES), dtype=jnp.float32)
    G = jax.random.normal(k_g, (N, N), dtype=jnp.float32) / math.sqrt(N)

    # Parameters: reset_parameters -> uniform(-stdv, stdv), stdv = 1/sqrt(256)
    stdv = 1.0 / math.sqrt(OUT_FEATURES)
    weight = jax.random.uniform(k_w, (IN_FEATURES, OUT_FEATURES), jnp.float32,
                                -stdv, stdv)
    bias = jax.random.uniform(k_b, (OUT_FEATURES,), jnp.float32, -stdv, stdv)

    out = hgnn_conv_mi_sim_forward(x, G, weight, bias)
    out = jax.block_until_ready(out)
    assert out.shape == (N, OUT_FEATURES)

    # Reference 1: same operand precision as the kernel (bf16 matmuls, f32 acc)
    h_ref = (jnp.dot(x.astype(jnp.bfloat16), weight.astype(jnp.bfloat16),
                     preferred_element_type=jnp.float32) + bias)
    ref_bf16 = jnp.dot(G.astype(jnp.bfloat16), h_ref.astype(jnp.bfloat16),
                       preferred_element_type=jnp.float32)
    assert jnp.allclose(out, ref_bf16, atol=2e-2, rtol=2e-2), \
        "mismatch vs matched-precision reference"

    # Reference 2: plain float32 reference (looser tolerance for bf16 operands)
    ref_f32 = G @ (x @ weight + bias)
    assert jnp.allclose(out, ref_f32, atol=1e-1, rtol=1e-1), \
        "mismatch vs float32 reference"

    print("KERNEL_OK")
</pallas_src>

<mosaic_0001>
module attributes {stable_mosaic.version = 11 : i64} {
  func.func @_linear_kernel(%arg0: i32, %arg1: memref<512x1024xbf16, #tpu.memory_space<vmem>>, %arg2: memref<1024x256xbf16, #tpu.memory_space<vmem>>, %arg3: memref<1x256xf32, #tpu.memory_space<vmem>>, %arg4: memref<512x256xbf16, #tpu.memory_space<vmem>>) attributes {dimension_semantics = [#tpu.dimension_semantics<parallel>], iteration_bounds = array<i64: 1>, scalar_prefetch = 0 : i64, scratch_operands = 0 : i64, tpu.core_type = #tpu.core_type<tc>, window_params = [{transform_indices = @transform_0, window_bounds = array<i64: 512, 1024>}, {pipeline_mode = #tpu.pipeline_mode<synchronous>, transform_indices = @transform_1, window_bounds = array<i64: 1024, 256>}, {pipeline_mode = #tpu.pipeline_mode<synchronous>, transform_indices = @transform_2, window_bounds = array<i64: 1, 256>}, {transform_indices = @transform_3, window_bounds = array<i64: 512, 256>}]} {
    %c0 = arith.constant 0 : index
    %c0_0 = arith.constant 0 : index
    %0 = vector.load %arg1[%c0, %c0_0] : memref<512x1024xbf16, #tpu.memory_space<vmem>>, vector<512x1024xbf16>
    %c0_1 = arith.constant 0 : index
    %c0_2 = arith.constant 0 : index
    %1 = vector.load %arg2[%c0_1, %c0_2] : memref<1024x256xbf16, #tpu.memory_space<vmem>>, vector<1024x256xbf16>
    %cst = arith.constant dense<0.000000e+00> : vector<512x256xf32>
    %2 = tpu.matmul %0, %1, %cst {dimension_numbers = #tpu.dot_dimension_numbers<[1], [0], [0], [1], [0, 0, 1, 1], [], []>} : vector<512x1024xbf16>, vector<1024x256xbf16>, vector<512x256xf32> -> vector<512x256xf32>
    %c0_3 = arith.constant 0 : index
    %c0_4 = arith.constant 0 : index
    %3 = vector.load %arg3[%c0_3, %c0_4] : memref<1x256xf32, #tpu.memory_space<vmem>>, vector<1x256xf32>
    %4 = vector.broadcast %3 : vector<1x256xf32> to vector<512x256xf32>
    %5 = arith.addf %2, %4 : vector<512x256xf32>
    %6 = arith.truncf %5 : vector<512x256xf32> to vector<512x256xbf16>
    %c0_5 = arith.constant 0 : index
    %c0_6 = arith.constant 0 : index
    %7 = vector.load %arg4[%c0_5, %c0_6] : memref<512x256xbf16, #tpu.memory_space<vmem>>, vector<512x256xbf16>
    tpu.vector_store %arg4[%c0_5, %c0_6], %6 {strides = array<i32>} : memref<512x256xbf16, #tpu.memory_space<vmem>>, vector<512x256xbf16>,
    return
  }
  func.func @transform_0(%arg0: i32) -> (i32, i32) {
    %c0_i32 = arith.constant 0 : i32
    %c0_i32_0 = arith.constant 0 : i32
    return %arg0, %c0_i32 : i32, i32
  }
  func.func @transform_1(%arg0: i32) -> (i32, i32) {
    %c0_i32 = arith.constant 0 : i32
    %c0_i32_0 = arith.constant 0 : i32
    %c0_i32_1 = arith.constant 0 : i32
    return %c0_i32, %c0_i32_0 : i32, i32
  }
  func.func @transform_2(%arg0: i32) -> (i32, i32) {
    %c0_i32 = arith.constant 0 : i32
    %c0_i32_0 = arith.constant 0 : i32
    %c0_i32_1 = arith.constant 0 : i32
    return %c0_i32, %c0_i32_0 : i32, i32
  }
  func.func @transform_3(%arg0: i32) -> (i32, i32) {
    %c0_i32 = arith.constant 0 : i32
    %c0_i32_0 = arith.constant 0 : i32
    return %arg0, %c0_i32 : i32, i32
  }
}

module attributes {stable_mosaic.version = 11 : i64} {
  func.func @kernel(%arg0: i32, %arg1: i32, %arg2: memref<512x512xbf16, #tpu.memory_space<vmem>>, %arg3: memref<512x256xbf16, #tpu.memory_space<vmem>>, %arg4: memref<512x256xf32, #tpu.memory_space<vmem>>) attributes {dimension_semantics = [#tpu.dimension_semantics<parallel>, #tpu.dimension_semantics<arbitrary>], iteration_bounds = array<i64: 1, 1>, scalar_prefetch = 0 : i64, scratch_operands = 0 : i64, tpu.core_type = #tpu.core_type<tc>, window_params = [{transform_indices = @transform_0, window_bounds = array<i64: 512, 512>}, {transform_indices = @transform_1, window_bounds = array<i64: 512, 256>}, {transform_indices = @transform_2, window_bounds = array<i64: 512, 256>}]} {
    %c0_i32 = arith.constant 0 : i32
    %0 = arith.cmpi eq, %arg1, %c0_i32 : i32
    %1 = arith.extui %0 : i1 to i32
    %c0_i32_0 = arith.constant 0 : i32
    %2 = arith.cmpi ne, %1, %c0_i32_0 : i32
    scf.if %2 {
      %cst_8 = arith.constant 0.000000e+00 : f32
      %9 = vector.broadcast %cst_8 : f32 to vector<512x256xf32>
      %c0_9 = arith.constant 0 : index
      %c0_10 = arith.constant 0 : index
      %10 = vector.load %arg4[%c0_9, %c0_10] : memref<512x256xf32, #tpu.memory_space<vmem>>, vector<512x256xf32>
      tpu.vector_store %arg4[%c0_9, %c0_10], %9 {strides = array<i32>} : memref<512x256xf32, #tpu.memory_space<vmem>>, vector<512x256xf32>,
    } else {
    }
    %c0 = arith.constant 0 : index
    %c0_1 = arith.constant 0 : index
    %3 = vector.load %arg2[%c0, %c0_1] : memref<512x512xbf16, #tpu.memory_space<vmem>>, vector<512x512xbf16>
    %c0_2 = arith.constant 0 : index
    %c0_3 = arith.constant 0 : index
    %4 = vector.load %arg3[%c0_2, %c0_3] : memref<512x256xbf16, #tpu.memory_space<vmem>>, vector<512x256xbf16>
    %c0_4 = arith.constant 0 : index
    %c0_5 = arith.constant 0 : index
    %5 = vector.load %arg4[%c0_4, %c0_5] : memref<512x256xf32, #tpu.memory_space<vmem>>, vector<512x256xf32>
    %cst = arith.constant dense<0.000000e+00> : vector<512x256xf32>
    %6 = tpu.matmul %3, %4, %cst {dimension_numbers = #tpu.dot_dimension_numbers<[1], [0], [0], [1], [0, 0, 1, 1], [], []>} : vector<512x512xbf16>, vector<512x256xbf16>, vector<512x256xf32> -> vector<512x256xf32>
    %7 = arith.addf %5, %6 : vector<512x256xf32>
    %c0_6 = arith.constant 0 : index
    %c0_7 = arith.constant 0 : index
    %8 = vector.load %arg4[%c0_6, %c0_7] : memref<512x256xf32, #tpu.memory_space<vmem>>, vector<512x256xf32>
    tpu.vector_store %arg4[%c0_6, %c0_7], %7 {strides = array<i32>} : memref<512x256xf32, #tpu.memory_space<vmem>>, vector<512x256xf32>,
    return
  }
  func.func @transform_0(%arg0: i32, %arg1: i32) -> (i32, i32) {
    %c0_i32 = arith.constant 0 : i32
    return %arg0, %arg1 : i32, i32
  }
  func.func @transform_1(%arg0: i32, %arg1: i32) -> (i32, i32) {
    %c0_i32 = arith.constant 0 : i32
    %c0_i32_0 = arith.constant 0 : i32
    return %arg1, %c0_i32 : i32, i32
  }
  func.func @transform_2(%arg0: i32, %arg1: i32) -> (i32, i32) {
    %c0_i32 = arith.constant 0 : i32
    %c0_i32_0 = arith.constant 0 : i32
    return %arg0, %c0_i32 : i32, i32
  }
}

</mosaic_0001>

<bundles_post_ra>
// kernel: hgnn_conv_mi_sim_forward.3
= control target key start
LH: loop header
LB: loop body
LE: loop exit
PB: predicated region body
PF: predicated region fallthrough
CT: control target
= control target key end

     0   :  { %s5725_s0 = inlined_call_operand.vmem [shape: bf16[512,512], index: 0, kind: input, shape index: {}]   ;;  %s5726_s1 = inlined_call_operand.vmem [shape: bf16[512,256], index: 1, kind: input, shape index: {}]   ;;  %s5727_s2 = inlined_call_operand.hbm [shape: f32[512,256], index: 2, kind: output, shape index: {}]  }
   0x1   :  { %v3620_v0 = vld [vmem:[%s5726_s1 + $0x70] sm:$0xf]  ;;  %v3961_v1 = vld [vmem:[%s5726_s1 + $0x74] sm:$0xf0]  ;;  %v3612_v11 = vld [vmem:[%s5726_s1 + $0x60] sm:$0xf] }
   0x2   :  { %v3684_v2 = vld [vmem:[%s5726_s1 + $0xf0] sm:$0xf]  ;;  %v3621_v3 = vor.u32 %v3961_v1, %v3620_v0  ;;  %v3977_v4 = vld [vmem:[%s5726_s1 + $0xf4] sm:$0xf0]  ;;  %v3959_v13 = vld [vmem:[%s5726_s1 + $0x64] sm:$0xf0] }
   0x3   :  { %v3748_v5 = vld [vmem:[%s5726_s1 + $0x170] sm:$0xf]  ;;  %v3993_v6 = vld [vmem:[%s5726_s1 + $0x174] sm:$0xf0]  ;;  %v3685_v7 = vor.u32 %v3977_v4, %v3684_v2  ;;  %v3676_v14 = vld [vmem:[%s5726_s1 + $0xe0] sm:$0xf]  ;;  %v3613_v16 = vor.u32 %v3959_v13, %v3612_v11 }
   0x4   :  { %v3749_v8 = vor.u32 %v3993_v6, %v3748_v5  ;;  %v3812_v9 = vld [vmem:[%s5726_s1 + $0x1f0] sm:$0xf]  ;;  %v4009_v10 = vld [vmem:[%s5726_s1 + $0x1f4] sm:$0xf0]  ;;  %1424 = vmatpush.bf16.msra.mxu0 %v3621_v3  ;;  %v3975_v15 = vld [vmem:[%s5726_s1 + $0xe4] sm:$0xf0] }
   0x5   :  { %v3813_v12 = vor.u32 %v4009_v10, %v3812_v9  ;;  %1593 = vmatpush.bf16.msra.mxu1 %v3685_v7  ;;  %v3677_v17 = vor.u32 %v3975_v15, %v3676_v14  ;;  %v3740_v18 = vld [vmem:[%s5726_s1 + $0x160] sm:$0xf]  ;;  %v3991_v19 = vld [vmem:[%s5726_s1 + $0x164] sm:$0xf0]  ;;  %v3604_v23 = vld [vmem:[%s5726_s1 + $0x50] sm:$0xf] }
   0x6   :  { %1762 = vmatpush.bf16.msra.mxu2 %v3749_v8  ;;  %v3804_v20 = vld [vmem:[%s5726_s1 + $0x1e0] sm:$0xf]  ;;  %v3741_v21 = vor.u32 %v3991_v19, %v3740_v18  ;;  %v4007_v22 = vld [vmem:[%s5726_s1 + $0x1e4] sm:$0xf0]  ;;  %v3957_v24 = vld [vmem:[%s5726_s1 + $0x54] sm:$0xf0] }
   0x7   :  { %1931 = vmatpush.bf16.msra.mxu3 %v3813_v12  ;;  %v3805_v25 = vor.u32 %v4007_v22, %v3804_v20  ;;  %v3668_v26 = vld [vmem:[%s5726_s1 + $0xd0] sm:$0xf]  ;;  %v3973_v27 = vld [vmem:[%s5726_s1 + $0xd4] sm:$0xf0]  ;;  %v3605_v29 = vor.u32 %v3957_v24, %v3604_v23  ;;  %v3596_v35 = vld [vmem:[%s5726_s1 + $0x40] sm:$0xf] }
   0x8   :  { %v3732_v28 = vld [vmem:[%s5726_s1 + $0x150] sm:$0xf]  ;;  %1425 = vmatpush.bf16.msra.mxu0 %v3613_v16  ;;  %v3989_v30 = vld [vmem:[%s5726_s1 + $0x154] sm:$0xf0]  ;;  %v3669_v33 = vor.u32 %v3973_v27, %v3668_v26  ;;  %v3955_v36 = vld [vmem:[%s5726_s1 + $0x44] sm:$0xf0] }
   0x9   :  { %v3796_v31 = vld [vmem:[%s5726_s1 + $0x1d0] sm:$0xf]  ;;  %v4005_v32 = vld [vmem:[%s5726_s1 + $0x1d4] sm:$0xf0]  ;;  %1594 = vmatpush.bf16.msra.mxu1 %v3677_v17  ;;  %v3733_v34 = vor.u32 %v3989_v30, %v3732_v28  ;;  %v3660_v37 = vld [vmem:[%s5726_s1 + $0xc0] sm:$0xf]  ;;  %v3597_v44 = vor.u32 %v3955_v36, %v3596_v35 }
   0xa   :  { %1763 = vmatpush.bf16.msra.mxu2 %v3741_v21  ;;  %v3797_v38 = vor.u32 %v4005_v32, %v3796_v31  ;;  %v3971_v39 = vld [vmem:[%s5726_s1 + $0xc4] sm:$0xf0]  ;;  %v3724_v40 = vld [vmem:[%s5726_s1 + $0x140] sm:$0xf]  ;;  %v3588_v47 = vld [vmem:[%s5726_s1 + $0x30] sm:$0xf] }
   0xb   :  { %1932 = vmatpush.bf16.msra.mxu3 %v3805_v25  ;;  %v3987_v41 = vld [vmem:[%s5726_s1 + $0x144] sm:$0xf0]  ;;  %v3788_v42 = vld [vmem:[%s5726_s1 + $0x1c0] sm:$0xf]  ;;  %v3661_v45 = vor.u32 %v3971_v39, %v3660_v37  ;;  %v3953_v48 = vld [vmem:[%s5726_s1 + $0x34] sm:$0xf0] }
   0xc   :  { %v4003_v43 = vld [vmem:[%s5726_s1 + $0x1c4] sm:$0xf0]  ;;  %1426 = vmatpush.bf16.msra.mxu0 %v3605_v29  ;;  %v3725_v46 = vor.u32 %v3987_v41, %v3724_v40  ;;  %v3652_v49 = vld [vmem:[%s5726_s1 + $0xb0] sm:$0xf]  ;;  %v3969_v51 = vld [vmem:[%s5726_s1 + $0xb4] sm:$0xf0]  ;;  %v3589_v56 = vor.u32 %v3953_v48, %v3588_v47 }
   0xd   :  { %1595 = vmatpush.bf16.msra.mxu1 %v3669_v33  ;;  %v3789_v50 = vor.u32 %v4003_v43, %v3788_v42  ;;  %v3716_v52 = vld [vmem:[%s5726_s1 + $0x130] sm:$0xf]  ;;  %v3985_v53 = vld [vmem:[%s5726_s1 + $0x134] sm:$0xf0]  ;;  %v3653_v57 = vor.u32 %v3969_v51, %v3652_v49  ;;  %v3580_v59 = vld [vmem:[%s5726_s1 + $0x20] sm:$0xf] }
   0xe   :  { %1764 = vmatpush.bf16.msra.mxu2 %v3733_v34  ;;  %v3780_v54 = vld [vmem:[%s5726_s1 + $0x1b0] sm:$0xf]  ;;  %v4001_v55 = vld [vmem:[%s5726_s1 + $0x1b4] sm:$0xf0]  ;;  %v3717_v58 = vor.u32 %v3985_v53, %v3716_v52  ;;  %v3951_v60 = vld [vmem:[%s5726_s1 + $0x24] sm:$0xf0] }
   0xf   :  { %1933 = vmatpush.bf16.msra.mxu3 %v3797_v38  ;;  %v3644_v61 = vld [vmem:[%s5726_s1 + $0xa0] sm:$0xf]  ;;  %v3781_v62 = vor.u32 %v4001_v55, %v3780_v54  ;;  %v3967_v63 = vld [vmem:[%s5726_s1 + $0xa4] sm:$0xf0]  ;;  %v3581_v4 = vor.u32 %v3951_v60, %v3580_v59  ;;  %v3572_v7 = vld [vmem:[%s5726_s1 + $0x10] sm:$0xf] }
  0x10   :  { %1427 = vmatpush.bf16.msra.mxu0 %v3597_v44  ;;  %v3708_v0 = vld [vmem:[%s5726_s1 + $0x120] sm:$0xf]  ;;  %v3983_v1 = vld [vmem:[%s5726_s1 + $0x124] sm:$0xf0]  ;;  %v3645_v5 = vor.u32 %v3967_v63, %v3644_v61  ;;  %v3949_v8 = vld [vmem:[%s5726_s1 + $0x14] sm:$0xf0] }
  0x11   :  { %1596 = vmatpush.bf16.msra.mxu1 %v3661_v45  ;;  %v3772_v2 = vld [vmem:[%s5726_s1 + $0x1a0] sm:$0xf]  ;;  %v3999_v3 = vld [vmem:[%s5726_s1 + $0x1a4] sm:$0xf0]  ;;  %v3709_v6 = vor.u32 %v3983_v1, %v3708_v0  ;;  %v3636_v9 = vld [vmem:[%s5726_s1 + $0x90] sm:$0xf]  ;;  %v3573_v17 = vor.u32 %v3949_v8, %v3572_v7 }
  0x12   :  { %1765 = vmatpush.bf16.msra.mxu2 %v3725_v46  ;;  %v3773_v10 = vor.u32 %v3999_v3, %v3772_v2  ;;  %v3965_v11 = vld [vmem:[%s5726_s1 + $0x94] sm:$0xf0]  ;;  %v3700_v12 = vld [vmem:[%s5726_s1 + $0x110] sm:$0xf]  ;;  %v3564_v16 = vld [vmem:[%s5726_s1] sm:$0xf] }
  0x13   :  { %1934 = vmatpush.bf16.msra.mxu3 %v3789_v50  ;;  %v3981_v13 = vld [vmem:[%s5726_s1 + $0x114] sm:$0xf0]  ;;  %v3764_v14 = vld [vmem:[%s5726_s1 + $0x190] sm:$0xf]  ;;  %v3947_v18 = vld [vmem:[%s5726_s1 + $0x4] sm:$0xf0]  ;;  %v3637_v21 = vor.u32 %v3965_v11, %v3636_v9 }
  0x14   :  { %1428 = vmatpush.bf16.msra.mxu0 %v3589_v56  ;;  %v3997_v15 = vld [vmem:[%s5726_s1 + $0x194] sm:$0xf0]  ;;  %v3628_v19 = vld [vmem:[%s5726_s1 + $0x80] sm:$0xf]  ;;  %v3963_v20 = vld [vmem:[%s5726_s1 + $0x84] sm:$0xf0]  ;;  %v3701_v22 = vor.u32 %v3981_v13, %v3700_v12  ;;  %v3565_v33 = vor.u32 %v3947_v18, %v3564_v16 }
  0x15   :  { %1597 = vmatpush.bf16.msra.mxu1 %v3653_v57  ;;  %v3692_v23 = vld [vmem:[%s5726_s1 + $0x100] sm:$0xf]  ;;  %v3979_v24 = vld [vmem:[%s5726_s1 + $0x104] sm:$0xf0]  ;;  %v3765_v26 = vor.u32 %v3997_v15, %v3764_v14  ;;  %v3820_v29 = vld [vmem:[%s5725_s0 + $0xc] sm:$0xf0]  ;;  %v3629_v37 = vor.u32 %v3963_v20, %v3628_v19 }
  0x16   :  { %1766 = vmatpush.bf16.msra.mxu2 %v3717_v58  ;;  %v3756_v25 = vld [vmem:[%s5726_s1 + $0x180] sm:$0xf]  ;;  %v3995_v27 = vld [vmem:[%s5726_s1 + $0x184] sm:$0xf0]  ;;  %v3818_v30 = vld [vmem:[%s5725_s0 + $0x4] sm:$0xf]  ;;  %v3693_v38 = vor.u32 %v3979_v24, %v3692_v23 }
  0x17   :  { %1935 = vmatpush.bf16.msra.mxu3 %v3781_v62  ;;  %v3052_v28 = vld [vmem:[%s5725_s0] sm:$0xf]  ;;  %v3992_v31 = vld [vmem:[%s5726_s1 + $0x174] sm:$0xf]  ;;  %v3750_v32 = vld [vmem:[%s5726_s1 + $0x178] sm:$0xf0]  ;;  %v3757_v42 = vor.u32 %v3995_v27, %v3756_v25 }
  0x18   :  { %1429 = vmatpush.bf16.msra.mxu0 %v3581_v4  ;;  %v3054_v34 = vld [vmem:[%s5725_s0 + $0x10] sm:$0xf0]  ;;  %v3814_v36 = vld [vmem:[%s5726_s1 + $0x1f8] sm:$0xf0]  ;;  %v3060_v39 = vld [vmem:[%s5725_s0 + $0x8] sm:$0xf]  ;;  %v3753_v44 = vor.u32 %v3992_v31, %v3750_v32  ;;  %v4292_v47 = vor.u32 %v3820_v29, %v3052_v28 }
  0x19   :  { %1598 = vmatpush.bf16.msra.mxu1 %v3645_v5  ;;  %v4008_v35 = vld [vmem:[%s5726_s1 + $0x1f4] sm:$0xf]  ;;  %v3821_v40 = vld [vmem:[%s5725_s0 + $0x14] sm:$0xf0]  ;;  %v3819_v41 = vld [vmem:[%s5725_s0 + $0xc] sm:$0xf] }
  0x1a   :  { %1767 = vmatpush.bf16.msra.mxu2 %v3709_v6  ;;  %v3062_v43 = vld [vmem:[%s5725_s0 + $0x18] sm:$0xf0]  ;;  %v3960_v45 = vld [vmem:[%s5726_s1 + $0x74] sm:$0xf]  ;;  %v3817_v48 = vor.u32 %v4008_v35, %v3814_v36 }
  0x1b   :  { %1936 = vmatpush.bf16.msra.mxu3 %v3773_v10  ;;  %v3622_v46 = vld [vmem:[%s5726_s1 + $0x78] sm:$0xf0]  ;;  %v3976_v49 = vld [vmem:[%s5726_s1 + $0xf4] sm:$0xf] }
  0x1c   :  { %1430 = vmatpush.bf16.msra.mxu0 %v3573_v17  ;;  %v3686_v50 = vld [vmem:[%s5726_s1 + $0xf8] sm:$0xf0] }
  0x1d   :  { %1599 = vmatpush.bf16.msra.mxu1 %v3637_v21 }
  0x1e   :  { %1768 = vmatpush.bf16.msra.mxu2 %v3701_v22 }
  0x1f   :  { %1937 = vmatpush.bf16.msra.mxu3 %v3765_v26 }
  0x20   :  { %7 = vsyncpa [#allocation3], 0  ;;  %1431 = vmatpush.bf16.msra.mxu0 %v3565_v33  ;;  %v4300_v51 = vor.u32 %v3818_v30, %v3054_v34  ;;  %v4302_v52 = vor.u32 %v3821_v40, %v3060_v39  ;;  %v4304_v53 = vor.u32 %v3819_v41, %v3062_v43  ;;  %v3625_v54 = vor.u32 %v3960_v45, %v3622_v46  ;;  %v3068_v56 = vld [vmem:[%s5725_s0 + $0x20] sm:$0xf]  ;;  %v3824_v57 = vld [vmem:[%s5725_s0 + $0x2c] sm:$0xf0] }
  0x21   :  { %1600 = vmatpush.bf16.msra.mxu1 %v3629_v37  ;;  %v3689_v55 = vor.u32 %v3976_v49, %v3686_v50  ;;  %v3822_v58 = vld [vmem:[%s5725_s0 + $0x24] sm:$0xf]  ;;  %v3070_v59 = vld [vmem:[%s5725_s0 + $0x30] sm:$0xf0]  ;;  %v3076_v60 = vld [vmem:[%s5725_s0 + $0x28] sm:$0xf]  ;;  %v4334_v0 = vor.u32 %v3824_v57, %v3068_v56 }
  0x22   :  { %1769 = vmatpush.bf16.msra.mxu2 %v3693_v38  ;;  %v3825_v61 = vld [vmem:[%s5725_s0 + $0x34] sm:$0xf0]  ;;  %v3823_v62 = vld [vmem:[%s5725_s0 + $0x2c] sm:$0xf]  ;;  %v3078_v63 = vld [vmem:[%s5725_s0 + $0x38] sm:$0xf0]  ;;  %v4336_v1 = vor.u32 %v3822_v58, %v3070_v59 }
  0x23   :  { %1938 = vmatpush.bf16.msra.mxu3 %v3757_v42  ;;  %1432 = vmatmul.bf16.vlgmr.msra.gmra.mxu0 %v4292_v47  ;;  %v4338_v2 = vor.u32 %v3825_v61, %v3076_v60  ;;  %v4340_v3 = vor.u32 %v3823_v62, %v3078_v63  ;;  %v3084_v4 = vld [vmem:[%s5725_s0 + $0x40] sm:$0xf]  ;;  %v3828_v5 = vld [vmem:[%s5725_s0 + $0x4c] sm:$0xf0]  ;;  %v3826_v6 = vld [vmem:[%s5725_s0 + $0x44] sm:$0xf] }
  0x24   :  { %1601 = vmatmul.bf16.vlgmr.msra.gmra.mxu1 %v4300_v51  ;;  %2100 = vmatpush.bf16.msrb.mxu0 %v3625_v54  ;;  %v3086_v7 = vld [vmem:[%s5725_s0 + $0x50] sm:$0xf0]  ;;  %v3092_v8 = vld [vmem:[%s5725_s0 + $0x48] sm:$0xf]  ;;  %v3829_v9 = vld [vmem:[%s5725_s0 + $0x54] sm:$0xf0]  ;;  %v4370_v12 = vor.u32 %v3828_v5, %v3084_v4 }
  0x25   :  { %1770 = vmatmul.bf16.vlgmr.msra.gmra.mxu2 %v4302_v52  ;;  %2269 = vmatpush.bf16.msrb.mxu1 %v3689_v55  ;;  %v3827_v10 = vld [vmem:[%s5725_s0 + $0x4c] sm:$0xf]  ;;  %v3094_v11 = vld [vmem:[%s5725_s0 + $0x58] sm:$0xf0]  ;;  %v4372_v13 = vor.u32 %v3826_v6, %v3086_v7  ;;  %v4374_v14 = vor.u32 %v3829_v9, %v3092_v8  ;;  %v3990_v16 = vld [vmem:[%s5726_s1 + $0x164] sm:$0xf] }
  0x26   :  { %2438 = vmatpush.bf16.msrb.mxu2 %v3753_v44  ;;  %1939 = vmatmul.bf16.vlgmr.msra.gmra.mxu3 %v4304_v53  ;;  %v4376_v15 = vor.u32 %v3827_v10, %v3094_v11  ;;  %v3742_v17 = vld [vmem:[%s5726_s1 + $0x168] sm:$0xf0]  ;;  %v4006_v18 = vld [vmem:[%s5726_s1 + $0x1e4] sm:$0xf]  ;;  %v3100_v28 = vld [vmem:[%s5725_s0 + $0x60] sm:$0xf] }
  0x27   :  { %2607 = vmatpush.bf16.msrb.mxu3 %v3817_v48  ;;  %v3745_v19 = vor.u32 %v3990_v16, %v3742_v17  ;;  %v3806_v20 = vld [vmem:[%s5726_s1 + $0x1e8] sm:$0xf0]  ;;  %v3958_v21 = vld [vmem:[%s5726_s1 + $0x64] sm:$0xf]  ;;  %v3832_v29 = vld [vmem:[%s5725_s0 + $0x6c] sm:$0xf0] }
  0x28   :  { %v3614_v22 = vld [vmem:[%s5726_s1 + $0x68] sm:$0xf0]  ;;  %v3809_v23 = vor.u32 %v4006_v18, %v3806_v20  ;;  %v3974_v25 = vld [vmem:[%s5726_s1 + $0xe4] sm:$0xf]  ;;  %v3102_v31 = vld [vmem:[%s5725_s0 + $0x70] sm:$0xf0]  ;;  %v4430_v36 = vor.u32 %v3832_v29, %v3100_v28 }
  0x29   :  { %v3617_v24 = vor.u32 %v3958_v21, %v3614_v22  ;;  %v3678_v26 = vld [vmem:[%s5726_s1 + $0xe8] sm:$0xf0]  ;;  %v3830_v30 = vld [vmem:[%s5725_s0 + $0x64] sm:$0xf]  ;;  %v3108_v32 = vld [vmem:[%s5725_s0 + $0x68] sm:$0xf] }
  0x2a   :  { %2439 = vmatpush.bf16.msrb.mxu2 %v3745_v19  ;;  %v3681_v27 = vor.u32 %v3974_v25, %v3678_v26  ;;  %v3833_v33 = vld [vmem:[%s5725_s0 + $0x74] sm:$0xf0]  ;;  %v3831_v34 = vld [vmem:[%s5725_s0 + $0x6c] sm:$0xf]  ;;  %v3110_v35 = vld [vmem:[%s5725_s0 + $0x78] sm:$0xf0]  ;;  %v4432_v37 = vor.u32 %v3830_v30, %v3102_v31 }
  0x2b   :  { %2608 = vmatpush.bf16.msrb.mxu3 %v3809_v23  ;;  %2101 = vmatpush.bf16.msrb.mxu0 %v3617_v24  ;;  %v4434_v38 = vor.u32 %v3833_v33, %v3108_v32  ;;  %v4436_v39 = vor.u32 %v3831_v34, %v3110_v35  ;;  %v3116_v40 = vld [vmem:[%s5725_s0 + $0x80] sm:$0xf]  ;;  %v3836_v41 = vld [vmem:[%s5725_s0 + $0x8c] sm:$0xf0]  ;;  %v3834_v42 = vld [vmem:[%s5725_s0 + $0x84] sm:$0xf] }
  0x2c   :  { %2270 = vmatpush.bf16.msrb.mxu1 %v3681_v27  ;;  %v3118_v43 = vld [vmem:[%s5725_s0 + $0x90] sm:$0xf0]  ;;  %v3124_v44 = vld [vmem:[%s5725_s0 + $0x88] sm:$0xf]  ;;  %v3837_v45 = vld [vmem:[%s5725_s0 + $0x94] sm:$0xf0]  ;;  %v4466_v49 = vor.u32 %v3836_v41, %v3116_v40 }
  0x2d   :  { %v3835_v46 = vld [vmem:[%s5725_s0 + $0x8c] sm:$0xf]  ;;  %v3126_v48 = vld [vmem:[%s5725_s0 + $0x98] sm:$0xf0]  ;;  %v4468_v50 = vor.u32 %v3834_v42, %v3118_v43  ;;  %v4470_v54 = vor.u32 %v3837_v45, %v3124_v44  ;;  %v3132_v56 = vld [vmem:[%s5725_s0 + $0xa0] sm:$0xf] }
  0x2e   :  { %v4472_v55 = vor.u32 %v3835_v46, %v3126_v48  ;;  %v3840_v57 = vld [vmem:[%s5725_s0 + $0xac] sm:$0xf0]  ;;  %v3838_v58 = vld [vmem:[%s5725_s0 + $0xa4] sm:$0xf]  ;;  %v3134_v59 = vld [vmem:[%s5725_s0 + $0xb0] sm:$0xf0] }
  0x2f   :  { %v3140_v60 = vld [vmem:[%s5725_s0 + $0xa8] sm:$0xf]  ;;  %v3841_v61 = vld [vmem:[%s5725_s0 + $0xb4] sm:$0xf0]  ;;  %v3839_v62 = vld [vmem:[%s5725_s0 + $0xac] sm:$0xf]  ;;  %v4502_v4 = vor.u32 %v3840_v57, %v3132_v56  ;;  %v4504_v5 = vor.u32 %v3838_v58, %v3134_v59 }
  0x30   :  { %v3142_v63 = vld [vmem:[%s5725_s0 + $0xb8] sm:$0xf0]  ;;  %v4506_v6 = vor.u32 %v3841_v61, %v3140_v60  ;;  %v3148_v8 = vld [vmem:[%s5725_s0 + $0xc0] sm:$0xf]  ;;  %v3844_v9 = vld [vmem:[%s5725_s0 + $0xcc] sm:$0xf0] }
  0x31   :  { %v4508_v7 = vor.u32 %v3839_v62, %v3142_v63  ;;  %v3842_v10 = vld [vmem:[%s5725_s0 + $0xc4] sm:$0xf]  ;;  %v3150_v11 = vld [vmem:[%s5725_s0 + $0xd0] sm:$0xf0]  ;;  %v3156_v16 = vld [vmem:[%s5725_s0 + $0xc8] sm:$0xf]  ;;  %v4538_v20 = vor.u32 %v3844_v9, %v3148_v8 }
  0x32   :  { %v3845_v17 = vld [vmem:[%s5725_s0 + $0xd4] sm:$0xf0]  ;;  %v3843_v18 = vld [vmem:[%s5725_s0 + $0xcc] sm:$0xf]  ;;  %v3158_v19 = vld [vmem:[%s5725_s0 + $0xd8] sm:$0xf0]  ;;  %v4540_v21 = vor.u32 %v3842_v10, %v3150_v11 }
  0x33   :  { %1437 = vmatmul.bf16.gmra.mxu0 %v4334_v0  ;;  %v4542_v22 = vor.u32 %v3845_v17, %v3156_v16  ;;  %v4544_v23 = vor.u32 %v3843_v18, %v3158_v19  ;;  %v3988_v24 = vld [vmem:[%s5726_s1 + $0x154] sm:$0xf]  ;;  %v3734_v25 = vld [vmem:[%s5726_s1 + $0x158] sm:$0xf0]  ;;  %v3164_v30 = vld [vmem:[%s5725_s0 + $0xe0] sm:$0xf] }
  0x34   :  { %1606 = vmatmul.bf16.gmra.mxu1 %v4336_v1  ;;  %v4004_v26 = vld [vmem:[%s5726_s1 + $0x1d4] sm:$0xf]  ;;  %v3737_v27 = vor.u32 %v3988_v24, %v3734_v25  ;;  %v3798_v28 = vld [vmem:[%s5726_s1 + $0x1d8] sm:$0xf0]  ;;  %v3848_v31 = vld [vmem:[%s5725_s0 + $0xec] sm:$0xf0] }
  0x35   :  { %1775 = vmatmul.bf16.gmra.mxu2 %v4338_v2  ;;  %v3801_v29 = vor.u32 %v4004_v26, %v3798_v28  ;;  %v3846_v32 = vld [vmem:[%s5725_s0 + $0xe4] sm:$0xf]  ;;  %v3166_v33 = vld [vmem:[%s5725_s0 + $0xf0] sm:$0xf0]  ;;  %v3172_v34 = vld [vmem:[%s5725_s0 + $0xe8] sm:$0xf]  ;;  %v4595_v45 = vor.u32 %v3848_v31, %v3164_v30 }
  0x36   :  { %1944 = vmatmul.bf16.gmra.mxu3 %v4340_v3  ;;  %2440 = vmatpush.bf16.msrb.mxu2 %v3737_v27  ;;  %v3849_v35 = vld [vmem:[%s5725_s0 + $0xf4] sm:$0xf0]  ;;  %v3847_v40 = vld [vmem:[%s5725_s0 + $0xec] sm:$0xf]  ;;  %v3174_v41 = vld [vmem:[%s5725_s0 + $0xf8] sm:$0xf0]  ;;  %v4600_v56 = vor.u32 %v3846_v32, %v3166_v33 }
  0x37   :  { %2609 = vmatpush.bf16.msrb.mxu3 %v3801_v29  ;;  %v3956_v42 = vld [vmem:[%s5726_s1 + $0x54] sm:$0xf]  ;;  %v3606_v43 = vld [vmem:[%s5726_s1 + $0x58] sm:$0xf0]  ;;  %v4602_v57 = vor.u32 %v3849_v35, %v3172_v34  ;;  %v4604_v59 = vor.u32 %v3847_v40, %v3174_v41  ;;  %v3180_v60 = vld [vmem:[%s5725_s0 + $0x100] sm:$0xf] }
  0x38   :  { %v3972_v44 = vld [vmem:[%s5726_s1 + $0xd4] sm:$0xf]  ;;  %v3609_v46 = vor.u32 %v3956_v42, %v3606_v43  ;;  %v3670_v48 = vld [vmem:[%s5726_s1 + $0xd8] sm:$0xf0]  ;;  %v3852_v61 = vld [vmem:[%s5725_s0 + $0x10c] sm:$0xf0] }
  0x39   :  { %v3673_v58 = vor.u32 %v3972_v44, %v3670_v48  ;;  %v3850_v62 = vld [vmem:[%s5725_s0 + $0x104] sm:$0xf]  ;;  %v3182_v63 = vld [vmem:[%s5725_s0 + $0x110] sm:$0xf0]  ;;  %v3188_v8 = vld [vmem:[%s5725_s0 + $0x108] sm:$0xf]  ;;  %v4634_v16 = vor.u32 %v3852_v61, %v3180_v60 }
  0x3a   :  { %2102 = vmatpush.bf16.msrb.mxu0 %v3609_v46  ;;  %v3853_v9 = vld [vmem:[%s5725_s0 + $0x114] sm:$0xf0]  ;;  %v3851_v10 = vld [vmem:[%s5725_s0 + $0x10c] sm:$0xf]  ;;  %v3190_v11 = vld [vmem:[%s5725_s0 + $0x118] sm:$0xf0]  ;;  %v4636_v18 = vor.u32 %v3850_v62, %v3182_v63 }
  0x3b   :  { %2271 = vmatpush.bf16.msrb.mxu1 %v3673_v58  ;;  %v4638_v19 = vor.u32 %v3853_v9, %v3188_v8  ;;  %v4640_v25 = vor.u32 %v3851_v10, %v3190_v11  ;;  %v3196_v33 = vld [vmem:[%s5725_s0 + $0x120] sm:$0xf]  ;;  %v3856_v34 = vld [vmem:[%s5725_s0 + $0x12c] sm:$0xf0]  ;;  %v3854_v35 = vld [vmem:[%s5725_s0 + $0x124] sm:$0xf] }
  0x3c   :  { %v3198_v40 = vld [vmem:[%s5725_s0 + $0x130] sm:$0xf0]  ;;  %v3204_v41 = vld [vmem:[%s5725_s0 + $0x128] sm:$0xf]  ;;  %v3857_v42 = vld [vmem:[%s5725_s0 + $0x134] sm:$0xf0]  ;;  %v4670_v58 = vor.u32 %v3856_v34, %v3196_v33 }
  0x3d   :  { %v3855_v44 = vld [vmem:[%s5725_s0 + $0x12c] sm:$0xf]  ;;  %v3206_v46 = vld [vmem:[%s5725_s0 + $0x138] sm:$0xf0]  ;;  %v4672_v63 = vor.u32 %v3854_v35, %v3198_v40  ;;  %v4674_v8 = vor.u32 %v3857_v42, %v3204_v41  ;;  %v3858_v33 = vld [vmem:[%s5725_s0 + $0x144] sm:$0xf] }
  0x3e   :  { %v4676_v10 = vor.u32 %v3855_v44, %v3206_v46  ;;  %v3214_v34 = vld [vmem:[%s5725_s0 + $0x150] sm:$0xf0]  ;;  %v3220_v35 = vld [vmem:[%s5725_s0 + $0x148] sm:$0xf]  ;;  %v3861_v40 = vld [vmem:[%s5725_s0 + $0x154] sm:$0xf0] }
  0x3f   :  { %v3859_v42 = vld [vmem:[%s5725_s0 + $0x14c] sm:$0xf]  ;;  %s3038_s21 = sshll.u32 %s5727_s2, 4  ;;  %s4041_s22 = smov 256   ;;  %s3039_s21 = int_to_ptr.hbm [resolvable:$true] %s3038_s21 }
  0x40   :  { %s4042_s23 = smov 16  }
  0x43   :  { %1442 = vmatmul.bf16.gmra.mxu0 %v4370_v12 }
  0x44   :  { %1611 = vmatmul.bf16.gmra.mxu1 %v4372_v13 }
  0x45   :  { %1780 = vmatmul.bf16.gmra.mxu2 %v4374_v14 }
  0x46   :  { %1949 = vmatmul.bf16.gmra.mxu3 %v4376_v15 }
  0x53   :  { %1447 = vmatmul.bf16.gmra.mxu0 %v4430_v36 }
  0x54   :  { %1616 = vmatmul.bf16.gmra.mxu1 %v4432_v37 }
  0x55   :  { %1785 = vmatmul.bf16.gmra.mxu2 %v4434_v38 }
  0x56   :  { %1954 = vmatmul.bf16.gmra.mxu3 %v4436_v39 }
  0x63   :  { %1452 = vmatmul.bf16.gmra.mxu0 %v4466_v49 }
  0x64   :  { %1621 = vmatmul.bf16.gmra.mxu1 %v4468_v50 }
  0x65   :  { %1790 = vmatmul.bf16.gmra.mxu2 %v4470_v54 }
  0x66   :  { %1959 = vmatmul.bf16.gmra.mxu3 %v4472_v55 }
  0x73   :  { %1457 = vmatmul.bf16.gmra.mxu0 %v4502_v4 }
  0x74   :  { %1626 = vmatmul.bf16.gmra.mxu1 %v4504_v5 }
  0x75   :  { %1795 = vmatmul.bf16.gmra.mxu2 %v4506_v6 }
  0x76   :  { %1964 = vmatmul.bf16.gmra.mxu3 %v4508_v7 }
  0x83   :  { %1462 = vmatmul.bf16.gmra.mxu0 %v4538_v20 }
  0x84   :  { %1631 = vmatmul.bf16.gmra.mxu1 %v4540_v21 }
  0x85   :  { %1800 = vmatmul.bf16.gmra.mxu2 %v4542_v22 }
  0x86   :  { %1969 = vmatmul.bf16.gmra.mxu3 %v4544_v23 }
  0x93   :  { %1467 = vmatmul.bf16.gmra.mxu0 %v4595_v45 }
  0x94   :  { %1636 = vmatmul.bf16.gmra.mxu1 %v4600_v56 }
  0x95   :  { %1805 = vmatmul.bf16.gmra.mxu2 %v4602_v57 }
  0x96   :  { %1974 = vmatmul.bf16.gmra.mxu3 %v4604_v59 }
  0xa0   :  { %v1433_v17 = vpop.f32.mrf.mxu0 }
  0xa1   :  { %v1602_v24 = vpop.f32.mrf.mxu1 }
  0xa2   :  { %v1603_v26 = vadd.f32 %v1602_v24, %v1433_v17 }
  0xa3   :  { %1472 = vmatmul.bf16.gmra.mxu0 %v4634_v16 }
  0xa4   :  { %1641 = vmatmul.bf16.gmra.mxu1 %v4636_v18 }
  0xa5   :  { %1810 = vmatmul.bf16.gmra.mxu2 %v4638_v19 }
  0xa6   :  { %1979 = vmatmul.bf16.gmra.mxu3 %v4640_v25 }
  0xa8   :  { %v1771_v27 = vpop.f32.mrf.mxu2  ;;  %v1435_v30 = vpop.f32.mrf.mxu0 }
  0xa9   :  { %v1772_v28 = vadd.f32 %v1771_v27, %v1603_v26  ;;  %v1940_v29 = vpop.f32.mrf.mxu3  ;;  %v1604_v31 = vpop.f32.mrf.mxu1 }
  0xaa   :  { %v1605_v43 = vadd.f32 %v1604_v31, %v1435_v30  ;;  %v3212_v31 = vld [vmem:[%s5725_s0 + $0x140] sm:$0xf] }
  0xab   :  { %v1941_v32 = vadd.f32 %v1940_v29, %v1772_v28 }
  0xad   :  { %2904 = vst [vmem:[#allocation2] sm:$0xff] %v1941_v32  ;;  %v3860_v32 = vld [vmem:[%s5725_s0 + $0x14c] sm:$0xf0] }
  0xae   :  { %v4706_v46 = vor.u32 %v3860_v32, %v3212_v31  ;;  %v4002_v31 = vld [vmem:[%s5726_s1 + $0x1c4] sm:$0xf]  ;;  %v3790_v32 = vld [vmem:[%s5726_s1 + $0x1c8] sm:$0xf0] }
  0xb0   :  { %v1773_v48 = vpop.f32.mrf.mxu2  ;;  %v1438_v62 = vpop.f32.mrf.mxu0 }
  0xb1   :  { %v1774_v60 = vadd.f32 %v1773_v48, %v1605_v43  ;;  %v1942_v61 = vpop.f32.mrf.mxu3  ;;  %v1607_v9 = vpop.f32.mrf.mxu1  ;;  %v3222_v43 = vld [vmem:[%s5725_s0 + $0x158] sm:$0xf0] }
  0xb2   :  { %v1608_v17 = vadd.f32 %v1607_v9, %v1438_v62  ;;  %v4708_v62 = vor.u32 %v3858_v33, %v3214_v34  ;;  %v4710_v9 = vor.u32 %v3861_v40, %v3220_v35  ;;  %v3793_v40 = vor.u32 %v4002_v31, %v3790_v32 }
  0xb3   :  { %v1943_v11 = vadd.f32 %v1942_v61, %v1774_v60  ;;  %1477 = vmatmul.bf16.gmra.mxu0 %v4670_v58 }
  0xb4   :  { %1646 = vmatmul.bf16.gmra.mxu1 %v4672_v63  ;;  %5808 = vst [vmem:[#allocation5_spill] sm:$0xff] %v4708_v62  ;;  %2610 = vmatpush.bf16.msrb.mxu3 %v3793_v40 }
  0xb5   :  { %1815 = vmatmul.bf16.gmra.mxu2 %v4674_v8  ;;  %2906 = vst [vmem:[#allocation2 + $0x10] sm:$0xff] %v1943_v11 }
  0xb6   :  { %1984 = vmatmul.bf16.gmra.mxu3 %v4676_v10  ;;  %5809 = vst [vmem:[#allocation6_spill] sm:$0xff] %v4710_v9 }
  0xb8   :  { %v1776_v24 = vpop.f32.mrf.mxu2  ;;  %v1440_v28 = vpop.f32.mrf.mxu0 }
  0xb9   :  { %v1777_v26 = vadd.f32 %v1776_v24, %v1608_v17  ;;  %v1945_v27 = vpop.f32.mrf.mxu3  ;;  %v1609_v29 = vpop.f32.mrf.mxu1  ;;  %v4712_v17 = vor.u32 %v3859_v42, %v3222_v43  ;;  %v3228_v43 = vld [vmem:[%s5725_s0 + $0x160] sm:$0xf] }
  0xba   :  { %v1610_v41 = vadd.f32 %v1609_v29, %v1440_v28  ;;  %v3726_v28 = vld [vmem:[%s5726_s1 + $0x148] sm:$0xf0] }
  0xbb   :  { %v1946_v30 = vadd.f32 %v1945_v27, %v1777_v26  ;;  %5810 = vst [vmem:[#allocation7_spill] sm:$0xff] %v4712_v17  ;;  %v3986_v27 = vld [vmem:[%s5726_s1 + $0x144] sm:$0xf] }
  0xbd   :  { %2908 = vst [vmem:[#allocation2 + $0x20] sm:$0xff] %v1946_v30  ;;  %v3729_v30 = vor.u32 %v3986_v27, %v3726_v28  ;;  %v3954_v28 = vld [vmem:[%s5726_s1 + $0x44] sm:$0xf] }
  0xbf   :  { %2441 = vmatpush.bf16.msrb.mxu2 %v3729_v30 }
  0xc0   :  { %v1778_v44 = vpop.f32.mrf.mxu2  ;;  %v1443_v61 = vpop.f32.mrf.mxu0 }
  0xc1   :  { %v1779_v48 = vadd.f32 %v1778_v44, %v1610_v41  ;;  %v1947_v60 = vpop.f32.mrf.mxu3  ;;  %v1612_v11 = vpop.f32.mrf.mxu1  ;;  %v3864_v44 = vld [vmem:[%s5725_s0 + $0x16c] sm:$0xf0] }
  0xc2   :  { %v1613_v26 = vadd.f32 %v1612_v11, %v1443_v61  ;;  %v3236_v61 = vld [vmem:[%s5725_s0 + $0x168] sm:$0xf]  ;;  %v3865_v11 = vld [vmem:[%s5725_s0 + $0x174] sm:$0xf0]  ;;  %v4760_v31 = vor.u32 %v3864_v44, %v3228_v43 }
  0xc3   :  { %v1948_v24 = vadd.f32 %v1947_v60, %v1779_v48  ;;  %1482 = vmatmul.bf16.gmra.mxu0 %v4706_v46  ;;  %v3862_v48 = vld [vmem:[%s5725_s0 + $0x164] sm:$0xf]  ;;  %v3230_v60 = vld [vmem:[%s5725_s0 + $0x170] sm:$0xf0] }
  0xc4   :  { %1651 = vmatmul.bf16.gmra.mxu1 %v4708_v62  ;;  %5811 = vst [vmem:[#allocation8_spill] sm:$0xff] %v4760_v31 }
  0xc5   :  { %1820 = vmatmul.bf16.gmra.mxu2 %v4710_v9  ;;  %2910 = vst [vmem:[#allocation2 + $0x30] sm:$0xff] %v1948_v24  ;;  %v3863_v24 = vld [vmem:[%s5725_s0 + $0x16c] sm:$0xf] }
  0xc6   :  { %1989 = vmatmul.bf16.gmra.mxu3 %v4712_v17  ;;  %v4770_v17 = vor.u32 %v3865_v11, %v3236_v61 }
  0xc8   :  { %v1781_v29 = vpop.f32.mrf.mxu2  ;;  %v1445_v35 = vpop.f32.mrf.mxu0  ;;  %5813 = vst [vmem:[#allocation10_spill] sm:$0xff] %v4770_v17 }
  0xc9   :  { %v1782_v33 = vadd.f32 %v1781_v29, %v1613_v26  ;;  %v1950_v34 = vpop.f32.mrf.mxu3  ;;  %v1614_v41 = vpop.f32.mrf.mxu1  ;;  %v3238_v26 = vld [vmem:[%s5725_s0 + $0x178] sm:$0xf0]  ;;  %v3598_v29 = vld [vmem:[%s5726_s1 + $0x48] sm:$0xf0] }
  0xca   :  { %v1615_v27 = vadd.f32 %v1614_v41, %v1445_v35  ;;  %v3601_v32 = vor.u32 %v3954_v28, %v3598_v29  ;;  %v4772_v43 = vor.u32 %v3863_v24, %v3238_v26  ;;  %v3866_v26 = vld [vmem:[%s5725_s0 + $0x184] sm:$0xf]  ;;  %v3246_v29 = vld [vmem:[%s5725_s0 + $0x190] sm:$0xf0] }
  0xcb   :  { %v1951_v42 = vadd.f32 %v1950_v34, %v1782_v33  ;;  %v3970_v33 = vld [vmem:[%s5726_s1 + $0xc4] sm:$0xf]  ;;  %v3662_v34 = vld [vmem:[%s5726_s1 + $0xc8] sm:$0xf0] }
  0xcc   :  { %v3665_v9 = vor.u32 %v3970_v33, %v3662_v34  ;;  %5814 = vst [vmem:[#allocation11_spill] sm:$0xff] %v4772_v43  ;;  %2103 = vmatpush.bf16.msrb.mxu0 %v3601_v32  ;;  %v3869_v32 = vld [vmem:[%s5725_s0 + $0x194] sm:$0xf0]  ;;  %v3867_v34 = vld [vmem:[%s5725_s0 + $0x18c] sm:$0xf] }
  0xcd   :  { %2912 = vst [vmem:[#allocation2 + $0x40] sm:$0xff] %v1951_v42  ;;  %v4768_v42 = vor.u32 %v3862_v48, %v3230_v60 }
  0xce   :  { %2272 = vmatpush.bf16.msrb.mxu1 %v3665_v9  ;;  %v3244_v9 = vld [vmem:[%s5725_s0 + $0x180] sm:$0xf] }
  0xcf   :  { %5812 = vst [vmem:[#allocation9_spill] sm:$0xff] %v4768_v42 }
  0xd0   :  { %v1783_v30 = vpop.f32.mrf.mxu2  ;;  %v1448_v41 = vpop.f32.mrf.mxu0 }
  0xd1   :  { %v1784_v35 = vadd.f32 %v1783_v30, %v1615_v27  ;;  %v1952_v40 = vpop.f32.mrf.mxu3  ;;  %v1617_v62 = vpop.f32.mrf.mxu1  ;;  %v3252_v30 = vld [vmem:[%s5725_s0 + $0x188] sm:$0xf] }
  0xd2   :  { %v1618_v28 = vadd.f32 %v1617_v62, %v1448_v41  ;;  %v3868_v62 = vld [vmem:[%s5725_s0 + $0x18c] sm:$0xf0] }
  0xd3   :  { %v1953_v44 = vadd.f32 %v1952_v40, %v1784_v35  ;;  %1487 = vmatmul.bf16.gmra.mxu0 %v4760_v31  ;;  %v3254_v35 = vld [vmem:[%s5725_s0 + $0x198] sm:$0xf0]  ;;  %v4802_v41 = vor.u32 %v3868_v62, %v3244_v9 }
  0xd4   :  { %1656 = vmatmul.bf16.gmra.mxu1 %v4768_v42 }
  0xd5   :  { %1825 = vmatmul.bf16.gmra.mxu2 %v4770_v17  ;;  %2914 = vst [vmem:[#allocation2 + $0x50] sm:$0xff] %v1953_v44 }
  0xd6   :  { %1994 = vmatmul.bf16.gmra.mxu3 %v4772_v43  ;;  %5815 = vst [vmem:[#allocation12_spill] sm:$0xff] %v4802_v41 }
  0xd8   :  { %v1786_v48 = vpop.f32.mrf.mxu2  ;;  %v1450_v11 = vpop.f32.mrf.mxu0 }
  0xd9   :  { %v1787_v60 = vadd.f32 %v1786_v48, %v1618_v28  ;;  %v1955_v61 = vpop.f32.mrf.mxu3  ;;  %v1619_v27 = vpop.f32.mrf.mxu1 }
  0xda   :  { %v1620_v33 = vadd.f32 %v1619_v27, %v1450_v11  ;;  %v4808_v11 = vor.u32 %v3867_v34, %v3254_v35  ;;  %v3872_v34 = vld [vmem:[%s5725_s0 + $0x1ac] sm:$0xf0]  ;;  %v3870_v35 = vld [vmem:[%s5725_s0 + $0x1a4] sm:$0xf] }
  0xdb   :  { %v1956_v24 = vadd.f32 %v1955_v61, %v1787_v60  ;;  %v4804_v60 = vor.u32 %v3866_v26, %v3246_v29  ;;  %v4806_v61 = vor.u32 %v3869_v32, %v3252_v30 }
  0xdc   :  { %5818 = vst [vmem:[#allocation15_spill] sm:$0xff] %v4808_v11 }
  0xdd   :  { %2916 = vst [vmem:[#allocation2 + $0x60] sm:$0xff] %v1956_v24 }
  0xde   :  { %5816 = vst [vmem:[#allocation13_spill] sm:$0xff] %v4804_v60 }
  0xdf   :  { %5817 = vst [vmem:[#allocation14_spill] sm:$0xff] %v4806_v61 }
  0xe0   :  { %v1788_v40 = vpop.f32.mrf.mxu2  ;;  %v1453_v48 = vpop.f32.mrf.mxu0 }
  0xe1   :  { %v1789_v44 = vadd.f32 %v1788_v40, %v1620_v33  ;;  %v1957_v28 = vpop.f32.mrf.mxu3  ;;  %v1622_v24 = vpop.f32.mrf.mxu1  ;;  %v3260_v33 = vld [vmem:[%s5725_s0 + $0x1a0] sm:$0xf]  ;;  %v3268_v40 = vld [vmem:[%s5725_s0 + $0x1a8] sm:$0xf] }
  0xe2   :  { %v1623_v43 = vadd.f32 %v1622_v24, %v1453_v48  ;;  %v3871_v48 = vld [vmem:[%s5725_s0 + $0x1ac] sm:$0xf]  ;;  %v3270_v24 = vld [vmem:[%s5725_s0 + $0x1b8] sm:$0xf0] }
  0xe3   :  { %v1958_v27 = vadd.f32 %v1957_v28, %v1789_v44  ;;  %1492 = vmatmul.bf16.gmra.mxu0 %v4802_v41  ;;  %v3873_v44 = vld [vmem:[%s5725_s0 + $0x1b4] sm:$0xf0] }
  0xe4   :  { %1661 = vmatmul.bf16.gmra.mxu1 %v4804_v60  ;;  %v4842_v60 = vor.u32 %v3873_v44, %v3268_v40 }
  0xe5   :  { %1830 = vmatmul.bf16.gmra.mxu2 %v4806_v61  ;;  %2918 = vst [vmem:[#allocation2 + $0x70] sm:$0xff] %v1958_v27 }
  0xe6   :  { %1999 = vmatmul.bf16.gmra.mxu3 %v4808_v11  ;;  %5821 = vst [vmem:[#allocation18_spill] sm:$0xff] %v4842_v60 }
  0xe8   :  { %v1791_v9 = vpop.f32.mrf.mxu2  ;;  %v1455_v29 = vpop.f32.mrf.mxu0 }
  0xe9   :  { %v1792_v62 = vadd.f32 %v1791_v9, %v1623_v43  ;;  %v1960_v26 = vpop.f32.mrf.mxu3  ;;  %v1624_v30 = vpop.f32.mrf.mxu1  ;;  %v3262_v43 = vld [vmem:[%s5725_s0 + $0x1b0] sm:$0xf0]  ;;  %v4838_v9 = vor.u32 %v3872_v34, %v3260_v33 }
  0xea   :  { %v1625_v28 = vadd.f32 %v1624_v30, %v1455_v29  ;;  %v4840_v61 = vor.u32 %v3870_v35, %v3262_v43  ;;  %v4844_v29 = vor.u32 %v3871_v48, %v3270_v24  ;;  %v3874_v48 = vld [vmem:[%s5725_s0 + $0x1c4] sm:$0xf]  ;;  %v3284_v24 = vld [vmem:[%s5725_s0 + $0x1c8] sm:$0xf] }
  0xeb   :  { %v1961_v32 = vadd.f32 %v1960_v26, %v1792_v62  ;;  %5819 = vst [vmem:[#allocation16_spill] sm:$0xff] %v4838_v9 }
  0xec   :  { %5820 = vst [vmem:[#allocation17_spill] sm:$0xff] %v4840_v61 }
  0xed   :  { %2920 = vst [vmem:[#allocation2 + $0x80] sm:$0xff] %v1961_v32 }
  0xee   :  { %5822 = vst [vmem:[#allocation19_spill] sm:$0xff] %v4844_v29 }
  0xf0   :  { %v1793_v27 = vpop.f32.mrf.mxu2  ;;  %v1458_v11 = vpop.f32.mrf.mxu0 }
  0xf1   :  { %v1794_v62 = vadd.f32 %v1793_v27, %v1625_v28  ;;  %v1962_v26 = vpop.f32.mrf.mxu3  ;;  %v1627_v32 = vpop.f32.mrf.mxu1  ;;  %v3276_v28 = vld [vmem:[%s5725_s0 + $0x1c0] sm:$0xf]  ;;  %v3877_v27 = vld [vmem:[%s5725_s0 + $0x1d4] sm:$0xf0] }
  0xf2   :  { %v1628_v41 = vadd.f32 %v1627_v32, %v1458_v11  ;;  %v3876_v11 = vld [vmem:[%s5725_s0 + $0x1cc] sm:$0xf0]  ;;  %v3286_v32 = vld [vmem:[%s5725_s0 + $0x1d8] sm:$0xf0] }
  0xf3   :  { %v1963_v30 = vadd.f32 %v1962_v26, %v1794_v62  ;;  %1497 = vmatmul.bf16.gmra.mxu0 %v4838_v9  ;;  %v3875_v26 = vld [vmem:[%s5725_s0 + $0x1cc] sm:$0xf] }
  0xf4   :  { %1666 = vmatmul.bf16.gmra.mxu1 %v4840_v61  ;;  %v4878_v61 = vor.u32 %v3877_v27, %v3284_v24  ;;  %v3782_v24 = vld [vmem:[%s5726_s1 + $0x1b8] sm:$0xf0] }
  0xf5   :  { %1835 = vmatmul.bf16.gmra.mxu2 %v4842_v60  ;;  %2922 = vst [vmem:[#allocation2 + $0x90] sm:$0xff] %v1963_v30 }
  0xf6   :  { %2004 = vmatmul.bf16.gmra.mxu3 %v4844_v29  ;;  %5825 = vst [vmem:[#allocation22_spill] sm:$0xff] %v4878_v61 }
  0xf8   :  { %v1796_v33 = vpop.f32.mrf.mxu2  ;;  %v1460_v43 = vpop.f32.mrf.mxu0 }
  0xf9   :  { %v1797_v34 = vadd.f32 %v1796_v33, %v1628_v41  ;;  %v1965_v35 = vpop.f32.mrf.mxu3  ;;  %v1629_v40 = vpop.f32.mrf.mxu1  ;;  %v3278_v41 = vld [vmem:[%s5725_s0 + $0x1d0] sm:$0xf0]  ;;  %v4874_v33 = vor.u32 %v3876_v11, %v3276_v28  ;;  %v3718_v11 = vld [vmem:[%s5726_s1 + $0x138] sm:$0xf0] }
  0xfa   :  { %v1630_v62 = vadd.f32 %v1629_v40, %v1460_v43  ;;  %v4876_v60 = vor.u32 %v3874_v48, %v3278_v41  ;;  %v4880_v43 = vor.u32 %v3875_v26, %v3286_v32  ;;  %v3984_v28 = vld [vmem:[%s5726_s1 + $0x134] sm:$0xf] }
  0xfb   :  { %v1966_v44 = vadd.f32 %v1965_v35, %v1797_v34  ;;  %5823 = vst [vmem:[#allocation20_spill] sm:$0xff] %v4874_v33  ;;  %v3721_v41 = vor.u32 %v3984_v28, %v3718_v11  ;;  %v3300_v28 = vld [vmem:[%s5725_s0 + $0x1e8] sm:$0xf]  ;;  %v3881_v11 = vld [vmem:[%s5725_s0 + $0x1f4] sm:$0xf0] }
  0xfc   :  { %5824 = vst [vmem:[#allocation21_spill] sm:$0xff] %v4876_v60  ;;  %v4938_v17 = vor.u32 %v3881_v11, %v3300_v28 }
  0xfd   :  { %2924 = vst [vmem:[#allocation2 + $0xa0] sm:$0xff] %v1966_v44  ;;  %2442 = vmatpush.bf16.msrb.mxu2 %v3721_v41  ;;  %v3302_v41 = vld [vmem:[%s5725_s0 + $0x1f8] sm:$0xf0] }
  0xfe   :  { %5826 = vst [vmem:[#allocation23_spill] sm:$0xff] %v4880_v43 }
  0xff   :  { %5829 = vst [vmem:[#allocation26_spill] sm:$0xff] %v4938_v17 }
 0x100   :  { %v1798_v30 = vpop.f32.mrf.mxu2  ;;  %v1463_v29 = vpop.f32.mrf.mxu0 }
 0x101   :  { %v1799_v34 = vadd.f32 %v1798_v30, %v1630_v62  ;;  %v1967_v35 = vpop.f32.mrf.mxu3  ;;  %v1632_v44 = vpop.f32.mrf.mxu1 }
 0x102   :  { %v1633_v9 = vadd.f32 %v1632_v44, %v1463_v29  ;;  %v4000_v29 = vld [vmem:[%s5726_s1 + $0x1b4] sm:$0xf]  ;;  %v3880_v44 = vld [vmem:[%s5725_s0 + $0x1ec] sm:$0xf0] }
 0x103   :  { %v1968_v40 = vadd.f32 %v1967_v35, %v1799_v34  ;;  %1502 = vmatmul.bf16.gmra.mxu0 %v4874_v33  ;;  %v3785_v32 = vor.u32 %v4000_v29, %v3782_v24  ;;  %v3292_v35 = vld [vmem:[%s5725_s0 + $0x1e0] sm:$0xf]  ;;  %v3952_v24 = vld [vmem:[%s5726_s1 + $0x34] sm:$0xf] }
 0x104   :  { %1671 = vmatmul.bf16.gmra.mxu1 %v4876_v60 }
 0x105   :  { %1840 = vmatmul.bf16.gmra.mxu2 %v4878_v61  ;;  %2926 = vst [vmem:[#allocation2 + $0xb0] sm:$0xff] %v1968_v40  ;;  %2611 = vmatpush.bf16.msrb.mxu3 %v3785_v32  ;;  %v3878_v40 = vld [vmem:[%s5725_s0 + $0x1e4] sm:$0xf]  ;;  %v4928_v32 = vor.u32 %v3880_v44, %v3292_v35  ;;  %v3968_v61 = vld [vmem:[%s5726_s1 + $0xb4] sm:$0xf] }
 0x106   :  { %2009 = vmatmul.bf16.gmra.mxu3 %v4880_v43 }
 0x107   :  { %5827 = vst [vmem:[#allocation24_spill] sm:$0xff] %v4928_v32 }
 0x108   :  { %v1801_v48 = vpop.f32.mrf.mxu2  ;;  %v1465_v26 = vpop.f32.mrf.mxu0 }
 0x109   :  { %v1802_v27 = vadd.f32 %v1801_v48, %v1633_v9  ;;  %v1970_v62 = vpop.f32.mrf.mxu3  ;;  %v1634_v30 = vpop.f32.mrf.mxu1  ;;  %v3294_v9 = vld [vmem:[%s5725_s0 + $0x1f0] sm:$0xf0]  ;;  %v3879_v48 = vld [vmem:[%s5725_s0 + $0x1ec] sm:$0xf] }
 0x10a   :  { %v1635_v29 = vadd.f32 %v1634_v30, %v1465_v26  ;;  %v3654_v26 = vld [vmem:[%s5726_s1 + $0xb8] sm:$0xf0]  ;;  %v4936_v33 = vor.u32 %v3878_v40, %v3294_v9  ;;  %v4940_v35 = vor.u32 %v3879_v48, %v3302_v41  ;;  %v3316_v41 = vld [vmem:[%s5725_s0 + $0x208] sm:$0xf] }
 0x10b   :  { %v1971_v34 = vadd.f32 %v1970_v62, %v1802_v27  ;;  %v3590_v27 = vld [vmem:[%s5726_s1 + $0x38] sm:$0xf0]  ;;  %v3657_v42 = vor.u32 %v3968_v61, %v3654_v26 }
 0x10c   :  { %v3593_v43 = vor.u32 %v3952_v24, %v3590_v27  ;;  %5828 = vst [vmem:[#allocation25_spill] sm:$0xff] %v4936_v33  ;;  %v3318_v26 = vld [vmem:[%s5725_s0 + $0x218] sm:$0xf0] }
 0x10d   :  { %2928 = vst [vmem:[#allocation2 + $0xc0] sm:$0xff] %v1971_v34  ;;  %2273 = vmatpush.bf16.msrb.mxu1 %v3657_v42  ;;  %v3308_v42 = vld [vmem:[%s5725_s0 + $0x200] sm:$0xf] }
 0x10e   :  { %5830 = vst [vmem:[#allocation27_spill] sm:$0xff] %v4940_v35  ;;  %2104 = vmatpush.bf16.msrb.mxu0 %v3593_v43  ;;  %v3310_v43 = vld [vmem:[%s5725_s0 + $0x210] sm:$0xf0] }
 0x110   :  { %v1803_v62 = vpop.f32.mrf.mxu2  ;;  %v1468_v60 = vpop.f32.mrf.mxu0 }
 0x111   :  { %v1804_v30 = vadd.f32 %v1803_v62, %v1635_v29  ;;  %v1972_v34 = vpop.f32.mrf.mxu3  ;;  %v1637_v31 = vpop.f32.mrf.mxu1  ;;  %v3885_v29 = vld [vmem:[%s5725_s0 + $0x214] sm:$0xf0]  ;;  %v3883_v62 = vld [vmem:[%s5725_s0 + $0x20c] sm:$0xf] }
 0x112   :  { %v1638_v24 = vadd.f32 %v1637_v31, %v1468_v60  ;;  %v3884_v31 = vld [vmem:[%s5725_s0 + $0x20c] sm:$0xf0]  ;;  %v3882_v60 = vld [vmem:[%s5725_s0 + $0x204] sm:$0xf] }
 0x113   :  { %v1973_v44 = vadd.f32 %v1972_v34, %v1804_v30  ;;  %1507 = vmatmul.bf16.gmra.mxu0 %v4928_v32  ;;  %v4970_v34 = vor.u32 %v3884_v31, %v3308_v42 }
 0x114   :  { %1676 = vmatmul.bf16.gmra.mxu1 %v4936_v33 }
 0x115   :  { %1845 = vmatmul.bf16.gmra.mxu2 %v4938_v17  ;;  %2930 = vst [vmem:[#allocation2 + $0xd0] sm:$0xff] %v1973_v44 }
 0x116   :  { %2014 = vmatmul.bf16.gmra.mxu3 %v4940_v35  ;;  %5831 = vst [vmem:[#allocation28_spill] sm:$0xff] %v4970_v34 }
 0x118   :  { %v1806_v40 = vpop.f32.mrf.mxu2  ;;  %v1470_v61 = vpop.f32.mrf.mxu0 }
 0x119   :  { %v1807_v9 = vadd.f32 %v1806_v40, %v1638_v24  ;;  %v1975_v28 = vpop.f32.mrf.mxu3  ;;  %v1639_v11 = vpop.f32.mrf.mxu1 }
 0x11a   :  { %v1640_v27 = vadd.f32 %v1639_v11, %v1470_v61  ;;  %v4976_v61 = vor.u32 %v3883_v62, %v3318_v26  ;;  %v3888_v62 = vld [vmem:[%s5725_s0 + $0x22c] sm:$0xf0]  ;;  %v3886_v26 = vld [vmem:[%s5725_s0 + $0x224] sm:$0xf] }
 0x11b   :  { %v1976_v48 = vadd.f32 %v1975_v28, %v1807_v9  ;;  %v4972_v9 = vor.u32 %v3882_v60, %v3310_v43  ;;  %v4974_v28 = vor.u32 %v3885_v29, %v3316_v41 }
 0x11c   :  { %5834 = vst [vmem:[#allocation31_spill] sm:$0xff] %v4976_v61 }
 0x11d   :  { %2932 = vst [vmem:[#allocation2 + $0xe0] sm:$0xff] %v1976_v48 }
 0x11e   :  { %5832 = vst [vmem:[#allocation29_spill] sm:$0xff] %v4972_v9 }
 0x11f   :  { %5833 = vst [vmem:[#allocation30_spill] sm:$0xff] %v4974_v28 }
 0x120   :  { %v1808_v30 = vpop.f32.mrf.mxu2  ;;  %v1473_v40 = vpop.f32.mrf.mxu0 }
 0x121   :  { %v1809_v44 = vadd.f32 %v1808_v30, %v1640_v27  ;;  %v1977_v24 = vpop.f32.mrf.mxu3  ;;  %v1642_v48 = vpop.f32.mrf.mxu1  ;;  %v3324_v27 = vld [vmem:[%s5725_s0 + $0x220] sm:$0xf]  ;;  %v3332_v30 = vld [vmem:[%s5725_s0 + $0x228] sm:$0xf] }
 0x122   :  { %v1643_v35 = vadd.f32 %v1642_v48, %v1473_v40  ;;  %v3887_v40 = vld [vmem:[%s5725_s0 + $0x22c] sm:$0xf]  ;;  %v3334_v48 = vld [vmem:[%s5725_s0 + $0x238] sm:$0xf0] }
 0x123   :  { %v1978_v11 = vadd.f32 %v1977_v24, %v1809_v44  ;;  %1512 = vmatmul.bf16.gmra.mxu0 %v4970_v34  ;;  %v3889_v44 = vld [vmem:[%s5725_s0 + $0x234] sm:$0xf0] }
 0x124   :  { %1681 = vmatmul.bf16.gmra.mxu1 %v4972_v9  ;;  %v5010_v9 = vor.u32 %v3889_v44, %v3332_v30 }
 0x125   :  { %1850 = vmatmul.bf16.gmra.mxu2 %v4974_v28  ;;  %2934 = vst [vmem:[#allocation2 + $0xf0] sm:$0xff] %v1978_v11 }
 0x126   :  { %2019 = vmatmul.bf16.gmra.mxu3 %v4976_v61  ;;  %5837 = vst [vmem:[#allocation34_spill] sm:$0xff] %v5010_v9 }
 0x128   :  { %v1811_v42 = vpop.f32.mrf.mxu2  ;;  %v1475_v43 = vpop.f32.mrf.mxu0 }
 0x129   :  { %v1812_v31 = vadd.f32 %v1811_v42, %v1643_v35  ;;  %v1980_v60 = vpop.f32.mrf.mxu3  ;;  %v1644_v41 = vpop.f32.mrf.mxu1  ;;  %v3326_v35 = vld [vmem:[%s5725_s0 + $0x230] sm:$0xf0]  ;;  %v5006_v42 = vor.u32 %v3888_v62, %v3324_v27 }
 0x12a   :  { %v1645_v24 = vadd.f32 %v1644_v41, %v1475_v43  ;;  %v5008_v28 = vor.u32 %v3886_v26, %v3326_v35  ;;  %v5012_v43 = vor.u32 %v3887_v40, %v3334_v48  ;;  %v3890_v40 = vld [vmem:[%s5725_s0 + $0x244] sm:$0xf]  ;;  %v3348_v48 = vld [vmem:[%s5725_s0 + $0x248] sm:$0xf] }
 0x12b   :  { %v1981_v29 = vadd.f32 %v1980_v60, %v1812_v31  ;;  %5835 = vst [vmem:[#allocation32_spill] sm:$0xff] %v5006_v42 }
 0x12c   :  { %5836 = vst [vmem:[#allocation33_spill] sm:$0xff] %v5008_v28 }
 0x12d   :  { %2936 = vst [vmem:[#allocation2 + $0x100] sm:$0xff] %v1981_v29 }
 0x12e   :  { %5838 = vst [vmem:[#allocation35_spill] sm:$0xff] %v5012_v43 }
 0x130   :  { %v1813_v11 = vpop.f32.mrf.mxu2  ;;  %v1478_v61 = vpop.f32.mrf.mxu0 }
 0x131   :  { %v1814_v31 = vadd.f32 %v1813_v11, %v1645_v24  ;;  %v1982_v60 = vpop.f32.mrf.mxu3  ;;  %v1647_v29 = vpop.f32.mrf.mxu1  ;;  %v3340_v24 = vld [vmem:[%s5725_s0 + $0x240] sm:$0xf]  ;;  %v3893_v11 = vld [vmem:[%s5725_s0 + $0x254] sm:$0xf0] }
 0x132   :  { %v1648_v34 = vadd.f32 %v1647_v29, %v1478_v61  ;;  %v3892_v61 = vld [vmem:[%s5725_s0 + $0x24c] sm:$0xf0]  ;;  %v3350_v29 = vld [vmem:[%s5725_s0 + $0x258] sm:$0xf0] }
 0x133   :  { %v1983_v41 = vadd.f32 %v1982_v60, %v1814_v31  ;;  %1517 = vmatmul.bf16.gmra.mxu0 %v5006_v42  ;;  %v3891_v60 = vld [vmem:[%s5725_s0 + $0x24c] sm:$0xf] }
 0x134   :  { %1686 = vmatmul.bf16.gmra.mxu1 %v5008_v28  ;;  %v5046_v28 = vor.u32 %v3893_v11, %v3348_v48  ;;  %v3774_v48 = vld [vmem:[%s5726_s1 + $0x1a8] sm:$0xf0] }
 0x135   :  { %1855 = vmatmul.bf16.gmra.mxu2 %v5010_v9  ;;  %2938 = vst [vmem:[#allocation2 + $0x110] sm:$0xff] %v1983_v41 }
 0x136   :  { %2024 = vmatmul.bf16.gmra.mxu3 %v5012_v43  ;;  %5841 = vst [vmem:[#allocation38_spill] sm:$0xff] %v5046_v28 }
 0x138   :  { %v1816_v27 = vpop.f32.mrf.mxu2  ;;  %v1480_v35 = vpop.f32.mrf.mxu0 }
 0x139   :  { %v1817_v62 = vadd.f32 %v1816_v27, %v1648_v34  ;;  %v1985_v26 = vpop.f32.mrf.mxu3  ;;  %v1649_v30 = vpop.f32.mrf.mxu1  ;;  %v3342_v34 = vld [vmem:[%s5725_s0 + $0x250] sm:$0xf0]  ;;  %v5042_v27 = vor.u32 %v3892_v61, %v3340_v24  ;;  %v3982_v24 = vld [vmem:[%s5726_s1 + $0x124] sm:$0xf]  ;;  %v3710_v61 = vld [vmem:[%s5726_s1 + $0x128] sm:$0xf0] }
 0x13a   :  { %v1650_v31 = vadd.f32 %v1649_v30, %v1480_v35  ;;  %v5044_v9 = vor.u32 %v3890_v40, %v3342_v34  ;;  %v5048_v35 = vor.u32 %v3891_v60, %v3350_v29  ;;  %v3713_v34 = vor.u32 %v3982_v24, %v3710_v61  ;;  %v3364_v24 = vld [vmem:[%s5725_s0 + $0x268] sm:$0xf]  ;;  %v3897_v61 = vld [vmem:[%s5725_s0 + $0x274] sm:$0xf0] }
 0x13b   :  { %v1986_v44 = vadd.f32 %v1985_v26, %v1817_v62  ;;  %5839 = vst [vmem:[#allocation36_spill] sm:$0xff] %v5042_v27  ;;  %v5106_v17 = vor.u32 %v3897_v61, %v3364_v24 }
 0x13c   :  { %5840 = vst [vmem:[#allocation37_spill] sm:$0xff] %v5044_v9  ;;  %2443 = vmatpush.bf16.msrb.mxu2 %v3713_v34  ;;  %v3366_v34 = vld [vmem:[%s5725_s0 + $0x278] sm:$0xf0] }
 0x13d   :  { %2940 = vst [vmem:[#allocation2 + $0x120] sm:$0xff] %v1986_v44 }
 0x13e   :  { %5842 = vst [vmem:[#allocation39_spill] sm:$0xff] %v5048_v35 }
 0x13f   :  { %5845 = vst [vmem:[#allocation42_spill] sm:$0xff] %v5106_v17 }
 0x140   :  { %v1818_v41 = vpop.f32.mrf.mxu2  ;;  %v1483_v43 = vpop.f32.mrf.mxu0 }
 0x141   :  { %v1819_v62 = vadd.f32 %v1818_v41, %v1650_v31  ;;  %v1987_v26 = vpop.f32.mrf.mxu3  ;;  %v1652_v44 = vpop.f32.mrf.mxu1 }
 0x142   :  { %v1653_v42 = vadd.f32 %v1652_v44, %v1483_v43  ;;  %v3998_v43 = vld [vmem:[%s5726_s1 + $0x1a4] sm:$0xf]  ;;  %v3896_v44 = vld [vmem:[%s5725_s0 + $0x26c] sm:$0xf0] }
 0x143   :  { %v1988_v30 = vadd.f32 %v1987_v26, %v1819_v62  ;;  %1522 = vmatmul.bf16.gmra.mxu0 %v5042_v27  ;;  %v3777_v29 = vor.u32 %v3998_v43, %v3774_v48  ;;  %v3356_v26 = vld [vmem:[%s5725_s0 + $0x260] sm:$0xf]  ;;  %v3950_v48 = vld [vmem:[%s5726_s1 + $0x24] sm:$0xf] }
 0x144   :  { %1691 = vmatmul.bf16.gmra.mxu1 %v5044_v9 }
 0x145   :  { %1860 = vmatmul.bf16.gmra.mxu2 %v5046_v28  ;;  %2942 = vst [vmem:[#allocation2 + $0x130] sm:$0xff] %v1988_v30  ;;  %2612 = vmatpush.bf16.msrb.mxu3 %v3777_v29  ;;  %v3894_v30 = vld [vmem:[%s5725_s0 + $0x264] sm:$0xf]  ;;  %v5096_v29 = vor.u32 %v3896_v44, %v3356_v26 }
 0x146   :  { %2029 = vmatmul.bf16.gmra.mxu3 %v5048_v35  ;;  %v3966_v28 = vld [vmem:[%s5726_s1 + $0xa4] sm:$0xf] }
 0x147   :  { %5843 = vst [vmem:[#allocation40_spill] sm:$0xff] %v5096_v29 }
 0x148   :  { %v1821_v40 = vpop.f32.mrf.mxu2  ;;  %v1485_v60 = vpop.f32.mrf.mxu0 }
 0x149   :  { %v1822_v11 = vadd.f32 %v1821_v40, %v1653_v42  ;;  %v1990_v31 = vpop.f32.mrf.mxu3  ;;  %v1654_v41 = vpop.f32.mrf.mxu1  ;;  %v3358_v42 = vld [vmem:[%s5725_s0 + $0x270] sm:$0xf0]  ;;  %v3895_v40 = vld [vmem:[%s5725_s0 + $0x26c] sm:$0xf] }
 0x14a   :  { %v1655_v43 = vadd.f32 %v1654_v41, %v1485_v60  ;;  %v3646_v60 = vld [vmem:[%s5726_s1 + $0xa8] sm:$0xf0]  ;;  %v5104_v27 = vor.u32 %v3894_v30, %v3358_v42  ;;  %v5108_v26 = vor.u32 %v3895_v40, %v3366_v34  ;;  %v3380_v34 = vld [vmem:[%s5725_s0 + $0x288] sm:$0xf] }
 0x14b   :  { %v1991_v62 = vadd.f32 %v1990_v31, %v1822_v11  ;;  %v3582_v11 = vld [vmem:[%s5726_s1 + $0x28] sm:$0xf0]  ;;  %v3649_v33 = vor.u32 %v3966_v28, %v3646_v60  ;;  %v3382_v60 = vld [vmem:[%s5725_s0 + $0x298] sm:$0xf0] }
 0x14c   :  { %v3585_v35 = vor.u32 %v3950_v48, %v3582_v11  ;;  %5844 = vst [vmem:[#allocation41_spill] sm:$0xff] %v5104_v27 }
 0x14d   :  { %2944 = vst [vmem:[#allocation2 + $0x140] sm:$0xff] %v1991_v62  ;;  %2274 = vmatpush.bf16.msrb.mxu1 %v3649_v33  ;;  %v3372_v33 = vld [vmem:[%s5725_s0 + $0x280] sm:$0xf] }
 0x14e   :  { %5846 = vst [vmem:[#allocation43_spill] sm:$0xff] %v5108_v26  ;;  %2105 = vmatpush.bf16.msrb.mxu0 %v3585_v35  ;;  %v3374_v35 = vld [vmem:[%s5725_s0 + $0x290] sm:$0xf0] }
 0x150   :  { %v1823_v31 = vpop.f32.mrf.mxu2  ;;  %v1488_v9 = vpop.f32.mrf.mxu0 }
 0x151   :  { %v1824_v41 = vadd.f32 %v1823_v31, %v1655_v43  ;;  %v1992_v62 = vpop.f32.mrf.mxu3  ;;  %v1657_v32 = vpop.f32.mrf.mxu1  ;;  %v3901_v43 = vld [vmem:[%s5725_s0 + $0x294] sm:$0xf0]  ;;  %v3899_v31 = vld [vmem:[%s5725_s0 + $0x28c] sm:$0xf] }
 0x152   :  { %v1658_v48 = vadd.f32 %v1657_v32, %v1488_v9  ;;  %v3900_v32 = vld [vmem:[%s5725_s0 + $0x28c] sm:$0xf0]  ;;  %v3898_v9 = vld [vmem:[%s5725_s0 + $0x284] sm:$0xf] }
 0x153   :  { %v1993_v44 = vadd.f32 %v1992_v62, %v1824_v41  ;;  %1527 = vmatmul.bf16.gmra.mxu0 %v5096_v29  ;;  %v5138_v62 = vor.u32 %v3900_v32, %v3372_v33 }
 0x154   :  { %1696 = vmatmul.bf16.gmra.mxu1 %v5104_v27 }
 0x155   :  { %1865 = vmatmul.bf16.gmra.mxu2 %v5106_v17  ;;  %2946 = vst [vmem:[#allocation2 + $0x150] sm:$0xff] %v1993_v44 }
 0x156   :  { %2034 = vmatmul.bf16.gmra.mxu3 %v5108_v26  ;;  %5847 = vst [vmem:[#allocation44_spill] sm:$0xff] %v5138_v62 }
 0x158   :  { %v1826_v30 = vpop.f32.mrf.mxu2  ;;  %v1490_v28 = vpop.f32.mrf.mxu0 }
 0x159   :  { %v1827_v42 = vadd.f32 %v1826_v30, %v1658_v48  ;;  %v1995_v24 = vpop.f32.mrf.mxu3  ;;  %v1659_v61 = vpop.f32.mrf.mxu1 }
 0x15a   :  { %v1660_v11 = vadd.f32 %v1659_v61, %v1490_v28  ;;  %v5144_v28 = vor.u32 %v3899_v31, %v3382_v60  ;;  %v3904_v31 = vld [vmem:[%s5725_s0 + $0x2ac] sm:$0xf0]  ;;  %v3902_v60 = vld [vmem:[%s5725_s0 + $0x2a4] sm:$0xf] }
 0x15b   :  { %v1996_v40 = vadd.f32 %v1995_v24, %v1827_v42  ;;  %v5140_v42 = vor.u32 %v3898_v9, %v3374_v35  ;;  %v5142_v24 = vor.u32 %v3901_v43, %v3380_v34 }
 0x15c   :  { %5850 = vst [vmem:[#allocation47_spill] sm:$0xff] %v5144_v28 }
 0x15d   :  { %2948 = vst [vmem:[#allocation2 + $0x160] sm:$0xff] %v1996_v40 }
 0x15e   :  { %5848 = vst [vmem:[#allocation45_spill] sm:$0xff] %v5140_v42 }
 0x15f   :  { %5849 = vst [vmem:[#allocation46_spill] sm:$0xff] %v5142_v24 }
 0x160   :  { %v1828_v41 = vpop.f32.mrf.mxu2  ;;  %v1493_v30 = vpop.f32.mrf.mxu0 }
 0x161   :  { %v1829_v44 = vadd.f32 %v1828_v41, %v1660_v11  ;;  %v1997_v48 = vpop.f32.mrf.mxu3  ;;  %v1662_v40 = vpop.f32.mrf.mxu1  ;;  %v3388_v11 = vld [vmem:[%s5725_s0 + $0x2a0] sm:$0xf]  ;;  %v3396_v41 = vld [vmem:[%s5725_s0 + $0x2a8] sm:$0xf] }
 0x162   :  { %v1663_v26 = vadd.f32 %v1662_v40, %v1493_v30  ;;  %v3903_v30 = vld [vmem:[%s5725_s0 + $0x2ac] sm:$0xf]  ;;  %v3398_v40 = vld [vmem:[%s5725_s0 + $0x2b8] sm:$0xf0] }
 0x163   :  { %v1998_v61 = vadd.f32 %v1997_v48, %v1829_v44  ;;  %1532 = vmatmul.bf16.gmra.mxu0 %v5138_v62  ;;  %v3905_v44 = vld [vmem:[%s5725_s0 + $0x2b4] sm:$0xf0] }
 0x164   :  { %1701 = vmatmul.bf16.gmra.mxu1 %v5140_v42  ;;  %v5178_v42 = vor.u32 %v3905_v44, %v3396_v41 }
 0x165   :  { %1870 = vmatmul.bf16.gmra.mxu2 %v5142_v24  ;;  %2950 = vst [vmem:[#allocation2 + $0x170] sm:$0xff] %v1998_v61 }
 0x166   :  { %2039 = vmatmul.bf16.gmra.mxu3 %v5144_v28  ;;  %5853 = vst [vmem:[#allocation50_spill] sm:$0xff] %v5178_v42 }
 0x168   :  { %v1831_v33 = vpop.f32.mrf.mxu2  ;;  %v1495_v35 = vpop.f32.mrf.mxu0 }
 0x169   :  { %v1832_v32 = vadd.f32 %v1831_v33, %v1663_v26  ;;  %v2000_v9 = vpop.f32.mrf.mxu3  ;;  %v1664_v34 = vpop.f32.mrf.mxu1  ;;  %v3390_v26 = vld [vmem:[%s5725_s0 + $0x2b0] sm:$0xf0]  ;;  %v5174_v33 = vor.u32 %v3904_v31, %v3388_v11 }
 0x16a   :  { %v1665_v48 = vadd.f32 %v1664_v34, %v1495_v35  ;;  %v5176_v24 = vor.u32 %v3902_v60, %v3390_v26  ;;  %v5180_v35 = vor.u32 %v3903_v30, %v3398_v40  ;;  %v3906_v30 = vld [vmem:[%s5725_s0 + $0x2c4] sm:$0xf]  ;;  %v3412_v40 = vld [vmem:[%s5725_s0 + $0x2c8] sm:$0xf] }
 0x16b   :  { %v2001_v43 = vadd.f32 %v2000_v9, %v1832_v32  ;;  %5851 = vst [vmem:[#allocation48_spill] sm:$0xff] %v5174_v33 }
 0x16c   :  { %5852 = vst [vmem:[#allocation49_spill] sm:$0xff] %v5176_v24 }
 0x16d   :  { %2952 = vst [vmem:[#allocation2 + $0x180] sm:$0xff] %v2001_v43 }
 0x16e   :  { %5854 = vst [vmem:[#allocation51_spill] sm:$0xff] %v5180_v35 }
 0x170   :  { %v1833_v61 = vpop.f32.mrf.mxu2  ;;  %v1498_v28 = vpop.f32.mrf.mxu0 }
 0x171   :  { %v1834_v32 = vadd.f32 %v1833_v61, %v1665_v48  ;;  %v2002_v9 = vpop.f32.mrf.mxu3  ;;  %v1667_v43 = vpop.f32.mrf.mxu1  ;;  %v3404_v48 = vld [vmem:[%s5725_s0 + $0x2c0] sm:$0xf]  ;;  %v3909_v61 = vld [vmem:[%s5725_s0 + $0x2d4] sm:$0xf0] }
 0x172   :  { %v1668_v62 = vadd.f32 %v1667_v43, %v1498_v28  ;;  %v3908_v28 = vld [vmem:[%s5725_s0 + $0x2cc] sm:$0xf0]  ;;  %v3414_v43 = vld [vmem:[%s5725_s0 + $0x2d8] sm:$0xf0] }
 0x173   :  { %v2003_v34 = vadd.f32 %v2002_v9, %v1834_v32  ;;  %1537 = vmatmul.bf16.gmra.mxu0 %v5174_v33  ;;  %v3907_v9 = vld [vmem:[%s5725_s0 + $0x2cc] sm:$0xf] }
 0x174   :  { %1706 = vmatmul.bf16.gmra.mxu1 %v5176_v24  ;;  %v5214_v24 = vor.u32 %v3909_v61, %v3412_v40  ;;  %v3766_v40 = vld [vmem:[%s5726_s1 + $0x198] sm:$0xf0] }
 0x175   :  { %1875 = vmatmul.bf16.gmra.mxu2 %v5178_v42  ;;  %2954 = vst [vmem:[#allocation2 + $0x190] sm:$0xff] %v2003_v34 }
 0x176   :  { %2044 = vmatmul.bf16.gmra.mxu3 %v5180_v35  ;;  %5857 = vst [vmem:[#allocation54_spill] sm:$0xff] %v5214_v24 }
 0x178   :  { %v1836_v11 = vpop.f32.mrf.mxu2  ;;  %v1500_v26 = vpop.f32.mrf.mxu0 }
 0x179   :  { %v1837_v31 = vadd.f32 %v1836_v11, %v1668_v62  ;;  %v2005_v60 = vpop.f32.mrf.mxu3  ;;  %v1669_v41 = vpop.f32.mrf.mxu1  ;;  %v3406_v62 = vld [vmem:[%s5725_s0 + $0x2d0] sm:$0xf0]  ;;  %v5210_v11 = vor.u32 %v3908_v28, %v3404_v48  ;;  %v3702_v28 = vld [vmem:[%s5726_s1 + $0x118] sm:$0xf0] }
 0x17a   :  { %v1670_v32 = vadd.f32 %v1669_v41, %v1500_v26  ;;  %v5212_v42 = vor.u32 %v3906_v30, %v3406_v62  ;;  %v5216_v26 = vor.u32 %v3907_v9, %v3414_v43  ;;  %v3980_v48 = vld [vmem:[%s5726_s1 + $0x114] sm:$0xf] }
 0x17b   :  { %v2006_v44 = vadd.f32 %v2005_v60, %v1837_v31  ;;  %5855 = vst [vmem:[#allocation52_spill] sm:$0xff] %v5210_v11  ;;  %v3705_v62 = vor.u32 %v3980_v48, %v3702_v28  ;;  %v3428_v48 = vld [vmem:[%s5725_s0 + $0x2e8] sm:$0xf]  ;;  %v3913_v28 = vld [vmem:[%s5725_s0 + $0x2f4] sm:$0xf0] }
 0x17c   :  { %5856 = vst [vmem:[#allocation53_spill] sm:$0xff] %v5212_v42  ;;  %v5274_v17 = vor.u32 %v3913_v28, %v3428_v48 }
 0x17d   :  { %2956 = vst [vmem:[#allocation2 + $0x1a0] sm:$0xff] %v2006_v44  ;;  %2444 = vmatpush.bf16.msrb.mxu2 %v3705_v62  ;;  %v3430_v62 = vld [vmem:[%s5725_s0 + $0x2f8] sm:$0xf0] }
 0x17e   :  { %5858 = vst [vmem:[#allocation55_spill] sm:$0xff] %v5216_v26 }
 0x17f   :  { %5861 = vst [vmem:[#allocation58_spill] sm:$0xff] %v5274_v17 }
 0x180   :  { %v1838_v34 = vpop.f32.mrf.mxu2  ;;  %v1503_v35 = vpop.f32.mrf.mxu0 }
 0x181   :  { %v1839_v31 = vadd.f32 %v1838_v34, %v1670_v32  ;;  %v2007_v60 = vpop.f32.mrf.mxu3  ;;  %v1672_v44 = vpop.f32.mrf.mxu1 }
 0x182   :  { %v1673_v33 = vadd.f32 %v1672_v44, %v1503_v35  ;;  %v3996_v35 = vld [vmem:[%s5726_s1 + $0x194] sm:$0xf]  ;;  %v3912_v44 = vld [vmem:[%s5725_s0 + $0x2ec] sm:$0xf0] }
 0x183   :  { %v2008_v41 = vadd.f32 %v2007_v60, %v1839_v31  ;;  %1542 = vmatmul.bf16.gmra.mxu0 %v5210_v11  ;;  %v3769_v43 = vor.u32 %v3996_v35, %v3766_v40  ;;  %v3420_v60 = vld [vmem:[%s5725_s0 + $0x2e0] sm:$0xf]  ;;  %v3948_v40 = vld [vmem:[%s5726_s1 + $0x14] sm:$0xf] }
 0x184   :  { %1711 = vmatmul.bf16.gmra.mxu1 %v5212_v42 }
 0x185   :  { %1880 = vmatmul.bf16.gmra.mxu2 %v5214_v24  ;;  %2958 = vst [vmem:[#allocation2 + $0x1b0] sm:$0xff] %v2008_v41  ;;  %2613 = vmatpush.bf16.msrb.mxu3 %v3769_v43  ;;  %v3910_v41 = vld [vmem:[%s5725_s0 + $0x2e4] sm:$0xf]  ;;  %v5264_v43 = vor.u32 %v3912_v44, %v3420_v60  ;;  %v3964_v24 = vld [vmem:[%s5726_s1 + $0x94] sm:$0xf] }
 0x186   :  { %2049 = vmatmul.bf16.gmra.mxu3 %v5216_v26 }
 0x187   :  { %5859 = vst [vmem:[#allocation56_spill] sm:$0xff] %v5264_v43 }
 0x188   :  { %v1841_v30 = vpop.f32.mrf.mxu2  ;;  %v1505_v9 = vpop.f32.mrf.mxu0 }
 0x189   :  { %v1842_v61 = vadd.f32 %v1841_v30, %v1673_v33  ;;  %v2010_v32 = vpop.f32.mrf.mxu3  ;;  %v1674_v34 = vpop.f32.mrf.mxu1  ;;  %v3422_v33 = vld [vmem:[%s5725_s0 + $0x2f0] sm:$0xf0]  ;;  %v3911_v30 = vld [vmem:[%s5725_s0 + $0x2ec] sm:$0xf] }
 0x18a   :  { %v1675_v35 = vadd.f32 %v1674_v34, %v1505_v9  ;;  %v3638_v9 = vld [vmem:[%s5726_s1 + $0x98] sm:$0xf0]  ;;  %v5272_v11 = vor.u32 %v3910_v41, %v3422_v33  ;;  %v5276_v60 = vor.u32 %v3911_v30, %v3430_v62  ;;  %v3444_v62 = vld [vmem:[%s5725_s0 + $0x308] sm:$0xf] }
 0x18b   :  { %v2011_v31 = vadd.f32 %v2010_v32, %v1842_v61  ;;  %v3574_v61 = vld [vmem:[%s5726_s1 + $0x18] sm:$0xf0]  ;;  %v3641_v27 = vor.u32 %v3964_v24, %v3638_v9 }
 0x18c   :  { %v3577_v26 = vor.u32 %v3948_v40, %v3574_v61  ;;  %5860 = vst [vmem:[#allocation57_spill] sm:$0xff] %v5272_v11  ;;  %v3446_v9 = vld [vmem:[%s5725_s0 + $0x318] sm:$0xf0] }
 0x18d   :  { %2960 = vst [vmem:[#allocation2 + $0x1c0] sm:$0xff] %v2011_v31  ;;  %2275 = vmatpush.bf16.msrb.mxu1 %v3641_v27  ;;  %v3436_v27 = vld [vmem:[%s5725_s0 + $0x300] sm:$0xf] }
 0x18e   :  { %5862 = vst [vmem:[#allocation59_spill] sm:$0xff] %v5276_v60  ;;  %2106 = vmatpush.bf16.msrb.mxu0 %v3577_v26  ;;  %v3438_v26 = vld [vmem:[%s5725_s0 + $0x310] sm:$0xf0] }
 0x190   :  { %v1843_v32 = vpop.f32.mrf.mxu2  ;;  %v1508_v42 = vpop.f32.mrf.mxu0 }
 0x191   :  { %v1844_v34 = vadd.f32 %v1843_v32, %v1675_v35  ;;  %v2012_v31 = vpop.f32.mrf.mxu3  ;;  %v1677_v29 = vpop.f32.mrf.mxu1  ;;  %v3917_v35 = vld [vmem:[%s5725_s0 + $0x314] sm:$0xf0]  ;;  %v3915_v32 = vld [vmem:[%s5725_s0 + $0x30c] sm:$0xf] }
 0x192   :  { %v1678_v40 = vadd.f32 %v1677_v29, %v1508_v42  ;;  %v3916_v29 = vld [vmem:[%s5725_s0 + $0x30c] sm:$0xf0]  ;;  %v3914_v42 = vld [vmem:[%s5725_s0 + $0x304] sm:$0xf] }
 0x193   :  { %v2013_v44 = vadd.f32 %v2012_v31, %v1844_v34  ;;  %1547 = vmatmul.bf16.gmra.mxu0 %v5264_v43  ;;  %v5306_v31 = vor.u32 %v3916_v29, %v3436_v27 }
 0x194   :  { %1716 = vmatmul.bf16.gmra.mxu1 %v5272_v11 }
 0x195   :  { %1885 = vmatmul.bf16.gmra.mxu2 %v5274_v17  ;;  %2962 = vst [vmem:[#allocation2 + $0x1d0] sm:$0xff] %v2013_v44 }
 0x196   :  { %2054 = vmatmul.bf16.gmra.mxu3 %v5276_v60  ;;  %5863 = vst [vmem:[#allocation60_spill] sm:$0xff] %v5306_v31 }
 0x198   :  { %v1846_v41 = vpop.f32.mrf.mxu2  ;;  %v1510_v24 = vpop.f32.mrf.mxu0 }
 0x199   :  { %v1847_v33 = vadd.f32 %v1846_v41, %v1678_v40  ;;  %v2015_v48 = vpop.f32.mrf.mxu3  ;;  %v1679_v28 = vpop.f32.mrf.mxu1 }
 0x19a   :  { %v1680_v61 = vadd.f32 %v1679_v28, %v1510_v24  ;;  %v5312_v24 = vor.u32 %v3915_v32, %v3446_v9  ;;  %v3920_v32 = vld [vmem:[%s5725_s0 + $0x32c] sm:$0xf0]  ;;  %v3918_v9 = vld [vmem:[%s5725_s0 + $0x324] sm:$0xf] }
 0x19b   :  { %v2016_v30 = vadd.f32 %v2015_v48, %v1847_v33  ;;  %v5308_v33 = vor.u32 %v3914_v42, %v3438_v26  ;;  %v5310_v48 = vor.u32 %v3917_v35, %v3444_v62 }
 0x19c   :  { %5866 = vst [vmem:[#allocation63_spill] sm:$0xff] %v5312_v24 }
 0x19d   :  { %2964 = vst [vmem:[#allocation2 + $0x1e0] sm:$0xff] %v2016_v30 }
 0x19e   :  { %5864 = vst [vmem:[#allocation61_spill] sm:$0xff] %v5308_v33 }
 0x19f   :  { %5865 = vst [vmem:[#allocation62_spill] sm:$0xff] %v5310_v48 }
 0x1a0   :  { %v1848_v34 = vpop.f32.mrf.mxu2  ;;  %v1513_v41 = vpop.f32.mrf.mxu0 }
 0x1a1   :  { %v1849_v44 = vadd.f32 %v1848_v34, %v1680_v61  ;;  %v2017_v40 = vpop.f32.mrf.mxu3  ;;  %v1682_v30 = vpop.f32.mrf.mxu1  ;;  %v3452_v61 = vld [vmem:[%s5725_s0 + $0x320] sm:$0xf]  ;;  %v3460_v34 = vld [vmem:[%s5725_s0 + $0x328] sm:$0xf] }
 0x1a2   :  { %v1683_v60 = vadd.f32 %v1682_v30, %v1513_v41  ;;  %v3919_v41 = vld [vmem:[%s5725_s0 + $0x32c] sm:$0xf]  ;;  %v3462_v30 = vld [vmem:[%s5725_s0 + $0x338] sm:$0xf0] }
 0x1a3   :  { %v2018_v28 = vadd.f32 %v2017_v40, %v1849_v44  ;;  %1552 = vmatmul.bf16.gmra.mxu0 %v5306_v31  ;;  %v3921_v44 = vld [vmem:[%s5725_s0 + $0x334] sm:$0xf0] }
 0x1a4   :  { %1721 = vmatmul.bf16.gmra.mxu1 %v5308_v33  ;;  %v5346_v33 = vor.u32 %v3921_v44, %v3460_v34 }
 0x1a5   :  { %1890 = vmatmul.bf16.gmra.mxu2 %v5310_v48  ;;  %2966 = vst [vmem:[#allocation2 + $0x1f0] sm:$0xff] %v2018_v28 }
 0x1a6   :  { %2059 = vmatmul.bf16.gmra.mxu3 %v5312_v24  ;;  %5869 = vst [vmem:[#allocation66_spill] sm:$0xff] %v5346_v33 }
 0x1a8   :  { %v1851_v27 = vpop.f32.mrf.mxu2  ;;  %v1515_v26 = vpop.f32.mrf.mxu0 }
 0x1a9   :  { %v1852_v29 = vadd.f32 %v1851_v27, %v1683_v60  ;;  %v2020_v42 = vpop.f32.mrf.mxu3  ;;  %v1684_v62 = vpop.f32.mrf.mxu1  ;;  %v3454_v60 = vld [vmem:[%s5725_s0 + $0x330] sm:$0xf0]  ;;  %v5342_v27 = vor.u32 %v3920_v32, %v3452_v61 }
 0x1aa   :  { %v1685_v40 = vadd.f32 %v1684_v62, %v1515_v26  ;;  %v5344_v48 = vor.u32 %v3918_v9, %v3454_v60  ;;  %v5348_v26 = vor.u32 %v3919_v41, %v3462_v30  ;;  %v3922_v41 = vld [vmem:[%s5725_s0 + $0x344] sm:$0xf]  ;;  %v3476_v30 = vld [vmem:[%s5725_s0 + $0x348] sm:$0xf] }
 0x1ab   :  { %v2021_v35 = vadd.f32 %v2020_v42, %v1852_v29  ;;  %5867 = vst [vmem:[#allocation64_spill] sm:$0xff] %v5342_v27 }
 0x1ac   :  { %5868 = vst [vmem:[#allocation65_spill] sm:$0xff] %v5344_v48 }
 0x1ad   :  { %2968 = vst [vmem:[#allocation2 + $0x200] sm:$0xff] %v2021_v35 }
 0x1ae   :  { %5870 = vst [vmem:[#allocation67_spill] sm:$0xff] %v5348_v26 }
 0x1b0   :  { %v1853_v28 = vpop.f32.mrf.mxu2  ;;  %v1518_v24 = vpop.f32.mrf.mxu0 }
 0x1b1   :  { %v1854_v29 = vadd.f32 %v1853_v28, %v1685_v40  ;;  %v2022_v42 = vpop.f32.mrf.mxu3  ;;  %v1687_v35 = vpop.f32.mrf.mxu1  ;;  %v3468_v40 = vld [vmem:[%s5725_s0 + $0x340] sm:$0xf]  ;;  %v3925_v28 = vld [vmem:[%s5725_s0 + $0x354] sm:$0xf0] }
 0x1b2   :  { %v1688_v31 = vadd.f32 %v1687_v35, %v1518_v24  ;;  %v3924_v24 = vld [vmem:[%s5725_s0 + $0x34c] sm:$0xf0]  ;;  %v3478_v35 = vld [vmem:[%s5725_s0 + $0x358] sm:$0xf0] }
 0x1b3   :  { %v2023_v62 = vadd.f32 %v2022_v42, %v1854_v29  ;;  %1557 = vmatmul.bf16.gmra.mxu0 %v5342_v27  ;;  %v3923_v42 = vld [vmem:[%s5725_s0 + $0x34c] sm:$0xf] }
 0x1b4   :  { %1726 = vmatmul.bf16.gmra.mxu1 %v5344_v48  ;;  %v5382_v48 = vor.u32 %v3925_v28, %v3476_v30  ;;  %v3758_v30 = vld [vmem:[%s5726_s1 + $0x188] sm:$0xf0] }
 0x1b5   :  { %1895 = vmatmul.bf16.gmra.mxu2 %v5346_v33  ;;  %2970 = vst [vmem:[#allocation2 + $0x210] sm:$0xff] %v2023_v62 }
 0x1b6   :  { %2064 = vmatmul.bf16.gmra.mxu3 %v5348_v26  ;;  %5873 = vst [vmem:[#allocation70_spill] sm:$0xff] %v5382_v48 }
 0x1b8   :  { %v1856_v61 = vpop.f32.mrf.mxu2  ;;  %v1520_v60 = vpop.f32.mrf.mxu0 }
 0x1b9   :  { %v1857_v32 = vadd.f32 %v1856_v61, %v1688_v31  ;;  %v2025_v9 = vpop.f32.mrf.mxu3  ;;  %v1689_v34 = vpop.f32.mrf.mxu1  ;;  %v3470_v31 = vld [vmem:[%s5725_s0 + $0x350] sm:$0xf0]  ;;  %v5378_v61 = vor.u32 %v3924_v24, %v3468_v40  ;;  %v3978_v40 = vld [vmem:[%s5726_s1 + $0x104] sm:$0xf]  ;;  %v3694_v24 = vld [vmem:[%s5726_s1 + $0x108] sm:$0xf0] }
 0x1ba   :  { %v1690_v29 = vadd.f32 %v1689_v34, %v1520_v60  ;;  %v5380_v33 = vor.u32 %v3922_v41, %v3470_v31  ;;  %v5384_v60 = vor.u32 %v3923_v42, %v3478_v35  ;;  %v3697_v31 = vor.u32 %v3978_v40, %v3694_v24  ;;  %v3492_v40 = vld [vmem:[%s5725_s0 + $0x368] sm:$0xf]  ;;  %v3929_v24 = vld [vmem:[%s5725_s0 + $0x374] sm:$0xf0] }
 0x1bb   :  { %v2026_v44 = vadd.f32 %v2025_v9, %v1857_v32  ;;  %5871 = vst [vmem:[#allocation68_spill] sm:$0xff] %v5378_v61  ;;  %v5442_v17 = vor.u32 %v3929_v24, %v3492_v40 }
 0x1bc   :  { %5872 = vst [vmem:[#allocation69_spill] sm:$0xff] %v5380_v33  ;;  %2445 = vmatpush.bf16.msrb.mxu2 %v3697_v31  ;;  %v3494_v31 = vld [vmem:[%s5725_s0 + $0x378] sm:$0xf0] }
 0x1bd   :  { %2972 = vst [vmem:[#allocation2 + $0x220] sm:$0xff] %v2026_v44 }
 0x1be   :  { %5874 = vst [vmem:[#allocation71_spill] sm:$0xff] %v5384_v60 }
 0x1c0   :  { %v1858_v62 = vpop.f32.mrf.mxu2  ;;  %v1523_v26 = vpop.f32.mrf.mxu0 }
 0x1c1   :  { %v1859_v32 = vadd.f32 %v1858_v62, %v1690_v29  ;;  %v2027_v9 = vpop.f32.mrf.mxu3  ;;  %v1692_v44 = vpop.f32.mrf.mxu1 }
 0x1c2   :  { %v1693_v27 = vadd.f32 %v1692_v44, %v1523_v26  ;;  %v3994_v26 = vld [vmem:[%s5726_s1 + $0x184] sm:$0xf]  ;;  %v3928_v44 = vld [vmem:[%s5725_s0 + $0x36c] sm:$0xf0] }
 0x1c3   :  { %v2028_v34 = vadd.f32 %v2027_v9, %v1859_v32  ;;  %1562 = vmatmul.bf16.gmra.mxu0 %v5378_v61  ;;  %v3761_v35 = vor.u32 %v3994_v26, %v3758_v30  ;;  %v3484_v9 = vld [vmem:[%s5725_s0 + $0x360] sm:$0xf]  ;;  %v3946_v30 = vld [vmem:[%s5726_s1 + $0x4] sm:$0xf] }
 0x1c4   :  { %1731 = vmatmul.bf16.gmra.mxu1 %v5380_v33 }
 0x1c5   :  { %1900 = vmatmul.bf16.gmra.mxu2 %v5382_v48  ;;  %2974 = vst [vmem:[#allocation2 + $0x230] sm:$0xff] %v2028_v34  ;;  %2614 = vmatpush.bf16.msrb.mxu3 %v3761_v35  ;;  %v3926_v34 = vld [vmem:[%s5725_s0 + $0x364] sm:$0xf]  ;;  %v5432_v35 = vor.u32 %v3928_v44, %v3484_v9 }
 0x1c6   :  { %2069 = vmatmul.bf16.gmra.mxu3 %v5384_v60  ;;  %v3962_v48 = vld [vmem:[%s5726_s1 + $0x84] sm:$0xf] }
 0x1c8   :  { %v1861_v41 = vpop.f32.mrf.mxu2  ;;  %v1525_v42 = vpop.f32.mrf.mxu0 }
 0x1c9   :  { %v1862_v28 = vadd.f32 %v1861_v41, %v1693_v27  ;;  %v2030_v29 = vpop.f32.mrf.mxu3  ;;  %v1694_v62 = vpop.f32.mrf.mxu1  ;;  %v3486_v27 = vld [vmem:[%s5725_s0 + $0x370] sm:$0xf0]  ;;  %v3927_v41 = vld [vmem:[%s5725_s0 + $0x36c] sm:$0xf] }
 0x1ca   :  { %v1695_v26 = vadd.f32 %v1694_v62, %v1525_v42  ;;  %v3630_v42 = vld [vmem:[%s5726_s1 + $0x88] sm:$0xf0]  ;;  %v5440_v61 = vor.u32 %v3926_v34, %v3486_v27  ;;  %v5444_v9 = vor.u32 %v3927_v41, %v3494_v31  ;;  %v3508_v31 = vld [vmem:[%s5725_s0 + $0x388] sm:$0xf] }
 0x1cb   :  { %v2031_v32 = vadd.f32 %v2030_v29, %v1862_v28  ;;  %v3566_v28 = vld [vmem:[%s5726_s1 + $0x8] sm:$0xf0]  ;;  %v3633_v11 = vor.u32 %v3962_v48, %v3630_v42  ;;  %v3510_v42 = vld [vmem:[%s5725_s0 + $0x398] sm:$0xf0] }
 0x1cc   :  { %v3569_v60 = vor.u32 %v3946_v30, %v3566_v28  ;;  %5875 = vst [vmem:[#allocation72_spill] sm:$0xff] %v5444_v9 }
 0x1cd   :  { %2976 = vst [vmem:[#allocation2 + $0x240] sm:$0xff] %v2031_v32  ;;  %2276 = vmatpush.bf16.msrb.mxu1 %v3633_v11  ;;  %v3500_v11 = vld [vmem:[%s5725_s0 + $0x380] sm:$0xf] }
 0x1ce   :  { %2107 = vmatpush.bf16.msrb.mxu0 %v3569_v60  ;;  %v3502_v60 = vld [vmem:[%s5725_s0 + $0x390] sm:$0xf0] }
 0x1d0   :  { %v1863_v29 = vpop.f32.mrf.mxu2  ;;  %v1528_v33 = vpop.f32.mrf.mxu0 }
 0x1d1   :  { %v1864_v62 = vadd.f32 %v1863_v29, %v1695_v26  ;;  %v2032_v32 = vpop.f32.mrf.mxu3  ;;  %v1697_v43 = vpop.f32.mrf.mxu1  ;;  %v3933_v26 = vld [vmem:[%s5725_s0 + $0x394] sm:$0xf0]  ;;  %v3931_v29 = vld [vmem:[%s5725_s0 + $0x38c] sm:$0xf] }
 0x1d2   :  { %v1698_v30 = vadd.f32 %v1697_v43, %v1528_v33  ;;  %v3932_v43 = vld [vmem:[%s5725_s0 + $0x38c] sm:$0xf0]  ;;  %v3930_v33 = vld [vmem:[%s5725_s0 + $0x384] sm:$0xf] }
 0x1d3   :  { %v2033_v44 = vadd.f32 %v2032_v32, %v1864_v62  ;;  %1567 = vmatmul.bf16.gmra.mxu0 %v5432_v35  ;;  %v5474_v32 = vor.u32 %v3932_v43, %v3500_v11 }
 0x1d4   :  { %1736 = vmatmul.bf16.gmra.mxu1 %v5440_v61 }
 0x1d5   :  { %1905 = vmatmul.bf16.gmra.mxu2 %v5442_v17  ;;  %2978 = vst [vmem:[#allocation2 + $0x250] sm:$0xff] %v2033_v44 }
 0x1d6   :  { %2074 = vmatmul.bf16.gmra.mxu3 %v5444_v9  ;;  %5876 = vst [vmem:[#allocation73_spill] sm:$0xff] %v5474_v32 }
 0x1d8   :  { %v1866_v34 = vpop.f32.mrf.mxu2  ;;  %v1530_v48 = vpop.f32.mrf.mxu0 }
 0x1d9   :  { %v1867_v27 = vadd.f32 %v1866_v34, %v1698_v30  ;;  %v2035_v40 = vpop.f32.mrf.mxu3  ;;  %v1699_v24 = vpop.f32.mrf.mxu1 }
 0x1da   :  { %v1700_v28 = vadd.f32 %v1699_v24, %v1530_v48  ;;  %v5480_v48 = vor.u32 %v3931_v29, %v3510_v42  ;;  %v3936_v29 = vld [vmem:[%s5725_s0 + $0x3ac] sm:$0xf0]  ;;  %v3934_v42 = vld [vmem:[%s5725_s0 + $0x3a4] sm:$0xf] }
 0x1db   :  { %v2036_v41 = vadd.f32 %v2035_v40, %v1867_v27  ;;  %v5476_v27 = vor.u32 %v3930_v33, %v3502_v60  ;;  %v5478_v40 = vor.u32 %v3933_v26, %v3508_v31 }
 0x1dc   :  { %5879 = vst [vmem:[#allocation76_spill] sm:$0xff] %v5480_v48 }
 0x1dd   :  { %2980 = vst [vmem:[#allocation2 + $0x260] sm:$0xff] %v2036_v41 }
 0x1de   :  { %5877 = vst [vmem:[#allocation74_spill] sm:$0xff] %v5476_v27 }
 0x1df   :  { %5878 = vst [vmem:[#allocation75_spill] sm:$0xff] %v5478_v40 }
 0x1e0   :  { %v1868_v62 = vpop.f32.mrf.mxu2  ;;  %v1533_v34 = vpop.f32.mrf.mxu0 }
 0x1e1   :  { %v1869_v44 = vadd.f32 %v1868_v62, %v1700_v28  ;;  %v2037_v30 = vpop.f32.mrf.mxu3  ;;  %v1702_v41 = vpop.f32.mrf.mxu1  ;;  %v3516_v28 = vld [vmem:[%s5725_s0 + $0x3a0] sm:$0xf]  ;;  %v3524_v62 = vld [vmem:[%s5725_s0 + $0x3a8] sm:$0xf] }
 0x1e2   :  { %v1703_v9 = vadd.f32 %v1702_v41, %v1533_v34  ;;  %v3935_v34 = vld [vmem:[%s5725_s0 + $0x3ac] sm:$0xf]  ;;  %v3526_v41 = vld [vmem:[%s5725_s0 + $0x3b8] sm:$0xf0] }
 0x1e3   :  { %v2038_v24 = vadd.f32 %v2037_v30, %v1869_v44  ;;  %1572 = vmatmul.bf16.gmra.mxu0 %v5474_v32  ;;  %v3937_v44 = vld [vmem:[%s5725_s0 + $0x3b4] sm:$0xf0] }
 0x1e4   :  { %1741 = vmatmul.bf16.gmra.mxu1 %v5476_v27  ;;  %v5514_v27 = vor.u32 %v3937_v44, %v3524_v62 }
 0x1e5   :  { %1910 = vmatmul.bf16.gmra.mxu2 %v5478_v40  ;;  %2982 = vst [vmem:[#allocation2 + $0x270] sm:$0xff] %v2038_v24 }
 0x1e6   :  { %2079 = vmatmul.bf16.gmra.mxu3 %v5480_v48  ;;  %5882 = vst [vmem:[#allocation79_spill] sm:$0xff] %v5514_v27 }
 0x1e8   :  { %v1871_v11 = vpop.f32.mrf.mxu2  ;;  %v1535_v60 = vpop.f32.mrf.mxu0 }
 0x1e9   :  { %v1872_v43 = vadd.f32 %v1871_v11, %v1703_v9  ;;  %v2040_v33 = vpop.f32.mrf.mxu3  ;;  %v1704_v31 = vpop.f32.mrf.mxu1  ;;  %v3518_v9 = vld [vmem:[%s5725_s0 + $0x3b0] sm:$0xf0]  ;;  %v5510_v11 = vor.u32 %v3936_v29, %v3516_v28 }
 0x1ea   :  { %v1705_v30 = vadd.f32 %v1704_v31, %v1535_v60  ;;  %v5512_v40 = vor.u32 %v3934_v42, %v3518_v9  ;;  %v5516_v60 = vor.u32 %v3935_v34, %v3526_v41  ;;  %v3938_v34 = vld [vmem:[%s5725_s0 + $0x3c4] sm:$0xf]  ;;  %v3540_v41 = vld [vmem:[%s5725_s0 + $0x3c8] sm:$0xf] }
 0x1eb   :  { %v2041_v26 = vadd.f32 %v2040_v33, %v1872_v43  ;;  %5880 = vst [vmem:[#allocation77_spill] sm:$0xff] %v5510_v11 }
 0x1ec   :  { %5881 = vst [vmem:[#allocation78_spill] sm:$0xff] %v5512_v40 }
 0x1ed   :  { %2984 = vst [vmem:[#allocation2 + $0x280] sm:$0xff] %v2041_v26 }
 0x1ee   :  { %5883 = vst [vmem:[#allocation80_spill] sm:$0xff] %v5516_v60 }
 0x1f0   :  { %v1873_v24 = vpop.f32.mrf.mxu2  ;;  %v1538_v48 = vpop.f32.mrf.mxu0 }
 0x1f1   :  { %v1874_v43 = vadd.f32 %v1873_v24, %v1705_v30  ;;  %v2042_v33 = vpop.f32.mrf.mxu3  ;;  %v1707_v26 = vpop.f32.mrf.mxu1  ;;  %v3532_v30 = vld [vmem:[%s5725_s0 + $0x3c0] sm:$0xf]  ;;  %v3941_v24 = vld [vmem:[%s5725_s0 + $0x3d4] sm:$0xf0] }
 0x1f2   :  { %v1708_v32 = vadd.f32 %v1707_v26, %v1538_v48  ;;  %v3940_v48 = vld [vmem:[%s5725_s0 + $0x3cc] sm:$0xf0]  ;;  %v3542_v26 = vld [vmem:[%s5725_s0 + $0x3d8] sm:$0xf0] }
 0x1f3   :  { %v2043_v31 = vadd.f32 %v2042_v33, %v1874_v43  ;;  %1577 = vmatmul.bf16.gmra.mxu0 %v5510_v11  ;;  %v3939_v33 = vld [vmem:[%s5725_s0 + $0x3cc] sm:$0xf] }
 0x1f4   :  { %1746 = vmatmul.bf16.gmra.mxu1 %v5512_v40  ;;  %v5550_v40 = vor.u32 %v3941_v24, %v3540_v41 }
 0x1f5   :  { %1915 = vmatmul.bf16.gmra.mxu2 %v5514_v27  ;;  %2986 = vst [vmem:[#allocation2 + $0x290] sm:$0xff] %v2043_v31 }
 0x1f6   :  { %2084 = vmatmul.bf16.gmra.mxu3 %v5516_v60  ;;  %5886 = vst [vmem:[#allocation83_spill] sm:$0xff] %v5550_v40 }
 0x1f8   :  { %v1876_v28 = vpop.f32.mrf.mxu2  ;;  %v1540_v9 = vpop.f32.mrf.mxu0 }
 0x1f9   :  { %v1877_v29 = vadd.f32 %v1876_v28, %v1708_v32  ;;  %v2045_v42 = vpop.f32.mrf.mxu3  ;;  %v1709_v62 = vpop.f32.mrf.mxu1  ;;  %v3534_v32 = vld [vmem:[%s5725_s0 + $0x3d0] sm:$0xf0]  ;;  %v5546_v28 = vor.u32 %v3940_v48, %v3532_v30 }
 0x1fa   :  { %v1710_v43 = vadd.f32 %v1709_v62, %v1540_v9  ;;  %v5548_v27 = vor.u32 %v3938_v34, %v3534_v32  ;;  %v5552_v9 = vor.u32 %v3939_v33, %v3542_v26  ;;  %v3942_v33 = vld [vmem:[%s5725_s0 + $0x3e4] sm:$0xf]  ;;  %v3556_v26 = vld [vmem:[%s5725_s0 + $0x3e8] sm:$0xf] }
 0x1fb   :  { %v2046_v44 = vadd.f32 %v2045_v42, %v1877_v29  ;;  %5884 = vst [vmem:[#allocation81_spill] sm:$0xff] %v5546_v28 }
 0x1fc   :  { %5885 = vst [vmem:[#allocation82_spill] sm:$0xff] %v5548_v27 }
 0x1fd   :  { %2988 = vst [vmem:[#allocation2 + $0x2a0] sm:$0xff] %v2046_v44 }
 0x1fe   :  { %5887 = vst [vmem:[#allocation84_spill] sm:$0xff] %v5552_v9 }
 0x200   :  { %v1878_v31 = vpop.f32.mrf.mxu2  ;;  %v1543_v60 = vpop.f32.mrf.mxu0 }
 0x201   :  { %v1879_v29 = vadd.f32 %v1878_v31, %v1710_v43  ;;  %v2047_v42 = vpop.f32.mrf.mxu3  ;;  %v1712_v44 = vpop.f32.mrf.mxu1  ;;  %v3548_v43 = vld [vmem:[%s5725_s0 + $0x3e0] sm:$0xf]  ;;  %v3945_v31 = vld [vmem:[%s5725_s0 + $0x3f4] sm:$0xf0] }
 0x202   :  { %v1713_v11 = vadd.f32 %v1712_v44, %v1543_v60  ;;  %v3944_v60 = vld [vmem:[%s5725_s0 + $0x3ec] sm:$0xf0]  ;;  %v3558_v44 = vld [vmem:[%s5725_s0 + $0x3f8] sm:$0xf0] }
 0x203   :  { %v2048_v62 = vadd.f32 %v2047_v42, %v1879_v29  ;;  %1582 = vmatmul.bf16.gmra.mxu0 %v5546_v28  ;;  %v3943_v42 = vld [vmem:[%s5725_s0 + $0x3ec] sm:$0xf] }
 0x204   :  { %1751 = vmatmul.bf16.gmra.mxu1 %v5548_v27  ;;  %v5586_v27 = vor.u32 %v3945_v31, %v3556_v26 }
 0x205   :  { %1920 = vmatmul.bf16.gmra.mxu2 %v5550_v40  ;;  %2990 = vst [vmem:[#allocation2 + $0x2b0] sm:$0xff] %v2048_v62 }
 0x206   :  { %2089 = vmatmul.bf16.gmra.mxu3 %v5552_v9 }
 0x208   :  { %v1881_v30 = vpop.f32.mrf.mxu2  ;;  %v1545_v32 = vpop.f32.mrf.mxu0 }
 0x209   :  { %v1882_v48 = vadd.f32 %v1881_v30, %v1713_v11  ;;  %v2050_v34 = vpop.f32.mrf.mxu3  ;;  %v1714_v41 = vpop.f32.mrf.mxu1  ;;  %v3550_v11 = vld [vmem:[%s5725_s0 + $0x3f0] sm:$0xf0]  ;;  %v5582_v30 = vor.u32 %v3944_v60, %v3548_v43  ;;  %s4040_s0 = smov [#allocation2]  }
 0x20a   :  { %v1715_v29 = vadd.f32 %v1714_v41, %v1545_v32  ;;  %v5584_v40 = vor.u32 %v3942_v33, %v3550_v11  ;;  %v5588_v32 = vor.u32 %v3943_v42, %v3558_v44  ;;  %s3036_s18 = sshll.u32 %s4040_s0, 4  ;;  %s3037_s18 = int_to_ptr.vmem [resolvable:$true] %s3036_s18 }
 0x20b   :  { %v2051_v24 = vadd.f32 %v2050_v34, %v1882_v48 }
 0x20d   :  { %2992 = vst [vmem:[#allocation2 + $0x2c0] sm:$0xff] %v2051_v24 }
 0x210   :  { %v1883_v62 = vpop.f32.mrf.mxu2  ;;  %v1548_v9 = vpop.f32.mrf.mxu0 }
 0x211   :  { %v1884_v48 = vadd.f32 %v1883_v62, %v1715_v29  ;;  %v2052_v34 = vpop.f32.mrf.mxu3  ;;  %v1717_v24 = vpop.f32.mrf.mxu1 }
 0x212   :  { %v1718_v28 = vadd.f32 %v1717_v24, %v1548_v9 }
 0x213   :  { %v2053_v41 = vadd.f32 %v2052_v34, %v1884_v48  ;;  %1587 = vmatmul.bf16.gmra.mxu0 %v5582_v30 }
 0x214   :  { %1756 = vmatmul.bf16.gmra.mxu1 %v5584_v40 }
 0x215   :  { %1925 = vmatmul.bf16.gmra.mxu2 %v5586_v27  ;;  %2994 = vst [vmem:[#allocation2 + $0x2d0] sm:$0xff] %v2053_v41 }
 0x216   :  { %2094 = vmatmul.bf16.gmra.mxu3 %v5588_v32 }
 0x218   :  { %v1886_v43 = vpop.f32.mrf.mxu2  ;;  %v1550_v11 = vpop.f32.mrf.mxu0 }
 0x219   :  { %v1887_v60 = vadd.f32 %v1886_v43, %v1718_v28  ;;  %v2055_v33 = vpop.f32.mrf.mxu3  ;;  %v1719_v26 = vpop.f32.mrf.mxu1 }
 0x21a   :  { %v1720_v29 = vadd.f32 %v1719_v26, %v1550_v11 }
 0x21b   :  { %v2056_v31 = vadd.f32 %v2055_v33, %v1887_v60 }
 0x21d   :  { %2996 = vst [vmem:[#allocation2 + $0x2e0] sm:$0xff] %v2056_v31 }
 0x220   :  { %v1888_v42 = vpop.f32.mrf.mxu2  ;;  %v1553_v48 = vpop.f32.mrf.mxu0 }
 0x221   :  { %v1889_v44 = vadd.f32 %v1888_v42, %v1720_v29  ;;  %v2057_v62 = vpop.f32.mrf.mxu3  ;;  %v1722_v9 = vpop.f32.mrf.mxu1 }
 0x222   :  { %v1723_v24 = vadd.f32 %v1722_v9, %v1553_v48 }
 0x223   :  { %v2058_v34 = vadd.f32 %v2057_v62, %v1889_v44  ;;  %2108 = vmatmul.bf16.vlgmr.msrb.gmra.mxu0 %v4292_v47 }
 0x224   :  { %2277 = vmatmul.bf16.vlgmr.msrb.gmra.mxu1 %v4300_v51 }
 0x225   :  { %2446 = vmatmul.bf16.vlgmr.msrb.gmra.mxu2 %v4302_v52  ;;  %2998 = vst [vmem:[#allocation2 + $0x2f0] sm:$0xff] %v2058_v34 }
 0x226   :  { %2615 = vmatmul.bf16.vlgmr.msrb.gmra.mxu3 %v4304_v53 }
 0x228   :  { %v1891_v28 = vpop.f32.mrf.mxu2  ;;  %v1555_v60 = vpop.f32.mrf.mxu0 }
 0x229   :  { %v1892_v41 = vadd.f32 %v1891_v28, %v1723_v24  ;;  %v2060_v43 = vpop.f32.mrf.mxu3  ;;  %v1724_v33 = vpop.f32.mrf.mxu1 }
 0x22a   :  { %v1725_v26 = vadd.f32 %v1724_v33, %v1555_v60 }
 0x22b   :  { %v2061_v11 = vadd.f32 %v2060_v43, %v1892_v41 }
 0x22d   :  { %3000 = vst [vmem:[#allocation2 + $0x300] sm:$0xff] %v2061_v11 }
 0x230   :  { %v1893_v31 = vpop.f32.mrf.mxu2  ;;  %v1558_v47 = vpop.f32.mrf.mxu0 }
 0x231   :  { %v1894_v29 = vadd.f32 %v1893_v31, %v1725_v26  ;;  %v2062_v42 = vpop.f32.mrf.mxu3  ;;  %v1727_v44 = vpop.f32.mrf.mxu1 }
 0x232   :  { %v1728_v51 = vadd.f32 %v1727_v44, %v1558_v47 }
 0x233   :  { %v2063_v62 = vadd.f32 %v2062_v42, %v1894_v29  ;;  %2113 = vmatmul.bf16.gmra.mxu0 %v4334_v0 }
 0x234   :  { %2282 = vmatmul.bf16.gmra.mxu1 %v4336_v1 }
 0x235   :  { %2451 = vmatmul.bf16.gmra.mxu2 %v4338_v2  ;;  %3002 = vst [vmem:[#allocation2 + $0x310] sm:$0xff] %v2063_v62 }
 0x236   :  { %2620 = vmatmul.bf16.gmra.mxu3 %v4340_v3 }
 0x238   :  { %v1896_v52 = vpop.f32.mrf.mxu2  ;;  %v1560_v9 = vpop.f32.mrf.mxu0 }
 0x239   :  { %v1897_v53 = vadd.f32 %v1896_v52, %v1728_v51  ;;  %v2065_v48 = vpop.f32.mrf.mxu3  ;;  %v1729_v34 = vpop.f32.mrf.mxu1 }
 0x23a   :  { %v1730_v28 = vadd.f32 %v1729_v34, %v1560_v9 }
 0x23b   :  { %v2066_v24 = vadd.f32 %v2065_v48, %v1897_v53 }
 0x23d   :  { %3004 = vst [vmem:[#allocation2 + $0x320] sm:$0xff] %v2066_v24 }
 0x240   :  { %v1898_v41 = vpop.f32.mrf.mxu2  ;;  %v1563_v0 = vpop.f32.mrf.mxu0 }
 0x241   :  { %v1899_v43 = vadd.f32 %v1898_v41, %v1730_v28  ;;  %v2067_v60 = vpop.f32.mrf.mxu3  ;;  %v1732_v33 = vpop.f32.mrf.mxu1 }
 0x242   :  { %v1733_v1 = vadd.f32 %v1732_v33, %v1563_v0 }
 0x243   :  { %v2068_v11 = vadd.f32 %v2067_v60, %v1899_v43  ;;  %2118 = vmatmul.bf16.gmra.mxu0 %v4370_v12 }
 0x244   :  { %2287 = vmatmul.bf16.gmra.mxu1 %v4372_v13 }
 0x245   :  { %2456 = vmatmul.bf16.gmra.mxu2 %v4374_v14  ;;  %3006 = vst [vmem:[#allocation2 + $0x330] sm:$0xff] %v2068_v11 }
 0x246   :  { %2625 = vmatmul.bf16.gmra.mxu3 %v4376_v15 }
 0x248   :  { %v1901_v2 = vpop.f32.mrf.mxu2  ;;  %v1565_v31 = vpop.f32.mrf.mxu0 }
 0x249   :  { %v1902_v3 = vadd.f32 %v1901_v2, %v1733_v1  ;;  %v2070_v26 = vpop.f32.mrf.mxu3  ;;  %v1734_v29 = vpop.f32.mrf.mxu1 }
 0x24a   :  { %v1735_v47 = vadd.f32 %v1734_v29, %v1565_v31 }
 0x24b   :  { %v2071_v42 = vadd.f32 %v2070_v26, %v1902_v3 }
 0x24d   :  { %3008 = vst [vmem:[#allocation2 + $0x340] sm:$0xff] %v2071_v42 }
 0x250   :  { %v1903_v44 = vpop.f32.mrf.mxu2  ;;  %v1568_v12 = vpop.f32.mrf.mxu0 }
 0x251   :  { %v1904_v62 = vadd.f32 %v1903_v44, %v1735_v47  ;;  %v2072_v51 = vpop.f32.mrf.mxu3  ;;  %v1737_v52 = vpop.f32.mrf.mxu1 }
 0x252   :  { %v1738_v13 = vadd.f32 %v1737_v52, %v1568_v12 }
 0x253   :  { %v2073_v53 = vadd.f32 %v2072_v51, %v1904_v62  ;;  %2123 = vmatmul.bf16.gmra.mxu0 %v4430_v36 }
 0x254   :  { %2292 = vmatmul.bf16.gmra.mxu1 %v4432_v37 }
 0x255   :  { %2461 = vmatmul.bf16.gmra.mxu2 %v4434_v38  ;;  %3010 = vst [vmem:[#allocation2 + $0x350] sm:$0xff] %v2073_v53 }
 0x256   :  { %2630 = vmatmul.bf16.gmra.mxu3 %v4436_v39 }
 0x258   :  { %v1906_v14 = vpop.f32.mrf.mxu2  ;;  %v1570_v9 = vpop.f32.mrf.mxu0 }
 0x259   :  { %v1907_v15 = vadd.f32 %v1906_v14, %v1738_v13  ;;  %v2075_v48 = vpop.f32.mrf.mxu3  ;;  %v1739_v34 = vpop.f32.mrf.mxu1 }
 0x25a   :  { %v1740_v28 = vadd.f32 %v1739_v34, %v1570_v9 }
 0x25b   :  { %v2076_v24 = vadd.f32 %v2075_v48, %v1907_v15 }
 0x25d   :  { %3012 = vst [vmem:[#allocation2 + $0x360] sm:$0xff] %v2076_v24 }
 0x260   :  { %v1908_v41 = vpop.f32.mrf.mxu2  ;;  %v1573_v36 = vpop.f32.mrf.mxu0 }
 0x261   :  { %v1909_v43 = vadd.f32 %v1908_v41, %v1740_v28  ;;  %v2077_v60 = vpop.f32.mrf.mxu3  ;;  %v1742_v0 = vpop.f32.mrf.mxu1 }
 0x262   :  { %v1743_v37 = vadd.f32 %v1742_v0, %v1573_v36 }
 0x263   :  { %v2078_v33 = vadd.f32 %v2077_v60, %v1909_v43  ;;  %2128 = vmatmul.bf16.gmra.mxu0 %v4466_v49 }
 0x264   :  { %2297 = vmatmul.bf16.gmra.mxu1 %v4468_v50 }
 0x265   :  { %2466 = vmatmul.bf16.gmra.mxu2 %v4470_v54  ;;  %3014 = vst [vmem:[#allocation2 + $0x370] sm:$0xff] %v2078_v33 }
 0x266   :  { %2635 = vmatmul.bf16.gmra.mxu3 %v4472_v55 }
 0x268   :  { %v1911_v38 = vpop.f32.mrf.mxu2  ;;  %v1575_v1 = vpop.f32.mrf.mxu0 }
 0x269   :  { %v1912_v39 = vadd.f32 %v1911_v38, %v1743_v37  ;;  %v2080_v11 = vpop.f32.mrf.mxu3  ;;  %v1744_v2 = vpop.f32.mrf.mxu1 }
 0x26a   :  { %v1745_v26 = vadd.f32 %v1744_v2, %v1575_v1 }
 0x26b   :  { %v2081_v3 = vadd.f32 %v2080_v11, %v1912_v39 }
 0x26d   :  { %3016 = vst [vmem:[#allocation2 + $0x380] sm:$0xff] %v2081_v3 }
 0x270   :  { %v1913_v31 = vpop.f32.mrf.mxu2  ;;  %v1578_v49 = vpop.f32.mrf.mxu0 }
 0x271   :  { %v1914_v29 = vadd.f32 %v1913_v31, %v1745_v26  ;;  %v2082_v42 = vpop.f32.mrf.mxu3  ;;  %v1747_v47 = vpop.f32.mrf.mxu1 }
 0x272   :  { %v1748_v50 = vadd.f32 %v1747_v47, %v1578_v49 }
 0x273   :  { %v2083_v44 = vadd.f32 %v2082_v42, %v1914_v29  ;;  %2133 = vmatmul.bf16.gmra.mxu0 %v4502_v4 }
 0x274   :  { %2302 = vmatmul.bf16.gmra.mxu1 %v4504_v5 }
 0x275   :  { %2471 = vmatmul.bf16.gmra.mxu2 %v4506_v6  ;;  %3018 = vst [vmem:[#allocation2 + $0x390] sm:$0xff] %v2083_v44 }
 0x276   :  { %2640 = vmatmul.bf16.gmra.mxu3 %v4508_v7 }
 0x278   :  { %v1916_v54 = vpop.f32.mrf.mxu2  ;;  %v1580_v51 = vpop.f32.mrf.mxu0 }
 0x279   :  { %v1917_v55 = vadd.f32 %v1916_v54, %v1748_v50  ;;  %v2085_v62 = vpop.f32.mrf.mxu3  ;;  %v1749_v12 = vpop.f32.mrf.mxu1 }
 0x27a   :  { %v1750_v53 = vadd.f32 %v1749_v12, %v1580_v51 }
 0x27b   :  { %v2086_v52 = vadd.f32 %v2085_v62, %v1917_v55 }
 0x27d   :  { %3020 = vst [vmem:[#allocation2 + $0x3a0] sm:$0xff] %v2086_v52 }
 0x280   :  { %v1918_v13 = vpop.f32.mrf.mxu2  ;;  %v1583_v4 = vpop.f32.mrf.mxu0 }
 0x281   :  { %v1919_v14 = vadd.f32 %v1918_v13, %v1750_v53  ;;  %v2087_v15 = vpop.f32.mrf.mxu3  ;;  %v1752_v48 = vpop.f32.mrf.mxu1 }
 0x282   :  { %v1753_v5 = vadd.f32 %v1752_v48, %v1583_v4 }
 0x283   :  { %v2088_v9 = vadd.f32 %v2087_v15, %v1919_v14  ;;  %2138 = vmatmul.bf16.gmra.mxu0 %v4538_v20 }
 0x284   :  { %2307 = vmatmul.bf16.gmra.mxu1 %v4540_v21 }
 0x285   :  { %2476 = vmatmul.bf16.gmra.mxu2 %v4542_v22  ;;  %3022 = vst [vmem:[#allocation2 + $0x3b0] sm:$0xff] %v2088_v9 }
 0x286   :  { %2645 = vmatmul.bf16.gmra.mxu3 %v4544_v23 }
 0x288   :  { %v1921_v6 = vpop.f32.mrf.mxu2  ;;  %v1585_v24 = vpop.f32.mrf.mxu0 }
 0x289   :  { %v1922_v7 = vadd.f32 %v1921_v6, %v1753_v5  ;;  %v2090_v34 = vpop.f32.mrf.mxu3  ;;  %v1754_v28 = vpop.f32.mrf.mxu1 }
 0x28a   :  { %v1755_v43 = vadd.f32 %v1754_v28, %v1585_v24 }
 0x28b   :  { %v2091_v41 = vadd.f32 %v2090_v34, %v1922_v7  ;;  %v5890_v34 = vld [vmem:[#allocation7_spill] sm:$0xff] }
 0x28d   :  { %3024 = vst [vmem:[#allocation2 + $0x3c0] sm:$0xff] %v2091_v41 }
 0x290   :  { %v1923_v60 = vpop.f32.mrf.mxu2  ;;  %v1588_v20 = vpop.f32.mrf.mxu0 }
 0x291   :  { %v1924_v36 = vadd.f32 %v1923_v60, %v1755_v43  ;;  %v2092_v0 = vpop.f32.mrf.mxu3  ;;  %v1757_v33 = vpop.f32.mrf.mxu1 }
 0x292   :  { %v1758_v21 = vadd.f32 %v1757_v33, %v1588_v20 }
 0x293   :  { %v2093_v37 = vadd.f32 %v2092_v0, %v1924_v36  ;;  %2143 = vmatmul.bf16.gmra.mxu0 %v4595_v45 }
 0x294   :  { %2312 = vmatmul.bf16.gmra.mxu1 %v4600_v56 }
 0x295   :  { %2481 = vmatmul.bf16.gmra.mxu2 %v4602_v57  ;;  %3026 = vst [vmem:[#allocation2 + $0x3d0] sm:$0xff] %v2093_v37 }
 0x296   :  { %2650 = vmatmul.bf16.gmra.mxu3 %v4604_v59 }
 0x298   :  { %v1926_v22 = vpop.f32.mrf.mxu2  ;;  %v1590_v39 = vpop.f32.mrf.mxu0 }
 0x299   :  { %v1927_v23 = vadd.f32 %v1926_v22, %v1758_v21  ;;  %v2095_v38 = vpop.f32.mrf.mxu3  ;;  %v1759_v11 = vpop.f32.mrf.mxu1 }
 0x29a   :  { %v1760_v2 = vadd.f32 %v1759_v11, %v1590_v39  ;;  %v5892_v39 = vld [vmem:[#allocation9_spill] sm:$0xff]  ;;  %v5893_v11 = vld [vmem:[#allocation10_spill] sm:$0xff] }
 0x29b   :  { %v2096_v1 = vadd.f32 %v2095_v38, %v1927_v23  ;;  %v5891_v23 = vld [vmem:[#allocation8_spill] sm:$0xff] }
 0x29d   :  { %3028 = vst [vmem:[#allocation2 + $0x3e0] sm:$0xff] %v2096_v1  ;;  %v5894_v1 = vld [vmem:[#allocation11_spill] sm:$0xff] }
 0x2a0   :  { %v1928_v3 = vpop.f32.mrf.mxu2  ;;  %v2109_v45 = vpop.f32.mrf.mxu0 }
 0x2a1   :  { %v1929_v26 = vadd.f32 %v1928_v3, %v1760_v2  ;;  %v2097_v31 = vpop.f32.mrf.mxu3  ;;  %v2278_v29 = vpop.f32.mrf.mxu1 }
 0x2a2   :  { %v2279_v56 = vadd.f32 %v2278_v29, %v2109_v45 }
 0x2a3   :  { %v2098_v42 = vadd.f32 %v2097_v31, %v1929_v26  ;;  %2148 = vmatmul.bf16.gmra.mxu0 %v4634_v16 }
 0x2a4   :  { %2317 = vmatmul.bf16.gmra.mxu1 %v4636_v18 }
 0x2a5   :  { %2486 = vmatmul.bf16.gmra.mxu2 %v4638_v19  ;;  %3030 = vst [vmem:[#allocation2 + $0x3f0] sm:$0xff] %v2098_v42 }
 0x2a6   :  { %2655 = vmatmul.bf16.gmra.mxu3 %v4640_v25 }
 0x2a8   :  { %v2447_v57 = vpop.f32.mrf.mxu2  ;;  %v2111_v47 = vpop.f32.mrf.mxu0 }
 0x2a9   :  { %v2448_v59 = vadd.f32 %v2447_v57, %v2279_v56  ;;  %v2616_v49 = vpop.f32.mrf.mxu3  ;;  %v2280_v44 = vpop.f32.mrf.mxu1 }
 0x2aa   :  { %v2281_v54 = vadd.f32 %v2280_v44, %v2111_v47 }
 0x2ab   :  { %v2617_v50 = vadd.f32 %v2616_v49, %v2448_v59 }
 0x2ad   :  { %2905 = vst [vmem:[#allocation2 + $0x8] sm:$0xff] %v2617_v50  ;;  %v5895_v50 = vld [vmem:[#allocation12_spill] sm:$0xff] }
 0x2b0   :  { %v2449_v55 = vpop.f32.mrf.mxu2  ;;  %v2114_v16 = vpop.f32.mrf.mxu0 }
 0x2b1   :  { %v2450_v62 = vadd.f32 %v2449_v55, %v2281_v54  ;;  %v2618_v51 = vpop.f32.mrf.mxu3  ;;  %v2283_v12 = vpop.f32.mrf.mxu1  ;;  %v5896_v55 = vld [vmem:[#allocation13_spill] sm:$0xff] }
 0x2b2   :  { %v2284_v18 = vadd.f32 %v2283_v12, %v2114_v16 }
 0x2b3   :  { %v2619_v52 = vadd.f32 %v2618_v51, %v2450_v62  ;;  %2153 = vmatmul.bf16.gmra.mxu0 %v4670_v58  ;;  %v5897_v62 = vld [vmem:[#allocation14_spill] sm:$0xff]  ;;  %v5898_v51 = vld [vmem:[#allocation15_spill] sm:$0xff] }
 0x2b4   :  { %2322 = vmatmul.bf16.gmra.mxu1 %v4672_v63 }
 0x2b5   :  { %2491 = vmatmul.bf16.gmra.mxu2 %v4674_v8  ;;  %2907 = vst [vmem:[#allocation2 + $0x18] sm:$0xff] %v2619_v52  ;;  %v5888_v8 = vld [vmem:[#allocation5_spill] sm:$0xff] }
 0x2b6   :  { %2660 = vmatmul.bf16.gmra.mxu3 %v4676_v10  ;;  %v5889_v10 = vld [vmem:[#allocation6_spill] sm:$0xff] }
 0x2b8   :  { %v2452_v19 = vpop.f32.mrf.mxu2  ;;  %v2116_v13 = vpop.f32.mrf.mxu0 }
 0x2b9   :  { %v2453_v25 = vadd.f32 %v2452_v19, %v2284_v18  ;;  %v2621_v53 = vpop.f32.mrf.mxu3  ;;  %v2285_v14 = vpop.f32.mrf.mxu1 }
 0x2ba   :  { %v2286_v4 = vadd.f32 %v2285_v14, %v2116_v13 }
 0x2bb   :  { %v2622_v15 = vadd.f32 %v2621_v53, %v2453_v25 }
 0x2bd   :  { %2909 = vst [vmem:[#allocation2 + $0x28] sm:$0xff] %v2622_v15 }
 0x2c0   :  { %v2454_v48 = vpop.f32.mrf.mxu2  ;;  %v2119_v58 = vpop.f32.mrf.mxu0 }
 0x2c1   :  { %v2455_v9 = vadd.f32 %v2454_v48, %v2286_v4  ;;  %v2623_v5 = vpop.f32.mrf.mxu3  ;;  %v2288_v6 = vpop.f32.mrf.mxu1 }
 0x2c2   :  { %v2289_v63 = vadd.f32 %v2288_v6, %v2119_v58  ;;  %v5900_v6 = vld [vmem:[#allocation17_spill] sm:$0xff] }
 0x2c3   :  { %v2624_v7 = vadd.f32 %v2623_v5, %v2455_v9  ;;  %2158 = vmatmul.bf16.gmra.mxu0 %v4706_v46  ;;  %v5899_v5 = vld [vmem:[#allocation16_spill] sm:$0xff] }
 0x2c4   :  { %2327 = vmatmul.bf16.gmra.mxu1 %v5888_v8 }
 0x2c5   :  { %2496 = vmatmul.bf16.gmra.mxu2 %v5889_v10  ;;  %2911 = vst [vmem:[#allocation2 + $0x38] sm:$0xff] %v2624_v7  ;;  %v5901_v7 = vld [vmem:[#allocation18_spill] sm:$0xff] }
 0x2c6   :  { %2665 = vmatmul.bf16.gmra.mxu3 %v5890_v34 }
 0x2c8   :  { %v2457_v24 = vpop.f32.mrf.mxu2  ;;  %v2121_v43 = vpop.f32.mrf.mxu0 }
 0x2c9   :  { %v2458_v28 = vadd.f32 %v2457_v24, %v2289_v63  ;;  %v2626_v41 = vpop.f32.mrf.mxu3  ;;  %v2290_v60 = vpop.f32.mrf.mxu1  ;;  %v5902_v63 = vld [vmem:[#allocation19_spill] sm:$0xff] }
 0x2ca   :  { %v2291_v0 = vadd.f32 %v2290_v60, %v2121_v43 }
 0x2cb   :  { %v2627_v36 = vadd.f32 %v2626_v41, %v2458_v28 }
 0x2cd   :  { %2913 = vst [vmem:[#allocation2 + $0x48] sm:$0xff] %v2627_v36 }
 0x2d0   :  { %v2459_v20 = vpop.f32.mrf.mxu2  ;;  %v2124_v46 = vpop.f32.mrf.mxu0 }
 0x2d1   :  { %v2460_v33 = vadd.f32 %v2459_v20, %v2291_v0  ;;  %v2628_v37 = vpop.f32.mrf.mxu3  ;;  %v2293_v21 = vpop.f32.mrf.mxu1 }
 0x2d2   :  { %v2294_v38 = vadd.f32 %v2293_v21, %v2124_v46  ;;  %v5903_v46 = vld [vmem:[#allocation20_spill] sm:$0xff] }
 0x2d3   :  { %v2629_v22 = vadd.f32 %v2628_v37, %v2460_v33  ;;  %2163 = vmatmul.bf16.gmra.mxu0 %v5891_v23  ;;  %v5905_v23 = vld [vmem:[#allocation22_spill] sm:$0xff] }
 0x2d4   :  { %2332 = vmatmul.bf16.gmra.mxu1 %v5892_v39 }
 0x2d5   :  { %2501 = vmatmul.bf16.gmra.mxu2 %v5893_v11  ;;  %2915 = vst [vmem:[#allocation2 + $0x58] sm:$0xff] %v2629_v22  ;;  %v5904_v22 = vld [vmem:[#allocation21_spill] sm:$0xff] }
 0x2d6   :  { %2670 = vmatmul.bf16.gmra.mxu3 %v5894_v1 }
 0x2d8   :  { %v2462_v2 = vpop.f32.mrf.mxu2  ;;  %v2126_v31 = vpop.f32.mrf.mxu0 }
 0x2d9   :  { %v2463_v3 = vadd.f32 %v2462_v2, %v2294_v38  ;;  %v2631_v26 = vpop.f32.mrf.mxu3  ;;  %v2295_v45 = vpop.f32.mrf.mxu1  ;;  %v5906_v38 = vld [vmem:[#allocation23_spill] sm:$0xff] }
 0x2da   :  { %v2296_v42 = vadd.f32 %v2295_v45, %v2126_v31 }
 0x2db   :  { %v2632_v29 = vadd.f32 %v2631_v26, %v2463_v3 }
 0x2dd   :  { %2917 = vst [vmem:[#allocation2 + $0x68] sm:$0xff] %v2632_v29 }
 0x2e0   :  { %v2464_v56 = vpop.f32.mrf.mxu2  ;;  %v2129_v49 = vpop.f32.mrf.mxu0 }
 0x2e1   :  { %v2465_v57 = vadd.f32 %v2464_v56, %v2296_v42  ;;  %v2633_v59 = vpop.f32.mrf.mxu3  ;;  %v2298_v47 = vpop.f32.mrf.mxu1 }
 0x2e2   :  { %v2299_v54 = vadd.f32 %v2298_v47, %v2129_v49  ;;  %v5907_v49 = vld [vmem:[#allocation24_spill] sm:$0xff] }
 0x2e3   :  { %v2634_v44 = vadd.f32 %v2633_v59, %v2465_v57  ;;  %2168 = vmatmul.bf16.gmra.mxu0 %v5895_v50  ;;  %v5909_v50 = vld [vmem:[#allocation26_spill] sm:$0xff] }
 0x2e4   :  { %2337 = vmatmul.bf16.gmra.mxu1 %v5896_v55 }
 0x2e5   :  { %2506 = vmatmul.bf16.gmra.mxu2 %v5897_v62  ;;  %2919 = vst [vmem:[#allocation2 + $0x78] sm:$0xff] %v2634_v44  ;;  %v5908_v44 = vld [vmem:[#allocation25_spill] sm:$0xff] }
 0x2e6   :  { %2675 = vmatmul.bf16.gmra.mxu3 %v5898_v51 }
 0x2e8   :  { %v2467_v16 = vpop.f32.mrf.mxu2  ;;  %v2131_v18 = vpop.f32.mrf.mxu0 }
 0x2e9   :  { %v2468_v12 = vadd.f32 %v2467_v16, %v2299_v54  ;;  %v2636_v52 = vpop.f32.mrf.mxu3  ;;  %v2300_v19 = vpop.f32.mrf.mxu1  ;;  %v5910_v54 = vld [vmem:[#allocation27_spill] sm:$0xff] }
 0x2ea   :  { %v2301_v53 = vadd.f32 %v2300_v19, %v2131_v18 }
 0x2eb   :  { %v2637_v25 = vadd.f32 %v2636_v52, %v2468_v12 }
 0x2ed   :  { %2921 = vst [vmem:[#allocation2 + $0x88] sm:$0xff] %v2637_v25 }
 0x2f0   :  { %v2469_v13 = vpop.f32.mrf.mxu2  ;;  %v2134_v4 = vpop.f32.mrf.mxu0 }
 0x2f1   :  { %v2470_v14 = vadd.f32 %v2469_v13, %v2301_v53  ;;  %v2638_v15 = vpop.f32.mrf.mxu3  ;;  %v2303_v48 = vpop.f32.mrf.mxu1 }
 0x2f2   :  { %v2304_v58 = vadd.f32 %v2303_v48, %v2134_v4  ;;  %v5911_v4 = vld [vmem:[#allocation28_spill] sm:$0xff] }
 0x2f3   :  { %v2639_v9 = vadd.f32 %v2638_v15, %v2470_v14  ;;  %2173 = vmatmul.bf16.gmra.mxu0 %v5899_v5  ;;  %v5913_v5 = vld [vmem:[#allocation30_spill] sm:$0xff] }
 0x2f4   :  { %2342 = vmatmul.bf16.gmra.mxu1 %v5900_v6 }
 0x2f5   :  { %2511 = vmatmul.bf16.gmra.mxu2 %v5901_v7  ;;  %2923 = vst [vmem:[#allocation2 + $0x98] sm:$0xff] %v2639_v9  ;;  %v5912_v9 = vld [vmem:[#allocation29_spill] sm:$0xff] }
 0x2f6   :  { %2680 = vmatmul.bf16.gmra.mxu3 %v5902_v63 }
 0x2f8   :  { %v2472_v8 = vpop.f32.mrf.mxu2  ;;  %v2136_v24 = vpop.f32.mrf.mxu0 }
 0x2f9   :  { %v2473_v10 = vadd.f32 %v2472_v8, %v2304_v58  ;;  %v2641_v34 = vpop.f32.mrf.mxu3  ;;  %v2305_v28 = vpop.f32.mrf.mxu1  ;;  %v5914_v58 = vld [vmem:[#allocation31_spill] sm:$0xff] }
 0x2fa   :  { %v2306_v43 = vadd.f32 %v2305_v28, %v2136_v24 }
 0x2fb   :  { %v2642_v41 = vadd.f32 %v2641_v34, %v2473_v10 }
 0x2fd   :  { %2925 = vst [vmem:[#allocation2 + $0xa8] sm:$0xff] %v2642_v41 }
 0x300   :  { %v2474_v60 = vpop.f32.mrf.mxu2  ;;  %v2139_v20 = vpop.f32.mrf.mxu0 }
 0x301   :  { %v2475_v36 = vadd.f32 %v2474_v60, %v2306_v43  ;;  %v2643_v0 = vpop.f32.mrf.mxu3  ;;  %v2308_v33 = vpop.f32.mrf.mxu1 }
 0x302   :  { %v2309_v21 = vadd.f32 %v2308_v33, %v2139_v20  ;;  %v5915_v20 = vld [vmem:[#allocation32_spill] sm:$0xff] }
 0x303   :  { %v2644_v37 = vadd.f32 %v2643_v0, %v2475_v36  ;;  %2178 = vmatmul.bf16.gmra.mxu0 %v5903_v46  ;;  %v5917_v46 = vld [vmem:[#allocation34_spill] sm:$0xff] }
 0x304   :  { %2347 = vmatmul.bf16.gmra.mxu1 %v5904_v22 }
 0x305   :  { %2516 = vmatmul.bf16.gmra.mxu2 %v5905_v23  ;;  %2927 = vst [vmem:[#allocation2 + $0xb8] sm:$0xff] %v2644_v37  ;;  %v5916_v37 = vld [vmem:[#allocation33_spill] sm:$0xff] }
 0x306   :  { %2685 = vmatmul.bf16.gmra.mxu3 %v5906_v38 }
 0x308   :  { %v2477_v39 = vpop.f32.mrf.mxu2  ;;  %v2141_v2 = vpop.f32.mrf.mxu0 }
 0x309   :  { %v2478_v11 = vadd.f32 %v2477_v39, %v2309_v21  ;;  %v2646_v1 = vpop.f32.mrf.mxu3  ;;  %v2310_v3 = vpop.f32.mrf.mxu1  ;;  %v5918_v21 = vld [vmem:[#allocation35_spill] sm:$0xff] }
 0x30a   :  { %v2311_v31 = vadd.f32 %v2310_v3, %v2141_v2 }
 0x30b   :  { %v2647_v26 = vadd.f32 %v2646_v1, %v2478_v11 }
 0x30d   :  { %2929 = vst [vmem:[#allocation2 + $0xc8] sm:$0xff] %v2647_v26 }
 0x310   :  { %v2479_v45 = vpop.f32.mrf.mxu2  ;;  %v2144_v56 = vpop.f32.mrf.mxu0 }
 0x311   :  { %v2480_v29 = vadd.f32 %v2479_v45, %v2311_v31  ;;  %v2648_v42 = vpop.f32.mrf.mxu3  ;;  %v2313_v57 = vpop.f32.mrf.mxu1 }
 0x312   :  { %v2314_v47 = vadd.f32 %v2313_v57, %v2144_v56  ;;  %v5919_v56 = vld [vmem:[#allocation36_spill] sm:$0xff] }
 0x313   :  { %v2649_v59 = vadd.f32 %v2648_v42, %v2480_v29  ;;  %2183 = vmatmul.bf16.gmra.mxu0 %v5907_v49  ;;  %v5921_v49 = vld [vmem:[#allocation38_spill] sm:$0xff] }
 0x314   :  { %2352 = vmatmul.bf16.gmra.mxu1 %v5908_v44 }
 0x315   :  { %2521 = vmatmul.bf16.gmra.mxu2 %v5909_v50  ;;  %2931 = vst [vmem:[#allocation2 + $0xd8] sm:$0xff] %v2649_v59  ;;  %v5920_v59 = vld [vmem:[#allocation37_spill] sm:$0xff] }
 0x316   :  { %2690 = vmatmul.bf16.gmra.mxu3 %v5910_v54 }
 0x318   :  { %v2482_v55 = vpop.f32.mrf.mxu2  ;;  %v2146_v16 = vpop.f32.mrf.mxu0 }
 0x319   :  { %v2483_v62 = vadd.f32 %v2482_v55, %v2314_v47  ;;  %v2651_v51 = vpop.f32.mrf.mxu3  ;;  %v2315_v12 = vpop.f32.mrf.mxu1  ;;  %v5922_v47 = vld [vmem:[#allocation39_spill] sm:$0xff] }
 0x31a   :  { %v2316_v18 = vadd.f32 %v2315_v12, %v2146_v16 }
 0x31b   :  { %v2652_v52 = vadd.f32 %v2651_v51, %v2483_v62 }
 0x31d   :  { %2933 = vst [vmem:[#allocation2 + $0xe8] sm:$0xff] %v2652_v52 }
 0x320   :  { %v2484_v19 = vpop.f32.mrf.mxu2  ;;  %v2149_v13 = vpop.f32.mrf.mxu0 }
 0x321   :  { %v2485_v25 = vadd.f32 %v2484_v19, %v2316_v18  ;;  %v2653_v53 = vpop.f32.mrf.mxu3  ;;  %v2318_v14 = vpop.f32.mrf.mxu1 }
 0x322   :  { %v2319_v48 = vadd.f32 %v2318_v14, %v2149_v13  ;;  %v5923_v13 = vld [vmem:[#allocation40_spill] sm:$0xff] }
 0x323   :  { %v2654_v15 = vadd.f32 %v2653_v53, %v2485_v25  ;;  %2188 = vmatmul.bf16.gmra.mxu0 %v5911_v4  ;;  %v5925_v4 = vld [vmem:[#allocation42_spill] sm:$0xff] }
 0x324   :  { %2357 = vmatmul.bf16.gmra.mxu1 %v5912_v9 }
 0x325   :  { %2526 = vmatmul.bf16.gmra.mxu2 %v5913_v5  ;;  %2935 = vst [vmem:[#allocation2 + $0xf8] sm:$0xff] %v2654_v15  ;;  %v5924_v15 = vld [vmem:[#allocation41_spill] sm:$0xff] }
 0x326   :  { %2695 = vmatmul.bf16.gmra.mxu3 %v5914_v58 }
 0x328   :  { %v2487_v6 = vpop.f32.mrf.mxu2  ;;  %v2151_v8 = vpop.f32.mrf.mxu0 }
 0x329   :  { %v2488_v7 = vadd.f32 %v2487_v6, %v2319_v48  ;;  %v2656_v63 = vpop.f32.mrf.mxu3  ;;  %v2320_v10 = vpop.f32.mrf.mxu1  ;;  %v5926_v48 = vld [vmem:[#allocation43_spill] sm:$0xff] }
 0x32a   :  { %v2321_v24 = vadd.f32 %v2320_v10, %v2151_v8 }
 0x32b   :  { %v2657_v34 = vadd.f32 %v2656_v63, %v2488_v7 }
 0x32d   :  { %2937 = vst [vmem:[#allocation2 + $0x108] sm:$0xff] %v2657_v34 }
 0x330   :  { %v2489_v28 = vpop.f32.mrf.mxu2  ;;  %v2154_v60 = vpop.f32.mrf.mxu0 }
 0x331   :  { %v2490_v41 = vadd.f32 %v2489_v28, %v2321_v24  ;;  %v2658_v43 = vpop.f32.mrf.mxu3  ;;  %v2323_v36 = vpop.f32.mrf.mxu1 }
 0x332   :  { %v2324_v33 = vadd.f32 %v2323_v36, %v2154_v60  ;;  %v5927_v60 = vld [vmem:[#allocation44_spill] sm:$0xff] }
 0x333   :  { %v2659_v0 = vadd.f32 %v2658_v43, %v2490_v41  ;;  %2193 = vmatmul.bf16.gmra.mxu0 %v5915_v20  ;;  %v5929_v20 = vld [vmem:[#allocation46_spill] sm:$0xff] }
 0x334   :  { %2362 = vmatmul.bf16.gmra.mxu1 %v5916_v37 }
 0x335   :  { %2531 = vmatmul.bf16.gmra.mxu2 %v5917_v46  ;;  %2939 = vst [vmem:[#allocation2 + $0x118] sm:$0xff] %v2659_v0  ;;  %v5928_v0 = vld [vmem:[#allocation45_spill] sm:$0xff] }
 0x336   :  { %2700 = vmatmul.bf16.gmra.mxu3 %v5918_v21 }
 0x338   :  { %v2492_v22 = vpop.f32.mrf.mxu2  ;;  %v2156_v39 = vpop.f32.mrf.mxu0 }
 0x339   :  { %v2493_v23 = vadd.f32 %v2492_v22, %v2324_v33  ;;  %v2661_v38 = vpop.f32.mrf.mxu3  ;;  %v2325_v11 = vpop.f32.mrf.mxu1  ;;  %v5930_v33 = vld [vmem:[#allocation47_spill] sm:$0xff] }
 0x33a   :  { %v2326_v2 = vadd.f32 %v2325_v11, %v2156_v39 }
 0x33b   :  { %v2662_v1 = vadd.f32 %v2661_v38, %v2493_v23 }
 0x33d   :  { %2941 = vst [vmem:[#allocation2 + $0x128] sm:$0xff] %v2662_v1 }
 0x340   :  { %v2494_v3 = vpop.f32.mrf.mxu2  ;;  %v2159_v45 = vpop.f32.mrf.mxu0 }
 0x341   :  { %v2495_v26 = vadd.f32 %v2494_v3, %v2326_v2  ;;  %v2663_v31 = vpop.f32.mrf.mxu3  ;;  %v2328_v29 = vpop.f32.mrf.mxu1 }
 0x342   :  { %v2329_v57 = vadd.f32 %v2328_v29, %v2159_v45  ;;  %v5931_v45 = vld [vmem:[#allocation48_spill] sm:$0xff] }
 0x343   :  { %v2664_v42 = vadd.f32 %v2663_v31, %v2495_v26  ;;  %2198 = vmatmul.bf16.gmra.mxu0 %v5919_v56  ;;  %v5933_v56 = vld [vmem:[#allocation50_spill] sm:$0xff] }
 0x344   :  { %2367 = vmatmul.bf16.gmra.mxu1 %v5920_v59 }
 0x345   :  { %2536 = vmatmul.bf16.gmra.mxu2 %v5921_v49  ;;  %2943 = vst [vmem:[#allocation2 + $0x138] sm:$0xff] %v2664_v42  ;;  %v5932_v42 = vld [vmem:[#allocation49_spill] sm:$0xff] }
 0x346   :  { %2705 = vmatmul.bf16.gmra.mxu3 %v5922_v47 }
 0x348   :  { %v2497_v44 = vpop.f32.mrf.mxu2  ;;  %v2161_v55 = vpop.f32.mrf.mxu0 }
 0x349   :  { %v2498_v50 = vadd.f32 %v2497_v44, %v2329_v57  ;;  %v2666_v54 = vpop.f32.mrf.mxu3  ;;  %v2330_v62 = vpop.f32.mrf.mxu1  ;;  %v5934_v57 = vld [vmem:[#allocation51_spill] sm:$0xff] }
 0x34a   :  { %v2331_v16 = vadd.f32 %v2330_v62, %v2161_v55 }
 0x34b   :  { %v2667_v51 = vadd.f32 %v2666_v54, %v2498_v50 }
 0x34d   :  { %2945 = vst [vmem:[#allocation2 + $0x148] sm:$0xff] %v2667_v51 }
 0x350   :  { %v2499_v12 = vpop.f32.mrf.mxu2  ;;  %v2164_v19 = vpop.f32.mrf.mxu0 }
 0x351   :  { %v2500_v52 = vadd.f32 %v2499_v12, %v2331_v16  ;;  %v2668_v18 = vpop.f32.mrf.mxu3  ;;  %v2333_v25 = vpop.f32.mrf.mxu1 }
 0x352   :  { %v2334_v14 = vadd.f32 %v2333_v25, %v2164_v19  ;;  %v5935_v19 = vld [vmem:[#allocation52_spill] sm:$0xff] }
 0x353   :  { %v2669_v53 = vadd.f32 %v2668_v18, %v2500_v52  ;;  %2203 = vmatmul.bf16.gmra.mxu0 %v5923_v13  ;;  %v5937_v13 = vld [vmem:[#allocation54_spill] sm:$0xff] }
 0x354   :  { %2372 = vmatmul.bf16.gmra.mxu1 %v5924_v15 }
 0x355   :  { %2541 = vmatmul.bf16.gmra.mxu2 %v5925_v4  ;;  %2947 = vst [vmem:[#allocation2 + $0x158] sm:$0xff] %v2669_v53  ;;  %v5936_v53 = vld [vmem:[#allocation53_spill] sm:$0xff] }
 0x356   :  { %2710 = vmatmul.bf16.gmra.mxu3 %v5926_v48 }
 0x358   :  { %v2502_v9 = vpop.f32.mrf.mxu2  ;;  %v2166_v6 = vpop.f32.mrf.mxu0 }
 0x359   :  { %v2503_v5 = vadd.f32 %v2502_v9, %v2334_v14  ;;  %v2671_v58 = vpop.f32.mrf.mxu3  ;;  %v2335_v7 = vpop.f32.mrf.mxu1  ;;  %v5938_v14 = vld [vmem:[#allocation55_spill] sm:$0xff] }
 0x35a   :  { %v2336_v8 = vadd.f32 %v2335_v7, %v2166_v6 }
 0x35b   :  { %v2672_v63 = vadd.f32 %v2671_v58, %v2503_v5 }
 0x35d   :  { %2949 = vst [vmem:[#allocation2 + $0x168] sm:$0xff] %v2672_v63 }
 0x360   :  { %v2504_v10 = vpop.f32.mrf.mxu2  ;;  %v2169_v28 = vpop.f32.mrf.mxu0 }
 0x361   :  { %v2505_v34 = vadd.f32 %v2504_v10, %v2336_v8  ;;  %v2673_v24 = vpop.f32.mrf.mxu3  ;;  %v2338_v41 = vpop.f32.mrf.mxu1 }
 0x362   :  { %v2339_v36 = vadd.f32 %v2338_v41, %v2169_v28  ;;  %v5939_v28 = vld [vmem:[#allocation56_spill] sm:$0xff] }
 0x363   :  { %v2674_v43 = vadd.f32 %v2673_v24, %v2505_v34  ;;  %2208 = vmatmul.bf16.gmra.mxu0 %v5927_v60  ;;  %v5941_v60 = vld [vmem:[#allocation58_spill] sm:$0xff] }
 0x364   :  { %2377 = vmatmul.bf16.gmra.mxu1 %v5928_v0 }
 0x365   :  { %2546 = vmatmul.bf16.gmra.mxu2 %v5929_v20  ;;  %2951 = vst [vmem:[#allocation2 + $0x178] sm:$0xff] %v2674_v43  ;;  %v5940_v43 = vld [vmem:[#allocation57_spill] sm:$0xff] }
 0x366   :  { %2715 = vmatmul.bf16.gmra.mxu3 %v5930_v33 }
 0x368   :  { %v2507_v37 = vpop.f32.mrf.mxu2  ;;  %v2171_v22 = vpop.f32.mrf.mxu0 }
 0x369   :  { %v2508_v46 = vadd.f32 %v2507_v37, %v2339_v36  ;;  %v2676_v21 = vpop.f32.mrf.mxu3  ;;  %v2340_v23 = vpop.f32.mrf.mxu1  ;;  %v5942_v36 = vld [vmem:[#allocation59_spill] sm:$0xff] }
 0x36a   :  { %v2341_v39 = vadd.f32 %v2340_v23, %v2171_v22 }
 0x36b   :  { %v2677_v38 = vadd.f32 %v2676_v21, %v2508_v46 }
 0x36d   :  { %2953 = vst [vmem:[#allocation2 + $0x188] sm:$0xff] %v2677_v38 }
 0x370   :  { %v2509_v11 = vpop.f32.mrf.mxu2  ;;  %v2174_v3 = vpop.f32.mrf.mxu0 }
 0x371   :  { %v2510_v1 = vadd.f32 %v2509_v11, %v2341_v39  ;;  %v2678_v2 = vpop.f32.mrf.mxu3  ;;  %v2343_v26 = vpop.f32.mrf.mxu1 }
 0x372   :  { %v2344_v29 = vadd.f32 %v2343_v26, %v2174_v3  ;;  %v5943_v3 = vld [vmem:[#allocation60_spill] sm:$0xff] }
 0x373   :  { %v2679_v31 = vadd.f32 %v2678_v2, %v2510_v1  ;;  %2213 = vmatmul.bf16.gmra.mxu0 %v5931_v45  ;;  %v5945_v45 = vld [vmem:[#allocation62_spill] sm:$0xff] }
 0x374   :  { %2382 = vmatmul.bf16.gmra.mxu1 %v5932_v42 }
 0x375   :  { %2551 = vmatmul.bf16.gmra.mxu2 %v5933_v56  ;;  %2955 = vst [vmem:[#allocation2 + $0x198] sm:$0xff] %v2679_v31  ;;  %v5944_v31 = vld [vmem:[#allocation61_spill] sm:$0xff] }
 0x376   :  { %2720 = vmatmul.bf16.gmra.mxu3 %v5934_v57 }
 0x378   :  { %v2512_v59 = vpop.f32.mrf.mxu2  ;;  %v2176_v44 = vpop.f32.mrf.mxu0 }
 0x379   :  { %v2513_v49 = vadd.f32 %v2512_v59, %v2344_v29  ;;  %v2681_v47 = vpop.f32.mrf.mxu3  ;;  %v2345_v50 = vpop.f32.mrf.mxu1  ;;  %v5946_v29 = vld [vmem:[#allocation63_spill] sm:$0xff] }
 0x37a   :  { %v2346_v55 = vadd.f32 %v2345_v50, %v2176_v44 }
 0x37b   :  { %v2682_v54 = vadd.f32 %v2681_v47, %v2513_v49 }
 0x37d   :  { %2957 = vst [vmem:[#allocation2 + $0x1a8] sm:$0xff] %v2682_v54 }
 0x380   :  { %v2514_v62 = vpop.f32.mrf.mxu2  ;;  %v2179_v12 = vpop.f32.mrf.mxu0 }
 0x381   :  { %v2515_v51 = vadd.f32 %v2514_v62, %v2346_v55  ;;  %v2683_v16 = vpop.f32.mrf.mxu3  ;;  %v2348_v52 = vpop.f32.mrf.mxu1 }
 0x382   :  { %v2349_v25 = vadd.f32 %v2348_v52, %v2179_v12  ;;  %v5947_v12 = vld [vmem:[#allocation64_spill] sm:$0xff] }
 0x383   :  { %v2684_v18 = vadd.f32 %v2683_v16, %v2515_v51  ;;  %2218 = vmatmul.bf16.gmra.mxu0 %v5935_v19  ;;  %v5949_v19 = vld [vmem:[#allocation66_spill] sm:$0xff] }
 0x384   :  { %2387 = vmatmul.bf16.gmra.mxu1 %v5936_v53 }
 0x385   :  { %2556 = vmatmul.bf16.gmra.mxu2 %v5937_v13  ;;  %2959 = vst [vmem:[#allocation2 + $0x1b8] sm:$0xff] %v2684_v18  ;;  %v5948_v18 = vld [vmem:[#allocation65_spill] sm:$0xff] }
 0x386   :  { %2725 = vmatmul.bf16.gmra.mxu3 %v5938_v14 }
 0x388   :  { %v2517_v15 = vpop.f32.mrf.mxu2  ;;  %v2181_v9 = vpop.f32.mrf.mxu0 }
 0x389   :  { %v2518_v4 = vadd.f32 %v2517_v15, %v2349_v25  ;;  %v2686_v48 = vpop.f32.mrf.mxu3  ;;  %v2350_v5 = vpop.f32.mrf.mxu1  ;;  %v5950_v25 = vld [vmem:[#allocation67_spill] sm:$0xff] }
 0x38a   :  { %v2351_v6 = vadd.f32 %v2350_v5, %v2181_v9 }
 0x38b   :  { %v2687_v58 = vadd.f32 %v2686_v48, %v2518_v4 }
 0x38d   :  { %2961 = vst [vmem:[#allocation2 + $0x1c8] sm:$0xff] %v2687_v58 }
 0x390   :  { %v2519_v7 = vpop.f32.mrf.mxu2  ;;  %v2184_v10 = vpop.f32.mrf.mxu0 }
 0x391   :  { %v2520_v63 = vadd.f32 %v2519_v7, %v2351_v6  ;;  %v2688_v8 = vpop.f32.mrf.mxu3  ;;  %v2353_v34 = vpop.f32.mrf.mxu1 }
 0x392   :  { %v2354_v41 = vadd.f32 %v2353_v34, %v2184_v10  ;;  %v5951_v10 = vld [vmem:[#allocation68_spill] sm:$0xff] }
 0x393   :  { %v2689_v24 = vadd.f32 %v2688_v8, %v2520_v63  ;;  %2223 = vmatmul.bf16.gmra.mxu0 %v5939_v28  ;;  %v5953_v28 = vld [vmem:[#allocation70_spill] sm:$0xff] }
 0x394   :  { %2392 = vmatmul.bf16.gmra.mxu1 %v5940_v43 }
 0x395   :  { %2561 = vmatmul.bf16.gmra.mxu2 %v5941_v60  ;;  %2963 = vst [vmem:[#allocation2 + $0x1d8] sm:$0xff] %v2689_v24  ;;  %v5952_v24 = vld [vmem:[#allocation69_spill] sm:$0xff] }
 0x396   :  { %2730 = vmatmul.bf16.gmra.mxu3 %v5942_v36 }
 0x398   :  { %v2522_v0 = vpop.f32.mrf.mxu2  ;;  %v2186_v37 = vpop.f32.mrf.mxu0 }
 0x399   :  { %v2523_v20 = vadd.f32 %v2522_v0, %v2354_v41  ;;  %v2691_v33 = vpop.f32.mrf.mxu3  ;;  %v2355_v46 = vpop.f32.mrf.mxu1  ;;  %v5954_v41 = vld [vmem:[#allocation71_spill] sm:$0xff] }
 0x39a   :  { %v2356_v22 = vadd.f32 %v2355_v46, %v2186_v37 }
 0x39b   :  { %v2692_v21 = vadd.f32 %v2691_v33, %v2523_v20 }
 0x39d   :  { %2965 = vst [vmem:[#allocation2 + $0x1e8] sm:$0xff] %v2692_v21 }
 0x3a0   :  { %v2524_v23 = vpop.f32.mrf.mxu2  ;;  %v2189_v11 = vpop.f32.mrf.mxu0 }
 0x3a1   :  { %v2525_v38 = vadd.f32 %v2524_v23, %v2356_v22  ;;  %v2693_v39 = vpop.f32.mrf.mxu3  ;;  %v2358_v1 = vpop.f32.mrf.mxu1 }
 0x3a2   :  { %v2359_v26 = vadd.f32 %v2358_v1, %v2189_v11  ;;  %v5955_v1 = vld [vmem:[#allocation72_spill] sm:$0xff] }
 0x3a3   :  { %v2694_v2 = vadd.f32 %v2693_v39, %v2525_v38  ;;  %2228 = vmatmul.bf16.gmra.mxu0 %v5943_v3 }
 0x3a4   :  { %2397 = vmatmul.bf16.gmra.mxu1 %v5944_v31 }
 0x3a5   :  { %2566 = vmatmul.bf16.gmra.mxu2 %v5945_v45  ;;  %2967 = vst [vmem:[#allocation2 + $0x1f8] sm:$0xff] %v2694_v2 }
 0x3a6   :  { %2735 = vmatmul.bf16.gmra.mxu3 %v5946_v29 }
 0x3a8   :  { %v2527_v42 = vpop.f32.mrf.mxu2  ;;  %v2191_v59 = vpop.f32.mrf.mxu0 }
 0x3a9   :  { %v2528_v56 = vadd.f32 %v2527_v42, %v2359_v26  ;;  %v2696_v57 = vpop.f32.mrf.mxu3  ;;  %v2360_v49 = vpop.f32.mrf.mxu1 }
 0x3aa   :  { %v2361_v44 = vadd.f32 %v2360_v49, %v2191_v59 }
 0x3ab   :  { %v2697_v47 = vadd.f32 %v2696_v57, %v2528_v56 }
 0x3ad   :  { %2969 = vst [vmem:[#allocation2 + $0x208] sm:$0xff] %v2697_v47 }
 0x3b0   :  { %v2529_v50 = vpop.f32.mrf.mxu2  ;;  %v2194_v62 = vpop.f32.mrf.mxu0 }
 0x3b1   :  { %v2530_v54 = vadd.f32 %v2529_v50, %v2361_v44  ;;  %v2698_v55 = vpop.f32.mrf.mxu3  ;;  %v2363_v51 = vpop.f32.mrf.mxu1  ;;  %v5957_v44 = vld [vmem:[#allocation74_spill] sm:$0xff]  ;;  %v5958_v50 = vld [vmem:[#allocation75_spill] sm:$0xff] }
 0x3b2   :  { %v2364_v52 = vadd.f32 %v2363_v51, %v2194_v62 }
 0x3b3   :  { %v2699_v16 = vadd.f32 %v2698_v55, %v2530_v54  ;;  %2233 = vmatmul.bf16.gmra.mxu0 %v5947_v12  ;;  %v5959_v54 = vld [vmem:[#allocation76_spill] sm:$0xff] }
 0x3b4   :  { %2402 = vmatmul.bf16.gmra.mxu1 %v5948_v18 }
 0x3b5   :  { %2571 = vmatmul.bf16.gmra.mxu2 %v5949_v19  ;;  %2971 = vst [vmem:[#allocation2 + $0x218] sm:$0xff] %v2699_v16 }
 0x3b6   :  { %2740 = vmatmul.bf16.gmra.mxu3 %v5950_v25 }
 0x3b8   :  { %v2532_v53 = vpop.f32.mrf.mxu2  ;;  %v2196_v15 = vpop.f32.mrf.mxu0 }
 0x3b9   :  { %v2533_v13 = vadd.f32 %v2532_v53, %v2364_v52  ;;  %v2701_v14 = vpop.f32.mrf.mxu3  ;;  %v2365_v4 = vpop.f32.mrf.mxu1 }
 0x3ba   :  { %v2366_v9 = vadd.f32 %v2365_v4, %v2196_v15  ;;  %v5960_v4 = vld [vmem:[#allocation77_spill] sm:$0xff] }
 0x3bb   :  { %v2702_v48 = vadd.f32 %v2701_v14, %v2533_v13 }
 0x3bd   :  { %2973 = vst [vmem:[#allocation2 + $0x228] sm:$0xff] %v2702_v48 }
 0x3c0   :  { %v2534_v5 = vpop.f32.mrf.mxu2  ;;  %v2199_v7 = vpop.f32.mrf.mxu0 }
 0x3c1   :  { %v2535_v58 = vadd.f32 %v2534_v5, %v2366_v9  ;;  %v2703_v6 = vpop.f32.mrf.mxu3  ;;  %v2368_v63 = vpop.f32.mrf.mxu1  ;;  %v5961_v9 = vld [vmem:[#allocation78_spill] sm:$0xff]  ;;  %v5962_v5 = vld [vmem:[#allocation79_spill] sm:$0xff] }
 0x3c2   :  { %v2369_v34 = vadd.f32 %v2368_v63, %v2199_v7 }
 0x3c3   :  { %v2704_v8 = vadd.f32 %v2703_v6, %v2535_v58  ;;  %2238 = vmatmul.bf16.gmra.mxu0 %v5951_v10  ;;  %v5963_v58 = vld [vmem:[#allocation80_spill] sm:$0xff] }
 0x3c4   :  { %2407 = vmatmul.bf16.gmra.mxu1 %v5952_v24 }
 0x3c5   :  { %2576 = vmatmul.bf16.gmra.mxu2 %v5953_v28  ;;  %2975 = vst [vmem:[#allocation2 + $0x238] sm:$0xff] %v2704_v8 }
 0x3c6   :  { %2745 = vmatmul.bf16.gmra.mxu3 %v5954_v41 }
 0x3c8   :  { %v2537_v43 = vpop.f32.mrf.mxu2  ;;  %v2201_v0 = vpop.f32.mrf.mxu0 }
 0x3c9   :  { %v2538_v60 = vadd.f32 %v2537_v43, %v2369_v34  ;;  %v2706_v36 = vpop.f32.mrf.mxu3  ;;  %v2370_v20 = vpop.f32.mrf.mxu1 }
 0x3ca   :  { %v2371_v37 = vadd.f32 %v2370_v20, %v2201_v0  ;;  %v5964_v20 = vld [vmem:[#allocation81_spill] sm:$0xff] }
 0x3cb   :  { %v2707_v33 = vadd.f32 %v2706_v36, %v2538_v60 }
 0x3cd   :  { %2977 = vst [vmem:[#allocation2 + $0x248] sm:$0xff] %v2707_v33 }
 0x3d0   :  { %v2539_v46 = vpop.f32.mrf.mxu2  ;;  %v2204_v23 = vpop.f32.mrf.mxu0 }
 0x3d1   :  { %v2540_v21 = vadd.f32 %v2539_v46, %v2371_v37  ;;  %v2708_v22 = vpop.f32.mrf.mxu3  ;;  %v2373_v38 = vpop.f32.mrf.mxu1  ;;  %v5965_v37 = vld [vmem:[#allocation82_spill] sm:$0xff]  ;;  %v5966_v46 = vld [vmem:[#allocation83_spill] sm:$0xff] }
 0x3d2   :  { %v2374_v11 = vadd.f32 %v2373_v38, %v2204_v23 }
 0x3d3   :  { %v2709_v39 = vadd.f32 %v2708_v22, %v2540_v21  ;;  %2243 = vmatmul.bf16.gmra.mxu0 %v5432_v35  ;;  %v5967_v21 = vld [vmem:[#allocation84_spill] sm:$0xff] }
 0x3d4   :  { %2412 = vmatmul.bf16.gmra.mxu1 %v5440_v61  ;;  %v5956_v61 = vld [vmem:[#allocation73_spill] sm:$0xff] }
 0x3d5   :  { %2581 = vmatmul.bf16.gmra.mxu2 %v5442_v17  ;;  %2979 = vst [vmem:[#allocation2 + $0x258] sm:$0xff] %v2709_v39 }
 0x3d6   :  { %2750 = vmatmul.bf16.gmra.mxu3 %v5955_v1 }
 0x3d8   :  { %v2542_v2 = vpop.f32.mrf.mxu2  ;;  %v2206_v31 = vpop.f32.mrf.mxu0 }
 0x3d9   :  { %v2543_v3 = vadd.f32 %v2542_v2, %v2374_v11  ;;  %v2711_v26 = vpop.f32.mrf.mxu3  ;;  %v2375_v45 = vpop.f32.mrf.mxu1 }
 0x3da   :  { %v2376_v42 = vadd.f32 %v2375_v45, %v2206_v31 }
 0x3db   :  { %v2712_v29 = vadd.f32 %v2711_v26, %v2543_v3 }
 0x3dd   :  { %2981 = vst [vmem:[#allocation2 + $0x268] sm:$0xff] %v2712_v29 }
 0x3e0   :  { %v2544_v56 = vpop.f32.mrf.mxu2  ;;  %v2209_v35 = vpop.f32.mrf.mxu0 }
 0x3e1   :  { %v2545_v57 = vadd.f32 %v2544_v56, %v2376_v42  ;;  %v2713_v59 = vpop.f32.mrf.mxu3  ;;  %v2378_v49 = vpop.f32.mrf.mxu1 }
 0x3e2   :  { %v2379_v17 = vadd.f32 %v2378_v49, %v2209_v35 }
 0x3e3   :  { %v2714_v47 = vadd.f32 %v2713_v59, %v2545_v57  ;;  %2248 = vmatmul.bf16.gmra.mxu0 %v5956_v61 }
 0x3e4   :  { %2417 = vmatmul.bf16.gmra.mxu1 %v5957_v44 }
 0x3e5   :  { %2586 = vmatmul.bf16.gmra.mxu2 %v5958_v50  ;;  %2983 = vst [vmem:[#allocation2 + $0x278] sm:$0xff] %v2714_v47 }
 0x3e6   :  { %2755 = vmatmul.bf16.gmra.mxu3 %v5959_v54 }
 0x3e8   :  { %v2547_v55 = vpop.f32.mrf.mxu2  ;;  %v2211_v16 = vpop.f32.mrf.mxu0 }
 0x3e9   :  { %v2548_v62 = vadd.f32 %v2547_v55, %v2379_v17  ;;  %v2716_v51 = vpop.f32.mrf.mxu3  ;;  %v2380_v12 = vpop.f32.mrf.mxu1 }
 0x3ea   :  { %v2381_v18 = vadd.f32 %v2380_v12, %v2211_v16 }
 0x3eb   :  { %v2717_v52 = vadd.f32 %v2716_v51, %v2548_v62 }
 0x3ed   :  { %2985 = vst [vmem:[#allocation2 + $0x288] sm:$0xff] %v2717_v52 }
 0x3f0   :  { %v2549_v19 = vpop.f32.mrf.mxu2  ;;  %v2214_v13 = vpop.f32.mrf.mxu0 }
 0x3f1   :  { %v2550_v25 = vadd.f32 %v2549_v19, %v2381_v18  ;;  %v2718_v53 = vpop.f32.mrf.mxu3  ;;  %v2383_v14 = vpop.f32.mrf.mxu1 }
 0x3f2   :  { %v2384_v48 = vadd.f32 %v2383_v14, %v2214_v13 }
 0x3f3   :  { %v2719_v15 = vadd.f32 %v2718_v53, %v2550_v25  ;;  %2253 = vmatmul.bf16.gmra.mxu0 %v5960_v4 }
 0x3f4   :  { %2422 = vmatmul.bf16.gmra.mxu1 %v5961_v9 }
 0x3f5   :  { %2591 = vmatmul.bf16.gmra.mxu2 %v5962_v5  ;;  %2987 = vst [vmem:[#allocation2 + $0x298] sm:$0xff] %v2719_v15 }
 0x3f6   :  { %2760 = vmatmul.bf16.gmra.mxu3 %v5963_v58 }
 0x3f8   :  { %v2552_v6 = vpop.f32.mrf.mxu2  ;;  %v2216_v8 = vpop.f32.mrf.mxu0 }
 0x3f9   :  { %v2553_v7 = vadd.f32 %v2552_v6, %v2384_v48  ;;  %v2721_v63 = vpop.f32.mrf.mxu3  ;;  %v2385_v10 = vpop.f32.mrf.mxu1 }
 0x3fa   :  { %v2386_v24 = vadd.f32 %v2385_v10, %v2216_v8 }
 0x3fb   :  { %v2722_v34 = vadd.f32 %v2721_v63, %v2553_v7 }
 0x3fd   :  { %2989 = vst [vmem:[#allocation2 + $0x2a8] sm:$0xff] %v2722_v34 }
 0x400   :  { %v2554_v28 = vpop.f32.mrf.mxu2  ;;  %v2219_v60 = vpop.f32.mrf.mxu0 }
 0x401   :  { %v2555_v41 = vadd.f32 %v2554_v28, %v2386_v24  ;;  %v2723_v43 = vpop.f32.mrf.mxu3  ;;  %v2388_v36 = vpop.f32.mrf.mxu1 }
 0x402   :  { %v2389_v33 = vadd.f32 %v2388_v36, %v2219_v60 }
 0x403   :  { %v2724_v0 = vadd.f32 %v2723_v43, %v2555_v41  ;;  %2258 = vmatmul.bf16.gmra.mxu0 %v5964_v20 }
 0x404   :  { %2427 = vmatmul.bf16.gmra.mxu1 %v5965_v37 }
 0x405   :  { %2596 = vmatmul.bf16.gmra.mxu2 %v5966_v46  ;;  %2991 = vst [vmem:[#allocation2 + $0x2b8] sm:$0xff] %v2724_v0 }
 0x406   :  { %2765 = vmatmul.bf16.gmra.mxu3 %v5967_v21 }
 0x408   :  { %v2557_v22 = vpop.f32.mrf.mxu2  ;;  %v2221_v39 = vpop.f32.mrf.mxu0 }
 0x409   :  { %v2558_v23 = vadd.f32 %v2557_v22, %v2389_v33  ;;  %v2726_v38 = vpop.f32.mrf.mxu3  ;;  %v2390_v11 = vpop.f32.mrf.mxu1 }
 0x40a   :  { %v2391_v2 = vadd.f32 %v2390_v11, %v2221_v39 }
 0x40b   :  { %v2727_v1 = vadd.f32 %v2726_v38, %v2558_v23 }
 0x40d   :  { %2993 = vst [vmem:[#allocation2 + $0x2c8] sm:$0xff] %v2727_v1 }
 0x410   :  { %v2559_v3 = vpop.f32.mrf.mxu2  ;;  %v2224_v45 = vpop.f32.mrf.mxu0 }
 0x411   :  { %v2560_v26 = vadd.f32 %v2559_v3, %v2391_v2  ;;  %v2728_v31 = vpop.f32.mrf.mxu3  ;;  %v2393_v29 = vpop.f32.mrf.mxu1 }
 0x412   :  { %v2394_v56 = vadd.f32 %v2393_v29, %v2224_v45 }
 0x413   :  { %v2729_v42 = vadd.f32 %v2728_v31, %v2560_v26  ;;  %2263 = vmatmul.bf16.gmra.mxu0 %v5582_v30 }
 0x414   :  { %2432 = vmatmul.bf16.gmra.mxu1 %v5584_v40 }
 0x415   :  { %2601 = vmatmul.bf16.gmra.mxu2 %v5586_v27  ;;  %2995 = vst [vmem:[#allocation2 + $0x2d8] sm:$0xff] %v2729_v42 }
 0x416   :  { %2770 = vmatmul.bf16.gmra.mxu3 %v5588_v32 }
 0x418   :  { %v2562_v57 = vpop.f32.mrf.mxu2  ;;  %v2226_v49 = vpop.f32.mrf.mxu0 }
 0x419   :  { %v2563_v59 = vadd.f32 %v2562_v57, %v2394_v56  ;;  %v2731_v35 = vpop.f32.mrf.mxu3  ;;  %v2395_v47 = vpop.f32.mrf.mxu1 }
 0x41a   :  { %v2396_v17 = vadd.f32 %v2395_v47, %v2226_v49 }
 0x41b   :  { %v2732_v61 = vadd.f32 %v2731_v35, %v2563_v59 }
 0x41d   :  { %2997 = vst [vmem:[#allocation2 + $0x2e8] sm:$0xff] %v2732_v61 }
 0x420   :  { %v2564_v44 = vpop.f32.mrf.mxu2  ;;  %v2229_v30 = vpop.f32.mrf.mxu0 }
 0x421   :  { %v2565_v50 = vadd.f32 %v2564_v44, %v2396_v17  ;;  %v2733_v54 = vpop.f32.mrf.mxu3  ;;  %v2398_v55 = vpop.f32.mrf.mxu1 }
 0x422   :  { %v2399_v40 = vadd.f32 %v2398_v55, %v2229_v30 }
 0x423   :  { %v2734_v62 = vadd.f32 %v2733_v54, %v2565_v50 }
 0x425   :  { %2999 = vst [vmem:[#allocation2 + $0x2f8] sm:$0xff] %v2734_v62 }
 0x428   :  { %v2567_v27 = vpop.f32.mrf.mxu2  ;;  %v2231_v16 = vpop.f32.mrf.mxu0 }
 0x429   :  { %v2568_v51 = vadd.f32 %v2567_v27, %v2399_v40  ;;  %v2736_v32 = vpop.f32.mrf.mxu3  ;;  %v2400_v12 = vpop.f32.mrf.mxu1 }
 0x42a   :  { %v2401_v18 = vadd.f32 %v2400_v12, %v2231_v16 }
 0x42b   :  { %v2737_v52 = vadd.f32 %v2736_v32, %v2568_v51 }
 0x42d   :  { %3001 = vst [vmem:[#allocation2 + $0x308] sm:$0xff] %v2737_v52 }
 0x430   :  { %v2569_v19 = vpop.f32.mrf.mxu2  ;;  %v2234_v13 = vpop.f32.mrf.mxu0 }
 0x431   :  { %v2570_v25 = vadd.f32 %v2569_v19, %v2401_v18  ;;  %v2738_v53 = vpop.f32.mrf.mxu3  ;;  %v2403_v14 = vpop.f32.mrf.mxu1 }
 0x432   :  { %v2404_v4 = vadd.f32 %v2403_v14, %v2234_v13 }
 0x433   :  { %v2739_v15 = vadd.f32 %v2738_v53, %v2570_v25 }
 0x435   :  { %3003 = vst [vmem:[#allocation2 + $0x318] sm:$0xff] %v2739_v15 }
 0x438   :  { %v2572_v48 = vpop.f32.mrf.mxu2  ;;  %v2236_v58 = vpop.f32.mrf.mxu0 }
 0x439   :  { %v2573_v9 = vadd.f32 %v2572_v48, %v2404_v4  ;;  %v2741_v5 = vpop.f32.mrf.mxu3  ;;  %v2405_v6 = vpop.f32.mrf.mxu1 }
 0x43a   :  { %v2406_v63 = vadd.f32 %v2405_v6, %v2236_v58 }
 0x43b   :  { %v2742_v7 = vadd.f32 %v2741_v5, %v2573_v9 }
 0x43d   :  { %3005 = vst [vmem:[#allocation2 + $0x328] sm:$0xff] %v2742_v7 }
 0x440   :  { %v2574_v8 = vpop.f32.mrf.mxu2  ;;  %v2239_v24 = vpop.f32.mrf.mxu0 }
 0x441   :  { %v2575_v10 = vadd.f32 %v2574_v8, %v2406_v63  ;;  %v2743_v34 = vpop.f32.mrf.mxu3  ;;  %v2408_v28 = vpop.f32.mrf.mxu1 }
 0x442   :  { %v2409_v43 = vadd.f32 %v2408_v28, %v2239_v24 }
 0x443   :  { %v2744_v41 = vadd.f32 %v2743_v34, %v2575_v10 }
 0x445   :  { %3007 = vst [vmem:[#allocation2 + $0x338] sm:$0xff] %v2744_v41 }
 0x448   :  { %v2577_v60 = vpop.f32.mrf.mxu2  ;;  %v2241_v20 = vpop.f32.mrf.mxu0 }
 0x449   :  { %v2578_v36 = vadd.f32 %v2577_v60, %v2409_v43  ;;  %v2746_v0 = vpop.f32.mrf.mxu3  ;;  %v2410_v33 = vpop.f32.mrf.mxu1 }
 0x44a   :  { %v2411_v46 = vadd.f32 %v2410_v33, %v2241_v20 }
 0x44b   :  { %v2747_v37 = vadd.f32 %v2746_v0, %v2578_v36 }
 0x44d   :  { %3009 = vst [vmem:[#allocation2 + $0x348] sm:$0xff] %v2747_v37 }
 0x450   :  { %v2579_v21 = vpop.f32.mrf.mxu2  ;;  %v2244_v38 = vpop.f32.mrf.mxu0 }
 0x451   :  { %v2580_v22 = vadd.f32 %v2579_v21, %v2411_v46  ;;  %v2748_v23 = vpop.f32.mrf.mxu3  ;;  %v2413_v39 = vpop.f32.mrf.mxu1 }
 0x452   :  { %v2414_v1 = vadd.f32 %v2413_v39, %v2244_v38 }
 0x453   :  { %v2749_v11 = vadd.f32 %v2748_v23, %v2580_v22 }
 0x455   :  { %3011 = vst [vmem:[#allocation2 + $0x358] sm:$0xff] %v2749_v11 }
 0x458   :  { %v2582_v2 = vpop.f32.mrf.mxu2  ;;  %v2246_v31 = vpop.f32.mrf.mxu0 }
 0x459   :  { %v2583_v3 = vadd.f32 %v2582_v2, %v2414_v1  ;;  %v2751_v26 = vpop.f32.mrf.mxu3  ;;  %v2415_v45 = vpop.f32.mrf.mxu1 }
 0x45a   :  { %v2416_v42 = vadd.f32 %v2415_v45, %v2246_v31 }
 0x45b   :  { %v2752_v29 = vadd.f32 %v2751_v26, %v2583_v3 }
 0x45d   :  { %3013 = vst [vmem:[#allocation2 + $0x368] sm:$0xff] %v2752_v29 }
 0x460   :  { %v2584_v56 = vpop.f32.mrf.mxu2  ;;  %v2249_v35 = vpop.f32.mrf.mxu0 }
 0x461   :  { %v2585_v57 = vadd.f32 %v2584_v56, %v2416_v42  ;;  %v2753_v59 = vpop.f32.mrf.mxu3  ;;  %v2418_v49 = vpop.f32.mrf.mxu1 }
 0x462   :  { %v2419_v61 = vadd.f32 %v2418_v49, %v2249_v35 }
 0x463   :  { %v2754_v47 = vadd.f32 %v2753_v59, %v2585_v57 }
 0x465   :  { %3015 = vst [vmem:[#allocation2 + $0x378] sm:$0xff] %v2754_v47 }
 0x468   :  { %v2587_v17 = vpop.f32.mrf.mxu2  ;;  %v2251_v54 = vpop.f32.mrf.mxu0 }
 0x469   :  { %v2588_v44 = vadd.f32 %v2587_v17, %v2419_v61  ;;  %v2756_v50 = vpop.f32.mrf.mxu3  ;;  %v2420_v30 = vpop.f32.mrf.mxu1 }
 0x46a   :  { %v2421_v62 = vadd.f32 %v2420_v30, %v2251_v54 }
 0x46b   :  { %v2757_v55 = vadd.f32 %v2756_v50, %v2588_v44 }
 0x46d   :  { %3017 = vst [vmem:[#allocation2 + $0x388] sm:$0xff] %v2757_v55 }
 0x470   :  { %v2589_v40 = vpop.f32.mrf.mxu2  ;;  %v2254_v32 = vpop.f32.mrf.mxu0 }
 0x471   :  { %v2590_v27 = vadd.f32 %v2589_v40, %v2421_v62  ;;  %v2758_v51 = vpop.f32.mrf.mxu3  ;;  %v2423_v16 = vpop.f32.mrf.mxu1 }
 0x472   :  { %v2424_v52 = vadd.f32 %v2423_v16, %v2254_v32 }
 0x473   :  { %v2759_v12 = vadd.f32 %v2758_v51, %v2590_v27 }
 0x475   :  { %3019 = vst [vmem:[#allocation2 + $0x398] sm:$0xff] %v2759_v12 }
 0x478   :  { %v2592_v18 = vpop.f32.mrf.mxu2  ;;  %v2256_v53 = vpop.f32.mrf.mxu0 }
 0x479   :  { %v2593_v19 = vadd.f32 %v2592_v18, %v2424_v52  ;;  %v2761_v25 = vpop.f32.mrf.mxu3  ;;  %v2425_v13 = vpop.f32.mrf.mxu1 }
 0x47a   :  { %v2426_v15 = vadd.f32 %v2425_v13, %v2256_v53 }
 0x47b   :  { %v2762_v14 = vadd.f32 %v2761_v25, %v2593_v19 }
 0x47d   :  { %3021 = vst [vmem:[#allocation2 + $0x3a8] sm:$0xff] %v2762_v14 }
 0x480   :  { %v2594_v4 = vpop.f32.mrf.mxu2  ;;  %v2259_v5 = vpop.f32.mrf.mxu0 }
 0x481   :  { %v2595_v48 = vadd.f32 %v2594_v4, %v2426_v15  ;;  %v2763_v9 = vpop.f32.mrf.mxu3  ;;  %v2428_v58 = vpop.f32.mrf.mxu1 }
 0x482   :  { %v2429_v7 = vadd.f32 %v2428_v58, %v2259_v5 }
 0x483   :  { %v2764_v6 = vadd.f32 %v2763_v9, %v2595_v48 }
 0x485   :  { %3023 = vst [vmem:[#allocation2 + $0x3b8] sm:$0xff] %v2764_v6 }
 0x488   :  { %v2597_v63 = vpop.f32.mrf.mxu2  ;;  %v2261_v34 = vpop.f32.mrf.mxu0 }
 0x489   :  { %v2598_v8 = vadd.f32 %v2597_v63, %v2429_v7  ;;  %v2766_v10 = vpop.f32.mrf.mxu3  ;;  %v2430_v24 = vpop.f32.mrf.mxu1 }
 0x48a   :  { %v2431_v41 = vadd.f32 %v2430_v24, %v2261_v34 }
 0x48b   :  { %v2767_v28 = vadd.f32 %v2766_v10, %v2598_v8 }
 0x48d   :  { %3025 = vst [vmem:[#allocation2 + $0x3c8] sm:$0xff] %v2767_v28 }
 0x490   :  { %v2599_v43 = vpop.f32.mrf.mxu2  ;;  %v2264_v0 = vpop.f32.mrf.mxu0 }
 0x491   :  { %v2600_v60 = vadd.f32 %v2599_v43, %v2431_v41  ;;  %v2768_v36 = vpop.f32.mrf.mxu3  ;;  %v2433_v20 = vpop.f32.mrf.mxu1 }
 0x492   :  { %v2434_v37 = vadd.f32 %v2433_v20, %v2264_v0 }
 0x493   :  { %v2769_v33 = vadd.f32 %v2768_v36, %v2600_v60 }
 0x495   :  { %3027 = vst [vmem:[#allocation2 + $0x3d8] sm:$0xff] %v2769_v33 }
 0x498   :  { %v2602_v46 = vpop.f32.mrf.mxu2  ;;  %v2266_v38 = vpop.f32.mrf.mxu0 }
 0x499   :  { %v2603_v21 = vadd.f32 %v2602_v46, %v2434_v37  ;;  %v2771_v22 = vpop.f32.mrf.mxu3  ;;  %v2435_v39 = vpop.f32.mrf.mxu1 }
 0x49a   :  { %v2436_v11 = vadd.f32 %v2435_v39, %v2266_v38 }
 0x49b   :  { %v2772_v23 = vadd.f32 %v2771_v22, %v2603_v21 }
 0x49d   :  { %3029 = vst [vmem:[#allocation2 + $0x3e8] sm:$0xff] %v2772_v23 }
 0x4a0   :  { %v2604_v1 = vpop.f32.mrf.mxu2 }
 0x4a1   :  { %v2605_v2 = vadd.f32 %v2604_v1, %v2436_v11  ;;  %v2773_v3 = vpop.f32.mrf.mxu3 }
 0x4a3   :  { %v2774_v26 = vadd.f32 %v2773_v3, %v2605_v2 }
 0x4a5   :  { %3031 = vst [vmem:[#allocation2 + $0x3f8] sm:$0xff] %v2774_v26 }
 0x4a6   :  { %3044 = dma.vmem_to_hbm [thread:$0]  %s3037_s18, 16384, %s3039_s21, [#allocation3], %s4041_s22, %s4041_s22, %s4042_s23  }
 0x4a7   :  { %4038 = dma.done.wait [#allocation3], 16384  }
 0x4a8   :  { %4039 = vsyncadd [#allocation3], 4294950912 }
 0x4a9   :  { %3049 = vsyncpa [#allocation3], 1 }

// kernel: hgnn_conv_mi_sim_forward.2
= control target key start
LH: loop header
LB: loop body
LE: loop exit
PB: predicated region body
PF: predicated region fallthrough
CT: control target
= control target key end

     0   :  { %s11335_s1 = inlined_call_operand.vmem [shape: bf16[1024,256], index: 1, kind: input, shape index: {}]   ;;  %s11336_s0 = inlined_call_operand.vmem [shape: bf16[512,1024], index: 0, kind: input, shape index: {}]   ;;  %s11337_s2 = inlined_call_operand.vmem [shape: f32[1,256], index: 2, kind: input, shape index: {}]   ;;  %s11338_s3 = inlined_call_operand.vmem [shape: bf16[512,256], index: 3, kind: output, shape index: {}]  }
   0x1   :  { %v6242_v0 = vld [vmem:[%s11335_s1 + $0x70] sm:$0xf]  ;;  %v6967_v1 = vld [vmem:[%s11335_s1 + $0x74] sm:$0xf0]  ;;  %v6234_v11 = vld [vmem:[%s11335_s1 + $0x60] sm:$0xf] }
   0x2   :  { %v6306_v2 = vld [vmem:[%s11335_s1 + $0xf0] sm:$0xf]  ;;  %v6243_v3 = vor.u32 %v6967_v1, %v6242_v0  ;;  %v6983_v4 = vld [vmem:[%s11335_s1 + $0xf4] sm:$0xf0]  ;;  %v6965_v13 = vld [vmem:[%s11335_s1 + $0x64] sm:$0xf0] }
   0x3   :  { %v6370_v5 = vld [vmem:[%s11335_s1 + $0x170] sm:$0xf]  ;;  %v6999_v6 = vld [vmem:[%s11335_s1 + $0x174] sm:$0xf0]  ;;  %v6307_v7 = vor.u32 %v6983_v4, %v6306_v2  ;;  %v6298_v14 = vld [vmem:[%s11335_s1 + $0xe0] sm:$0xf]  ;;  %v6235_v16 = vor.u32 %v6965_v13, %v6234_v11 }
   0x4   :  { %v6371_v8 = vor.u32 %v6999_v6, %v6370_v5  ;;  %v6434_v9 = vld [vmem:[%s11335_s1 + $0x1f0] sm:$0xf]  ;;  %v7015_v10 = vld [vmem:[%s11335_s1 + $0x1f4] sm:$0xf0]  ;;  %2324 = vmatpush.bf16.msra.mxu0 %v6243_v3  ;;  %v6981_v15 = vld [vmem:[%s11335_s1 + $0xe4] sm:$0xf0] }
   0x5   :  { %v6435_v12 = vor.u32 %v7015_v10, %v6434_v9  ;;  %2493 = vmatpush.bf16.msra.mxu1 %v6307_v7  ;;  %v6299_v17 = vor.u32 %v6981_v15, %v6298_v14  ;;  %v6362_v18 = vld [vmem:[%s11335_s1 + $0x160] sm:$0xf]  ;;  %v6997_v19 = vld [vmem:[%s11335_s1 + $0x164] sm:$0xf0]  ;;  %v6226_v23 = vld [vmem:[%s11335_s1 + $0x50] sm:$0xf] }
   0x6   :  { %2662 = vmatpush.bf16.msra.mxu2 %v6371_v8  ;;  %v6426_v20 = vld [vmem:[%s11335_s1 + $0x1e0] sm:$0xf]  ;;  %v6363_v21 = vor.u32 %v6997_v19, %v6362_v18  ;;  %v7013_v22 = vld [vmem:[%s11335_s1 + $0x1e4] sm:$0xf0]  ;;  %v6963_v24 = vld [vmem:[%s11335_s1 + $0x54] sm:$0xf0] }
   0x7   :  { %2831 = vmatpush.bf16.msra.mxu3 %v6435_v12  ;;  %v6427_v25 = vor.u32 %v7013_v22, %v6426_v20  ;;  %v6290_v26 = vld [vmem:[%s11335_s1 + $0xd0] sm:$0xf]  ;;  %v6979_v27 = vld [vmem:[%s11335_s1 + $0xd4] sm:$0xf0]  ;;  %v6227_v29 = vor.u32 %v6963_v24, %v6226_v23  ;;  %v6218_v35 = vld [vmem:[%s11335_s1 + $0x40] sm:$0xf] }
   0x8   :  { %v6354_v28 = vld [vmem:[%s11335_s1 + $0x150] sm:$0xf]  ;;  %2325 = vmatpush.bf16.msra.mxu0 %v6235_v16  ;;  %v6995_v30 = vld [vmem:[%s11335_s1 + $0x154] sm:$0xf0]  ;;  %v6291_v33 = vor.u32 %v6979_v27, %v6290_v26  ;;  %v6961_v36 = vld [vmem:[%s11335_s1 + $0x44] sm:$0xf0] }
   0x9   :  { %v6418_v31 = vld [vmem:[%s11335_s1 + $0x1d0] sm:$0xf]  ;;  %v7011_v32 = vld [vmem:[%s11335_s1 + $0x1d4] sm:$0xf0]  ;;  %2494 = vmatpush.bf16.msra.mxu1 %v6299_v17  ;;  %v6355_v34 = vor.u32 %v6995_v30, %v6354_v28  ;;  %v6282_v37 = vld [vmem:[%s11335_s1 + $0xc0] sm:$0xf]  ;;  %v6219_v44 = vor.u32 %v6961_v36, %v6218_v35 }
   0xa   :  { %2663 = vmatpush.bf16.msra.mxu2 %v6363_v21  ;;  %v6419_v38 = vor.u32 %v7011_v32, %v6418_v31  ;;  %v6977_v39 = vld [vmem:[%s11335_s1 + $0xc4] sm:$0xf0]  ;;  %v6346_v40 = vld [vmem:[%s11335_s1 + $0x140] sm:$0xf]  ;;  %v6210_v47 = vld [vmem:[%s11335_s1 + $0x30] sm:$0xf] }
   0xb   :  { %2832 = vmatpush.bf16.msra.mxu3 %v6427_v25  ;;  %v6993_v41 = vld [vmem:[%s11335_s1 + $0x144] sm:$0xf0]  ;;  %v6410_v42 = vld [vmem:[%s11335_s1 + $0x1c0] sm:$0xf]  ;;  %v6283_v45 = vor.u32 %v6977_v39, %v6282_v37  ;;  %v6959_v48 = vld [vmem:[%s11335_s1 + $0x34] sm:$0xf0] }
   0xc   :  { %v7009_v43 = vld [vmem:[%s11335_s1 + $0x1c4] sm:$0xf0]  ;;  %2326 = vmatpush.bf16.msra.mxu0 %v6227_v29  ;;  %v6347_v46 = vor.u32 %v6993_v41, %v6346_v40  ;;  %v6274_v49 = vld [vmem:[%s11335_s1 + $0xb0] sm:$0xf]  ;;  %v6975_v51 = vld [vmem:[%s11335_s1 + $0xb4] sm:$0xf0]  ;;  %v6211_v56 = vor.u32 %v6959_v48, %v6210_v47 }
   0xd   :  { %2495 = vmatpush.bf16.msra.mxu1 %v6291_v33  ;;  %v6411_v50 = vor.u32 %v7009_v43, %v6410_v42  ;;  %v6338_v52 = vld [vmem:[%s11335_s1 + $0x130] sm:$0xf]  ;;  %v6991_v53 = vld [vmem:[%s11335_s1 + $0x134] sm:$0xf0]  ;;  %v6275_v57 = vor.u32 %v6975_v51, %v6274_v49  ;;  %v6202_v59 = vld [vmem:[%s11335_s1 + $0x20] sm:$0xf] }
   0xe   :  { %2664 = vmatpush.bf16.msra.mxu2 %v6355_v34  ;;  %v6402_v54 = vld [vmem:[%s11335_s1 + $0x1b0] sm:$0xf]  ;;  %v7007_v55 = vld [vmem:[%s11335_s1 + $0x1b4] sm:$0xf0]  ;;  %v6339_v58 = vor.u32 %v6991_v53, %v6338_v52  ;;  %v6957_v60 = vld [vmem:[%s11335_s1 + $0x24] sm:$0xf0] }
   0xf   :  { %2833 = vmatpush.bf16.msra.mxu3 %v6419_v38  ;;  %v6266_v61 = vld [vmem:[%s11335_s1 + $0xa0] sm:$0xf]  ;;  %v6403_v62 = vor.u32 %v7007_v55, %v6402_v54  ;;  %v6973_v63 = vld [vmem:[%s11335_s1 + $0xa4] sm:$0xf0]  ;;  %v6203_v4 = vor.u32 %v6957_v60, %v6202_v59  ;;  %v6194_v7 = vld [vmem:[%s11335_s1 + $0x10] sm:$0xf] }
  0x10   :  { %2327 = vmatpush.bf16.msra.mxu0 %v6219_v44  ;;  %v6330_v0 = vld [vmem:[%s11335_s1 + $0x120] sm:$0xf]  ;;  %v6989_v1 = vld [vmem:[%s11335_s1 + $0x124] sm:$0xf0]  ;;  %v6267_v5 = vor.u32 %v6973_v63, %v6266_v61  ;;  %v6955_v8 = vld [vmem:[%s11335_s1 + $0x14] sm:$0xf0] }
  0x11   :  { %2496 = vmatpush.bf16.msra.mxu1 %v6283_v45  ;;  %v6394_v2 = vld [vmem:[%s11335_s1 + $0x1a0] sm:$0xf]  ;;  %v7005_v3 = vld [vmem:[%s11335_s1 + $0x1a4] sm:$0xf0]  ;;  %v6331_v6 = vor.u32 %v6989_v1, %v6330_v0  ;;  %v6258_v9 = vld [vmem:[%s11335_s1 + $0x90] sm:$0xf]  ;;  %v6195_v17 = vor.u32 %v6955_v8, %v6194_v7 }
  0x12   :  { %2665 = vmatpush.bf16.msra.mxu2 %v6347_v46  ;;  %v6395_v10 = vor.u32 %v7005_v3, %v6394_v2  ;;  %v6971_v11 = vld [vmem:[%s11335_s1 + $0x94] sm:$0xf0]  ;;  %v6322_v12 = vld [vmem:[%s11335_s1 + $0x110] sm:$0xf]  ;;  %v6186_v16 = vld [vmem:[%s11335_s1] sm:$0xf] }
  0x13   :  { %2834 = vmatpush.bf16.msra.mxu3 %v6411_v50  ;;  %v6987_v13 = vld [vmem:[%s11335_s1 + $0x114] sm:$0xf0]  ;;  %v6386_v14 = vld [vmem:[%s11335_s1 + $0x190] sm:$0xf]  ;;  %v6953_v18 = vld [vmem:[%s11335_s1 + $0x4] sm:$0xf0]  ;;  %v6259_v21 = vor.u32 %v6971_v11, %v6258_v9 }
  0x14   :  { %2328 = vmatpush.bf16.msra.mxu0 %v6211_v56  ;;  %v7003_v15 = vld [vmem:[%s11335_s1 + $0x194] sm:$0xf0]  ;;  %v6250_v19 = vld [vmem:[%s11335_s1 + $0x80] sm:$0xf]  ;;  %v6969_v20 = vld [vmem:[%s11335_s1 + $0x84] sm:$0xf0]  ;;  %v6323_v22 = vor.u32 %v6987_v13, %v6322_v12  ;;  %v6187_v33 = vor.u32 %v6953_v18, %v6186_v16 }
  0x15   :  { %2497 = vmatpush.bf16.msra.mxu1 %v6275_v57  ;;  %v6314_v23 = vld [vmem:[%s11335_s1 + $0x100] sm:$0xf]  ;;  %v6985_v24 = vld [vmem:[%s11335_s1 + $0x104] sm:$0xf0]  ;;  %v6387_v26 = vor.u32 %v7003_v15, %v6386_v14  ;;  %v6696_v30 = vld [vmem:[%s11336_s0 + $0x4] sm:$0xf]  ;;  %v6251_v37 = vor.u32 %v6969_v20, %v6250_v19 }
  0x16   :  { %2666 = vmatpush.bf16.msra.mxu2 %v6339_v58  ;;  %v6378_v25 = vld [vmem:[%s11335_s1 + $0x180] sm:$0xf]  ;;  %v7001_v27 = vld [vmem:[%s11335_s1 + $0x184] sm:$0xf0]  ;;  %v6626_v31 = vld [vmem:[%s11335_s1 + $0x370] sm:$0xf]  ;;  %v6315_v38 = vor.u32 %v6985_v24, %v6314_v23 }
  0x17   :  { %2835 = vmatpush.bf16.msra.mxu3 %v6403_v62  ;;  %v5162_v28 = vld [vmem:[%s11336_s0] sm:$0xf]  ;;  %v7063_v32 = vld [vmem:[%s11335_s1 + $0x374] sm:$0xf0]  ;;  %v5164_v34 = vld [vmem:[%s11336_s0 + $0x20] sm:$0xf0]  ;;  %v6379_v42 = vor.u32 %v7001_v27, %v6378_v25 }
  0x18   :  { %2329 = vmatpush.bf16.msra.mxu0 %v6203_v4  ;;  %v6700_v29 = vld [vmem:[%s11336_s0 + $0x1c] sm:$0xf0]  ;;  %v6690_v35 = vld [vmem:[%s11335_s1 + $0x3f0] sm:$0xf]  ;;  %v7079_v36 = vld [vmem:[%s11335_s1 + $0x3f4] sm:$0xf0]  ;;  %v6627_v44 = vor.u32 %v7063_v32, %v6626_v31  ;;  %v7343_v51 = vor.u32 %v6696_v30, %v5164_v34 }
  0x19   :  { %2498 = vmatpush.bf16.msra.mxu1 %v6267_v5  ;;  %v5170_v39 = vld [vmem:[%s11336_s0 + $0x8] sm:$0xf]  ;;  %v6697_v41 = vld [vmem:[%s11336_s0 + $0xc] sm:$0xf]  ;;  %v6498_v45 = vld [vmem:[%s11335_s1 + $0x270] sm:$0xf]  ;;  %v7335_v47 = vor.u32 %v6700_v29, %v5162_v28  ;;  %v6691_v48 = vor.u32 %v7079_v36, %v6690_v35 }
  0x1a   :  { %2667 = vmatpush.bf16.msra.mxu2 %v6331_v6  ;;  %v6701_v40 = vld [vmem:[%s11336_s0 + $0x24] sm:$0xf0]  ;;  %v5172_v43 = vld [vmem:[%s11336_s0 + $0x28] sm:$0xf0]  ;;  %v7031_v46 = vld [vmem:[%s11335_s1 + $0x274] sm:$0xf0] }
  0x1b   :  { %2836 = vmatpush.bf16.msra.mxu3 %v6395_v10  ;;  %11583 = vst [vmem:[#allocation2_spill] sm:$0xff] %v7335_v47  ;;  %v6562_v49 = vld [vmem:[%s11335_s1 + $0x2f0] sm:$0xf]  ;;  %v7047_v50 = vld [vmem:[%s11335_s1 + $0x2f4] sm:$0xf0]  ;;  %v7345_v52 = vor.u32 %v6701_v40, %v5170_v39  ;;  %v7347_v53 = vor.u32 %v6697_v41, %v5172_v43  ;;  %v6499_v54 = vor.u32 %v7031_v46, %v6498_v45 }
  0x1c   :  { %2330 = vmatpush.bf16.msra.mxu0 %v6195_v17  ;;  %11584 = vst [vmem:[#allocation3_spill] sm:$0xff] %v7343_v51  ;;  %v6563_v55 = vor.u32 %v7047_v50, %v6562_v49  ;;  %v5194_v56 = vld [vmem:[%s11336_s0 + $0x40] sm:$0xf]  ;;  %v6704_v58 = vld [vmem:[%s11336_s0 + $0x44] sm:$0xf] }
  0x1d   :  { %2499 = vmatpush.bf16.msra.mxu1 %v6259_v21  ;;  %11585 = vst [vmem:[#allocation4_spill] sm:$0xff] %v7345_v52  ;;  %v6708_v57 = vld [vmem:[%s11336_s0 + $0x5c] sm:$0xf0]  ;;  %v5196_v59 = vld [vmem:[%s11336_s0 + $0x60] sm:$0xf0] }
  0x1e   :  { %2668 = vmatpush.bf16.msra.mxu2 %v6323_v22  ;;  %11586 = vst [vmem:[#allocation5_spill] sm:$0xff] %v7347_v53  ;;  %v5202_v60 = vld [vmem:[%s11336_s0 + $0x48] sm:$0xf]  ;;  %v6705_v62 = vld [vmem:[%s11336_s0 + $0x4c] sm:$0xf]  ;;  %v7377_v0 = vor.u32 %v6708_v57, %v5194_v56  ;;  %v7379_v1 = vor.u32 %v6704_v58, %v5196_v59 }
  0x1f   :  { %2837 = vmatpush.bf16.msra.mxu3 %v6387_v26  ;;  %v6709_v61 = vld [vmem:[%s11336_s0 + $0x64] sm:$0xf0]  ;;  %v5204_v63 = vld [vmem:[%s11336_s0 + $0x68] sm:$0xf0]  ;;  %v5226_v4 = vld [vmem:[%s11336_s0 + $0x80] sm:$0xf] }
  0x20   :  { %2331 = vmatpush.bf16.msra.mxu0 %v6187_v33  ;;  %11587 = vst [vmem:[#allocation6_spill] sm:$0xff] %v7377_v0  ;;  %v7381_v2 = vor.u32 %v6709_v61, %v5202_v60  ;;  %v7383_v3 = vor.u32 %v6705_v62, %v5204_v63  ;;  %v6716_v5 = vld [vmem:[%s11336_s0 + $0x9c] sm:$0xf0]  ;;  %v6712_v6 = vld [vmem:[%s11336_s0 + $0x84] sm:$0xf] }
  0x21   :  { %2500 = vmatpush.bf16.msra.mxu1 %v6251_v37  ;;  %11588 = vst [vmem:[#allocation7_spill] sm:$0xff] %v7379_v1  ;;  %v5228_v7 = vld [vmem:[%s11336_s0 + $0xa0] sm:$0xf0]  ;;  %v5234_v8 = vld [vmem:[%s11336_s0 + $0x88] sm:$0xf]  ;;  %v7413_v12 = vor.u32 %v6716_v5, %v5226_v4 }
  0x22   :  { %2669 = vmatpush.bf16.msra.mxu2 %v6315_v38  ;;  %11589 = vst [vmem:[#allocation8_spill] sm:$0xff] %v7381_v2  ;;  %v6717_v9 = vld [vmem:[%s11336_s0 + $0xa4] sm:$0xf0]  ;;  %v6713_v10 = vld [vmem:[%s11336_s0 + $0x8c] sm:$0xf]  ;;  %v7415_v13 = vor.u32 %v6712_v6, %v5228_v7 }
  0x23   :  { %2838 = vmatpush.bf16.msra.mxu3 %v6379_v42  ;;  %2332 = vmatmul.bf16.vlgmr.msra.gmra.mxu0 %v7335_v47  ;;  %11590 = vst [vmem:[#allocation9_spill] sm:$0xff] %v7383_v3  ;;  %v5236_v11 = vld [vmem:[%s11336_s0 + $0xa8] sm:$0xf0]  ;;  %v7417_v14 = vor.u32 %v6717_v9, %v5234_v8  ;;  %v6618_v16 = vld [vmem:[%s11335_s1 + $0x360] sm:$0xf] }
  0x24   :  { %2501 = vmatmul.bf16.vlgmr.msra.gmra.mxu1 %v7343_v51  ;;  %3000 = vmatpush.bf16.msrb.mxu0 %v6499_v54  ;;  %11591 = vst [vmem:[#allocation10_spill] sm:$0xff] %v7413_v12  ;;  %v7419_v15 = vor.u32 %v6713_v10, %v5236_v11  ;;  %v7061_v17 = vld [vmem:[%s11335_s1 + $0x364] sm:$0xf0]  ;;  %v6490_v18 = vld [vmem:[%s11335_s1 + $0x260] sm:$0xf] }
  0x25   :  { %2670 = vmatmul.bf16.vlgmr.msra.gmra.mxu2 %v7345_v52  ;;  %3169 = vmatpush.bf16.msrb.mxu1 %v6563_v55  ;;  %11592 = vst [vmem:[#allocation11_spill] sm:$0xff] %v7415_v13  ;;  %v6619_v19 = vor.u32 %v7061_v17, %v6618_v16  ;;  %v7029_v20 = vld [vmem:[%s11335_s1 + $0x264] sm:$0xf0]  ;;  %v6682_v21 = vld [vmem:[%s11335_s1 + $0x3e0] sm:$0xf] }
  0x26   :  { %3338 = vmatpush.bf16.msrb.mxu2 %v6627_v44  ;;  %2839 = vmatmul.bf16.vlgmr.msra.gmra.mxu3 %v7347_v53  ;;  %11593 = vst [vmem:[#allocation12_spill] sm:$0xff] %v7417_v14  ;;  %v7077_v22 = vld [vmem:[%s11335_s1 + $0x3e4] sm:$0xf0]  ;;  %v6491_v23 = vor.u32 %v7029_v20, %v6490_v18  ;;  %v6554_v25 = vld [vmem:[%s11335_s1 + $0x2e0] sm:$0xf] }
  0x27   :  { %3507 = vmatpush.bf16.msrb.mxu3 %v6691_v48  ;;  %11594 = vst [vmem:[#allocation13_spill] sm:$0xff] %v7419_v15  ;;  %v6683_v24 = vor.u32 %v7077_v22, %v6682_v21  ;;  %v7045_v26 = vld [vmem:[%s11335_s1 + $0x2e4] sm:$0xf0]  ;;  %v5258_v28 = vld [vmem:[%s11336_s0 + $0xc0] sm:$0xf] }
  0x28   :  { %v6555_v27 = vor.u32 %v7045_v26, %v6554_v25  ;;  %3001 = vmatpush.bf16.msrb.mxu0 %v6491_v23  ;;  %v6724_v29 = vld [vmem:[%s11336_s0 + $0xdc] sm:$0xf0]  ;;  %v6720_v30 = vld [vmem:[%s11336_s0 + $0xc4] sm:$0xf]  ;;  %v5266_v32 = vld [vmem:[%s11336_s0 + $0xc8] sm:$0xf] }
  0x29   :  { %v5260_v31 = vld [vmem:[%s11336_s0 + $0xe0] sm:$0xf0]  ;;  %v6725_v33 = vld [vmem:[%s11336_s0 + $0xe4] sm:$0xf0]  ;;  %v6721_v34 = vld [vmem:[%s11336_s0 + $0xcc] sm:$0xf]  ;;  %v7473_v36 = vor.u32 %v6724_v29, %v5258_v28 }
  0x2a   :  { %3339 = vmatpush.bf16.msrb.mxu2 %v6619_v19  ;;  %3170 = vmatpush.bf16.msrb.mxu1 %v6555_v27  ;;  %v5268_v35 = vld [vmem:[%s11336_s0 + $0xe8] sm:$0xf0]  ;;  %v7475_v37 = vor.u32 %v6720_v30, %v5260_v31  ;;  %v7477_v38 = vor.u32 %v6725_v33, %v5266_v32  ;;  %v5290_v40 = vld [vmem:[%s11336_s0 + $0x100] sm:$0xf]  ;;  %v6728_v42 = vld [vmem:[%s11336_s0 + $0x104] sm:$0xf] }
  0x2b   :  { %3508 = vmatpush.bf16.msrb.mxu3 %v6683_v24  ;;  %11595 = vst [vmem:[#allocation14_spill] sm:$0xff] %v7473_v36  ;;  %v7479_v39 = vor.u32 %v6721_v34, %v5268_v35  ;;  %v6732_v41 = vld [vmem:[%s11336_s0 + $0x11c] sm:$0xf0]  ;;  %v5292_v43 = vld [vmem:[%s11336_s0 + $0x120] sm:$0xf0] }
  0x2c   :  { %11596 = vst [vmem:[#allocation15_spill] sm:$0xff] %v7475_v37  ;;  %v5298_v44 = vld [vmem:[%s11336_s0 + $0x108] sm:$0xf]  ;;  %v6729_v46 = vld [vmem:[%s11336_s0 + $0x10c] sm:$0xf]  ;;  %v7509_v49 = vor.u32 %v6732_v41, %v5290_v40  ;;  %v7511_v50 = vor.u32 %v6728_v42, %v5292_v43 }
  0x2d   :  { %11597 = vst [vmem:[#allocation16_spill] sm:$0xff] %v7477_v38  ;;  %v6733_v45 = vld [vmem:[%s11336_s0 + $0x124] sm:$0xf0]  ;;  %v5300_v48 = vld [vmem:[%s11336_s0 + $0x128] sm:$0xf0] }
  0x2e   :  { %11598 = vst [vmem:[#allocation17_spill] sm:$0xff] %v7479_v39  ;;  %v7513_v54 = vor.u32 %v6733_v45, %v5298_v44  ;;  %v7515_v55 = vor.u32 %v6729_v46, %v5300_v48  ;;  %v5322_v56 = vld [vmem:[%s11336_s0 + $0x140] sm:$0xf]  ;;  %v6736_v58 = vld [vmem:[%s11336_s0 + $0x144] sm:$0xf] }
  0x2f   :  { %11599 = vst [vmem:[#allocation18_spill] sm:$0xff] %v7509_v49  ;;  %v6740_v57 = vld [vmem:[%s11336_s0 + $0x15c] sm:$0xf0]  ;;  %v5324_v59 = vld [vmem:[%s11336_s0 + $0x160] sm:$0xf0] }
  0x30   :  { %11600 = vst [vmem:[#allocation19_spill] sm:$0xff] %v7511_v50  ;;  %v5330_v60 = vld [vmem:[%s11336_s0 + $0x148] sm:$0xf]  ;;  %v6737_v62 = vld [vmem:[%s11336_s0 + $0x14c] sm:$0xf]  ;;  %v7545_v4 = vor.u32 %v6740_v57, %v5322_v56  ;;  %v7547_v5 = vor.u32 %v6736_v58, %v5324_v59 }
  0x31   :  { %11601 = vst [vmem:[#allocation20_spill] sm:$0xff] %v7513_v54  ;;  %v6741_v61 = vld [vmem:[%s11336_s0 + $0x164] sm:$0xf0]  ;;  %v5332_v63 = vld [vmem:[%s11336_s0 + $0x168] sm:$0xf0] }
  0x32   :  { %11602 = vst [vmem:[#allocation21_spill] sm:$0xff] %v7515_v55  ;;  %v7549_v6 = vor.u32 %v6741_v61, %v5330_v60  ;;  %v7551_v7 = vor.u32 %v6737_v62, %v5332_v63  ;;  %v5354_v8 = vld [vmem:[%s11336_s0 + $0x180] sm:$0xf]  ;;  %v6744_v10 = vld [vmem:[%s11336_s0 + $0x184] sm:$0xf] }
  0x33   :  { %2337 = vmatmul.bf16.gmra.mxu0 %v7377_v0  ;;  %11603 = vst [vmem:[#allocation22_spill] sm:$0xff] %v7545_v4  ;;  %v6748_v9 = vld [vmem:[%s11336_s0 + $0x19c] sm:$0xf0]  ;;  %v5356_v11 = vld [vmem:[%s11336_s0 + $0x1a0] sm:$0xf0] }
  0x34   :  { %2506 = vmatmul.bf16.gmra.mxu1 %v7379_v1  ;;  %11604 = vst [vmem:[#allocation23_spill] sm:$0xff] %v7547_v5  ;;  %v5362_v16 = vld [vmem:[%s11336_s0 + $0x188] sm:$0xf]  ;;  %v6745_v18 = vld [vmem:[%s11336_s0 + $0x18c] sm:$0xf]  ;;  %v7581_v20 = vor.u32 %v6748_v9, %v5354_v8  ;;  %v7583_v21 = vor.u32 %v6744_v10, %v5356_v11 }
  0x35   :  { %2675 = vmatmul.bf16.gmra.mxu2 %v7381_v2  ;;  %11605 = vst [vmem:[#allocation24_spill] sm:$0xff] %v7549_v6  ;;  %v6749_v17 = vld [vmem:[%s11336_s0 + $0x1a4] sm:$0xf0]  ;;  %v5364_v19 = vld [vmem:[%s11336_s0 + $0x1a8] sm:$0xf0] }
  0x36   :  { %2844 = vmatmul.bf16.gmra.mxu3 %v7383_v3  ;;  %11606 = vst [vmem:[#allocation25_spill] sm:$0xff] %v7551_v7  ;;  %v7585_v22 = vor.u32 %v6749_v17, %v5362_v16  ;;  %v7587_v23 = vor.u32 %v6745_v18, %v5364_v19  ;;  %v6610_v24 = vld [vmem:[%s11335_s1 + $0x350] sm:$0xf]  ;;  %v7059_v25 = vld [vmem:[%s11335_s1 + $0x354] sm:$0xf0] }
  0x37   :  { %11607 = vst [vmem:[#allocation26_spill] sm:$0xff] %v7581_v20  ;;  %v6482_v26 = vld [vmem:[%s11335_s1 + $0x250] sm:$0xf]  ;;  %v6611_v27 = vor.u32 %v7059_v25, %v6610_v24  ;;  %v7027_v28 = vld [vmem:[%s11335_s1 + $0x254] sm:$0xf0] }
  0x38   :  { %11608 = vst [vmem:[#allocation27_spill] sm:$0xff] %v7583_v21  ;;  %v6674_v29 = vld [vmem:[%s11335_s1 + $0x3d0] sm:$0xf]  ;;  %v7075_v30 = vld [vmem:[%s11335_s1 + $0x3d4] sm:$0xf0]  ;;  %v6483_v31 = vor.u32 %v7027_v28, %v6482_v26 }
  0x39   :  { %11609 = vst [vmem:[#allocation28_spill] sm:$0xff] %v7585_v22  ;;  %v6675_v32 = vor.u32 %v7075_v30, %v6674_v29  ;;  %3340 = vmatpush.bf16.msrb.mxu2 %v6611_v27  ;;  %v6546_v33 = vld [vmem:[%s11335_s1 + $0x2d0] sm:$0xf]  ;;  %v7043_v34 = vld [vmem:[%s11335_s1 + $0x2d4] sm:$0xf0] }
  0x3a   :  { %11610 = vst [vmem:[#allocation29_spill] sm:$0xff] %v7587_v23  ;;  %3002 = vmatpush.bf16.msrb.mxu0 %v6483_v31  ;;  %v6547_v35 = vor.u32 %v7043_v34, %v6546_v33  ;;  %v5386_v40 = vld [vmem:[%s11336_s0 + $0x1c0] sm:$0xf]  ;;  %v6752_v42 = vld [vmem:[%s11336_s0 + $0x1c4] sm:$0xf] }
  0x3b   :  { %3509 = vmatpush.bf16.msrb.mxu3 %v6675_v32  ;;  %v6756_v41 = vld [vmem:[%s11336_s0 + $0x1dc] sm:$0xf0]  ;;  %v5388_v43 = vld [vmem:[%s11336_s0 + $0x1e0] sm:$0xf0]  ;;  %v5394_v44 = vld [vmem:[%s11336_s0 + $0x1c8] sm:$0xf] }
  0x3c   :  { %v6757_v45 = vld [vmem:[%s11336_s0 + $0x1e4] sm:$0xf0]  ;;  %3171 = vmatpush.bf16.msrb.mxu1 %v6547_v35  ;;  %v6753_v46 = vld [vmem:[%s11336_s0 + $0x1cc] sm:$0xf]  ;;  %v7641_v56 = vor.u32 %v6756_v41, %v5386_v40  ;;  %v7643_v57 = vor.u32 %v6752_v42, %v5388_v43  ;;  %v398_v60 = vld [vmem:[%s11337_s2] sm:$0x3] }
  0x3d   :  { %v5396_v48 = vld [vmem:[%s11336_s0 + $0x1e8] sm:$0xf0]  ;;  %v7645_v58 = vor.u32 %v6757_v45, %v5394_v44  ;;  %v7656_v61 = vperm.slane %v398_v60, 0  ;;  %v5418_v62 = vld [vmem:[%s11336_s0 + $0x200] sm:$0xf] }
  0x3e   :  { %11611 = vst [vmem:[#allocation30_spill] sm:$0xff] %v7641_v56  ;;  %v7647_v59 = vor.u32 %v6753_v46, %v5396_v48  ;;  %v6764_v63 = vld [vmem:[%s11336_s0 + $0x21c] sm:$0xf0]  ;;  %v6760_v8 = vld [vmem:[%s11336_s0 + $0x204] sm:$0xf] }
  0x3f   :  { %11612 = vst [vmem:[#allocation31_spill] sm:$0xff] %v7643_v57  ;;  %v5420_v9 = vld [vmem:[%s11336_s0 + $0x220] sm:$0xf0]  ;;  %v5426_v10 = vld [vmem:[%s11336_s0 + $0x208] sm:$0xf]  ;;  %v7682_v18 = vor.u32 %v6764_v63, %v5418_v62 }
  0x40   :  { %11613 = vst [vmem:[#allocation32_spill] sm:$0xff] %v7645_v58  ;;  %v6765_v11 = vld [vmem:[%s11336_s0 + $0x224] sm:$0xf0]  ;;  %v6761_v16 = vld [vmem:[%s11336_s0 + $0x20c] sm:$0xf]  ;;  %v7684_v24 = vor.u32 %v6760_v8, %v5420_v9 }
  0x41   :  { %11614 = vst [vmem:[#allocation33_spill] sm:$0xff] %v7647_v59  ;;  %v5428_v17 = vld [vmem:[%s11336_s0 + $0x228] sm:$0xf0]  ;;  %v7686_v25 = vor.u32 %v6765_v11, %v5426_v10  ;;  %v5450_v42 = vld [vmem:[%s11336_s0 + $0x240] sm:$0xf] }
  0x42   :  { %11615 = vst [vmem:[#allocation34_spill] sm:$0xff] %v7682_v18  ;;  %v7689_v28 = vor.u32 %v6761_v16, %v5428_v17  ;;  %v6772_v43 = vld [vmem:[%s11336_s0 + $0x25c] sm:$0xf0]  ;;  %v6768_v44 = vld [vmem:[%s11336_s0 + $0x244] sm:$0xf] }
  0x43   :  { %2342 = vmatmul.bf16.gmra.mxu0 %v7413_v12  ;;  %11616 = vst [vmem:[#allocation35_spill] sm:$0xff] %v7684_v24  ;;  %v5452_v45 = vld [vmem:[%s11336_s0 + $0x260] sm:$0xf0]  ;;  %v5458_v46 = vld [vmem:[%s11336_s0 + $0x248] sm:$0xf]  ;;  %v7722_v8 = vor.u32 %v6772_v43, %v5450_v42 }
  0x44   :  { %2511 = vmatmul.bf16.gmra.mxu1 %v7415_v13  ;;  %11617 = vst [vmem:[#allocation36_spill] sm:$0xff] %v7686_v25  ;;  %v6773_v48 = vld [vmem:[%s11336_s0 + $0x264] sm:$0xf0]  ;;  %v6769_v60 = vld [vmem:[%s11336_s0 + $0x24c] sm:$0xf]  ;;  %v7724_v16 = vor.u32 %v6768_v44, %v5452_v45 }
  0x45   :  { %2680 = vmatmul.bf16.gmra.mxu2 %v7417_v14  ;;  %11618 = vst [vmem:[#allocation37_spill] sm:$0xff] %v7689_v28  ;;  %v5460_v62 = vld [vmem:[%s11336_s0 + $0x268] sm:$0xf0]  ;;  %v7726_v17 = vor.u32 %v6773_v48, %v5458_v46  ;;  %v5482_v44 = vld [vmem:[%s11336_s0 + $0x280] sm:$0xf] }
  0x46   :  { %2849 = vmatmul.bf16.gmra.mxu3 %v7419_v15  ;;  %11619 = vst [vmem:[#allocation38_spill] sm:$0xff] %v7722_v8  ;;  %v6780_v45 = vld [vmem:[%s11336_s0 + $0x29c] sm:$0xf0]  ;;  %v6776_v46 = vld [vmem:[%s11336_s0 + $0x284] sm:$0xf] }
  0x47   :  { %11620 = vst [vmem:[#allocation39_spill] sm:$0xff] %v7724_v16  ;;  %v5484_v48 = vld [vmem:[%s11336_s0 + $0x2a0] sm:$0xf0] }
  0x48   :  { %11621 = vst [vmem:[#allocation40_spill] sm:$0xff] %v7726_v17 }
  0x53   :  { %2347 = vmatmul.bf16.gmra.mxu0 %v7473_v36 }
  0x54   :  { %2516 = vmatmul.bf16.gmra.mxu1 %v7475_v37 }
  0x55   :  { %2685 = vmatmul.bf16.gmra.mxu2 %v7477_v38 }
  0x56   :  { %2854 = vmatmul.bf16.gmra.mxu3 %v7479_v39 }
  0x63   :  { %2352 = vmatmul.bf16.gmra.mxu0 %v7509_v49 }
  0x64   :  { %2521 = vmatmul.bf16.gmra.mxu1 %v7511_v50 }
  0x65   :  { %2690 = vmatmul.bf16.gmra.mxu2 %v7513_v54 }
  0x66   :  { %2859 = vmatmul.bf16.gmra.mxu3 %v7515_v55 }
  0x73   :  { %2357 = vmatmul.bf16.gmra.mxu0 %v7545_v4 }
  0x74   :  { %2526 = vmatmul.bf16.gmra.mxu1 %v7547_v5 }
  0x75   :  { %2695 = vmatmul.bf16.gmra.mxu2 %v7549_v6 }
  0x76   :  { %2864 = vmatmul.bf16.gmra.mxu3 %v7551_v7 }
  0x83   :  { %2362 = vmatmul.bf16.gmra.mxu0 %v7581_v20 }
  0x84   :  { %2531 = vmatmul.bf16.gmra.mxu1 %v7583_v21 }
  0x85   :  { %2700 = vmatmul.bf16.gmra.mxu2 %v7585_v22 }
  0x86   :  { %2869 = vmatmul.bf16.gmra.mxu3 %v7587_v23 }
  0x93   :  { %2367 = vmatmul.bf16.gmra.mxu0 %v7641_v56 }
  0x94   :  { %2536 = vmatmul.bf16.gmra.mxu1 %v7643_v57 }
  0x95   :  { %2705 = vmatmul.bf16.gmra.mxu2 %v7645_v58 }
  0x96   :  { %2874 = vmatmul.bf16.gmra.mxu3 %v7647_v59 }
  0xa0   :  { %v2333_v19 = vpop.f32.mrf.mxu0 }
  0xa1   :  { %v2334_v26 = vadd.f32 %v2333_v19, %v7656_v61  ;;  %v2502_v27 = vpop.f32.mrf.mxu1 }
  0xa3   :  { %v2503_v29 = vadd.f32 %v2502_v27, %v2334_v26  ;;  %2372 = vmatmul.bf16.gmra.mxu0 %v7682_v18  ;;  %v7729_v27 = vor.u32 %v6769_v60, %v5460_v62  ;;  %v5490_v60 = vld [vmem:[%s11336_s0 + $0x288] sm:$0xf] }
  0xa4   :  { %2541 = vmatmul.bf16.gmra.mxu1 %v7684_v24  ;;  %v6781_v62 = vld [vmem:[%s11336_s0 + $0x2a4] sm:$0xf0] }
  0xa5   :  { %2710 = vmatmul.bf16.gmra.mxu2 %v7686_v25  ;;  %11622 = vst [vmem:[#allocation41_spill] sm:$0xff] %v7729_v27 }
  0xa6   :  { %2879 = vmatmul.bf16.gmra.mxu3 %v7689_v28 }
  0xa8   :  { %v2671_v30 = vpop.f32.mrf.mxu2  ;;  %v2335_v33 = vpop.f32.mrf.mxu0 }
  0xa9   :  { %v2672_v31 = vadd.f32 %v2671_v30, %v2503_v29  ;;  %v2840_v32 = vpop.f32.mrf.mxu3  ;;  %v2336_v34 = vadd.f32 %v2335_v33, %v7656_v61  ;;  %v2504_v35 = vpop.f32.mrf.mxu1 }
  0xab   :  { %v7696_v40 = vadd.f32 %v2840_v32, %v2672_v31  ;;  %v2505_v41 = vadd.f32 %v2504_v35, %v2336_v34 }
  0xb0   :  { %v2673_v63 = vpop.f32.mrf.mxu2  ;;  %v2338_v11 = vpop.f32.mrf.mxu0 }
  0xb1   :  { %v2674_v9 = vadd.f32 %v2673_v63, %v2505_v41  ;;  %v2842_v10 = vpop.f32.mrf.mxu3  ;;  %v2339_v19 = vadd.f32 %v2338_v11, %v7656_v61  ;;  %v2507_v26 = vpop.f32.mrf.mxu1  ;;  %v6777_v63 = vld [vmem:[%s11336_s0 + $0x28c] sm:$0xf]  ;;  %v7764_v11 = vor.u32 %v6780_v45, %v5482_v44  ;;  %v7057_v44 = vld [vmem:[%s11335_s1 + $0x344] sm:$0xf0]  ;;  %v6474_v45 = vld [vmem:[%s11335_s1 + $0x240] sm:$0xf] }
  0xb3   :  { %v7731_v29 = vadd.f32 %v2842_v10, %v2674_v9  ;;  %v2508_v30 = vadd.f32 %v2507_v26, %v2339_v19  ;;  %2377 = vmatmul.bf16.gmra.mxu0 %v7722_v8  ;;  %v5492_v9 = vld [vmem:[%s11336_s0 + $0x2a8] sm:$0xf0]  ;;  %11623 = vst [vmem:[#allocation42_spill] sm:$0xff] %v7764_v11 }
  0xb4   :  { %2546 = vmatmul.bf16.gmra.mxu1 %v7724_v16 }
  0xb5   :  { %2715 = vmatmul.bf16.gmra.mxu2 %v7726_v17 }
  0xb6   :  { %2884 = vmatmul.bf16.gmra.mxu3 %v7729_v27 }
  0xb8   :  { %v2676_v31 = vpop.f32.mrf.mxu2  ;;  %v2340_v34 = vpop.f32.mrf.mxu0 }
  0xb9   :  { %v2677_v32 = vadd.f32 %v2676_v31, %v2508_v30  ;;  %v2845_v33 = vpop.f32.mrf.mxu3  ;;  %v2341_v35 = vadd.f32 %v2340_v34, %v7656_v61  ;;  %v2509_v41 = vpop.f32.mrf.mxu1  ;;  %v7766_v31 = vor.u32 %v6776_v46, %v5484_v48  ;;  %v7025_v48 = vld [vmem:[%s11335_s1 + $0x244] sm:$0xf0] }
  0xbb   :  { %v7738_v42 = vadd.f32 %v2845_v33, %v2677_v32  ;;  %v2510_v43 = vadd.f32 %v2509_v41, %v2341_v35  ;;  %11624 = vst [vmem:[#allocation43_spill] sm:$0xff] %v7766_v31  ;;  %v7768_v32 = vor.u32 %v6781_v62, %v5490_v60  ;;  %v7771_v35 = vor.u32 %v6777_v63, %v5492_v9  ;;  %v6666_v60 = vld [vmem:[%s11335_s1 + $0x3c0] sm:$0xf]  ;;  %v7073_v62 = vld [vmem:[%s11335_s1 + $0x3c4] sm:$0xf0] }
  0xbc   :  { %v6475_v9 = vor.u32 %v7025_v48, %v6474_v45  ;;  %v7041_v45 = vld [vmem:[%s11335_s1 + $0x2c4] sm:$0xf0] }
  0xbd   :  { %11625 = vst [vmem:[#allocation44_spill] sm:$0xff] %v7768_v32 }
  0xbe   :  { %11626 = vst [vmem:[#allocation45_spill] sm:$0xff] %v7771_v35  ;;  %3003 = vmatpush.bf16.msrb.mxu0 %v6475_v9  ;;  %v5522_v9 = vld [vmem:[%s11336_s0 + $0x2c8] sm:$0xf] }
  0xc0   :  { %v2678_v10 = vpop.f32.mrf.mxu2  ;;  %v2343_v30 = vpop.f32.mrf.mxu0 }
  0xc1   :  { %v2679_v19 = vadd.f32 %v2678_v10, %v2510_v43  ;;  %v2847_v26 = vpop.f32.mrf.mxu3  ;;  %v2344_v33 = vadd.f32 %v2343_v30, %v7656_v61  ;;  %v2512_v34 = vpop.f32.mrf.mxu1  ;;  %v6602_v43 = vld [vmem:[%s11335_s1 + $0x340] sm:$0xf]  ;;  %v6667_v10 = vor.u32 %v7073_v62, %v6666_v60  ;;  %v6784_v62 = vld [vmem:[%s11336_s0 + $0x2c4] sm:$0xf] }
  0xc2   :  { %v6603_v46 = vor.u32 %v7057_v44, %v6602_v43  ;;  %v6538_v44 = vld [vmem:[%s11335_s1 + $0x2c0] sm:$0xf] }
  0xc3   :  { %v7773_v41 = vadd.f32 %v2847_v26, %v2679_v19  ;;  %v2513_v27 = vadd.f32 %v2512_v34, %v2344_v33  ;;  %2382 = vmatmul.bf16.gmra.mxu0 %v7764_v11  ;;  %3510 = vmatpush.bf16.msrb.mxu3 %v6667_v10  ;;  %v6788_v60 = vld [vmem:[%s11336_s0 + $0x2dc] sm:$0xf0]  ;;  %v6789_v10 = vld [vmem:[%s11336_s0 + $0x2e4] sm:$0xf0] }
  0xc4   :  { %2551 = vmatmul.bf16.gmra.mxu1 %v7766_v31  ;;  %3341 = vmatpush.bf16.msrb.mxu2 %v6603_v46  ;;  %v5514_v46 = vld [vmem:[%s11336_s0 + $0x2c0] sm:$0xf] }
  0xc5   :  { %2720 = vmatmul.bf16.gmra.mxu2 %v7768_v32  ;;  %v7834_v32 = vor.u32 %v6789_v10, %v5522_v9 }
  0xc6   :  { %2889 = vmatmul.bf16.gmra.mxu3 %v7771_v35 }
  0xc7   :  { %11629 = vst [vmem:[#allocation48_spill] sm:$0xff] %v7834_v32 }
  0xc8   :  { %v2681_v63 = vpop.f32.mrf.mxu2  ;;  %v2345_v30 = vpop.f32.mrf.mxu0 }
  0xc9   :  { %v2682_v19 = vadd.f32 %v2681_v63, %v2513_v27  ;;  %v2850_v26 = vpop.f32.mrf.mxu3  ;;  %v2346_v33 = vadd.f32 %v2345_v30, %v7656_v61  ;;  %v2514_v34 = vpop.f32.mrf.mxu1  ;;  %v6539_v27 = vor.u32 %v7041_v45, %v6538_v44  ;;  %v5516_v63 = vld [vmem:[%s11336_s0 + $0x2e0] sm:$0xf0] }
  0xca   :  { %v7832_v35 = vor.u32 %v6784_v62, %v5516_v63 }
  0xcb   :  { %v7798_v43 = vadd.f32 %v2850_v26, %v2682_v19  ;;  %v2515_v48 = vadd.f32 %v2514_v34, %v2346_v33  ;;  %3172 = vmatpush.bf16.msrb.mxu1 %v6539_v27  ;;  %v6785_v19 = vld [vmem:[%s11336_s0 + $0x2cc] sm:$0xf]  ;;  %v7830_v33 = vor.u32 %v6788_v60, %v5514_v46 }
  0xcc   :  { %v5524_v26 = vld [vmem:[%s11336_s0 + $0x2e8] sm:$0xf0]  ;;  %11628 = vst [vmem:[#allocation47_spill] sm:$0xff] %v7832_v35 }
  0xcd   :  { %11627 = vst [vmem:[#allocation46_spill] sm:$0xff] %v7830_v33  ;;  %v7837_v11 = vor.u32 %v6785_v19, %v5524_v26  ;;  %v6796_v26 = vld [vmem:[%s11336_s0 + $0x31c] sm:$0xf0] }
  0xcf   :  { %11630 = vst [vmem:[#allocation49_spill] sm:$0xff] %v7837_v11 }
  0xd0   :  { %v2683_v30 = vpop.f32.mrf.mxu2  ;;  %v2348_v45 = vpop.f32.mrf.mxu0 }
  0xd1   :  { %v2684_v34 = vadd.f32 %v2683_v30, %v2515_v48  ;;  %v2852_v44 = vpop.f32.mrf.mxu3  ;;  %v2349_v27 = vadd.f32 %v2348_v45, %v7656_v61  ;;  %v2517_v31 = vpop.f32.mrf.mxu1  ;;  %v5548_v30 = vld [vmem:[%s11336_s0 + $0x320] sm:$0xf0]  ;;  %v6793_v45 = vld [vmem:[%s11336_s0 + $0x30c] sm:$0xf] }
  0xd3   :  { %v7839_v17 = vadd.f32 %v2852_v44, %v2684_v34  ;;  %v2518_v16 = vadd.f32 %v2517_v31, %v2349_v27  ;;  %2387 = vmatmul.bf16.gmra.mxu0 %v7830_v33  ;;  %v5546_v31 = vld [vmem:[%s11336_s0 + $0x300] sm:$0xf]  ;;  %v5554_v34 = vld [vmem:[%s11336_s0 + $0x308] sm:$0xf]  ;;  %v5556_v27 = vld [vmem:[%s11336_s0 + $0x328] sm:$0xf0] }
  0xd4   :  { %2556 = vmatmul.bf16.gmra.mxu1 %v7832_v35  ;;  %v6797_v44 = vld [vmem:[%s11336_s0 + $0x324] sm:$0xf0]  ;;  %v7879_v33 = vor.u32 %v6793_v45, %v5556_v27  ;;  %v5580_v27 = vld [vmem:[%s11336_s0 + $0x360] sm:$0xf0] }
  0xd5   :  { %2725 = vmatmul.bf16.gmra.mxu2 %v7834_v32 }
  0xd6   :  { %2894 = vmatmul.bf16.gmra.mxu3 %v7837_v11  ;;  %v7876_v11 = vor.u32 %v6797_v44, %v5554_v34  ;;  %11634 = vst [vmem:[#allocation53_spill] sm:$0xff] %v7879_v33 }
  0xd8   :  { %v2686_v48 = vpop.f32.mrf.mxu2  ;;  %v2350_v62 = vpop.f32.mrf.mxu0  ;;  %11633 = vst [vmem:[#allocation52_spill] sm:$0xff] %v7876_v11 }
  0xd9   :  { %v2687_v46 = vadd.f32 %v2686_v48, %v2518_v16  ;;  %v2855_v60 = vpop.f32.mrf.mxu3  ;;  %v2351_v63 = vadd.f32 %v2350_v62, %v7656_v61  ;;  %v2519_v9 = vpop.f32.mrf.mxu1  ;;  %v6792_v16 = vld [vmem:[%s11336_s0 + $0x304] sm:$0xf] }
  0xdb   :  { %v7846_v10 = vadd.f32 %v2855_v60, %v2687_v46  ;;  %v2520_v19 = vadd.f32 %v2519_v9, %v2351_v63  ;;  %v7872_v46 = vor.u32 %v6796_v26, %v5546_v31  ;;  %v7874_v9 = vor.u32 %v6792_v16, %v5548_v30 }
  0xdd   :  { %11631 = vst [vmem:[#allocation50_spill] sm:$0xff] %v7872_v46 }
  0xde   :  { %11632 = vst [vmem:[#allocation51_spill] sm:$0xff] %v7874_v9 }
  0xe0   :  { %v2688_v48 = vpop.f32.mrf.mxu2  ;;  %v2353_v63 = vpop.f32.mrf.mxu0 }
  0xe1   :  { %v2689_v60 = vadd.f32 %v2688_v48, %v2520_v19  ;;  %v2857_v62 = vpop.f32.mrf.mxu3  ;;  %v2354_v32 = vadd.f32 %v2353_v63, %v7656_v61  ;;  %v2522_v35 = vpop.f32.mrf.mxu1  ;;  %v5586_v48 = vld [vmem:[%s11336_s0 + $0x348] sm:$0xf]  ;;  %v5588_v63 = vld [vmem:[%s11336_s0 + $0x368] sm:$0xf0] }
  0xe3   :  { %v7881_v8 = vadd.f32 %v2857_v62, %v2689_v60  ;;  %v2523_v28 = vadd.f32 %v2522_v35, %v2354_v32  ;;  %2392 = vmatmul.bf16.gmra.mxu0 %v7872_v46  ;;  %v5578_v32 = vld [vmem:[%s11336_s0 + $0x340] sm:$0xf]  ;;  %v6805_v60 = vld [vmem:[%s11336_s0 + $0x364] sm:$0xf0]  ;;  %v6801_v62 = vld [vmem:[%s11336_s0 + $0x34c] sm:$0xf] }
  0xe4   :  { %2561 = vmatmul.bf16.gmra.mxu1 %v7874_v9  ;;  %v6804_v35 = vld [vmem:[%s11336_s0 + $0x35c] sm:$0xf0]  ;;  %v7921_v46 = vor.u32 %v6801_v62, %v5588_v63  ;;  %v5612_v63 = vld [vmem:[%s11336_s0 + $0x3a0] sm:$0xf0] }
  0xe5   :  { %2730 = vmatmul.bf16.gmra.mxu2 %v7876_v11 }
  0xe6   :  { %2899 = vmatmul.bf16.gmra.mxu3 %v7879_v33  ;;  %v7918_v33 = vor.u32 %v6805_v60, %v5586_v48  ;;  %11638 = vst [vmem:[#allocation57_spill] sm:$0xff] %v7921_v46 }
  0xe8   :  { %v2691_v19 = vpop.f32.mrf.mxu2  ;;  %v2355_v16 = vpop.f32.mrf.mxu0  ;;  %11637 = vst [vmem:[#allocation56_spill] sm:$0xff] %v7918_v33 }
  0xe9   :  { %v2692_v31 = vadd.f32 %v2691_v19, %v2523_v28  ;;  %v2860_v26 = vpop.f32.mrf.mxu3  ;;  %v2356_v30 = vadd.f32 %v2355_v16, %v7656_v61  ;;  %v2524_v34 = vpop.f32.mrf.mxu1  ;;  %v6800_v28 = vld [vmem:[%s11336_s0 + $0x344] sm:$0xf] }
  0xeb   :  { %v7888_v44 = vadd.f32 %v2860_v26, %v2692_v31  ;;  %v2525_v45 = vadd.f32 %v2524_v34, %v2356_v30  ;;  %v7914_v31 = vor.u32 %v6804_v35, %v5578_v32  ;;  %v7916_v34 = vor.u32 %v6800_v28, %v5580_v27 }
  0xed   :  { %11635 = vst [vmem:[#allocation54_spill] sm:$0xff] %v7914_v31 }
  0xee   :  { %11636 = vst [vmem:[#allocation55_spill] sm:$0xff] %v7916_v34 }
  0xf0   :  { %v2693_v19 = vpop.f32.mrf.mxu2  ;;  %v2358_v30 = vpop.f32.mrf.mxu0 }
  0xf1   :  { %v2694_v26 = vadd.f32 %v2693_v19, %v2525_v45  ;;  %v2862_v16 = vpop.f32.mrf.mxu3  ;;  %v2359_v11 = vadd.f32 %v2358_v30, %v7656_v61  ;;  %v2527_v9 = vpop.f32.mrf.mxu1  ;;  %v5618_v19 = vld [vmem:[%s11336_s0 + $0x388] sm:$0xf]  ;;  %v5620_v30 = vld [vmem:[%s11336_s0 + $0x3a8] sm:$0xf0] }
  0xf3   :  { %v7923_v25 = vadd.f32 %v2862_v16, %v2694_v26  ;;  %v2528_v24 = vadd.f32 %v2527_v9, %v2359_v11  ;;  %2397 = vmatmul.bf16.gmra.mxu0 %v7914_v31  ;;  %v5610_v11 = vld [vmem:[%s11336_s0 + $0x380] sm:$0xf]  ;;  %v6813_v26 = vld [vmem:[%s11336_s0 + $0x3a4] sm:$0xf0]  ;;  %v6809_v16 = vld [vmem:[%s11336_s0 + $0x38c] sm:$0xf] }
  0xf4   :  { %2566 = vmatmul.bf16.gmra.mxu1 %v7916_v34  ;;  %v6812_v9 = vld [vmem:[%s11336_s0 + $0x39c] sm:$0xf0]  ;;  %v7963_v31 = vor.u32 %v6809_v16, %v5620_v30 }
  0xf5   :  { %2735 = vmatmul.bf16.gmra.mxu2 %v7918_v33 }
  0xf6   :  { %2904 = vmatmul.bf16.gmra.mxu3 %v7921_v46  ;;  %v7960_v46 = vor.u32 %v6813_v26, %v5618_v19  ;;  %11642 = vst [vmem:[#allocation61_spill] sm:$0xff] %v7963_v31 }
  0xf8   :  { %v2696_v45 = vpop.f32.mrf.mxu2  ;;  %v2360_v28 = vpop.f32.mrf.mxu0  ;;  %11641 = vst [vmem:[#allocation60_spill] sm:$0xff] %v7960_v46 }
  0xf9   :  { %v2697_v32 = vadd.f32 %v2696_v45, %v2528_v24  ;;  %v2865_v35 = vpop.f32.mrf.mxu3  ;;  %v2361_v27 = vadd.f32 %v2360_v28, %v7656_v61  ;;  %v2529_v48 = vpop.f32.mrf.mxu1  ;;  %v6808_v24 = vld [vmem:[%s11336_s0 + $0x384] sm:$0xf] }
  0xfb   :  { %v7930_v60 = vadd.f32 %v2865_v35, %v2697_v32  ;;  %v2530_v62 = vadd.f32 %v2529_v48, %v2361_v27  ;;  %v7956_v32 = vor.u32 %v6812_v9, %v5610_v11  ;;  %v7958_v48 = vor.u32 %v6808_v24, %v5612_v63  ;;  %v7055_v11 = vld [vmem:[%s11335_s1 + $0x334] sm:$0xf0]  ;;  %v6658_v24 = vld [vmem:[%s11335_s1 + $0x3b0] sm:$0xf] }
  0xfc   :  { %v7023_v9 = vld [vmem:[%s11335_s1 + $0x234] sm:$0xf0] }
  0xfd   :  { %11639 = vst [vmem:[#allocation58_spill] sm:$0xff] %v7956_v32  ;;  %v7071_v63 = vld [vmem:[%s11335_s1 + $0x3b4] sm:$0xf0] }
  0xfe   :  { %11640 = vst [vmem:[#allocation59_spill] sm:$0xff] %v7958_v48  ;;  %v6659_v16 = vor.u32 %v7071_v63, %v6658_v24  ;;  %v6820_v24 = vld [vmem:[%s11336_s0 + $0x3dc] sm:$0xf0]  ;;  %v6816_v63 = vld [vmem:[%s11336_s0 + $0x3c4] sm:$0xf] }
 0x100   :  { %v2698_v45 = vpop.f32.mrf.mxu2  ;;  %v2363_v27 = vpop.f32.mrf.mxu0  ;;  %3511 = vmatpush.bf16.msrb.mxu3 %v6659_v16  ;;  %v6821_v16 = vld [vmem:[%s11336_s0 + $0x3e4] sm:$0xf0] }
 0x101   :  { %v2699_v35 = vadd.f32 %v2698_v45, %v2530_v62  ;;  %v2867_v28 = vpop.f32.mrf.mxu3  ;;  %v2364_v33 = vadd.f32 %v2363_v27, %v7656_v61  ;;  %v2532_v34 = vpop.f32.mrf.mxu1  ;;  %v6594_v62 = vld [vmem:[%s11335_s1 + $0x330] sm:$0xf] }
 0x103   :  { %v7965_v18 = vadd.f32 %v2867_v28, %v2699_v35  ;;  %v2533_v59 = vadd.f32 %v2532_v34, %v2364_v33  ;;  %2402 = vmatmul.bf16.gmra.mxu0 %v7956_v32  ;;  %v6466_v33 = vld [vmem:[%s11335_s1 + $0x230] sm:$0xf]  ;;  %v6595_v34 = vor.u32 %v7055_v11, %v6594_v62 }
 0x104   :  { %2571 = vmatmul.bf16.gmra.mxu1 %v7958_v48  ;;  %v6467_v26 = vor.u32 %v7023_v9, %v6466_v33  ;;  %v6530_v11 = vld [vmem:[%s11335_s1 + $0x2b0] sm:$0xf]  ;;  %v7039_v33 = vld [vmem:[%s11335_s1 + $0x2b4] sm:$0xf0] }
 0x105   :  { %2740 = vmatmul.bf16.gmra.mxu2 %v7960_v46 }
 0x106   :  { %2909 = vmatmul.bf16.gmra.mxu3 %v7963_v31  ;;  %3342 = vmatpush.bf16.msrb.mxu2 %v6595_v34  ;;  %v5642_v34 = vld [vmem:[%s11336_s0 + $0x3c0] sm:$0xf] }
 0x107   :  { %3004 = vmatpush.bf16.msrb.mxu0 %v6467_v26  ;;  %v5650_v26 = vld [vmem:[%s11336_s0 + $0x3c8] sm:$0xf] }
 0x108   :  { %v2701_v19 = vpop.f32.mrf.mxu2  ;;  %v2365_v35 = vpop.f32.mrf.mxu0  ;;  %v8026_v46 = vor.u32 %v6821_v16, %v5650_v26 }
 0x109   :  { %v2702_v30 = vadd.f32 %v2701_v19, %v2533_v59  ;;  %v2870_v45 = vpop.f32.mrf.mxu3  ;;  %v2366_v28 = vadd.f32 %v2365_v35, %v7656_v61  ;;  %v2534_v27 = vpop.f32.mrf.mxu1  ;;  %v6531_v59 = vor.u32 %v7039_v33, %v6530_v11  ;;  %v5644_v19 = vld [vmem:[%s11336_s0 + $0x3e0] sm:$0xf0] }
 0x10a   :  { %v8024_v31 = vor.u32 %v6816_v63, %v5644_v19  ;;  %11645 = vst [vmem:[#allocation64_spill] sm:$0xff] %v8026_v46 }
 0x10b   :  { %v7990_v62 = vadd.f32 %v2870_v45, %v2702_v30  ;;  %v2535_v9 = vadd.f32 %v2534_v27, %v2366_v28  ;;  %3173 = vmatpush.bf16.msrb.mxu1 %v6531_v59  ;;  %v6817_v30 = vld [vmem:[%s11336_s0 + $0x3cc] sm:$0xf]  ;;  %v8022_v28 = vor.u32 %v6820_v24, %v5642_v34 }
 0x10c   :  { %v5652_v45 = vld [vmem:[%s11336_s0 + $0x3e8] sm:$0xf0]  ;;  %11644 = vst [vmem:[#allocation63_spill] sm:$0xff] %v8024_v31 }
 0x10d   :  { %11643 = vst [vmem:[#allocation62_spill] sm:$0xff] %v8022_v28  ;;  %v8029_v32 = vor.u32 %v6817_v30, %v5652_v45  ;;  %v6828_v45 = vld [vmem:[%s11336_s0 + $0x41c] sm:$0xf0] }
 0x10f   :  { %11646 = vst [vmem:[#allocation65_spill] sm:$0xff] %v8029_v32 }
 0x110   :  { %v2703_v35 = vpop.f32.mrf.mxu2  ;;  %v2368_v33 = vpop.f32.mrf.mxu0 }
 0x111   :  { %v2704_v27 = vadd.f32 %v2703_v35, %v2535_v9  ;;  %v2872_v11 = vpop.f32.mrf.mxu3  ;;  %v2369_v59 = vadd.f32 %v2368_v33, %v7656_v61  ;;  %v2537_v48 = vpop.f32.mrf.mxu1  ;;  %v5676_v35 = vld [vmem:[%s11336_s0 + $0x420] sm:$0xf0]  ;;  %v6825_v33 = vld [vmem:[%s11336_s0 + $0x40c] sm:$0xf] }
 0x113   :  { %v8031_v58 = vadd.f32 %v2872_v11, %v2704_v27  ;;  %v2538_v57 = vadd.f32 %v2537_v48, %v2369_v59  ;;  %2407 = vmatmul.bf16.gmra.mxu0 %v8022_v28  ;;  %v5674_v48 = vld [vmem:[%s11336_s0 + $0x400] sm:$0xf]  ;;  %v5682_v27 = vld [vmem:[%s11336_s0 + $0x408] sm:$0xf]  ;;  %v5684_v59 = vld [vmem:[%s11336_s0 + $0x428] sm:$0xf0] }
 0x114   :  { %2576 = vmatmul.bf16.gmra.mxu1 %v8024_v31  ;;  %v6829_v11 = vld [vmem:[%s11336_s0 + $0x424] sm:$0xf0]  ;;  %v8071_v28 = vor.u32 %v6825_v33, %v5684_v59  ;;  %v5708_v59 = vld [vmem:[%s11336_s0 + $0x460] sm:$0xf0] }
 0x115   :  { %2745 = vmatmul.bf16.gmra.mxu2 %v8026_v46 }
 0x116   :  { %2914 = vmatmul.bf16.gmra.mxu3 %v8029_v32  ;;  %v8068_v32 = vor.u32 %v6829_v11, %v5682_v27  ;;  %11650 = vst [vmem:[#allocation69_spill] sm:$0xff] %v8071_v28 }
 0x118   :  { %v2706_v9 = vpop.f32.mrf.mxu2  ;;  %v2370_v63 = vpop.f32.mrf.mxu0  ;;  %11649 = vst [vmem:[#allocation68_spill] sm:$0xff] %v8068_v32 }
 0x119   :  { %v2707_v34 = vadd.f32 %v2706_v9, %v2538_v57  ;;  %v2875_v24 = vpop.f32.mrf.mxu3  ;;  %v2371_v19 = vadd.f32 %v2370_v63, %v7656_v61  ;;  %v2539_v26 = vpop.f32.mrf.mxu1  ;;  %v6824_v57 = vld [vmem:[%s11336_s0 + $0x404] sm:$0xf] }
 0x11b   :  { %v8038_v16 = vadd.f32 %v2875_v24, %v2707_v34  ;;  %v2540_v30 = vadd.f32 %v2539_v26, %v2371_v19  ;;  %v8064_v34 = vor.u32 %v6828_v45, %v5674_v48  ;;  %v8066_v26 = vor.u32 %v6824_v57, %v5676_v35 }
 0x11d   :  { %11647 = vst [vmem:[#allocation66_spill] sm:$0xff] %v8064_v34 }
 0x11e   :  { %11648 = vst [vmem:[#allocation67_spill] sm:$0xff] %v8066_v26 }
 0x120   :  { %v2708_v9 = vpop.f32.mrf.mxu2  ;;  %v2373_v19 = vpop.f32.mrf.mxu0 }
 0x121   :  { %v2709_v24 = vadd.f32 %v2708_v9, %v2540_v30  ;;  %v2877_v63 = vpop.f32.mrf.mxu3  ;;  %v2374_v46 = vadd.f32 %v2373_v19, %v7656_v61  ;;  %v2542_v31 = vpop.f32.mrf.mxu1  ;;  %v5714_v9 = vld [vmem:[%s11336_s0 + $0x448] sm:$0xf]  ;;  %v5716_v19 = vld [vmem:[%s11336_s0 + $0x468] sm:$0xf0] }
 0x123   :  { %v8073_v56 = vadd.f32 %v2877_v63, %v2709_v24  ;;  %v2543_v23 = vadd.f32 %v2542_v31, %v2374_v46  ;;  %2412 = vmatmul.bf16.gmra.mxu0 %v8064_v34  ;;  %v5706_v46 = vld [vmem:[%s11336_s0 + $0x440] sm:$0xf]  ;;  %v6837_v24 = vld [vmem:[%s11336_s0 + $0x464] sm:$0xf0]  ;;  %v6833_v63 = vld [vmem:[%s11336_s0 + $0x44c] sm:$0xf] }
 0x124   :  { %2581 = vmatmul.bf16.gmra.mxu1 %v8066_v26  ;;  %v6836_v31 = vld [vmem:[%s11336_s0 + $0x45c] sm:$0xf0]  ;;  %v8113_v34 = vor.u32 %v6833_v63, %v5716_v19  ;;  %v5740_v19 = vld [vmem:[%s11336_s0 + $0x4a0] sm:$0xf0] }
 0x125   :  { %2750 = vmatmul.bf16.gmra.mxu2 %v8068_v32 }
 0x126   :  { %2919 = vmatmul.bf16.gmra.mxu3 %v8071_v28  ;;  %v8110_v28 = vor.u32 %v6837_v24, %v5714_v9  ;;  %11654 = vst [vmem:[#allocation73_spill] sm:$0xff] %v8113_v34 }
 0x128   :  { %v2711_v30 = vpop.f32.mrf.mxu2  ;;  %v2375_v57 = vpop.f32.mrf.mxu0  ;;  %11653 = vst [vmem:[#allocation72_spill] sm:$0xff] %v8110_v28 }
 0x129   :  { %v2712_v48 = vadd.f32 %v2711_v30, %v2543_v23  ;;  %v2880_v45 = vpop.f32.mrf.mxu3  ;;  %v2376_v35 = vadd.f32 %v2375_v57, %v7656_v61  ;;  %v2544_v27 = vpop.f32.mrf.mxu1  ;;  %v6832_v23 = vld [vmem:[%s11336_s0 + $0x444] sm:$0xf] }
 0x12b   :  { %v8080_v11 = vadd.f32 %v2880_v45, %v2712_v48  ;;  %v2545_v33 = vadd.f32 %v2544_v27, %v2376_v35  ;;  %v8106_v48 = vor.u32 %v6836_v31, %v5706_v46  ;;  %v8108_v27 = vor.u32 %v6832_v23, %v5708_v59 }
 0x12d   :  { %11651 = vst [vmem:[#allocation70_spill] sm:$0xff] %v8106_v48 }
 0x12e   :  { %11652 = vst [vmem:[#allocation71_spill] sm:$0xff] %v8108_v27 }
 0x130   :  { %v2713_v30 = vpop.f32.mrf.mxu2  ;;  %v2378_v35 = vpop.f32.mrf.mxu0 }
 0x131   :  { %v2714_v45 = vadd.f32 %v2713_v30, %v2545_v33  ;;  %v2882_v57 = vpop.f32.mrf.mxu3  ;;  %v2379_v32 = vadd.f32 %v2378_v35, %v7656_v61  ;;  %v2547_v26 = vpop.f32.mrf.mxu1  ;;  %v5746_v30 = vld [vmem:[%s11336_s0 + $0x488] sm:$0xf]  ;;  %v5748_v35 = vld [vmem:[%s11336_s0 + $0x4a8] sm:$0xf0] }
 0x133   :  { %v8115_v22 = vadd.f32 %v2882_v57, %v2714_v45  ;;  %v2548_v21 = vadd.f32 %v2547_v26, %v2379_v32  ;;  %2417 = vmatmul.bf16.gmra.mxu0 %v8106_v48  ;;  %v5738_v32 = vld [vmem:[%s11336_s0 + $0x480] sm:$0xf]  ;;  %v6845_v45 = vld [vmem:[%s11336_s0 + $0x4a4] sm:$0xf0]  ;;  %v6841_v57 = vld [vmem:[%s11336_s0 + $0x48c] sm:$0xf] }
 0x134   :  { %2586 = vmatmul.bf16.gmra.mxu1 %v8108_v27  ;;  %v6844_v26 = vld [vmem:[%s11336_s0 + $0x49c] sm:$0xf0]  ;;  %v8155_v48 = vor.u32 %v6841_v57, %v5748_v35 }
 0x135   :  { %2755 = vmatmul.bf16.gmra.mxu2 %v8110_v28 }
 0x136   :  { %2924 = vmatmul.bf16.gmra.mxu3 %v8113_v34  ;;  %v8152_v34 = vor.u32 %v6845_v45, %v5746_v30  ;;  %11658 = vst [vmem:[#allocation77_spill] sm:$0xff] %v8155_v48 }
 0x138   :  { %v2716_v33 = vpop.f32.mrf.mxu2  ;;  %v2380_v23 = vpop.f32.mrf.mxu0  ;;  %11657 = vst [vmem:[#allocation76_spill] sm:$0xff] %v8152_v34 }
 0x139   :  { %v2717_v46 = vadd.f32 %v2716_v33, %v2548_v21  ;;  %v2885_v31 = vpop.f32.mrf.mxu3  ;;  %v2381_v59 = vadd.f32 %v2380_v23, %v7656_v61  ;;  %v2549_v9 = vpop.f32.mrf.mxu1  ;;  %v6840_v21 = vld [vmem:[%s11336_s0 + $0x484] sm:$0xf] }
 0x13b   :  { %v8122_v24 = vadd.f32 %v2885_v31, %v2717_v46  ;;  %v2550_v63 = vadd.f32 %v2549_v9, %v2381_v59  ;;  %v8148_v46 = vor.u32 %v6844_v26, %v5738_v32  ;;  %v8150_v9 = vor.u32 %v6840_v21, %v5740_v19  ;;  %v7053_v32 = vld [vmem:[%s11335_s1 + $0x324] sm:$0xf0]  ;;  %v6650_v21 = vld [vmem:[%s11335_s1 + $0x3a0] sm:$0xf] }
 0x13c   :  { %v7021_v26 = vld [vmem:[%s11335_s1 + $0x224] sm:$0xf0] }
 0x13d   :  { %11655 = vst [vmem:[#allocation74_spill] sm:$0xff] %v8148_v46  ;;  %v7069_v19 = vld [vmem:[%s11335_s1 + $0x3a4] sm:$0xf0] }
 0x13e   :  { %11656 = vst [vmem:[#allocation75_spill] sm:$0xff] %v8150_v9  ;;  %v6651_v57 = vor.u32 %v7069_v19, %v6650_v21  ;;  %v6852_v21 = vld [vmem:[%s11336_s0 + $0x4dc] sm:$0xf0]  ;;  %v6848_v19 = vld [vmem:[%s11336_s0 + $0x4c4] sm:$0xf] }
 0x140   :  { %v2718_v33 = vpop.f32.mrf.mxu2  ;;  %v2383_v59 = vpop.f32.mrf.mxu0  ;;  %3512 = vmatpush.bf16.msrb.mxu3 %v6651_v57  ;;  %v6853_v57 = vld [vmem:[%s11336_s0 + $0x4e4] sm:$0xf0] }
 0x141   :  { %v2719_v31 = vadd.f32 %v2718_v33, %v2550_v63  ;;  %v2887_v23 = vpop.f32.mrf.mxu3  ;;  %v2384_v28 = vadd.f32 %v2383_v59, %v7656_v61  ;;  %v2552_v27 = vpop.f32.mrf.mxu1  ;;  %v6586_v63 = vld [vmem:[%s11335_s1 + $0x320] sm:$0xf] }
 0x143   :  { %v8157_v20 = vadd.f32 %v2887_v23, %v2719_v31  ;;  %v2553_v7 = vadd.f32 %v2552_v27, %v2384_v28  ;;  %2422 = vmatmul.bf16.gmra.mxu0 %v8148_v46  ;;  %v6458_v28 = vld [vmem:[%s11335_s1 + $0x220] sm:$0xf]  ;;  %v6587_v27 = vor.u32 %v7053_v32, %v6586_v63 }
 0x144   :  { %2591 = vmatmul.bf16.gmra.mxu1 %v8150_v9  ;;  %v6459_v45 = vor.u32 %v7021_v26, %v6458_v28  ;;  %v6522_v32 = vld [vmem:[%s11335_s1 + $0x2a0] sm:$0xf]  ;;  %v7037_v28 = vld [vmem:[%s11335_s1 + $0x2a4] sm:$0xf0] }
 0x145   :  { %2760 = vmatmul.bf16.gmra.mxu2 %v8152_v34 }
 0x146   :  { %2929 = vmatmul.bf16.gmra.mxu3 %v8155_v48  ;;  %3343 = vmatpush.bf16.msrb.mxu2 %v6587_v27  ;;  %v5770_v27 = vld [vmem:[%s11336_s0 + $0x4c0] sm:$0xf] }
 0x147   :  { %3005 = vmatpush.bf16.msrb.mxu0 %v6459_v45  ;;  %v5778_v45 = vld [vmem:[%s11336_s0 + $0x4c8] sm:$0xf] }
 0x148   :  { %v2721_v30 = vpop.f32.mrf.mxu2  ;;  %v2385_v31 = vpop.f32.mrf.mxu0  ;;  %v8218_v34 = vor.u32 %v6853_v57, %v5778_v45 }
 0x149   :  { %v2722_v35 = vadd.f32 %v2721_v30, %v2553_v7  ;;  %v2890_v33 = vpop.f32.mrf.mxu3  ;;  %v2386_v23 = vadd.f32 %v2385_v31, %v7656_v61  ;;  %v2554_v59 = vpop.f32.mrf.mxu1  ;;  %v6523_v7 = vor.u32 %v7037_v28, %v6522_v32  ;;  %v5772_v30 = vld [vmem:[%s11336_s0 + $0x4e0] sm:$0xf0] }
 0x14a   :  { %v8216_v48 = vor.u32 %v6848_v19, %v5772_v30  ;;  %11661 = vst [vmem:[#allocation80_spill] sm:$0xff] %v8218_v34 }
 0x14b   :  { %v8182_v63 = vadd.f32 %v2890_v33, %v2722_v35  ;;  %v2555_v26 = vadd.f32 %v2554_v59, %v2386_v23  ;;  %3174 = vmatpush.bf16.msrb.mxu1 %v6523_v7  ;;  %v6849_v35 = vld [vmem:[%s11336_s0 + $0x4cc] sm:$0xf]  ;;  %v8214_v23 = vor.u32 %v6852_v21, %v5770_v27 }
 0x14c   :  { %v5780_v33 = vld [vmem:[%s11336_s0 + $0x4e8] sm:$0xf0]  ;;  %11660 = vst [vmem:[#allocation79_spill] sm:$0xff] %v8216_v48 }
 0x14d   :  { %11659 = vst [vmem:[#allocation78_spill] sm:$0xff] %v8214_v23  ;;  %v8221_v46 = vor.u32 %v6849_v35, %v5780_v33  ;;  %v6860_v33 = vld [vmem:[%s11336_s0 + $0x51c] sm:$0xf0] }
 0x14f   :  { %11662 = vst [vmem:[#allocation81_spill] sm:$0xff] %v8221_v46 }
 0x150   :  { %v2723_v31 = vpop.f32.mrf.mxu2  ;;  %v2388_v28 = vpop.f32.mrf.mxu0 }
 0x151   :  { %v2724_v59 = vadd.f32 %v2723_v31, %v2555_v26  ;;  %v2892_v32 = vpop.f32.mrf.mxu3  ;;  %v2389_v7 = vadd.f32 %v2388_v28, %v7656_v61  ;;  %v2557_v9 = vpop.f32.mrf.mxu1  ;;  %v5804_v31 = vld [vmem:[%s11336_s0 + $0x520] sm:$0xf0]  ;;  %v6857_v28 = vld [vmem:[%s11336_s0 + $0x50c] sm:$0xf] }
 0x153   :  { %v8223_v6 = vadd.f32 %v2892_v32, %v2724_v59  ;;  %v2558_v5 = vadd.f32 %v2557_v9, %v2389_v7  ;;  %2427 = vmatmul.bf16.gmra.mxu0 %v8214_v23  ;;  %v5802_v9 = vld [vmem:[%s11336_s0 + $0x500] sm:$0xf]  ;;  %v5810_v59 = vld [vmem:[%s11336_s0 + $0x508] sm:$0xf]  ;;  %v5812_v7 = vld [vmem:[%s11336_s0 + $0x528] sm:$0xf0] }
 0x154   :  { %2596 = vmatmul.bf16.gmra.mxu1 %v8216_v48  ;;  %v6861_v32 = vld [vmem:[%s11336_s0 + $0x524] sm:$0xf0]  ;;  %v8263_v23 = vor.u32 %v6857_v28, %v5812_v7  ;;  %v5836_v7 = vld [vmem:[%s11336_s0 + $0x560] sm:$0xf0] }
 0x155   :  { %2765 = vmatmul.bf16.gmra.mxu2 %v8218_v34 }
 0x156   :  { %2934 = vmatmul.bf16.gmra.mxu3 %v8221_v46  ;;  %v8260_v46 = vor.u32 %v6861_v32, %v5810_v59  ;;  %11666 = vst [vmem:[#allocation85_spill] sm:$0xff] %v8263_v23 }
 0x158   :  { %v2726_v26 = vpop.f32.mrf.mxu2  ;;  %v2390_v19 = vpop.f32.mrf.mxu0  ;;  %11665 = vst [vmem:[#allocation84_spill] sm:$0xff] %v8260_v46 }
 0x159   :  { %v2727_v27 = vadd.f32 %v2726_v26, %v2558_v5  ;;  %v2895_v21 = vpop.f32.mrf.mxu3  ;;  %v2391_v30 = vadd.f32 %v2390_v19, %v7656_v61  ;;  %v2559_v45 = vpop.f32.mrf.mxu1  ;;  %v6856_v5 = vld [vmem:[%s11336_s0 + $0x504] sm:$0xf] }
 0x15b   :  { %v8230_v57 = vadd.f32 %v2895_v21, %v2727_v27  ;;  %v2560_v35 = vadd.f32 %v2559_v45, %v2391_v30  ;;  %v8256_v27 = vor.u32 %v6860_v33, %v5802_v9  ;;  %v8258_v45 = vor.u32 %v6856_v5, %v5804_v31 }
 0x15d   :  { %11663 = vst [vmem:[#allocation82_spill] sm:$0xff] %v8256_v27 }
 0x15e   :  { %11664 = vst [vmem:[#allocation83_spill] sm:$0xff] %v8258_v45 }
 0x160   :  { %v2728_v26 = vpop.f32.mrf.mxu2  ;;  %v2393_v30 = vpop.f32.mrf.mxu0 }
 0x161   :  { %v2729_v21 = vadd.f32 %v2728_v26, %v2560_v35  ;;  %v2897_v19 = vpop.f32.mrf.mxu3  ;;  %v2394_v34 = vadd.f32 %v2393_v30, %v7656_v61  ;;  %v2562_v48 = vpop.f32.mrf.mxu1  ;;  %v5842_v26 = vld [vmem:[%s11336_s0 + $0x548] sm:$0xf]  ;;  %v5844_v30 = vld [vmem:[%s11336_s0 + $0x568] sm:$0xf0] }
 0x163   :  { %v8265_v4 = vadd.f32 %v2897_v19, %v2729_v21  ;;  %v2563_v55 = vadd.f32 %v2562_v48, %v2394_v34  ;;  %2432 = vmatmul.bf16.gmra.mxu0 %v8256_v27  ;;  %v5834_v34 = vld [vmem:[%s11336_s0 + $0x540] sm:$0xf]  ;;  %v6869_v21 = vld [vmem:[%s11336_s0 + $0x564] sm:$0xf0]  ;;  %v6865_v19 = vld [vmem:[%s11336_s0 + $0x54c] sm:$0xf] }
 0x164   :  { %2601 = vmatmul.bf16.gmra.mxu1 %v8258_v45  ;;  %v6868_v48 = vld [vmem:[%s11336_s0 + $0x55c] sm:$0xf0]  ;;  %v8305_v27 = vor.u32 %v6865_v19, %v5844_v30  ;;  %v5868_v30 = vld [vmem:[%s11336_s0 + $0x5a0] sm:$0xf0] }
 0x165   :  { %2770 = vmatmul.bf16.gmra.mxu2 %v8260_v46 }
 0x166   :  { %2939 = vmatmul.bf16.gmra.mxu3 %v8263_v23  ;;  %v8302_v23 = vor.u32 %v6869_v21, %v5842_v26  ;;  %11670 = vst [vmem:[#allocation89_spill] sm:$0xff] %v8305_v27 }
 0x168   :  { %v2731_v35 = vpop.f32.mrf.mxu2  ;;  %v2395_v5 = vpop.f32.mrf.mxu0  ;;  %11669 = vst [vmem:[#allocation88_spill] sm:$0xff] %v8302_v23 }
 0x169   :  { %v2732_v9 = vadd.f32 %v2731_v35, %v2563_v55  ;;  %v2900_v33 = vpop.f32.mrf.mxu3  ;;  %v2396_v31 = vadd.f32 %v2395_v5, %v7656_v61  ;;  %v2564_v59 = vpop.f32.mrf.mxu1  ;;  %v6864_v55 = vld [vmem:[%s11336_s0 + $0x544] sm:$0xf] }
 0x16b   :  { %v8272_v32 = vadd.f32 %v2900_v33, %v2732_v9  ;;  %v2565_v28 = vadd.f32 %v2564_v59, %v2396_v31  ;;  %v8298_v9 = vor.u32 %v6868_v48, %v5834_v34  ;;  %v8300_v59 = vor.u32 %v6864_v55, %v5836_v7 }
 0x16d   :  { %11667 = vst [vmem:[#allocation86_spill] sm:$0xff] %v8298_v9 }
 0x16e   :  { %11668 = vst [vmem:[#allocation87_spill] sm:$0xff] %v8300_v59 }
 0x170   :  { %v2733_v35 = vpop.f32.mrf.mxu2  ;;  %v2398_v31 = vpop.f32.mrf.mxu0 }
 0x171   :  { %v2734_v33 = vadd.f32 %v2733_v35, %v2565_v28  ;;  %v2902_v5 = vpop.f32.mrf.mxu3  ;;  %v2399_v46 = vadd.f32 %v2398_v31, %v7656_v61  ;;  %v2567_v45 = vpop.f32.mrf.mxu1  ;;  %v5874_v35 = vld [vmem:[%s11336_s0 + $0x588] sm:$0xf]  ;;  %v5876_v31 = vld [vmem:[%s11336_s0 + $0x5a8] sm:$0xf0] }
 0x173   :  { %v8307_v54 = vadd.f32 %v2902_v5, %v2734_v33  ;;  %v2568_v50 = vadd.f32 %v2567_v45, %v2399_v46  ;;  %2437 = vmatmul.bf16.gmra.mxu0 %v8298_v9  ;;  %v5866_v46 = vld [vmem:[%s11336_s0 + $0x580] sm:$0xf]  ;;  %v6877_v33 = vld [vmem:[%s11336_s0 + $0x5a4] sm:$0xf0]  ;;  %v6873_v5 = vld [vmem:[%s11336_s0 + $0x58c] sm:$0xf] }
 0x174   :  { %2606 = vmatmul.bf16.gmra.mxu1 %v8300_v59  ;;  %v6876_v45 = vld [vmem:[%s11336_s0 + $0x59c] sm:$0xf0]  ;;  %v8347_v9 = vor.u32 %v6873_v5, %v5876_v31 }
 0x175   :  { %2775 = vmatmul.bf16.gmra.mxu2 %v8302_v23 }
 0x176   :  { %2944 = vmatmul.bf16.gmra.mxu3 %v8305_v27  ;;  %v8344_v27 = vor.u32 %v6877_v33, %v5874_v35  ;;  %11674 = vst [vmem:[#allocation93_spill] sm:$0xff] %v8347_v9 }
 0x178   :  { %v2736_v28 = vpop.f32.mrf.mxu2  ;;  %v2400_v55 = vpop.f32.mrf.mxu0  ;;  %11673 = vst [vmem:[#allocation92_spill] sm:$0xff] %v8344_v27 }
 0x179   :  { %v2737_v34 = vadd.f32 %v2736_v28, %v2568_v50  ;;  %v2905_v48 = vpop.f32.mrf.mxu3  ;;  %v2401_v7 = vadd.f32 %v2400_v55, %v7656_v61  ;;  %v2569_v26 = vpop.f32.mrf.mxu1  ;;  %v6872_v50 = vld [vmem:[%s11336_s0 + $0x584] sm:$0xf] }
 0x17b   :  { %v8314_v21 = vadd.f32 %v2905_v48, %v2737_v34  ;;  %v2570_v19 = vadd.f32 %v2569_v26, %v2401_v7  ;;  %v8340_v34 = vor.u32 %v6876_v45, %v5866_v46  ;;  %v8342_v26 = vor.u32 %v6872_v50, %v5868_v30  ;;  %v7051_v46 = vld [vmem:[%s11335_s1 + $0x314] sm:$0xf0]  ;;  %v6642_v50 = vld [vmem:[%s11335_s1 + $0x390] sm:$0xf] }
 0x17c   :  { %v7019_v45 = vld [vmem:[%s11335_s1 + $0x214] sm:$0xf0] }
 0x17d   :  { %11671 = vst [vmem:[#allocation90_spill] sm:$0xff] %v8340_v34  ;;  %v7067_v30 = vld [vmem:[%s11335_s1 + $0x394] sm:$0xf0] }
 0x17e   :  { %11672 = vst [vmem:[#allocation91_spill] sm:$0xff] %v8342_v26  ;;  %v6643_v5 = vor.u32 %v7067_v30, %v6642_v50  ;;  %v6884_v50 = vld [vmem:[%s11336_s0 + $0x5dc] sm:$0xf0]  ;;  %v6880_v30 = vld [vmem:[%s11336_s0 + $0x5c4] sm:$0xf] }
 0x180   :  { %v2738_v28 = vpop.f32.mrf.mxu2  ;;  %v2403_v7 = vpop.f32.mrf.mxu0  ;;  %3513 = vmatpush.bf16.msrb.mxu3 %v6643_v5  ;;  %v6885_v5 = vld [vmem:[%s11336_s0 + $0x5e4] sm:$0xf0] }
 0x181   :  { %v2739_v48 = vadd.f32 %v2738_v28, %v2570_v19  ;;  %v2907_v55 = vpop.f32.mrf.mxu3  ;;  %v2404_v23 = vadd.f32 %v2403_v7, %v7656_v61  ;;  %v2572_v59 = vpop.f32.mrf.mxu1  ;;  %v6578_v19 = vld [vmem:[%s11335_s1 + $0x310] sm:$0xf] }
 0x183   :  { %v8349_v49 = vadd.f32 %v2907_v55, %v2739_v48  ;;  %v2573_v39 = vadd.f32 %v2572_v59, %v2404_v23  ;;  %2442 = vmatmul.bf16.gmra.mxu0 %v8340_v34  ;;  %v6450_v23 = vld [vmem:[%s11335_s1 + $0x210] sm:$0xf]  ;;  %v6579_v59 = vor.u32 %v7051_v46, %v6578_v19 }
 0x184   :  { %2611 = vmatmul.bf16.gmra.mxu1 %v8342_v26  ;;  %v6451_v33 = vor.u32 %v7019_v45, %v6450_v23  ;;  %v6514_v46 = vld [vmem:[%s11335_s1 + $0x290] sm:$0xf]  ;;  %v7035_v23 = vld [vmem:[%s11335_s1 + $0x294] sm:$0xf0] }
 0x185   :  { %2780 = vmatmul.bf16.gmra.mxu2 %v8344_v27 }
 0x186   :  { %2949 = vmatmul.bf16.gmra.mxu3 %v8347_v9  ;;  %3344 = vmatpush.bf16.msrb.mxu2 %v6579_v59  ;;  %v5898_v59 = vld [vmem:[%s11336_s0 + $0x5c0] sm:$0xf] }
 0x187   :  { %3006 = vmatpush.bf16.msrb.mxu0 %v6451_v33  ;;  %v5906_v33 = vld [vmem:[%s11336_s0 + $0x5c8] sm:$0xf] }
 0x188   :  { %v2741_v35 = vpop.f32.mrf.mxu2  ;;  %v2405_v48 = vpop.f32.mrf.mxu0  ;;  %v8410_v27 = vor.u32 %v6885_v5, %v5906_v33 }
 0x189   :  { %v2742_v31 = vadd.f32 %v2741_v35, %v2573_v39  ;;  %v2910_v28 = vpop.f32.mrf.mxu3  ;;  %v2406_v55 = vadd.f32 %v2405_v48, %v7656_v61  ;;  %v2574_v7 = vpop.f32.mrf.mxu1  ;;  %v6515_v39 = vor.u32 %v7035_v23, %v6514_v46  ;;  %v5900_v35 = vld [vmem:[%s11336_s0 + $0x5e0] sm:$0xf0] }
 0x18a   :  { %v8408_v9 = vor.u32 %v6880_v30, %v5900_v35  ;;  %11677 = vst [vmem:[#allocation96_spill] sm:$0xff] %v8410_v27 }
 0x18b   :  { %v8374_v19 = vadd.f32 %v2910_v28, %v2742_v31  ;;  %v2575_v45 = vadd.f32 %v2574_v7, %v2406_v55  ;;  %3175 = vmatpush.bf16.msrb.mxu1 %v6515_v39  ;;  %v6881_v31 = vld [vmem:[%s11336_s0 + $0x5cc] sm:$0xf]  ;;  %v8406_v55 = vor.u32 %v6884_v50, %v5898_v59 }
 0x18c   :  { %v5908_v28 = vld [vmem:[%s11336_s0 + $0x5e8] sm:$0xf0]  ;;  %11676 = vst [vmem:[#allocation95_spill] sm:$0xff] %v8408_v9 }
 0x18d   :  { %11675 = vst [vmem:[#allocation94_spill] sm:$0xff] %v8406_v55  ;;  %v8413_v34 = vor.u32 %v6881_v31, %v5908_v28  ;;  %v6892_v28 = vld [vmem:[%s11336_s0 + $0x61c] sm:$0xf0] }
 0x18f   :  { %11678 = vst [vmem:[#allocation97_spill] sm:$0xff] %v8413_v34 }
 0x190   :  { %v2743_v48 = vpop.f32.mrf.mxu2  ;;  %v2408_v23 = vpop.f32.mrf.mxu0 }
 0x191   :  { %v2744_v7 = vadd.f32 %v2743_v48, %v2575_v45  ;;  %v2912_v46 = vpop.f32.mrf.mxu3  ;;  %v2409_v39 = vadd.f32 %v2408_v23, %v7656_v61  ;;  %v2577_v26 = vpop.f32.mrf.mxu1  ;;  %v5932_v48 = vld [vmem:[%s11336_s0 + $0x620] sm:$0xf0]  ;;  %v6889_v23 = vld [vmem:[%s11336_s0 + $0x60c] sm:$0xf] }
 0x193   :  { %v8415_v38 = vadd.f32 %v2912_v46, %v2744_v7  ;;  %v2578_v37 = vadd.f32 %v2577_v26, %v2409_v39  ;;  %2447 = vmatmul.bf16.gmra.mxu0 %v8406_v55  ;;  %v5930_v26 = vld [vmem:[%s11336_s0 + $0x600] sm:$0xf]  ;;  %v5938_v7 = vld [vmem:[%s11336_s0 + $0x608] sm:$0xf]  ;;  %v5940_v39 = vld [vmem:[%s11336_s0 + $0x628] sm:$0xf0] }
 0x194   :  { %2616 = vmatmul.bf16.gmra.mxu1 %v8408_v9  ;;  %v6893_v46 = vld [vmem:[%s11336_s0 + $0x624] sm:$0xf0]  ;;  %v8455_v55 = vor.u32 %v6889_v23, %v5940_v39  ;;  %v5964_v39 = vld [vmem:[%s11336_s0 + $0x660] sm:$0xf0] }
 0x195   :  { %2785 = vmatmul.bf16.gmra.mxu2 %v8410_v27 }
 0x196   :  { %2954 = vmatmul.bf16.gmra.mxu3 %v8413_v34  ;;  %v8452_v34 = vor.u32 %v6893_v46, %v5938_v7  ;;  %11682 = vst [vmem:[#allocation101_spill] sm:$0xff] %v8455_v55 }
 0x198   :  { %v2746_v45 = vpop.f32.mrf.mxu2  ;;  %v2410_v30 = vpop.f32.mrf.mxu0  ;;  %11681 = vst [vmem:[#allocation100_spill] sm:$0xff] %v8452_v34 }
 0x199   :  { %v2747_v59 = vadd.f32 %v2746_v45, %v2578_v37  ;;  %v2915_v50 = vpop.f32.mrf.mxu3  ;;  %v2411_v35 = vadd.f32 %v2410_v30, %v7656_v61  ;;  %v2579_v33 = vpop.f32.mrf.mxu1  ;;  %v6888_v37 = vld [vmem:[%s11336_s0 + $0x604] sm:$0xf] }
 0x19b   :  { %v8422_v5 = vadd.f32 %v2915_v50, %v2747_v59  ;;  %v2580_v31 = vadd.f32 %v2579_v33, %v2411_v35  ;;  %v8448_v59 = vor.u32 %v6892_v28, %v5930_v26  ;;  %v8450_v33 = vor.u32 %v6888_v37, %v5932_v48 }
 0x19d   :  { %11679 = vst [vmem:[#allocation98_spill] sm:$0xff] %v8448_v59 }
 0x19e   :  { %11680 = vst [vmem:[#allocation99_spill] sm:$0xff] %v8450_v33 }
 0x1a0   :  { %v2748_v45 = vpop.f32.mrf.mxu2  ;;  %v2413_v35 = vpop.f32.mrf.mxu0 }
 0x1a1   :  { %v2749_v50 = vadd.f32 %v2748_v45, %v2580_v31  ;;  %v2917_v30 = vpop.f32.mrf.mxu3  ;;  %v2414_v27 = vadd.f32 %v2413_v35, %v7656_v61  ;;  %v2582_v9 = vpop.f32.mrf.mxu1  ;;  %v5970_v45 = vld [vmem:[%s11336_s0 + $0x648] sm:$0xf]  ;;  %v5972_v35 = vld [vmem:[%s11336_s0 + $0x668] sm:$0xf0] }
 0x1a3   :  { %v8457_v36 = vadd.f32 %v2917_v30, %v2749_v50  ;;  %v2583_v15 = vadd.f32 %v2582_v9, %v2414_v27  ;;  %2452 = vmatmul.bf16.gmra.mxu0 %v8448_v59  ;;  %v5962_v27 = vld [vmem:[%s11336_s0 + $0x640] sm:$0xf]  ;;  %v6901_v50 = vld [vmem:[%s11336_s0 + $0x664] sm:$0xf0]  ;;  %v6897_v30 = vld [vmem:[%s11336_s0 + $0x64c] sm:$0xf] }
 0x1a4   :  { %2621 = vmatmul.bf16.gmra.mxu1 %v8450_v33  ;;  %v6900_v9 = vld [vmem:[%s11336_s0 + $0x65c] sm:$0xf0]  ;;  %v8497_v59 = vor.u32 %v6897_v30, %v5972_v35  ;;  %v5996_v35 = vld [vmem:[%s11336_s0 + $0x6a0] sm:$0xf0] }
 0x1a5   :  { %2790 = vmatmul.bf16.gmra.mxu2 %v8452_v34 }
 0x1a6   :  { %2959 = vmatmul.bf16.gmra.mxu3 %v8455_v55  ;;  %v8494_v55 = vor.u32 %v6901_v50, %v5970_v45  ;;  %11686 = vst [vmem:[#allocation105_spill] sm:$0xff] %v8497_v59 }
 0x1a8   :  { %v2751_v31 = vpop.f32.mrf.mxu2  ;;  %v2415_v37 = vpop.f32.mrf.mxu0  ;;  %11685 = vst [vmem:[#allocation104_spill] sm:$0xff] %v8494_v55 }
 0x1a9   :  { %v2752_v26 = vadd.f32 %v2751_v31, %v2583_v15  ;;  %v2920_v28 = vpop.f32.mrf.mxu3  ;;  %v2416_v48 = vadd.f32 %v2415_v37, %v7656_v61  ;;  %v2584_v7 = vpop.f32.mrf.mxu1  ;;  %v6896_v15 = vld [vmem:[%s11336_s0 + $0x644] sm:$0xf] }
 0x1ab   :  { %v8464_v46 = vadd.f32 %v2920_v28, %v2752_v26  ;;  %v2585_v23 = vadd.f32 %v2584_v7, %v2416_v48  ;;  %v8490_v26 = vor.u32 %v6900_v9, %v5962_v27  ;;  %v8492_v7 = vor.u32 %v6896_v15, %v5964_v39 }
 0x1ad   :  { %11683 = vst [vmem:[#allocation102_spill] sm:$0xff] %v8490_v26 }
 0x1ae   :  { %11684 = vst [vmem:[#allocation103_spill] sm:$0xff] %v8492_v7 }
 0x1b0   :  { %v2753_v31 = vpop.f32.mrf.mxu2  ;;  %v2418_v48 = vpop.f32.mrf.mxu0 }
 0x1b1   :  { %v2754_v28 = vadd.f32 %v2753_v31, %v2585_v23  ;;  %v2922_v37 = vpop.f32.mrf.mxu3  ;;  %v2419_v34 = vadd.f32 %v2418_v48, %v7656_v61  ;;  %v2587_v33 = vpop.f32.mrf.mxu1  ;;  %v6002_v31 = vld [vmem:[%s11336_s0 + $0x688] sm:$0xf]  ;;  %v6004_v48 = vld [vmem:[%s11336_s0 + $0x6a8] sm:$0xf0] }
 0x1b3   :  { %v8499_v14 = vadd.f32 %v2922_v37, %v2754_v28  ;;  %v2588_v13 = vadd.f32 %v2587_v33, %v2419_v34  ;;  %2457 = vmatmul.bf16.gmra.mxu0 %v8490_v26  ;;  %v5994_v34 = vld [vmem:[%s11336_s0 + $0x680] sm:$0xf]  ;;  %v6909_v28 = vld [vmem:[%s11336_s0 + $0x6a4] sm:$0xf0]  ;;  %v6905_v37 = vld [vmem:[%s11336_s0 + $0x68c] sm:$0xf] }
 0x1b4   :  { %2626 = vmatmul.bf16.gmra.mxu1 %v8492_v7  ;;  %v6908_v33 = vld [vmem:[%s11336_s0 + $0x69c] sm:$0xf0]  ;;  %v8539_v26 = vor.u32 %v6905_v37, %v6004_v48 }
 0x1b5   :  { %2795 = vmatmul.bf16.gmra.mxu2 %v8494_v55 }
 0x1b6   :  { %2964 = vmatmul.bf16.gmra.mxu3 %v8497_v59  ;;  %v8536_v59 = vor.u32 %v6909_v28, %v6002_v31  ;;  %11690 = vst [vmem:[#allocation109_spill] sm:$0xff] %v8539_v26 }
 0x1b8   :  { %v2756_v23 = vpop.f32.mrf.mxu2  ;;  %v2420_v15 = vpop.f32.mrf.mxu0  ;;  %11689 = vst [vmem:[#allocation108_spill] sm:$0xff] %v8536_v59 }
 0x1b9   :  { %v2757_v27 = vadd.f32 %v2756_v23, %v2588_v13  ;;  %v2925_v9 = vpop.f32.mrf.mxu3  ;;  %v2421_v39 = vadd.f32 %v2420_v15, %v7656_v61  ;;  %v2589_v45 = vpop.f32.mrf.mxu1  ;;  %v6904_v13 = vld [vmem:[%s11336_s0 + $0x684] sm:$0xf] }
 0x1bb   :  { %v8506_v50 = vadd.f32 %v2925_v9, %v2757_v27  ;;  %v2590_v30 = vadd.f32 %v2589_v45, %v2421_v39  ;;  %v8532_v27 = vor.u32 %v6908_v33, %v5994_v34  ;;  %v8534_v45 = vor.u32 %v6904_v13, %v5996_v35  ;;  %v7049_v34 = vld [vmem:[%s11335_s1 + $0x304] sm:$0xf0]  ;;  %v6634_v13 = vld [vmem:[%s11335_s1 + $0x380] sm:$0xf] }
 0x1bc   :  { %v7017_v33 = vld [vmem:[%s11335_s1 + $0x204] sm:$0xf0] }
 0x1bd   :  { %11687 = vst [vmem:[#allocation106_spill] sm:$0xff] %v8532_v27  ;;  %v7065_v35 = vld [vmem:[%s11335_s1 + $0x384] sm:$0xf0] }
 0x1be   :  { %11688 = vst [vmem:[#allocation107_spill] sm:$0xff] %v8534_v45  ;;  %v6635_v37 = vor.u32 %v7065_v35, %v6634_v13  ;;  %v6916_v13 = vld [vmem:[%s11336_s0 + $0x6dc] sm:$0xf0]  ;;  %v6912_v35 = vld [vmem:[%s11336_s0 + $0x6c4] sm:$0xf] }
 0x1c0   :  { %v2758_v23 = vpop.f32.mrf.mxu2  ;;  %v2423_v39 = vpop.f32.mrf.mxu0  ;;  %3514 = vmatpush.bf16.msrb.mxu3 %v6635_v37  ;;  %v6917_v37 = vld [vmem:[%s11336_s0 + $0x6e4] sm:$0xf0] }
 0x1c1   :  { %v2759_v9 = vadd.f32 %v2758_v23, %v2590_v30  ;;  %v2927_v15 = vpop.f32.mrf.mxu3  ;;  %v2424_v55 = vadd.f32 %v2423_v39, %v7656_v61  ;;  %v2592_v7 = vpop.f32.mrf.mxu1  ;;  %v6570_v30 = vld [vmem:[%s11335_s1 + $0x300] sm:$0xf] }
 0x1c3   :  { %v8541_v12 = vadd.f32 %v2927_v15, %v2759_v9  ;;  %v2593_v3 = vadd.f32 %v2592_v7, %v2424_v55  ;;  %2462 = vmatmul.bf16.gmra.mxu0 %v8532_v27  ;;  %v6442_v55 = vld [vmem:[%s11335_s1 + $0x200] sm:$0xf]  ;;  %v6571_v7 = vor.u32 %v7049_v34, %v6570_v30 }
 0x1c4   :  { %2631 = vmatmul.bf16.gmra.mxu1 %v8534_v45  ;;  %v6443_v28 = vor.u32 %v7017_v33, %v6442_v55  ;;  %v6506_v34 = vld [vmem:[%s11335_s1 + $0x280] sm:$0xf]  ;;  %v7033_v55 = vld [vmem:[%s11335_s1 + $0x284] sm:$0xf0] }
 0x1c5   :  { %2800 = vmatmul.bf16.gmra.mxu2 %v8536_v59 }
 0x1c6   :  { %2969 = vmatmul.bf16.gmra.mxu3 %v8539_v26  ;;  %3345 = vmatpush.bf16.msrb.mxu2 %v6571_v7  ;;  %v6026_v7 = vld [vmem:[%s11336_s0 + $0x6c0] sm:$0xf] }
 0x1c7   :  { %3007 = vmatpush.bf16.msrb.mxu0 %v6443_v28  ;;  %v6034_v28 = vld [vmem:[%s11336_s0 + $0x6c8] sm:$0xf] }
 0x1c8   :  { %v2761_v31 = vpop.f32.mrf.mxu2  ;;  %v2425_v9 = vpop.f32.mrf.mxu0  ;;  %v8602_v59 = vor.u32 %v6917_v37, %v6034_v28 }
 0x1c9   :  { %v2762_v48 = vadd.f32 %v2761_v31, %v2593_v3  ;;  %v2930_v23 = vpop.f32.mrf.mxu3  ;;  %v2426_v15 = vadd.f32 %v2425_v9, %v7656_v61  ;;  %v2594_v39 = vpop.f32.mrf.mxu1  ;;  %v6507_v3 = vor.u32 %v7033_v55, %v6506_v34  ;;  %v6028_v31 = vld [vmem:[%s11336_s0 + $0x6e0] sm:$0xf0] }
 0x1ca   :  { %v8600_v26 = vor.u32 %v6912_v35, %v6028_v31  ;;  %11693 = vst [vmem:[#allocation112_spill] sm:$0xff] %v8602_v59 }
 0x1cb   :  { %v8566_v30 = vadd.f32 %v2930_v23, %v2762_v48  ;;  %v2595_v33 = vadd.f32 %v2594_v39, %v2426_v15  ;;  %3176 = vmatpush.bf16.msrb.mxu1 %v6507_v3  ;;  %v6913_v48 = vld [vmem:[%s11336_s0 + $0x6cc] sm:$0xf]  ;;  %v8598_v15 = vor.u32 %v6916_v13, %v6026_v7 }
 0x1cc   :  { %v6036_v23 = vld [vmem:[%s11336_s0 + $0x6e8] sm:$0xf0]  ;;  %11692 = vst [vmem:[#allocation111_spill] sm:$0xff] %v8600_v26 }
 0x1cd   :  { %11691 = vst [vmem:[#allocation110_spill] sm:$0xff] %v8598_v15  ;;  %v8605_v27 = vor.u32 %v6913_v48, %v6036_v23  ;;  %v6924_v23 = vld [vmem:[%s11336_s0 + $0x71c] sm:$0xf0] }
 0x1cf   :  { %11694 = vst [vmem:[#allocation113_spill] sm:$0xff] %v8605_v27 }
 0x1d0   :  { %v2763_v9 = vpop.f32.mrf.mxu2  ;;  %v2428_v55 = vpop.f32.mrf.mxu0 }
 0x1d1   :  { %v2764_v39 = vadd.f32 %v2763_v9, %v2595_v33  ;;  %v2932_v34 = vpop.f32.mrf.mxu3  ;;  %v2429_v3 = vadd.f32 %v2428_v55, %v7656_v61  ;;  %v2597_v45 = vpop.f32.mrf.mxu1  ;;  %v6060_v9 = vld [vmem:[%s11336_s0 + $0x720] sm:$0xf0]  ;;  %v6921_v55 = vld [vmem:[%s11336_s0 + $0x70c] sm:$0xf] }
 0x1d3   :  { %v8607_v2 = vadd.f32 %v2932_v34, %v2764_v39  ;;  %v2598_v1 = vadd.f32 %v2597_v45, %v2429_v3  ;;  %2467 = vmatmul.bf16.gmra.mxu0 %v8598_v15  ;;  %v6058_v45 = vld [vmem:[%s11336_s0 + $0x700] sm:$0xf]  ;;  %v6066_v39 = vld [vmem:[%s11336_s0 + $0x708] sm:$0xf]  ;;  %v6068_v3 = vld [vmem:[%s11336_s0 + $0x728] sm:$0xf0] }
 0x1d4   :  { %2636 = vmatmul.bf16.gmra.mxu1 %v8600_v26  ;;  %v6925_v34 = vld [vmem:[%s11336_s0 + $0x724] sm:$0xf0]  ;;  %v8647_v15 = vor.u32 %v6921_v55, %v6068_v3  ;;  %v6092_v3 = vld [vmem:[%s11336_s0 + $0x760] sm:$0xf0] }
 0x1d5   :  { %2805 = vmatmul.bf16.gmra.mxu2 %v8602_v59 }
 0x1d6   :  { %2974 = vmatmul.bf16.gmra.mxu3 %v8605_v27  ;;  %v8644_v27 = vor.u32 %v6925_v34, %v6066_v39  ;;  %11698 = vst [vmem:[#allocation117_spill] sm:$0xff] %v8647_v15 }
 0x1d8   :  { %v2766_v33 = vpop.f32.mrf.mxu2  ;;  %v2430_v35 = vpop.f32.mrf.mxu0  ;;  %11697 = vst [vmem:[#allocation116_spill] sm:$0xff] %v8644_v27 }
 0x1d9   :  { %v2767_v7 = vadd.f32 %v2766_v33, %v2598_v1  ;;  %v2935_v13 = vpop.f32.mrf.mxu3  ;;  %v2431_v31 = vadd.f32 %v2430_v35, %v7656_v61  ;;  %v2599_v28 = vpop.f32.mrf.mxu1  ;;  %v6920_v1 = vld [vmem:[%s11336_s0 + $0x704] sm:$0xf] }
 0x1db   :  { %v8614_v37 = vadd.f32 %v2935_v13, %v2767_v7  ;;  %v2600_v48 = vadd.f32 %v2599_v28, %v2431_v31  ;;  %v8640_v7 = vor.u32 %v6924_v23, %v6058_v45  ;;  %v8642_v28 = vor.u32 %v6920_v1, %v6060_v9 }
 0x1dd   :  { %11695 = vst [vmem:[#allocation114_spill] sm:$0xff] %v8640_v7 }
 0x1de   :  { %11696 = vst [vmem:[#allocation115_spill] sm:$0xff] %v8642_v28 }
 0x1e0   :  { %v2768_v33 = vpop.f32.mrf.mxu2  ;;  %v2433_v31 = vpop.f32.mrf.mxu0 }
 0x1e1   :  { %v2769_v13 = vadd.f32 %v2768_v33, %v2600_v48  ;;  %v2937_v35 = vpop.f32.mrf.mxu3  ;;  %v2434_v59 = vadd.f32 %v2433_v31, %v7656_v61  ;;  %v2602_v26 = vpop.f32.mrf.mxu1  ;;  %v6098_v33 = vld [vmem:[%s11336_s0 + $0x748] sm:$0xf]  ;;  %v6100_v31 = vld [vmem:[%s11336_s0 + $0x768] sm:$0xf0] }
 0x1e3   :  { %v8649_v0 = vadd.f32 %v2937_v35, %v2769_v13  ;;  %v2603_v53 = vadd.f32 %v2602_v26, %v2434_v59  ;;  %2472 = vmatmul.bf16.gmra.mxu0 %v8640_v7  ;;  %v6090_v59 = vld [vmem:[%s11336_s0 + $0x740] sm:$0xf]  ;;  %v6933_v13 = vld [vmem:[%s11336_s0 + $0x764] sm:$0xf0]  ;;  %v6929_v35 = vld [vmem:[%s11336_s0 + $0x74c] sm:$0xf] }
 0x1e4   :  { %2641 = vmatmul.bf16.gmra.mxu1 %v8642_v28  ;;  %v6932_v26 = vld [vmem:[%s11336_s0 + $0x75c] sm:$0xf0]  ;;  %v8689_v7 = vor.u32 %v6929_v35, %v6100_v31  ;;  %v6124_v31 = vld [vmem:[%s11336_s0 + $0x7a0] sm:$0xf0] }
 0x1e5   :  { %2810 = vmatmul.bf16.gmra.mxu2 %v8644_v27 }
 0x1e6   :  { %2979 = vmatmul.bf16.gmra.mxu3 %v8647_v15  ;;  %v8686_v15 = vor.u32 %v6933_v13, %v6098_v33  ;;  %11702 = vst [vmem:[#allocation121_spill] sm:$0xff] %v8689_v7 }
 0x1e8   :  { %v2771_v48 = vpop.f32.mrf.mxu2  ;;  %v2435_v1 = vpop.f32.mrf.mxu0  ;;  %11701 = vst [vmem:[#allocation120_spill] sm:$0xff] %v8686_v15 }
 0x1e9   :  { %v2772_v45 = vadd.f32 %v2771_v48, %v2603_v53  ;;  %v2940_v23 = vpop.f32.mrf.mxu3  ;;  %v2436_v9 = vadd.f32 %v2435_v1, %v7656_v61  ;;  %v2604_v39 = vpop.f32.mrf.mxu1  ;;  %v6928_v53 = vld [vmem:[%s11336_s0 + $0x744] sm:$0xf] }
 0x1eb   :  { %v8656_v34 = vadd.f32 %v2940_v23, %v2772_v45  ;;  %v2605_v55 = vadd.f32 %v2604_v39, %v2436_v9  ;;  %v8682_v45 = vor.u32 %v6932_v26, %v6090_v59  ;;  %v8684_v39 = vor.u32 %v6928_v53, %v6092_v3 }
 0x1ed   :  { %11699 = vst [vmem:[#allocation118_spill] sm:$0xff] %v8682_v45 }
 0x1ee   :  { %11700 = vst [vmem:[#allocation119_spill] sm:$0xff] %v8684_v39 }
 0x1f0   :  { %v2773_v48 = vpop.f32.mrf.mxu2  ;;  %v2438_v9 = vpop.f32.mrf.mxu0 }
 0x1f1   :  { %v2774_v23 = vadd.f32 %v2773_v48, %v2605_v55  ;;  %v2942_v1 = vpop.f32.mrf.mxu3  ;;  %v2439_v27 = vadd.f32 %v2438_v9, %v7656_v61  ;;  %v2607_v28 = vpop.f32.mrf.mxu1  ;;  %v6130_v48 = vld [vmem:[%s11336_s0 + $0x788] sm:$0xf]  ;;  %v6132_v9 = vld [vmem:[%s11336_s0 + $0x7a8] sm:$0xf0] }
 0x1f3   :  { %v8691_v52 = vadd.f32 %v2942_v1, %v2774_v23  ;;  %v2608_v51 = vadd.f32 %v2607_v28, %v2439_v27  ;;  %2477 = vmatmul.bf16.gmra.mxu0 %v8682_v45  ;;  %v6122_v27 = vld [vmem:[%s11336_s0 + $0x780] sm:$0xf]  ;;  %v6941_v23 = vld [vmem:[%s11336_s0 + $0x7a4] sm:$0xf0]  ;;  %v6937_v1 = vld [vmem:[%s11336_s0 + $0x78c] sm:$0xf] }
 0x1f4   :  { %2646 = vmatmul.bf16.gmra.mxu1 %v8684_v39  ;;  %v6940_v28 = vld [vmem:[%s11336_s0 + $0x79c] sm:$0xf0]  ;;  %v8731_v45 = vor.u32 %v6937_v1, %v6132_v9 }
 0x1f5   :  { %2815 = vmatmul.bf16.gmra.mxu2 %v8686_v15 }
 0x1f6   :  { %2984 = vmatmul.bf16.gmra.mxu3 %v8689_v7  ;;  %v8728_v7 = vor.u32 %v6941_v23, %v6130_v48  ;;  %11707 = vst [vmem:[#allocation126_spill] sm:$0xff] %v8731_v45 }
 0x1f8   :  { %v2776_v55 = vpop.f32.mrf.mxu2  ;;  %v2440_v53 = vpop.f32.mrf.mxu0  ;;  %11706 = vst [vmem:[#allocation125_spill] sm:$0xff] %v8728_v7 }
 0x1f9   :  { %v2777_v59 = vadd.f32 %v2776_v55, %v2608_v51  ;;  %v2945_v26 = vpop.f32.mrf.mxu3  ;;  %v2441_v3 = vadd.f32 %v2440_v53, %v7656_v61  ;;  %v2609_v33 = vpop.f32.mrf.mxu1  ;;  %v6936_v51 = vld [vmem:[%s11336_s0 + $0x784] sm:$0xf] }
 0x1fb   :  { %v8698_v13 = vadd.f32 %v2945_v26, %v2777_v59  ;;  %v2610_v35 = vadd.f32 %v2609_v33, %v2441_v3  ;;  %v8724_v59 = vor.u32 %v6940_v28, %v6122_v27  ;;  %v8726_v33 = vor.u32 %v6936_v51, %v6124_v31  ;;  %v6372_v27 = vld [vmem:[%s11335_s1 + $0x178] sm:$0xf0]  ;;  %v7014_v51 = vld [vmem:[%s11335_s1 + $0x1f4] sm:$0xf] }
 0x1fc   :  { %v6244_v28 = vld [vmem:[%s11335_s1 + $0x78] sm:$0xf0] }
 0x1fd   :  { %11703 = vst [vmem:[#allocation122_spill] sm:$0xff] %v8698_v13  ;;  %v6436_v31 = vld [vmem:[%s11335_s1 + $0x1f8] sm:$0xf0] }
 0x1fe   :  { %11704 = vst [vmem:[#allocation123_spill] sm:$0xff] %v8724_v59  ;;  %v6439_v1 = vor.u32 %v7014_v51, %v6436_v31  ;;  %v6948_v51 = vld [vmem:[%s11336_s0 + $0x7dc] sm:$0xf0]  ;;  %v6944_v31 = vld [vmem:[%s11336_s0 + $0x7c4] sm:$0xf] }
 0x1ff   :  { %11705 = vst [vmem:[#allocation124_spill] sm:$0xff] %v8726_v33 }
 0x200   :  { %v2778_v55 = vpop.f32.mrf.mxu2  ;;  %v2443_v3 = vpop.f32.mrf.mxu0  ;;  %4183 = vmatpush.bf16.msra.mxu3 %v6439_v1  ;;  %v6949_v1 = vld [vmem:[%s11336_s0 + $0x7e4] sm:$0xf0] }
 0x201   :  { %v2779_v26 = vadd.f32 %v2778_v55, %v2610_v35  ;;  %v2947_v53 = vpop.f32.mrf.mxu3  ;;  %v2444_v15 = vadd.f32 %v2443_v3, %v7656_v61  ;;  %v2612_v39 = vpop.f32.mrf.mxu1  ;;  %v6998_v35 = vld [vmem:[%s11335_s1 + $0x174] sm:$0xf] }
 0x203   :  { %v8733_v47 = vadd.f32 %v2947_v53, %v2779_v26  ;;  %v2613_v13 = vadd.f32 %v2612_v39, %v2444_v15  ;;  %2482 = vmatmul.bf16.gmra.mxu0 %v8724_v59  ;;  %v6966_v15 = vld [vmem:[%s11335_s1 + $0x74] sm:$0xf]  ;;  %v6375_v39 = vor.u32 %v6998_v35, %v6372_v27 }
 0x204   :  { %2651 = vmatmul.bf16.gmra.mxu1 %v8726_v33  ;;  %v6247_v23 = vor.u32 %v6966_v15, %v6244_v28  ;;  %v6982_v27 = vld [vmem:[%s11335_s1 + $0xf4] sm:$0xf]  ;;  %v6308_v15 = vld [vmem:[%s11335_s1 + $0xf8] sm:$0xf0] }
 0x205   :  { %11708 = vst [vmem:[#allocation127_spill] sm:$0xff] %v8733_v47  ;;  %2820 = vmatmul.bf16.gmra.mxu2 %v8728_v7 }
 0x206   :  { %2989 = vmatmul.bf16.gmra.mxu3 %v8731_v45  ;;  %4014 = vmatpush.bf16.msra.mxu2 %v6375_v39  ;;  %v6154_v39 = vld [vmem:[%s11336_s0 + $0x7c0] sm:$0xf] }
 0x207   :  { %3676 = vmatpush.bf16.msra.mxu0 %v6247_v23  ;;  %v6162_v23 = vld [vmem:[%s11336_s0 + $0x7c8] sm:$0xf] }
 0x208   :  { %v2781_v48 = vpop.f32.mrf.mxu2  ;;  %v2445_v26 = vpop.f32.mrf.mxu0  ;;  %v8794_v7 = vor.u32 %v6949_v1, %v6162_v23 }
 0x209   :  { %v2782_v9 = vadd.f32 %v2781_v48, %v2613_v13  ;;  %v2950_v55 = vpop.f32.mrf.mxu3  ;;  %v2446_v53 = vadd.f32 %v2445_v26, %v7656_v61  ;;  %v2614_v3 = vpop.f32.mrf.mxu1  ;;  %v6311_v13 = vor.u32 %v6982_v27, %v6308_v15  ;;  %v6156_v48 = vld [vmem:[%s11336_s0 + $0x7e0] sm:$0xf0] }
 0x20a   :  { %v8792_v45 = vor.u32 %v6944_v31, %v6156_v48  ;;  %11712 = vst [vmem:[#allocation131_spill] sm:$0xff] %v8794_v7 }
 0x20b   :  { %v8758_v35 = vadd.f32 %v2950_v55, %v2782_v9  ;;  %v2615_v28 = vadd.f32 %v2614_v3, %v2446_v53  ;;  %3845 = vmatpush.bf16.msra.mxu1 %v6311_v13  ;;  %v6945_v9 = vld [vmem:[%s11336_s0 + $0x7cc] sm:$0xf]  ;;  %v8790_v53 = vor.u32 %v6948_v51, %v6154_v39 }
 0x20c   :  { %v6164_v55 = vld [vmem:[%s11336_s0 + $0x7e8] sm:$0xf0]  ;;  %11711 = vst [vmem:[#allocation130_spill] sm:$0xff] %v8792_v45 }
 0x20d   :  { %11709 = vst [vmem:[#allocation128_spill] sm:$0xff] %v8758_v35  ;;  %v8797_v59 = vor.u32 %v6945_v9, %v6164_v55  ;;  %v6702_v55 = vld [vmem:[%s11336_s0 + $0x2c] sm:$0xf0] }
 0x20e   :  { %11710 = vst [vmem:[#allocation129_spill] sm:$0xff] %v8790_v53 }
 0x20f   :  { %11713 = vst [vmem:[#allocation132_spill] sm:$0xff] %v8797_v59 }
 0x210   :  { %v2783_v26 = vpop.f32.mrf.mxu2  ;;  %v2448_v15 = vpop.f32.mrf.mxu0 }
 0x211   :  { %v2784_v3 = vadd.f32 %v2783_v26, %v2615_v28  ;;  %v2952_v27 = vpop.f32.mrf.mxu3  ;;  %v2449_v13 = vadd.f32 %v2448_v15, %v7656_v61  ;;  %v2617_v33 = vpop.f32.mrf.mxu1  ;;  %v5180_v26 = vld [vmem:[%s11336_s0 + $0x30] sm:$0xf0]  ;;  %v6699_v15 = vld [vmem:[%s11336_s0 + $0x1c] sm:$0xf] }
 0x213   :  { %v8799_v35 = vadd.f32 %v2952_v27, %v2784_v3  ;;  %v2618_v47 = vadd.f32 %v2617_v33, %v2449_v13  ;;  %2487 = vmatmul.bf16.gmra.mxu0 %v8790_v53  ;;  %v5178_v33 = vld [vmem:[%s11336_s0 + $0x10] sm:$0xf]  ;;  %v5186_v3 = vld [vmem:[%s11336_s0 + $0x18] sm:$0xf]  ;;  %v5188_v13 = vld [vmem:[%s11336_s0 + $0x38] sm:$0xf0] }
 0x214   :  { %2656 = vmatmul.bf16.gmra.mxu1 %v8792_v45  ;;  %v6703_v27 = vld [vmem:[%s11336_s0 + $0x34] sm:$0xf0]  ;;  %v8839_v53 = vor.u32 %v6699_v15, %v5188_v13  ;;  %v5212_v13 = vld [vmem:[%s11336_s0 + $0x70] sm:$0xf0] }
 0x215   :  { %11714 = vst [vmem:[#allocation133_spill] sm:$0xff] %v8799_v35  ;;  %2825 = vmatmul.bf16.gmra.mxu2 %v8794_v7 }
 0x216   :  { %2994 = vmatmul.bf16.gmra.mxu3 %v8797_v59  ;;  %v8836_v59 = vor.u32 %v6703_v27, %v5186_v3  ;;  %11719 = vst [vmem:[#allocation138_spill] sm:$0xff] %v8839_v53 }
 0x218   :  { %v2786_v28 = vpop.f32.mrf.mxu2  ;;  %v2450_v31 = vpop.f32.mrf.mxu0  ;;  %11718 = vst [vmem:[#allocation137_spill] sm:$0xff] %v8836_v59 }
 0x219   :  { %v2787_v39 = vadd.f32 %v2786_v28, %v2618_v47  ;;  %v2955_v51 = vpop.f32.mrf.mxu3  ;;  %v2451_v48 = vadd.f32 %v2450_v31, %v7656_v61  ;;  %v2619_v23 = vpop.f32.mrf.mxu1  ;;  %v6698_v47 = vld [vmem:[%s11336_s0 + $0x14] sm:$0xf] }
 0x21b   :  { %v8806_v1 = vadd.f32 %v2955_v51, %v2787_v39  ;;  %v2620_v9 = vadd.f32 %v2619_v23, %v2451_v48  ;;  %v8832_v39 = vor.u32 %v6702_v55, %v5178_v33  ;;  %v8834_v23 = vor.u32 %v6698_v47, %v5180_v26 }
 0x21d   :  { %11715 = vst [vmem:[#allocation134_spill] sm:$0xff] %v8806_v1 }
 0x21e   :  { %11716 = vst [vmem:[#allocation135_spill] sm:$0xff] %v8832_v39 }
 0x21f   :  { %11717 = vst [vmem:[#allocation136_spill] sm:$0xff] %v8834_v23 }
 0x220   :  { %v2788_v28 = vpop.f32.mrf.mxu2  ;;  %v2453_v48 = vpop.f32.mrf.mxu0 }
 0x221   :  { %v2789_v51 = vadd.f32 %v2788_v28, %v2620_v9  ;;  %v2957_v31 = vpop.f32.mrf.mxu3  ;;  %v2454_v7 = vadd.f32 %v2453_v48, %v7656_v61  ;;  %v2622_v45 = vpop.f32.mrf.mxu1  ;;  %v5218_v28 = vld [vmem:[%s11336_s0 + $0x58] sm:$0xf]  ;;  %v5220_v48 = vld [vmem:[%s11336_s0 + $0x78] sm:$0xf0] }
 0x223   :  { %v8841_v1 = vadd.f32 %v2957_v31, %v2789_v51  ;;  %v2623_v35 = vadd.f32 %v2622_v45, %v2454_v7  ;;  %3008 = vmatmul.bf16.vlgmr.msrb.gmra.mxu0 %v8832_v39  ;;  %v5210_v7 = vld [vmem:[%s11336_s0 + $0x50] sm:$0xf]  ;;  %v6711_v51 = vld [vmem:[%s11336_s0 + $0x74] sm:$0xf0]  ;;  %v6707_v31 = vld [vmem:[%s11336_s0 + $0x5c] sm:$0xf] }
 0x224   :  { %3177 = vmatmul.bf16.vlgmr.msrb.gmra.mxu1 %v8834_v23  ;;  %v6710_v45 = vld [vmem:[%s11336_s0 + $0x6c] sm:$0xf0]  ;;  %v8881_v39 = vor.u32 %v6707_v31, %v5220_v48  ;;  %v5244_v48 = vld [vmem:[%s11336_s0 + $0xb0] sm:$0xf0] }
 0x225   :  { %11720 = vst [vmem:[#allocation139_spill] sm:$0xff] %v8841_v1  ;;  %3346 = vmatmul.bf16.vlgmr.msrb.gmra.mxu2 %v8836_v59 }
 0x226   :  { %3515 = vmatmul.bf16.vlgmr.msrb.gmra.mxu3 %v8839_v53  ;;  %v8878_v53 = vor.u32 %v6711_v51, %v5218_v28  ;;  %11725 = vst [vmem:[#allocation144_spill] sm:$0xff] %v8881_v39 }
 0x228   :  { %v2791_v9 = vpop.f32.mrf.mxu2  ;;  %v2455_v47 = vpop.f32.mrf.mxu0  ;;  %11724 = vst [vmem:[#allocation143_spill] sm:$0xff] %v8878_v53 }
 0x229   :  { %v2792_v33 = vadd.f32 %v2791_v9, %v2623_v35  ;;  %v2960_v55 = vpop.f32.mrf.mxu3  ;;  %v2456_v26 = vadd.f32 %v2455_v47, %v7656_v61  ;;  %v2624_v3 = vpop.f32.mrf.mxu1  ;;  %v6706_v35 = vld [vmem:[%s11336_s0 + $0x54] sm:$0xf] }
 0x22b   :  { %v8848_v27 = vadd.f32 %v2960_v55, %v2792_v33  ;;  %v2625_v15 = vadd.f32 %v2624_v3, %v2456_v26  ;;  %v8874_v33 = vor.u32 %v6710_v45, %v5210_v7  ;;  %v8876_v3 = vor.u32 %v6706_v35, %v5212_v13 }
 0x22d   :  { %11721 = vst [vmem:[#allocation140_spill] sm:$0xff] %v8848_v27 }
 0x22e   :  { %11722 = vst [vmem:[#allocation141_spill] sm:$0xff] %v8874_v33 }
 0x22f   :  { %11723 = vst [vmem:[#allocation142_spill] sm:$0xff] %v8876_v3 }
 0x230   :  { %v2793_v9 = vpop.f32.mrf.mxu2  ;;  %v2458_v26 = vpop.f32.mrf.mxu0 }
 0x231   :  { %v2794_v55 = vadd.f32 %v2793_v9, %v2625_v15  ;;  %v2962_v47 = vpop.f32.mrf.mxu3  ;;  %v2459_v59 = vadd.f32 %v2458_v26, %v7656_v61  ;;  %v2627_v23 = vpop.f32.mrf.mxu1  ;;  %v5250_v9 = vld [vmem:[%s11336_s0 + $0x98] sm:$0xf]  ;;  %v5252_v26 = vld [vmem:[%s11336_s0 + $0xb8] sm:$0xf0] }
 0x233   :  { %v8883_v27 = vadd.f32 %v2962_v47, %v2794_v55  ;;  %v2628_v1 = vadd.f32 %v2627_v23, %v2459_v59  ;;  %3013 = vmatmul.bf16.gmra.mxu0 %v8874_v33  ;;  %v5242_v59 = vld [vmem:[%s11336_s0 + $0x90] sm:$0xf]  ;;  %v6719_v55 = vld [vmem:[%s11336_s0 + $0xb4] sm:$0xf0]  ;;  %v6715_v47 = vld [vmem:[%s11336_s0 + $0x9c] sm:$0xf] }
 0x234   :  { %3182 = vmatmul.bf16.gmra.mxu1 %v8876_v3  ;;  %v6718_v23 = vld [vmem:[%s11336_s0 + $0xac] sm:$0xf0]  ;;  %v8923_v33 = vor.u32 %v6715_v47, %v5252_v26 }
 0x235   :  { %11726 = vst [vmem:[#allocation145_spill] sm:$0xff] %v8883_v27  ;;  %3351 = vmatmul.bf16.gmra.mxu2 %v8878_v53 }
 0x236   :  { %3520 = vmatmul.bf16.gmra.mxu3 %v8881_v39  ;;  %v8920_v39 = vor.u32 %v6719_v55, %v5250_v9  ;;  %11731 = vst [vmem:[#allocation150_spill] sm:$0xff] %v8923_v33 }
 0x238   :  { %v2796_v15 = vpop.f32.mrf.mxu2  ;;  %v2460_v35 = vpop.f32.mrf.mxu0  ;;  %11730 = vst [vmem:[#allocation149_spill] sm:$0xff] %v8920_v39 }
 0x239   :  { %v2797_v7 = vadd.f32 %v2796_v15, %v2628_v1  ;;  %v2965_v45 = vpop.f32.mrf.mxu3  ;;  %v2461_v13 = vadd.f32 %v2460_v35, %v7656_v61  ;;  %v2629_v28 = vpop.f32.mrf.mxu1  ;;  %v6714_v1 = vld [vmem:[%s11336_s0 + $0x94] sm:$0xf] }
 0x23b   :  { %v8890_v51 = vadd.f32 %v2965_v45, %v2797_v7  ;;  %v2630_v31 = vadd.f32 %v2629_v28, %v2461_v13  ;;  %v8916_v7 = vor.u32 %v6718_v23, %v5242_v59  ;;  %v8918_v28 = vor.u32 %v6714_v1, %v5244_v48  ;;  %v6364_v59 = vld [vmem:[%s11335_s1 + $0x168] sm:$0xf0]  ;;  %v7012_v1 = vld [vmem:[%s11335_s1 + $0x1e4] sm:$0xf] }
 0x23c   :  { %v6236_v23 = vld [vmem:[%s11335_s1 + $0x68] sm:$0xf0] }
 0x23d   :  { %11727 = vst [vmem:[#allocation146_spill] sm:$0xff] %v8890_v51  ;;  %v6428_v48 = vld [vmem:[%s11335_s1 + $0x1e8] sm:$0xf0] }
 0x23e   :  { %11728 = vst [vmem:[#allocation147_spill] sm:$0xff] %v8916_v7  ;;  %v6431_v47 = vor.u32 %v7012_v1, %v6428_v48  ;;  %v6726_v1 = vld [vmem:[%s11336_s0 + $0xec] sm:$0xf0]  ;;  %v6722_v48 = vld [vmem:[%s11336_s0 + $0xd4] sm:$0xf] }
 0x23f   :  { %11729 = vst [vmem:[#allocation148_spill] sm:$0xff] %v8918_v28 }
 0x240   :  { %v2798_v15 = vpop.f32.mrf.mxu2  ;;  %v2463_v13 = vpop.f32.mrf.mxu0  ;;  %4184 = vmatpush.bf16.msra.mxu3 %v6431_v47  ;;  %v6727_v47 = vld [vmem:[%s11336_s0 + $0xf4] sm:$0xf0] }
 0x241   :  { %v2799_v45 = vadd.f32 %v2798_v15, %v2630_v31  ;;  %v2967_v35 = vpop.f32.mrf.mxu3  ;;  %v2464_v53 = vadd.f32 %v2463_v13, %v7656_v61  ;;  %v2632_v3 = vpop.f32.mrf.mxu1  ;;  %v6996_v31 = vld [vmem:[%s11335_s1 + $0x164] sm:$0xf] }
 0x243   :  { %v8925_v51 = vadd.f32 %v2967_v35, %v2799_v45  ;;  %v2633_v27 = vadd.f32 %v2632_v3, %v2464_v53  ;;  %3018 = vmatmul.bf16.gmra.mxu0 %v8916_v7  ;;  %v6964_v53 = vld [vmem:[%s11335_s1 + $0x64] sm:$0xf]  ;;  %v6367_v3 = vor.u32 %v6996_v31, %v6364_v59 }
 0x244   :  { %3187 = vmatmul.bf16.gmra.mxu1 %v8918_v28  ;;  %v6239_v55 = vor.u32 %v6964_v53, %v6236_v23  ;;  %v6980_v59 = vld [vmem:[%s11335_s1 + $0xe4] sm:$0xf]  ;;  %v6300_v53 = vld [vmem:[%s11335_s1 + $0xe8] sm:$0xf0] }
 0x245   :  { %11732 = vst [vmem:[#allocation151_spill] sm:$0xff] %v8925_v51  ;;  %3356 = vmatmul.bf16.gmra.mxu2 %v8920_v39 }
 0x246   :  { %3525 = vmatmul.bf16.gmra.mxu3 %v8923_v33  ;;  %4015 = vmatpush.bf16.msra.mxu2 %v6367_v3  ;;  %v5274_v3 = vld [vmem:[%s11336_s0 + $0xd0] sm:$0xf] }
 0x247   :  { %3677 = vmatpush.bf16.msra.mxu0 %v6239_v55  ;;  %v5282_v55 = vld [vmem:[%s11336_s0 + $0xd8] sm:$0xf] }
 0x248   :  { %v2801_v9 = vpop.f32.mrf.mxu2  ;;  %v2465_v45 = vpop.f32.mrf.mxu0  ;;  %v8986_v39 = vor.u32 %v6727_v47, %v5282_v55 }
 0x249   :  { %v2802_v26 = vadd.f32 %v2801_v9, %v2633_v27  ;;  %v2970_v15 = vpop.f32.mrf.mxu3  ;;  %v2466_v35 = vadd.f32 %v2465_v45, %v7656_v61  ;;  %v2634_v13 = vpop.f32.mrf.mxu1  ;;  %v6303_v27 = vor.u32 %v6980_v59, %v6300_v53  ;;  %v5276_v9 = vld [vmem:[%s11336_s0 + $0xf0] sm:$0xf0] }
 0x24a   :  { %v8984_v33 = vor.u32 %v6722_v48, %v5276_v9  ;;  %11736 = vst [vmem:[#allocation155_spill] sm:$0xff] %v8986_v39 }
 0x24b   :  { %v8950_v31 = vadd.f32 %v2970_v15, %v2802_v26  ;;  %v2635_v23 = vadd.f32 %v2634_v13, %v2466_v35  ;;  %3846 = vmatpush.bf16.msra.mxu1 %v6303_v27  ;;  %v6723_v26 = vld [vmem:[%s11336_s0 + $0xdc] sm:$0xf]  ;;  %v8982_v35 = vor.u32 %v6726_v1, %v5274_v3 }
 0x24c   :  { %v5284_v15 = vld [vmem:[%s11336_s0 + $0xf8] sm:$0xf0]  ;;  %11735 = vst [vmem:[#allocation154_spill] sm:$0xff] %v8984_v33 }
 0x24d   :  { %11733 = vst [vmem:[#allocation152_spill] sm:$0xff] %v8950_v31  ;;  %v8989_v7 = vor.u32 %v6723_v26, %v5284_v15  ;;  %v6734_v15 = vld [vmem:[%s11336_s0 + $0x12c] sm:$0xf0] }
 0x24e   :  { %11734 = vst [vmem:[#allocation153_spill] sm:$0xff] %v8982_v35 }
 0x24f   :  { %11737 = vst [vmem:[#allocation156_spill] sm:$0xff] %v8989_v7 }
 0x250   :  { %v2803_v45 = vpop.f32.mrf.mxu2  ;;  %v2468_v53 = vpop.f32.mrf.mxu0 }
 0x251   :  { %v2804_v13 = vadd.f32 %v2803_v45, %v2635_v23  ;;  %v2972_v59 = vpop.f32.mrf.mxu3  ;;  %v2469_v27 = vadd.f32 %v2468_v53, %v7656_v61  ;;  %v2637_v28 = vpop.f32.mrf.mxu1  ;;  %v5308_v45 = vld [vmem:[%s11336_s0 + $0x130] sm:$0xf0]  ;;  %v6731_v53 = vld [vmem:[%s11336_s0 + $0x11c] sm:$0xf] }
 0x253   :  { %v8991_v31 = vadd.f32 %v2972_v59, %v2804_v13  ;;  %v2638_v51 = vadd.f32 %v2637_v28, %v2469_v27  ;;  %3023 = vmatmul.bf16.gmra.mxu0 %v8982_v35  ;;  %v5306_v28 = vld [vmem:[%s11336_s0 + $0x110] sm:$0xf]  ;;  %v5314_v13 = vld [vmem:[%s11336_s0 + $0x118] sm:$0xf]  ;;  %v5316_v27 = vld [vmem:[%s11336_s0 + $0x138] sm:$0xf0] }
 0x254   :  { %3192 = vmatmul.bf16.gmra.mxu1 %v8984_v33  ;;  %v6735_v59 = vld [vmem:[%s11336_s0 + $0x134] sm:$0xf0]  ;;  %v9031_v35 = vor.u32 %v6731_v53, %v5316_v27  ;;  %v5340_v27 = vld [vmem:[%s11336_s0 + $0x170] sm:$0xf0] }
 0x255   :  { %11738 = vst [vmem:[#allocation157_spill] sm:$0xff] %v8991_v31  ;;  %3361 = vmatmul.bf16.gmra.mxu2 %v8986_v39 }
 0x256   :  { %3530 = vmatmul.bf16.gmra.mxu3 %v8989_v7  ;;  %v9028_v7 = vor.u32 %v6735_v59, %v5314_v13  ;;  %11743 = vst [vmem:[#allocation162_spill] sm:$0xff] %v9031_v35 }
 0x258   :  { %v2806_v23 = vpop.f32.mrf.mxu2  ;;  %v2470_v48 = vpop.f32.mrf.mxu0  ;;  %11742 = vst [vmem:[#allocation161_spill] sm:$0xff] %v9028_v7 }
 0x259   :  { %v2807_v3 = vadd.f32 %v2806_v23, %v2638_v51  ;;  %v2975_v1 = vpop.f32.mrf.mxu3  ;;  %v2471_v9 = vadd.f32 %v2470_v48, %v7656_v61  ;;  %v2639_v55 = vpop.f32.mrf.mxu1  ;;  %v6730_v51 = vld [vmem:[%s11336_s0 + $0x114] sm:$0xf] }
 0x25b   :  { %v8998_v47 = vadd.f32 %v2975_v1, %v2807_v3  ;;  %v2640_v26 = vadd.f32 %v2639_v55, %v2471_v9  ;;  %v9024_v3 = vor.u32 %v6734_v15, %v5306_v28  ;;  %v9026_v55 = vor.u32 %v6730_v51, %v5308_v45 }
 0x25d   :  { %11739 = vst [vmem:[#allocation158_spill] sm:$0xff] %v8998_v47 }
 0x25e   :  { %11740 = vst [vmem:[#allocation159_spill] sm:$0xff] %v9024_v3 }
 0x25f   :  { %11741 = vst [vmem:[#allocation160_spill] sm:$0xff] %v9026_v55 }
 0x260   :  { %v2808_v23 = vpop.f32.mrf.mxu2  ;;  %v2473_v9 = vpop.f32.mrf.mxu0 }
 0x261   :  { %v2809_v1 = vadd.f32 %v2808_v23, %v2640_v26  ;;  %v2977_v48 = vpop.f32.mrf.mxu3  ;;  %v2474_v39 = vadd.f32 %v2473_v9, %v7656_v61  ;;  %v2642_v33 = vpop.f32.mrf.mxu1  ;;  %v5346_v23 = vld [vmem:[%s11336_s0 + $0x158] sm:$0xf]  ;;  %v5348_v9 = vld [vmem:[%s11336_s0 + $0x178] sm:$0xf0] }
 0x263   :  { %v9033_v47 = vadd.f32 %v2977_v48, %v2809_v1  ;;  %v2643_v31 = vadd.f32 %v2642_v33, %v2474_v39  ;;  %3028 = vmatmul.bf16.gmra.mxu0 %v9024_v3  ;;  %v5338_v39 = vld [vmem:[%s11336_s0 + $0x150] sm:$0xf]  ;;  %v6743_v1 = vld [vmem:[%s11336_s0 + $0x174] sm:$0xf0]  ;;  %v6739_v48 = vld [vmem:[%s11336_s0 + $0x15c] sm:$0xf] }
 0x264   :  { %3197 = vmatmul.bf16.gmra.mxu1 %v9026_v55  ;;  %v6742_v33 = vld [vmem:[%s11336_s0 + $0x16c] sm:$0xf0]  ;;  %v9073_v3 = vor.u32 %v6739_v48, %v5348_v9  ;;  %v5372_v9 = vld [vmem:[%s11336_s0 + $0x1b0] sm:$0xf0] }
 0x265   :  { %11744 = vst [vmem:[#allocation163_spill] sm:$0xff] %v9033_v47  ;;  %3366 = vmatmul.bf16.gmra.mxu2 %v9028_v7 }
 0x266   :  { %3535 = vmatmul.bf16.gmra.mxu3 %v9031_v35  ;;  %v9070_v35 = vor.u32 %v6743_v1, %v5346_v23  ;;  %11749 = vst [vmem:[#allocation168_spill] sm:$0xff] %v9073_v3 }
 0x268   :  { %v2811_v26 = vpop.f32.mrf.mxu2  ;;  %v2475_v51 = vpop.f32.mrf.mxu0  ;;  %11748 = vst [vmem:[#allocation167_spill] sm:$0xff] %v9070_v35 }
 0x269   :  { %v2812_v28 = vadd.f32 %v2811_v26, %v2643_v31  ;;  %v2980_v15 = vpop.f32.mrf.mxu3  ;;  %v2476_v45 = vadd.f32 %v2475_v51, %v7656_v61  ;;  %v2644_v13 = vpop.f32.mrf.mxu1  ;;  %v6738_v31 = vld [vmem:[%s11336_s0 + $0x154] sm:$0xf] }
 0x26b   :  { %v9040_v59 = vadd.f32 %v2980_v15, %v2812_v28  ;;  %v2645_v53 = vadd.f32 %v2644_v13, %v2476_v45  ;;  %v9066_v28 = vor.u32 %v6742_v33, %v5338_v39  ;;  %v9068_v13 = vor.u32 %v6738_v31, %v5340_v27 }
 0x26d   :  { %11745 = vst [vmem:[#allocation164_spill] sm:$0xff] %v9040_v59 }
 0x26e   :  { %11746 = vst [vmem:[#allocation165_spill] sm:$0xff] %v9066_v28 }
 0x26f   :  { %11747 = vst [vmem:[#allocation166_spill] sm:$0xff] %v9068_v13 }
 0x270   :  { %v2813_v26 = vpop.f32.mrf.mxu2  ;;  %v2478_v45 = vpop.f32.mrf.mxu0 }
 0x271   :  { %v2814_v15 = vadd.f32 %v2813_v26, %v2645_v53  ;;  %v2982_v51 = vpop.f32.mrf.mxu3  ;;  %v2479_v7 = vadd.f32 %v2478_v45, %v7656_v61  ;;  %v2647_v55 = vpop.f32.mrf.mxu1  ;;  %v5378_v26 = vld [vmem:[%s11336_s0 + $0x198] sm:$0xf]  ;;  %v5380_v45 = vld [vmem:[%s11336_s0 + $0x1b8] sm:$0xf0] }
 0x273   :  { %v9075_v59 = vadd.f32 %v2982_v51, %v2814_v15  ;;  %v2648_v47 = vadd.f32 %v2647_v55, %v2479_v7  ;;  %3033 = vmatmul.bf16.gmra.mxu0 %v9066_v28  ;;  %v5370_v7 = vld [vmem:[%s11336_s0 + $0x190] sm:$0xf]  ;;  %v6751_v15 = vld [vmem:[%s11336_s0 + $0x1b4] sm:$0xf0]  ;;  %v6747_v51 = vld [vmem:[%s11336_s0 + $0x19c] sm:$0xf] }
 0x274   :  { %3202 = vmatmul.bf16.gmra.mxu1 %v9068_v13  ;;  %v6750_v55 = vld [vmem:[%s11336_s0 + $0x1ac] sm:$0xf0]  ;;  %v9115_v28 = vor.u32 %v6747_v51, %v5380_v45 }
 0x275   :  { %11750 = vst [vmem:[#allocation169_spill] sm:$0xff] %v9075_v59  ;;  %3371 = vmatmul.bf16.gmra.mxu2 %v9070_v35 }
 0x276   :  { %3540 = vmatmul.bf16.gmra.mxu3 %v9073_v3  ;;  %v9112_v3 = vor.u32 %v6751_v15, %v5378_v26  ;;  %11755 = vst [vmem:[#allocation174_spill] sm:$0xff] %v9115_v28 }
 0x278   :  { %v2816_v53 = vpop.f32.mrf.mxu2  ;;  %v2480_v31 = vpop.f32.mrf.mxu0  ;;  %11754 = vst [vmem:[#allocation173_spill] sm:$0xff] %v9112_v3 }
 0x279   :  { %v2817_v39 = vadd.f32 %v2816_v53, %v2648_v47  ;;  %v2985_v33 = vpop.f32.mrf.mxu3  ;;  %v2481_v27 = vadd.f32 %v2480_v31, %v7656_v61  ;;  %v2649_v23 = vpop.f32.mrf.mxu1  ;;  %v6746_v47 = vld [vmem:[%s11336_s0 + $0x194] sm:$0xf] }
 0x27b   :  { %v9082_v1 = vadd.f32 %v2985_v33, %v2817_v39  ;;  %v2650_v48 = vadd.f32 %v2649_v23, %v2481_v27  ;;  %v9108_v39 = vor.u32 %v6750_v55, %v5370_v7  ;;  %v9110_v23 = vor.u32 %v6746_v47, %v5372_v9  ;;  %v6356_v7 = vld [vmem:[%s11335_s1 + $0x158] sm:$0xf0]  ;;  %v7010_v47 = vld [vmem:[%s11335_s1 + $0x1d4] sm:$0xf] }
 0x27c   :  { %v6228_v55 = vld [vmem:[%s11335_s1 + $0x58] sm:$0xf0] }
 0x27d   :  { %11751 = vst [vmem:[#allocation170_spill] sm:$0xff] %v9082_v1  ;;  %v6420_v9 = vld [vmem:[%s11335_s1 + $0x1d8] sm:$0xf0] }
 0x27e   :  { %11752 = vst [vmem:[#allocation171_spill] sm:$0xff] %v9108_v39  ;;  %v6423_v51 = vor.u32 %v7010_v47, %v6420_v9  ;;  %v6758_v47 = vld [vmem:[%s11336_s0 + $0x1ec] sm:$0xf0]  ;;  %v6754_v9 = vld [vmem:[%s11336_s0 + $0x1d4] sm:$0xf] }
 0x27f   :  { %11753 = vst [vmem:[#allocation172_spill] sm:$0xff] %v9110_v23 }
 0x280   :  { %v2818_v53 = vpop.f32.mrf.mxu2  ;;  %v2483_v27 = vpop.f32.mrf.mxu0  ;;  %4185 = vmatpush.bf16.msra.mxu3 %v6423_v51  ;;  %v6759_v51 = vld [vmem:[%s11336_s0 + $0x1f4] sm:$0xf0] }
 0x281   :  { %v2819_v33 = vadd.f32 %v2818_v53, %v2650_v48  ;;  %v2987_v31 = vpop.f32.mrf.mxu3  ;;  %v2484_v35 = vadd.f32 %v2483_v27, %v7656_v61  ;;  %v2652_v13 = vpop.f32.mrf.mxu1  ;;  %v6994_v48 = vld [vmem:[%s11335_s1 + $0x154] sm:$0xf] }
 0x283   :  { %v9117_v1 = vadd.f32 %v2987_v31, %v2819_v33  ;;  %v2653_v59 = vadd.f32 %v2652_v13, %v2484_v35  ;;  %3038 = vmatmul.bf16.gmra.mxu0 %v9108_v39  ;;  %v6962_v35 = vld [vmem:[%s11335_s1 + $0x54] sm:$0xf]  ;;  %v6359_v13 = vor.u32 %v6994_v48, %v6356_v7 }
 0x284   :  { %3207 = vmatmul.bf16.gmra.mxu1 %v9110_v23  ;;  %v6231_v15 = vor.u32 %v6962_v35, %v6228_v55  ;;  %v6978_v7 = vld [vmem:[%s11335_s1 + $0xd4] sm:$0xf]  ;;  %v6292_v35 = vld [vmem:[%s11335_s1 + $0xd8] sm:$0xf0] }
 0x285   :  { %11756 = vst [vmem:[#allocation175_spill] sm:$0xff] %v9117_v1  ;;  %3376 = vmatmul.bf16.gmra.mxu2 %v9112_v3 }
 0x286   :  { %3545 = vmatmul.bf16.gmra.mxu3 %v9115_v28  ;;  %4016 = vmatpush.bf16.msra.mxu2 %v6359_v13  ;;  %v5402_v13 = vld [vmem:[%s11336_s0 + $0x1d0] sm:$0xf] }
 0x287   :  { %3678 = vmatpush.bf16.msra.mxu0 %v6231_v15  ;;  %v5410_v15 = vld [vmem:[%s11336_s0 + $0x1d8] sm:$0xf] }
 0x288   :  { %v2821_v26 = vpop.f32.mrf.mxu2  ;;  %v2485_v33 = vpop.f32.mrf.mxu0  ;;  %v9178_v3 = vor.u32 %v6759_v51, %v5410_v15 }
 0x289   :  { %v2822_v45 = vadd.f32 %v2821_v26, %v2653_v59  ;;  %v2990_v53 = vpop.f32.mrf.mxu3  ;;  %v2486_v31 = vadd.f32 %v2485_v33, %v7656_v61  ;;  %v2654_v27 = vpop.f32.mrf.mxu1  ;;  %v6295_v59 = vor.u32 %v6978_v7, %v6292_v35  ;;  %v5404_v26 = vld [vmem:[%s11336_s0 + $0x1f0] sm:$0xf0] }
 0x28a   :  { %v9176_v28 = vor.u32 %v6754_v9, %v5404_v26  ;;  %11760 = vst [vmem:[#allocation179_spill] sm:$0xff] %v9178_v3 }
 0x28b   :  { %v9142_v48 = vadd.f32 %v2990_v53, %v2822_v45  ;;  %v2655_v55 = vadd.f32 %v2654_v27, %v2486_v31  ;;  %3847 = vmatpush.bf16.msra.mxu1 %v6295_v59  ;;  %v6755_v45 = vld [vmem:[%s11336_s0 + $0x1dc] sm:$0xf]  ;;  %v9174_v31 = vor.u32 %v6758_v47, %v5402_v13 }
 0x28c   :  { %v5412_v53 = vld [vmem:[%s11336_s0 + $0x1f8] sm:$0xf0]  ;;  %11759 = vst [vmem:[#allocation178_spill] sm:$0xff] %v9176_v28 }
 0x28d   :  { %11757 = vst [vmem:[#allocation176_spill] sm:$0xff] %v9142_v48  ;;  %v9181_v39 = vor.u32 %v6755_v45, %v5412_v53  ;;  %v6766_v53 = vld [vmem:[%s11336_s0 + $0x22c] sm:$0xf0] }
 0x28e   :  { %11758 = vst [vmem:[#allocation177_spill] sm:$0xff] %v9174_v31 }
 0x28f   :  { %11761 = vst [vmem:[#allocation180_spill] sm:$0xff] %v9181_v39 }
 0x290   :  { %v2823_v33 = vpop.f32.mrf.mxu2  ;;  %v2488_v35 = vpop.f32.mrf.mxu0 }
 0x291   :  { %v2824_v27 = vadd.f32 %v2823_v33, %v2655_v55  ;;  %v2992_v7 = vpop.f32.mrf.mxu3  ;;  %v2489_v59 = vadd.f32 %v2488_v35, %v7656_v61  ;;  %v2657_v23 = vpop.f32.mrf.mxu1  ;;  %v5442_v33 = vld [vmem:[%s11336_s0 + $0x218] sm:$0xf]  ;;  %v5444_v35 = vld [vmem:[%s11336_s0 + $0x238] sm:$0xf0] }
 0x293   :  { %v9183_v48 = vadd.f32 %v2992_v7, %v2824_v27  ;;  %v2658_v1 = vadd.f32 %v2657_v23, %v2489_v59  ;;  %3043 = vmatmul.bf16.gmra.mxu0 %v9174_v31  ;;  %v5434_v23 = vld [vmem:[%s11336_s0 + $0x210] sm:$0xf]  ;;  %v6767_v27 = vld [vmem:[%s11336_s0 + $0x234] sm:$0xf0]  ;;  %v6763_v7 = vld [vmem:[%s11336_s0 + $0x21c] sm:$0xf] }
 0x294   :  { %3212 = vmatmul.bf16.gmra.mxu1 %v9176_v28  ;;  %v9223_v28 = vor.u32 %v6763_v7, %v5444_v35  ;;  %v5474_v7 = vld [vmem:[%s11336_s0 + $0x258] sm:$0xf] }
 0x295   :  { %3381 = vmatmul.bf16.gmra.mxu2 %v9178_v3  ;;  %v6775_v35 = vld [vmem:[%s11336_s0 + $0x274] sm:$0xf0] }
 0x296   :  { %3550 = vmatmul.bf16.gmra.mxu3 %v9181_v39  ;;  %11765 = vst [vmem:[#allocation184_spill] sm:$0xff] %v9223_v28 }
 0x298   :  { %v2826_v55 = vpop.f32.mrf.mxu2  ;;  %v2490_v9 = vpop.f32.mrf.mxu0 }
 0x299   :  { %v2827_v13 = vadd.f32 %v2826_v55, %v2658_v1  ;;  %v2995_v47 = vpop.f32.mrf.mxu3  ;;  %v2491_v26 = vadd.f32 %v2490_v9, %v7656_v61  ;;  %v2659_v15 = vpop.f32.mrf.mxu1  ;;  %v6762_v1 = vld [vmem:[%s11336_s0 + $0x214] sm:$0xf]  ;;  %v9216_v55 = vor.u32 %v6766_v53, %v5434_v23 }
 0x29a   :  { %v5436_v61 = vld [vmem:[%s11336_s0 + $0x230] sm:$0xf0] }
 0x29b   :  { %v9190_v51 = vadd.f32 %v2995_v47, %v2827_v13  ;;  %v2660_v45 = vadd.f32 %v2659_v15, %v2491_v26  ;;  %v9218_v26 = vor.u32 %v6762_v1, %v5436_v61  ;;  %v9220_v15 = vor.u32 %v6767_v27, %v5442_v33 }
 0x29d   :  { %11762 = vst [vmem:[#allocation181_spill] sm:$0xff] %v9190_v51 }
 0x29e   :  { %11763 = vst [vmem:[#allocation182_spill] sm:$0xff] %v9218_v26 }
 0x29f   :  { %11764 = vst [vmem:[#allocation183_spill] sm:$0xff] %v9220_v15 }
 0x2a0   :  { %v2828_v59 = vpop.f32.mrf.mxu2  ;;  %v3009_v9 = vpop.f32.mrf.mxu0 }
 0x2a1   :  { %v2829_v13 = vadd.f32 %v2828_v59, %v2660_v45  ;;  %v2997_v47 = vpop.f32.mrf.mxu3  ;;  %v3010_v39 = vadd.f32 %v3009_v9, %v7696_v40  ;;  %v3178_v3 = vpop.f32.mrf.mxu1  ;;  %v6771_v59 = vld [vmem:[%s11336_s0 + $0x25c] sm:$0xf] }
 0x2a3   :  { %v9225_v31 = vadd.f32 %v2997_v47, %v2829_v13  ;;  %v3179_v51 = vadd.f32 %v3178_v3, %v3010_v39  ;;  %3048 = vmatmul.bf16.gmra.mxu0 %v9216_v55  ;;  %v5466_v3 = vld [vmem:[%s11336_s0 + $0x250] sm:$0xf]  ;;  %v5476_v13 = vld [vmem:[%s11336_s0 + $0x278] sm:$0xf0] }
 0x2a4   :  { %3217 = vmatmul.bf16.gmra.mxu1 %v9218_v26  ;;  %v6774_v39 = vld [vmem:[%s11336_s0 + $0x26c] sm:$0xf0] }
 0x2a5   :  { %3386 = vmatmul.bf16.gmra.mxu2 %v9220_v15  ;;  %v9258_v9 = vor.u32 %v6774_v39, %v5466_v3 }
 0x2a6   :  { %3555 = vmatmul.bf16.gmra.mxu3 %v9223_v28  ;;  %v9265_v28 = vor.u32 %v6771_v59, %v5476_v13  ;;  %v6782_v59 = vld [vmem:[%s11336_s0 + $0x2ac] sm:$0xf0]  ;;  %v5506_v13 = vld [vmem:[%s11336_s0 + $0x298] sm:$0xf] }
 0x2a8   :  { %v3347_v45 = vpop.f32.mrf.mxu2  ;;  %v3011_v1 = vpop.f32.mrf.mxu0  ;;  %11769 = vst [vmem:[#allocation188_spill] sm:$0xff] %v9265_v28 }
 0x2a9   :  { %v3348_v23 = vadd.f32 %v3347_v45, %v3179_v51  ;;  %v3516_v53 = vpop.f32.mrf.mxu3  ;;  %v3012_v40 = vadd.f32 %v3011_v1, %v7731_v29  ;;  %v3180_v61 = vpop.f32.mrf.mxu1  ;;  %v6770_v51 = vld [vmem:[%s11336_s0 + $0x254] sm:$0xf] }
 0x2aa   :  { %v5468_v29 = vld [vmem:[%s11336_s0 + $0x270] sm:$0xf0] }
 0x2ab   :  { %v9232_v33 = vadd.f32 %v3516_v53, %v3348_v23  ;;  %v3181_v27 = vadd.f32 %v3180_v61, %v3012_v40  ;;  %v9260_v1 = vor.u32 %v6770_v51, %v5468_v29  ;;  %v9262_v40 = vor.u32 %v6775_v35, %v5474_v7 }
 0x2ad   :  { %11766 = vst [vmem:[#allocation185_spill] sm:$0xff] %v9232_v33 }
 0x2ae   :  { %11767 = vst [vmem:[#allocation186_spill] sm:$0xff] %v9260_v1 }
 0x2af   :  { %11768 = vst [vmem:[#allocation187_spill] sm:$0xff] %v9262_v40 }
 0x2b0   :  { %v3349_v47 = vpop.f32.mrf.mxu2  ;;  %v3014_v53 = vpop.f32.mrf.mxu0 }
 0x2b1   :  { %v3350_v45 = vadd.f32 %v3349_v47, %v3181_v27  ;;  %v3518_v23 = vpop.f32.mrf.mxu3  ;;  %v3015_v61 = vadd.f32 %v3014_v53, %v7738_v42  ;;  %v3183_v33 = vpop.f32.mrf.mxu1  ;;  %v6783_v47 = vld [vmem:[%s11336_s0 + $0x2b4] sm:$0xf0] }
 0x2b3   :  { %v9267_v15 = vadd.f32 %v3518_v23, %v3350_v45  ;;  %v3184_v26 = vadd.f32 %v3183_v33, %v3015_v61  ;;  %3053 = vmatmul.bf16.gmra.mxu0 %v9258_v9  ;;  %v5498_v33 = vld [vmem:[%s11336_s0 + $0x290] sm:$0xf]  ;;  %v6779_v45 = vld [vmem:[%s11336_s0 + $0x29c] sm:$0xf] }
 0x2b4   :  { %3222 = vmatmul.bf16.gmra.mxu1 %v9260_v1  ;;  %v5508_v23 = vld [vmem:[%s11336_s0 + $0x2b8] sm:$0xf0]  ;;  %v9300_v61 = vor.u32 %v6782_v59, %v5498_v33  ;;  %v6220_v59 = vld [vmem:[%s11335_s1 + $0x48] sm:$0xf0] }
 0x2b5   :  { %3391 = vmatmul.bf16.gmra.mxu2 %v9262_v40 }
 0x2b6   :  { %3560 = vmatmul.bf16.gmra.mxu3 %v9265_v28  ;;  %v9307_v28 = vor.u32 %v6779_v45, %v5508_v23 }
 0x2b8   :  { %v3352_v27 = vpop.f32.mrf.mxu2  ;;  %v3016_v51 = vpop.f32.mrf.mxu0  ;;  %11773 = vst [vmem:[#allocation192_spill] sm:$0xff] %v9307_v28 }
 0x2b9   :  { %v3353_v3 = vadd.f32 %v3352_v27, %v3184_v26  ;;  %v3521_v39 = vpop.f32.mrf.mxu3  ;;  %v3017_v42 = vadd.f32 %v3016_v51, %v7773_v41  ;;  %v3185_v29 = vpop.f32.mrf.mxu1  ;;  %v6778_v26 = vld [vmem:[%s11336_s0 + $0x294] sm:$0xf] }
 0x2ba   :  { %v5500_v41 = vld [vmem:[%s11336_s0 + $0x2b0] sm:$0xf0] }
 0x2bb   :  { %v9274_v7 = vadd.f32 %v3521_v39, %v3353_v3  ;;  %v3186_v35 = vadd.f32 %v3185_v29, %v3017_v42  ;;  %v9302_v51 = vor.u32 %v6778_v26, %v5500_v41  ;;  %v9304_v42 = vor.u32 %v6783_v47, %v5506_v13  ;;  %v7008_v26 = vld [vmem:[%s11335_s1 + $0x1c4] sm:$0xf]  ;;  %v6412_v41 = vld [vmem:[%s11335_s1 + $0x1c8] sm:$0xf0] }
 0x2bc   :  { %v6415_v45 = vor.u32 %v7008_v26, %v6412_v41  ;;  %v5532_v26 = vld [vmem:[%s11336_s0 + $0x2f0] sm:$0xf0]  ;;  %v5538_v41 = vld [vmem:[%s11336_s0 + $0x2d8] sm:$0xf] }
 0x2bd   :  { %11770 = vst [vmem:[#allocation189_spill] sm:$0xff] %v9274_v7 }
 0x2be   :  { %11771 = vst [vmem:[#allocation190_spill] sm:$0xff] %v9302_v51  ;;  %4186 = vmatpush.bf16.msra.mxu3 %v6415_v45  ;;  %v5540_v45 = vld [vmem:[%s11336_s0 + $0x2f8] sm:$0xf0] }
 0x2bf   :  { %11772 = vst [vmem:[#allocation191_spill] sm:$0xff] %v9304_v42 }
 0x2c0   :  { %v3354_v53 = vpop.f32.mrf.mxu2  ;;  %v3019_v39 = vpop.f32.mrf.mxu0 }
 0x2c1   :  { %v3355_v27 = vadd.f32 %v3354_v53, %v3186_v35  ;;  %v3523_v3 = vpop.f32.mrf.mxu3  ;;  %v3020_v29 = vadd.f32 %v3019_v39, %v7798_v43  ;;  %v3188_v7 = vpop.f32.mrf.mxu1  ;;  %v6992_v35 = vld [vmem:[%s11335_s1 + $0x144] sm:$0xf]  ;;  %v6348_v43 = vld [vmem:[%s11335_s1 + $0x148] sm:$0xf0] }
 0x2c2   :  { %v6351_v33 = vor.u32 %v6992_v35, %v6348_v43  ;;  %v6976_v35 = vld [vmem:[%s11335_s1 + $0xc4] sm:$0xf]  ;;  %v6284_v43 = vld [vmem:[%s11335_s1 + $0xc8] sm:$0xf0] }
 0x2c3   :  { %v9309_v40 = vadd.f32 %v3523_v3, %v3355_v27  ;;  %v3189_v1 = vadd.f32 %v3188_v7, %v3020_v29  ;;  %3058 = vmatmul.bf16.gmra.mxu0 %v9300_v61  ;;  %v6960_v7 = vld [vmem:[%s11335_s1 + $0x44] sm:$0xf] }
 0x2c4   :  { %3227 = vmatmul.bf16.gmra.mxu1 %v9302_v51  ;;  %v6223_v47 = vor.u32 %v6960_v7, %v6220_v59  ;;  %4017 = vmatpush.bf16.msra.mxu2 %v6351_v33  ;;  %v5530_v33 = vld [vmem:[%s11336_s0 + $0x2d0] sm:$0xf]  ;;  %v6786_v59 = vld [vmem:[%s11336_s0 + $0x2d4] sm:$0xf] }
 0x2c5   :  { %3396 = vmatmul.bf16.gmra.mxu2 %v9304_v42 }
 0x2c6   :  { %3565 = vmatmul.bf16.gmra.mxu3 %v9307_v28  ;;  %3679 = vmatpush.bf16.msra.mxu0 %v6223_v47  ;;  %v6787_v47 = vld [vmem:[%s11336_s0 + $0x2dc] sm:$0xf] }
 0x2c7   :  { %v9373_v28 = vor.u32 %v6787_v47, %v5540_v45  ;;  %v6798_v47 = vld [vmem:[%s11336_s0 + $0x32c] sm:$0xf0]  ;;  %v5570_v45 = vld [vmem:[%s11336_s0 + $0x318] sm:$0xf] }
 0x2c8   :  { %v3357_v13 = vpop.f32.mrf.mxu2  ;;  %v3021_v27 = vpop.f32.mrf.mxu0 }
 0x2c9   :  { %v3358_v23 = vadd.f32 %v3357_v13, %v3189_v1  ;;  %v3526_v53 = vpop.f32.mrf.mxu3  ;;  %v3022_v3 = vadd.f32 %v3021_v27, %v7839_v17  ;;  %v3190_v39 = vpop.f32.mrf.mxu1  ;;  %v6287_v1 = vor.u32 %v6976_v35, %v6284_v43  ;;  %v6790_v17 = vld [vmem:[%s11336_s0 + $0x2ec] sm:$0xf0]  ;;  %v6791_v13 = vld [vmem:[%s11336_s0 + $0x2f4] sm:$0xf0]  ;;  %v9368_v35 = vor.u32 %v6786_v59, %v5532_v26  ;;  %11777 = vst [vmem:[#allocation196_spill] sm:$0xff] %v9373_v28 }
 0x2ca   :  { %v9370_v43 = vor.u32 %v6791_v13, %v5538_v41 }
 0x2cb   :  { %v9334_v29 = vadd.f32 %v3526_v53, %v3358_v23  ;;  %v3191_v7 = vadd.f32 %v3190_v39, %v3022_v3  ;;  %3848 = vmatpush.bf16.msra.mxu1 %v6287_v1  ;;  %v9366_v53 = vor.u32 %v6790_v17, %v5530_v33  ;;  %11775 = vst [vmem:[#allocation194_spill] sm:$0xff] %v9368_v35 }
 0x2cc   :  { %11776 = vst [vmem:[#allocation195_spill] sm:$0xff] %v9370_v43 }
 0x2cd   :  { %11774 = vst [vmem:[#allocation193_spill] sm:$0xff] %v9334_v29 }
 0x2d0   :  { %v3359_v23 = vpop.f32.mrf.mxu2  ;;  %v3024_v39 = vpop.f32.mrf.mxu0 }
 0x2d1   :  { %v3360_v27 = vadd.f32 %v3359_v23, %v3191_v7  ;;  %v3528_v3 = vpop.f32.mrf.mxu3  ;;  %v3025_v1 = vadd.f32 %v3024_v39, %v7846_v10  ;;  %v3193_v29 = vpop.f32.mrf.mxu1  ;;  %v6799_v23 = vld [vmem:[%s11336_s0 + $0x334] sm:$0xf0] }
 0x2d3   :  { %v9375_v42 = vadd.f32 %v3528_v3, %v3360_v27  ;;  %v3194_v51 = vadd.f32 %v3193_v29, %v3025_v1  ;;  %3063 = vmatmul.bf16.gmra.mxu0 %v9366_v53  ;;  %v5562_v29 = vld [vmem:[%s11336_s0 + $0x310] sm:$0xf]  ;;  %v6795_v27 = vld [vmem:[%s11336_s0 + $0x31c] sm:$0xf] }
 0x2d4   :  { %3232 = vmatmul.bf16.gmra.mxu1 %v9368_v35  ;;  %v5572_v3 = vld [vmem:[%s11336_s0 + $0x338] sm:$0xf0]  ;;  %v9408_v1 = vor.u32 %v6798_v47, %v5562_v29 }
 0x2d5   :  { %3401 = vmatmul.bf16.gmra.mxu2 %v9370_v43 }
 0x2d6   :  { %3570 = vmatmul.bf16.gmra.mxu3 %v9373_v28  ;;  %v9415_v28 = vor.u32 %v6795_v27, %v5572_v3  ;;  %v6806_v27 = vld [vmem:[%s11336_s0 + $0x36c] sm:$0xf0]  ;;  %v5602_v3 = vld [vmem:[%s11336_s0 + $0x358] sm:$0xf] }
 0x2d8   :  { %v3362_v7 = vpop.f32.mrf.mxu2  ;;  %v3026_v59 = vpop.f32.mrf.mxu0  ;;  %11781 = vst [vmem:[#allocation200_spill] sm:$0xff] %v9415_v28 }
 0x2d9   :  { %v3363_v33 = vadd.f32 %v3362_v7, %v3194_v51  ;;  %v3531_v17 = vpop.f32.mrf.mxu3  ;;  %v3027_v10 = vadd.f32 %v3026_v59, %v7881_v8  ;;  %v3195_v26 = vpop.f32.mrf.mxu1  ;;  %v6794_v51 = vld [vmem:[%s11336_s0 + $0x314] sm:$0xf] }
 0x2da   :  { %v5564_v8 = vld [vmem:[%s11336_s0 + $0x330] sm:$0xf0] }
 0x2db   :  { %v9382_v41 = vadd.f32 %v3531_v17, %v3363_v33  ;;  %v3196_v13 = vadd.f32 %v3195_v26, %v3027_v10  ;;  %v9410_v59 = vor.u32 %v6794_v51, %v5564_v8  ;;  %v9412_v10 = vor.u32 %v6799_v23, %v5570_v45 }
 0x2dd   :  { %11778 = vst [vmem:[#allocation197_spill] sm:$0xff] %v9382_v41 }
 0x2de   :  { %11779 = vst [vmem:[#allocation198_spill] sm:$0xff] %v9410_v59 }
 0x2df   :  { %11780 = vst [vmem:[#allocation199_spill] sm:$0xff] %v9412_v10 }
 0x2e0   :  { %v3364_v39 = vpop.f32.mrf.mxu2  ;;  %v3029_v17 = vpop.f32.mrf.mxu0 }
 0x2e1   :  { %v3365_v7 = vadd.f32 %v3364_v39, %v3196_v13  ;;  %v3533_v33 = vpop.f32.mrf.mxu3  ;;  %v3030_v26 = vadd.f32 %v3029_v17, %v7888_v44  ;;  %v3198_v41 = vpop.f32.mrf.mxu1  ;;  %v6807_v39 = vld [vmem:[%s11336_s0 + $0x374] sm:$0xf0] }
 0x2e3   :  { %v9417_v43 = vadd.f32 %v3533_v33, %v3365_v7  ;;  %v3199_v35 = vadd.f32 %v3198_v41, %v3030_v26  ;;  %3068 = vmatmul.bf16.gmra.mxu0 %v9408_v1  ;;  %v5594_v41 = vld [vmem:[%s11336_s0 + $0x350] sm:$0xf]  ;;  %v6803_v7 = vld [vmem:[%s11336_s0 + $0x35c] sm:$0xf] }
 0x2e4   :  { %3237 = vmatmul.bf16.gmra.mxu1 %v9410_v59  ;;  %v5604_v33 = vld [vmem:[%s11336_s0 + $0x378] sm:$0xf0]  ;;  %v9450_v26 = vor.u32 %v6806_v27, %v5594_v41 }
 0x2e5   :  { %3406 = vmatmul.bf16.gmra.mxu2 %v9412_v10 }
 0x2e6   :  { %3575 = vmatmul.bf16.gmra.mxu3 %v9415_v28  ;;  %v9457_v28 = vor.u32 %v6803_v7, %v5604_v33  ;;  %v6814_v7 = vld [vmem:[%s11336_s0 + $0x3ac] sm:$0xf0]  ;;  %v5634_v33 = vld [vmem:[%s11336_s0 + $0x398] sm:$0xf] }
 0x2e8   :  { %v3367_v13 = vpop.f32.mrf.mxu2  ;;  %v3031_v51 = vpop.f32.mrf.mxu0  ;;  %11785 = vst [vmem:[#allocation204_spill] sm:$0xff] %v9457_v28 }
 0x2e9   :  { %v3368_v29 = vadd.f32 %v3367_v13, %v3199_v35  ;;  %v3536_v47 = vpop.f32.mrf.mxu3  ;;  %v3032_v44 = vadd.f32 %v3031_v51, %v7923_v25  ;;  %v3200_v8 = vpop.f32.mrf.mxu1  ;;  %v6802_v35 = vld [vmem:[%s11336_s0 + $0x354] sm:$0xf] }
 0x2ea   :  { %v5596_v25 = vld [vmem:[%s11336_s0 + $0x370] sm:$0xf0] }
 0x2eb   :  { %v9424_v45 = vadd.f32 %v3536_v47, %v3368_v29  ;;  %v3201_v23 = vadd.f32 %v3200_v8, %v3032_v44  ;;  %v9452_v51 = vor.u32 %v6802_v35, %v5596_v25  ;;  %v9454_v44 = vor.u32 %v6807_v39, %v5602_v3 }
 0x2ed   :  { %11782 = vst [vmem:[#allocation201_spill] sm:$0xff] %v9424_v45 }
 0x2ee   :  { %11783 = vst [vmem:[#allocation202_spill] sm:$0xff] %v9452_v51 }
 0x2ef   :  { %11784 = vst [vmem:[#allocation203_spill] sm:$0xff] %v9454_v44 }
 0x2f0   :  { %v3369_v17 = vpop.f32.mrf.mxu2  ;;  %v3034_v47 = vpop.f32.mrf.mxu0 }
 0x2f1   :  { %v3370_v13 = vadd.f32 %v3369_v17, %v3201_v23  ;;  %v3538_v29 = vpop.f32.mrf.mxu3  ;;  %v3035_v8 = vadd.f32 %v3034_v47, %v7930_v60  ;;  %v3203_v45 = vpop.f32.mrf.mxu1  ;;  %v6815_v17 = vld [vmem:[%s11336_s0 + $0x3b4] sm:$0xf0] }
 0x2f3   :  { %v9459_v10 = vadd.f32 %v3538_v29, %v3370_v13  ;;  %v3204_v59 = vadd.f32 %v3203_v45, %v3035_v8  ;;  %3073 = vmatmul.bf16.gmra.mxu0 %v9450_v26  ;;  %v5626_v45 = vld [vmem:[%s11336_s0 + $0x390] sm:$0xf]  ;;  %v6811_v13 = vld [vmem:[%s11336_s0 + $0x39c] sm:$0xf] }
 0x2f4   :  { %3242 = vmatmul.bf16.gmra.mxu1 %v9452_v51  ;;  %v5636_v29 = vld [vmem:[%s11336_s0 + $0x3b8] sm:$0xf0]  ;;  %v9492_v8 = vor.u32 %v6814_v7, %v5626_v45 }
 0x2f5   :  { %3411 = vmatmul.bf16.gmra.mxu2 %v9454_v44  ;;  %v6212_v7 = vld [vmem:[%s11335_s1 + $0x38] sm:$0xf0] }
 0x2f6   :  { %3580 = vmatmul.bf16.gmra.mxu3 %v9457_v28  ;;  %v9499_v28 = vor.u32 %v6811_v13, %v5636_v29 }
 0x2f8   :  { %v3372_v23 = vpop.f32.mrf.mxu2  ;;  %v3036_v35 = vpop.f32.mrf.mxu0  ;;  %11789 = vst [vmem:[#allocation208_spill] sm:$0xff] %v9499_v28 }
 0x2f9   :  { %v3373_v41 = vadd.f32 %v3372_v23, %v3204_v59  ;;  %v3541_v27 = vpop.f32.mrf.mxu3  ;;  %v3037_v60 = vadd.f32 %v3036_v35, %v7965_v18  ;;  %v3205_v25 = vpop.f32.mrf.mxu1  ;;  %v6810_v59 = vld [vmem:[%s11336_s0 + $0x394] sm:$0xf] }
 0x2fa   :  { %v5628_v18 = vld [vmem:[%s11336_s0 + $0x3b0] sm:$0xf0] }
 0x2fb   :  { %v9466_v3 = vadd.f32 %v3541_v27, %v3373_v41  ;;  %v3206_v39 = vadd.f32 %v3205_v25, %v3037_v60  ;;  %v9494_v35 = vor.u32 %v6810_v59, %v5628_v18  ;;  %v9496_v60 = vor.u32 %v6815_v17, %v5634_v33  ;;  %v7006_v59 = vld [vmem:[%s11335_s1 + $0x1b4] sm:$0xf]  ;;  %v6404_v18 = vld [vmem:[%s11335_s1 + $0x1b8] sm:$0xf0] }
 0x2fc   :  { %v6407_v13 = vor.u32 %v7006_v59, %v6404_v18  ;;  %v5660_v59 = vld [vmem:[%s11336_s0 + $0x3f0] sm:$0xf0]  ;;  %v5666_v18 = vld [vmem:[%s11336_s0 + $0x3d8] sm:$0xf] }
 0x2fd   :  { %11786 = vst [vmem:[#allocation205_spill] sm:$0xff] %v9466_v3 }
 0x2fe   :  { %11787 = vst [vmem:[#allocation206_spill] sm:$0xff] %v9494_v35  ;;  %4187 = vmatpush.bf16.msra.mxu3 %v6407_v13  ;;  %v5668_v13 = vld [vmem:[%s11336_s0 + $0x3f8] sm:$0xf0] }
 0x2ff   :  { %11788 = vst [vmem:[#allocation207_spill] sm:$0xff] %v9496_v60 }
 0x300   :  { %v3374_v47 = vpop.f32.mrf.mxu2  ;;  %v3039_v27 = vpop.f32.mrf.mxu0 }
 0x301   :  { %v3375_v23 = vadd.f32 %v3374_v47, %v3206_v39  ;;  %v3543_v41 = vpop.f32.mrf.mxu3  ;;  %v3040_v25 = vadd.f32 %v3039_v27, %v7990_v62  ;;  %v3208_v3 = vpop.f32.mrf.mxu1  ;;  %v6990_v39 = vld [vmem:[%s11335_s1 + $0x134] sm:$0xf]  ;;  %v6340_v62 = vld [vmem:[%s11335_s1 + $0x138] sm:$0xf0] }
 0x302   :  { %v6343_v45 = vor.u32 %v6990_v39, %v6340_v62  ;;  %v6974_v39 = vld [vmem:[%s11335_s1 + $0xb4] sm:$0xf]  ;;  %v6276_v62 = vld [vmem:[%s11335_s1 + $0xb8] sm:$0xf0] }
 0x303   :  { %v9501_v44 = vadd.f32 %v3543_v41, %v3375_v23  ;;  %v3209_v51 = vadd.f32 %v3208_v3, %v3040_v25  ;;  %3078 = vmatmul.bf16.gmra.mxu0 %v9492_v8  ;;  %v6958_v3 = vld [vmem:[%s11335_s1 + $0x34] sm:$0xf] }
 0x304   :  { %3247 = vmatmul.bf16.gmra.mxu1 %v9494_v35  ;;  %v6215_v17 = vor.u32 %v6958_v3, %v6212_v7  ;;  %4018 = vmatpush.bf16.msra.mxu2 %v6343_v45  ;;  %v5658_v45 = vld [vmem:[%s11336_s0 + $0x3d0] sm:$0xf]  ;;  %v6818_v7 = vld [vmem:[%s11336_s0 + $0x3d4] sm:$0xf] }
 0x305   :  { %3416 = vmatmul.bf16.gmra.mxu2 %v9496_v60 }
 0x306   :  { %3585 = vmatmul.bf16.gmra.mxu3 %v9499_v28  ;;  %3680 = vmatpush.bf16.msra.mxu0 %v6215_v17  ;;  %v6819_v17 = vld [vmem:[%s11336_s0 + $0x3dc] sm:$0xf] }
 0x307   :  { %v9565_v28 = vor.u32 %v6819_v17, %v5668_v13  ;;  %v6830_v17 = vld [vmem:[%s11336_s0 + $0x42c] sm:$0xf0]  ;;  %v5698_v13 = vld [vmem:[%s11336_s0 + $0x418] sm:$0xf] }
 0x308   :  { %v3377_v33 = vpop.f32.mrf.mxu2  ;;  %v3041_v23 = vpop.f32.mrf.mxu0 }
 0x309   :  { %v3378_v29 = vadd.f32 %v3377_v33, %v3209_v51  ;;  %v3546_v47 = vpop.f32.mrf.mxu3  ;;  %v3042_v41 = vadd.f32 %v3041_v23, %v8031_v58  ;;  %v3210_v27 = vpop.f32.mrf.mxu1  ;;  %v6279_v51 = vor.u32 %v6974_v39, %v6276_v62  ;;  %v6822_v58 = vld [vmem:[%s11336_s0 + $0x3ec] sm:$0xf0]  ;;  %v6823_v33 = vld [vmem:[%s11336_s0 + $0x3f4] sm:$0xf0]  ;;  %v9560_v39 = vor.u32 %v6818_v7, %v5660_v59  ;;  %11793 = vst [vmem:[#allocation212_spill] sm:$0xff] %v9565_v28 }
 0x30a   :  { %v9562_v62 = vor.u32 %v6823_v33, %v5666_v18 }
 0x30b   :  { %v9526_v25 = vadd.f32 %v3546_v47, %v3378_v29  ;;  %v3211_v3 = vadd.f32 %v3210_v27, %v3042_v41  ;;  %3849 = vmatpush.bf16.msra.mxu1 %v6279_v51  ;;  %v9558_v47 = vor.u32 %v6822_v58, %v5658_v45  ;;  %11791 = vst [vmem:[#allocation210_spill] sm:$0xff] %v9560_v39 }
 0x30c   :  { %11792 = vst [vmem:[#allocation211_spill] sm:$0xff] %v9562_v62 }
 0x30d   :  { %11790 = vst [vmem:[#allocation209_spill] sm:$0xff] %v9526_v25 }
 0x310   :  { %v3379_v29 = vpop.f32.mrf.mxu2  ;;  %v3044_v27 = vpop.f32.mrf.mxu0 }
 0x311   :  { %v3380_v23 = vadd.f32 %v3379_v29, %v3211_v3  ;;  %v3548_v41 = vpop.f32.mrf.mxu3  ;;  %v3045_v51 = vadd.f32 %v3044_v27, %v8038_v16  ;;  %v3213_v25 = vpop.f32.mrf.mxu1  ;;  %v6831_v29 = vld [vmem:[%s11336_s0 + $0x434] sm:$0xf0] }
 0x313   :  { %v9567_v60 = vadd.f32 %v3548_v41, %v3380_v23  ;;  %v3214_v35 = vadd.f32 %v3213_v25, %v3045_v51  ;;  %3083 = vmatmul.bf16.gmra.mxu0 %v9558_v47  ;;  %v5690_v25 = vld [vmem:[%s11336_s0 + $0x410] sm:$0xf]  ;;  %v6827_v23 = vld [vmem:[%s11336_s0 + $0x41c] sm:$0xf] }
 0x314   :  { %3252 = vmatmul.bf16.gmra.mxu1 %v9560_v39  ;;  %v5700_v41 = vld [vmem:[%s11336_s0 + $0x438] sm:$0xf0]  ;;  %v9600_v51 = vor.u32 %v6830_v17, %v5690_v25 }
 0x315   :  { %3421 = vmatmul.bf16.gmra.mxu2 %v9562_v62 }
 0x316   :  { %3590 = vmatmul.bf16.gmra.mxu3 %v9565_v28  ;;  %v9607_v28 = vor.u32 %v6827_v23, %v5700_v41  ;;  %v6838_v23 = vld [vmem:[%s11336_s0 + $0x46c] sm:$0xf0]  ;;  %v5730_v41 = vld [vmem:[%s11336_s0 + $0x458] sm:$0xf] }
 0x318   :  { %v3382_v3 = vpop.f32.mrf.mxu2  ;;  %v3046_v7 = vpop.f32.mrf.mxu0  ;;  %11797 = vst [vmem:[#allocation216_spill] sm:$0xff] %v9607_v28 }
 0x319   :  { %v3383_v45 = vadd.f32 %v3382_v3, %v3214_v35  ;;  %v3551_v58 = vpop.f32.mrf.mxu3  ;;  %v3047_v16 = vadd.f32 %v3046_v7, %v8073_v56  ;;  %v3215_v59 = vpop.f32.mrf.mxu1  ;;  %v6826_v35 = vld [vmem:[%s11336_s0 + $0x414] sm:$0xf] }
 0x31a   :  { %v5692_v56 = vld [vmem:[%s11336_s0 + $0x430] sm:$0xf0] }
 0x31b   :  { %v9574_v18 = vadd.f32 %v3551_v58, %v3383_v45  ;;  %v3216_v33 = vadd.f32 %v3215_v59, %v3047_v16  ;;  %v9602_v7 = vor.u32 %v6826_v35, %v5692_v56  ;;  %v9604_v16 = vor.u32 %v6831_v29, %v5698_v13 }
 0x31d   :  { %11794 = vst [vmem:[#allocation213_spill] sm:$0xff] %v9574_v18 }
 0x31e   :  { %11795 = vst [vmem:[#allocation214_spill] sm:$0xff] %v9602_v7 }
 0x31f   :  { %11796 = vst [vmem:[#allocation215_spill] sm:$0xff] %v9604_v16 }
 0x320   :  { %v3384_v27 = vpop.f32.mrf.mxu2  ;;  %v3049_v58 = vpop.f32.mrf.mxu0 }
 0x321   :  { %v3385_v3 = vadd.f32 %v3384_v27, %v3216_v33  ;;  %v3553_v45 = vpop.f32.mrf.mxu3  ;;  %v3050_v59 = vadd.f32 %v3049_v58, %v8080_v11  ;;  %v3218_v18 = vpop.f32.mrf.mxu1  ;;  %v6839_v27 = vld [vmem:[%s11336_s0 + $0x474] sm:$0xf0] }
 0x323   :  { %v9609_v62 = vadd.f32 %v3553_v45, %v3385_v3  ;;  %v3219_v39 = vadd.f32 %v3218_v18, %v3050_v59  ;;  %3088 = vmatmul.bf16.gmra.mxu0 %v9600_v51  ;;  %v5722_v18 = vld [vmem:[%s11336_s0 + $0x450] sm:$0xf]  ;;  %v6835_v3 = vld [vmem:[%s11336_s0 + $0x45c] sm:$0xf] }
 0x324   :  { %3257 = vmatmul.bf16.gmra.mxu1 %v9602_v7  ;;  %v5732_v45 = vld [vmem:[%s11336_s0 + $0x478] sm:$0xf0]  ;;  %v9642_v59 = vor.u32 %v6838_v23, %v5722_v18 }
 0x325   :  { %3426 = vmatmul.bf16.gmra.mxu2 %v9604_v16 }
 0x326   :  { %3595 = vmatmul.bf16.gmra.mxu3 %v9607_v28  ;;  %v9649_v28 = vor.u32 %v6835_v3, %v5732_v45  ;;  %v6846_v3 = vld [vmem:[%s11336_s0 + $0x4ac] sm:$0xf0]  ;;  %v5762_v45 = vld [vmem:[%s11336_s0 + $0x498] sm:$0xf] }
 0x328   :  { %v3387_v33 = vpop.f32.mrf.mxu2  ;;  %v3051_v35 = vpop.f32.mrf.mxu0  ;;  %11801 = vst [vmem:[#allocation220_spill] sm:$0xff] %v9649_v28 }
 0x329   :  { %v3388_v25 = vadd.f32 %v3387_v33, %v3219_v39  ;;  %v3556_v17 = vpop.f32.mrf.mxu3  ;;  %v3052_v11 = vadd.f32 %v3051_v35, %v8115_v22  ;;  %v3220_v56 = vpop.f32.mrf.mxu1  ;;  %v6834_v39 = vld [vmem:[%s11336_s0 + $0x454] sm:$0xf] }
 0x32a   :  { %v5724_v22 = vld [vmem:[%s11336_s0 + $0x470] sm:$0xf0] }
 0x32b   :  { %v9616_v13 = vadd.f32 %v3556_v17, %v3388_v25  ;;  %v3221_v29 = vadd.f32 %v3220_v56, %v3052_v11  ;;  %v9644_v35 = vor.u32 %v6834_v39, %v5724_v22  ;;  %v9646_v11 = vor.u32 %v6839_v27, %v5730_v41 }
 0x32d   :  { %11798 = vst [vmem:[#allocation217_spill] sm:$0xff] %v9616_v13 }
 0x32e   :  { %11799 = vst [vmem:[#allocation218_spill] sm:$0xff] %v9644_v35 }
 0x32f   :  { %11800 = vst [vmem:[#allocation219_spill] sm:$0xff] %v9646_v11 }
 0x330   :  { %v3389_v58 = vpop.f32.mrf.mxu2  ;;  %v3054_v17 = vpop.f32.mrf.mxu0 }
 0x331   :  { %v3390_v33 = vadd.f32 %v3389_v58, %v3221_v29  ;;  %v3558_v25 = vpop.f32.mrf.mxu3  ;;  %v3055_v56 = vadd.f32 %v3054_v17, %v8122_v24  ;;  %v3223_v13 = vpop.f32.mrf.mxu1  ;;  %v6847_v58 = vld [vmem:[%s11336_s0 + $0x4b4] sm:$0xf0] }
 0x333   :  { %v9651_v16 = vadd.f32 %v3558_v25, %v3390_v33  ;;  %v3224_v7 = vadd.f32 %v3223_v13, %v3055_v56  ;;  %3093 = vmatmul.bf16.gmra.mxu0 %v9642_v59  ;;  %v5754_v13 = vld [vmem:[%s11336_s0 + $0x490] sm:$0xf]  ;;  %v6843_v33 = vld [vmem:[%s11336_s0 + $0x49c] sm:$0xf] }
 0x334   :  { %3262 = vmatmul.bf16.gmra.mxu1 %v9644_v35  ;;  %v5764_v25 = vld [vmem:[%s11336_s0 + $0x4b8] sm:$0xf0]  ;;  %v9684_v56 = vor.u32 %v6846_v3, %v5754_v13  ;;  %v6204_v3 = vld [vmem:[%s11335_s1 + $0x28] sm:$0xf0] }
 0x335   :  { %3431 = vmatmul.bf16.gmra.mxu2 %v9646_v11 }
 0x336   :  { %3600 = vmatmul.bf16.gmra.mxu3 %v9649_v28  ;;  %v9691_v28 = vor.u32 %v6843_v33, %v5764_v25 }
 0x338   :  { %v3392_v29 = vpop.f32.mrf.mxu2  ;;  %v3056_v39 = vpop.f32.mrf.mxu0  ;;  %11805 = vst [vmem:[#allocation224_spill] sm:$0xff] %v9691_v28 }
 0x339   :  { %v3393_v18 = vadd.f32 %v3392_v29, %v3224_v7  ;;  %v3561_v23 = vpop.f32.mrf.mxu3  ;;  %v3057_v24 = vadd.f32 %v3056_v39, %v8157_v20  ;;  %v3225_v22 = vpop.f32.mrf.mxu1  ;;  %v6842_v7 = vld [vmem:[%s11336_s0 + $0x494] sm:$0xf] }
 0x33a   :  { %v5756_v20 = vld [vmem:[%s11336_s0 + $0x4b0] sm:$0xf0] }
 0x33b   :  { %v9658_v41 = vadd.f32 %v3561_v23, %v3393_v18  ;;  %v3226_v27 = vadd.f32 %v3225_v22, %v3057_v24  ;;  %v9686_v39 = vor.u32 %v6842_v7, %v5756_v20  ;;  %v9688_v24 = vor.u32 %v6847_v58, %v5762_v45  ;;  %v7004_v7 = vld [vmem:[%s11335_s1 + $0x1a4] sm:$0xf]  ;;  %v6396_v20 = vld [vmem:[%s11335_s1 + $0x1a8] sm:$0xf0] }
 0x33c   :  { %v6399_v33 = vor.u32 %v7004_v7, %v6396_v20  ;;  %v5788_v7 = vld [vmem:[%s11336_s0 + $0x4f0] sm:$0xf0]  ;;  %v5794_v20 = vld [vmem:[%s11336_s0 + $0x4d8] sm:$0xf] }
 0x33d   :  { %11802 = vst [vmem:[#allocation221_spill] sm:$0xff] %v9658_v41 }
 0x33e   :  { %11803 = vst [vmem:[#allocation222_spill] sm:$0xff] %v9686_v39  ;;  %4188 = vmatpush.bf16.msra.mxu3 %v6399_v33  ;;  %v5796_v33 = vld [vmem:[%s11336_s0 + $0x4f8] sm:$0xf0] }
 0x33f   :  { %11804 = vst [vmem:[#allocation223_spill] sm:$0xff] %v9688_v24 }
 0x340   :  { %v3394_v17 = vpop.f32.mrf.mxu2  ;;  %v3059_v23 = vpop.f32.mrf.mxu0 }
 0x341   :  { %v3395_v29 = vadd.f32 %v3394_v17, %v3226_v27  ;;  %v3563_v18 = vpop.f32.mrf.mxu3  ;;  %v3060_v22 = vadd.f32 %v3059_v23, %v8182_v63  ;;  %v3228_v41 = vpop.f32.mrf.mxu1  ;;  %v6988_v27 = vld [vmem:[%s11335_s1 + $0x124] sm:$0xf]  ;;  %v6332_v63 = vld [vmem:[%s11335_s1 + $0x128] sm:$0xf0] }
 0x342   :  { %v6335_v13 = vor.u32 %v6988_v27, %v6332_v63  ;;  %v6972_v27 = vld [vmem:[%s11335_s1 + $0xa4] sm:$0xf]  ;;  %v6268_v63 = vld [vmem:[%s11335_s1 + $0xa8] sm:$0xf0] }
 0x343   :  { %v9693_v11 = vadd.f32 %v3563_v18, %v3395_v29  ;;  %v3229_v35 = vadd.f32 %v3228_v41, %v3060_v22  ;;  %3098 = vmatmul.bf16.gmra.mxu0 %v9684_v56  ;;  %v6956_v41 = vld [vmem:[%s11335_s1 + $0x24] sm:$0xf] }
 0x344   :  { %3267 = vmatmul.bf16.gmra.mxu1 %v9686_v39  ;;  %v6207_v58 = vor.u32 %v6956_v41, %v6204_v3  ;;  %4019 = vmatpush.bf16.msra.mxu2 %v6335_v13  ;;  %v5786_v13 = vld [vmem:[%s11336_s0 + $0x4d0] sm:$0xf]  ;;  %v6850_v3 = vld [vmem:[%s11336_s0 + $0x4d4] sm:$0xf] }
 0x345   :  { %3436 = vmatmul.bf16.gmra.mxu2 %v9688_v24 }
 0x346   :  { %3605 = vmatmul.bf16.gmra.mxu3 %v9691_v28  ;;  %3681 = vmatpush.bf16.msra.mxu0 %v6207_v58  ;;  %v6851_v58 = vld [vmem:[%s11336_s0 + $0x4dc] sm:$0xf] }
 0x347   :  { %v9757_v28 = vor.u32 %v6851_v58, %v5796_v33  ;;  %v6862_v58 = vld [vmem:[%s11336_s0 + $0x52c] sm:$0xf0]  ;;  %v5826_v33 = vld [vmem:[%s11336_s0 + $0x518] sm:$0xf] }
 0x348   :  { %v3397_v45 = vpop.f32.mrf.mxu2  ;;  %v3061_v29 = vpop.f32.mrf.mxu0 }
 0x349   :  { %v3398_v25 = vadd.f32 %v3397_v45, %v3229_v35  ;;  %v3566_v17 = vpop.f32.mrf.mxu3  ;;  %v3062_v18 = vadd.f32 %v3061_v29, %v8223_v6  ;;  %v3230_v23 = vpop.f32.mrf.mxu1  ;;  %v6271_v35 = vor.u32 %v6972_v27, %v6268_v63  ;;  %v6854_v6 = vld [vmem:[%s11336_s0 + $0x4ec] sm:$0xf0]  ;;  %v6855_v45 = vld [vmem:[%s11336_s0 + $0x4f4] sm:$0xf0]  ;;  %v9752_v27 = vor.u32 %v6850_v3, %v5788_v7  ;;  %11809 = vst [vmem:[#allocation228_spill] sm:$0xff] %v9757_v28 }
 0x34a   :  { %v9754_v63 = vor.u32 %v6855_v45, %v5794_v20 }
 0x34b   :  { %v9718_v22 = vadd.f32 %v3566_v17, %v3398_v25  ;;  %v3231_v41 = vadd.f32 %v3230_v23, %v3062_v18  ;;  %3850 = vmatpush.bf16.msra.mxu1 %v6271_v35  ;;  %v9750_v17 = vor.u32 %v6854_v6, %v5786_v13  ;;  %11807 = vst [vmem:[#allocation226_spill] sm:$0xff] %v9752_v27 }
 0x34c   :  { %11808 = vst [vmem:[#allocation227_spill] sm:$0xff] %v9754_v63 }
 0x34d   :  { %11806 = vst [vmem:[#allocation225_spill] sm:$0xff] %v9718_v22 }
 0x350   :  { %v3399_v25 = vpop.f32.mrf.mxu2  ;;  %v3064_v23 = vpop.f32.mrf.mxu0 }
 0x351   :  { %v3400_v29 = vadd.f32 %v3399_v25, %v3231_v41  ;;  %v3568_v18 = vpop.f32.mrf.mxu3  ;;  %v3065_v35 = vadd.f32 %v3064_v23, %v8230_v57  ;;  %v3233_v22 = vpop.f32.mrf.mxu1  ;;  %v6863_v25 = vld [vmem:[%s11336_s0 + $0x534] sm:$0xf0] }
 0x353   :  { %v9759_v24 = vadd.f32 %v3568_v18, %v3400_v29  ;;  %v3234_v39 = vadd.f32 %v3233_v22, %v3065_v35  ;;  %3103 = vmatmul.bf16.gmra.mxu0 %v9750_v17  ;;  %v5818_v22 = vld [vmem:[%s11336_s0 + $0x510] sm:$0xf]  ;;  %v6859_v29 = vld [vmem:[%s11336_s0 + $0x51c] sm:$0xf] }
 0x354   :  { %3272 = vmatmul.bf16.gmra.mxu1 %v9752_v27  ;;  %v5828_v18 = vld [vmem:[%s11336_s0 + $0x538] sm:$0xf0]  ;;  %v9792_v35 = vor.u32 %v6862_v58, %v5818_v22 }
 0x355   :  { %11810 = vst [vmem:[#allocation229_spill] sm:$0xff] %v9759_v24  ;;  %3441 = vmatmul.bf16.gmra.mxu2 %v9754_v63  ;;  %v12008_v24 = vld [vmem:[#allocation86_spill] sm:$0xff] }
 0x356   :  { %3610 = vmatmul.bf16.gmra.mxu3 %v9757_v28  ;;  %11812 = vst [vmem:[#allocation231_spill] sm:$0xff] %v9792_v35  ;;  %v9799_v28 = vor.u32 %v6859_v29, %v5828_v18  ;;  %v6870_v29 = vld [vmem:[%s11336_s0 + $0x56c] sm:$0xf0]  ;;  %v5858_v18 = vld [vmem:[%s11336_s0 + $0x558] sm:$0xf] }
 0x358   :  { %v3402_v41 = vpop.f32.mrf.mxu2  ;;  %v3066_v3 = vpop.f32.mrf.mxu0  ;;  %11815 = vst [vmem:[#allocation234_spill] sm:$0xff] %v9799_v28 }
 0x359   :  { %v3403_v13 = vadd.f32 %v3402_v41, %v3234_v39  ;;  %v3571_v6 = vpop.f32.mrf.mxu3  ;;  %v3067_v57 = vadd.f32 %v3066_v3, %v8265_v4  ;;  %v3235_v7 = vpop.f32.mrf.mxu1  ;;  %v6858_v39 = vld [vmem:[%s11336_s0 + $0x514] sm:$0xf] }
 0x35a   :  { %v5820_v4 = vld [vmem:[%s11336_s0 + $0x530] sm:$0xf0] }
 0x35b   :  { %v9766_v20 = vadd.f32 %v3571_v6, %v3403_v13  ;;  %v3236_v45 = vadd.f32 %v3235_v7, %v3067_v57  ;;  %v9794_v3 = vor.u32 %v6858_v39, %v5820_v4  ;;  %v9796_v57 = vor.u32 %v6863_v25, %v5826_v33 }
 0x35d   :  { %11811 = vst [vmem:[#allocation230_spill] sm:$0xff] %v9766_v20 }
 0x35e   :  { %11813 = vst [vmem:[#allocation232_spill] sm:$0xff] %v9794_v3 }
 0x35f   :  { %11814 = vst [vmem:[#allocation233_spill] sm:$0xff] %v9796_v57 }
 0x360   :  { %v3404_v23 = vpop.f32.mrf.mxu2  ;;  %v3069_v6 = vpop.f32.mrf.mxu0 }
 0x361   :  { %v3405_v41 = vadd.f32 %v3404_v23, %v3236_v45  ;;  %v3573_v13 = vpop.f32.mrf.mxu3  ;;  %v3070_v7 = vadd.f32 %v3069_v6, %v8272_v32  ;;  %v3238_v20 = vpop.f32.mrf.mxu1  ;;  %v6871_v23 = vld [vmem:[%s11336_s0 + $0x574] sm:$0xf0] }
 0x363   :  { %v9801_v63 = vadd.f32 %v3573_v13, %v3405_v41  ;;  %v3239_v27 = vadd.f32 %v3238_v20, %v3070_v7  ;;  %3108 = vmatmul.bf16.gmra.mxu0 %v9792_v35  ;;  %v5850_v20 = vld [vmem:[%s11336_s0 + $0x550] sm:$0xf]  ;;  %v6867_v41 = vld [vmem:[%s11336_s0 + $0x55c] sm:$0xf]  ;;  %v12002_v35 = vld [vmem:[#allocation82_spill] sm:$0xff] }
 0x364   :  { %3277 = vmatmul.bf16.gmra.mxu1 %v9794_v3  ;;  %v5860_v13 = vld [vmem:[%s11336_s0 + $0x578] sm:$0xf0]  ;;  %v9834_v7 = vor.u32 %v6870_v29, %v5850_v20 }
 0x365   :  { %11816 = vst [vmem:[#allocation235_spill] sm:$0xff] %v9801_v63  ;;  %3446 = vmatmul.bf16.gmra.mxu2 %v9796_v57  ;;  %v12000_v63 = vld [vmem:[#allocation81_spill] sm:$0xff] }
 0x366   :  { %3615 = vmatmul.bf16.gmra.mxu3 %v9799_v28  ;;  %11818 = vst [vmem:[#allocation237_spill] sm:$0xff] %v9834_v7  ;;  %v9841_v28 = vor.u32 %v6867_v41, %v5860_v13  ;;  %v6878_v41 = vld [vmem:[%s11336_s0 + $0x5ac] sm:$0xf0]  ;;  %v5890_v13 = vld [vmem:[%s11336_s0 + $0x598] sm:$0xf] }
 0x368   :  { %v3407_v45 = vpop.f32.mrf.mxu2  ;;  %v3071_v39 = vpop.f32.mrf.mxu0  ;;  %11821 = vst [vmem:[#allocation240_spill] sm:$0xff] %v9841_v28 }
 0x369   :  { %v3408_v22 = vadd.f32 %v3407_v45, %v3239_v27  ;;  %v3576_v58 = vpop.f32.mrf.mxu3  ;;  %v3072_v32 = vadd.f32 %v3071_v39, %v8307_v54  ;;  %v3240_v4 = vpop.f32.mrf.mxu1  ;;  %v6866_v27 = vld [vmem:[%s11336_s0 + $0x554] sm:$0xf] }
 0x36a   :  { %v5852_v54 = vld [vmem:[%s11336_s0 + $0x570] sm:$0xf0] }
 0x36b   :  { %v9808_v33 = vadd.f32 %v3576_v58, %v3408_v22  ;;  %v3241_v25 = vadd.f32 %v3240_v4, %v3072_v32  ;;  %v9836_v39 = vor.u32 %v6866_v27, %v5852_v54  ;;  %v9838_v32 = vor.u32 %v6871_v23, %v5858_v18 }
 0x36d   :  { %11817 = vst [vmem:[#allocation236_spill] sm:$0xff] %v9808_v33 }
 0x36e   :  { %11819 = vst [vmem:[#allocation238_spill] sm:$0xff] %v9836_v39 }
 0x36f   :  { %11820 = vst [vmem:[#allocation239_spill] sm:$0xff] %v9838_v32 }
 0x370   :  { %v3409_v6 = vpop.f32.mrf.mxu2  ;;  %v3074_v58 = vpop.f32.mrf.mxu0 }
 0x371   :  { %v3410_v45 = vadd.f32 %v3409_v6, %v3241_v25  ;;  %v3578_v22 = vpop.f32.mrf.mxu3  ;;  %v3075_v4 = vadd.f32 %v3074_v58, %v8314_v21  ;;  %v3243_v33 = vpop.f32.mrf.mxu1  ;;  %v6879_v6 = vld [vmem:[%s11336_s0 + $0x5b4] sm:$0xf0] }
 0x373   :  { %v9843_v57 = vadd.f32 %v3578_v22, %v3410_v45  ;;  %v3244_v3 = vadd.f32 %v3243_v33, %v3075_v4  ;;  %3113 = vmatmul.bf16.gmra.mxu0 %v9834_v7  ;;  %v5882_v33 = vld [vmem:[%s11336_s0 + $0x590] sm:$0xf]  ;;  %v6875_v45 = vld [vmem:[%s11336_s0 + $0x59c] sm:$0xf] }
 0x374   :  { %3282 = vmatmul.bf16.gmra.mxu1 %v9836_v39  ;;  %v5892_v22 = vld [vmem:[%s11336_s0 + $0x5b8] sm:$0xf0]  ;;  %v9876_v4 = vor.u32 %v6878_v41, %v5882_v33  ;;  %v11999_v7 = vld [vmem:[#allocation80_spill] sm:$0xff] }
 0x375   :  { %11822 = vst [vmem:[#allocation241_spill] sm:$0xff] %v9843_v57  ;;  %3451 = vmatmul.bf16.gmra.mxu2 %v9838_v32  ;;  %v6196_v41 = vld [vmem:[%s11335_s1 + $0x18] sm:$0xf0]  ;;  %v11998_v57 = vld [vmem:[#allocation79_spill] sm:$0xff] }
 0x376   :  { %3620 = vmatmul.bf16.gmra.mxu3 %v9841_v28  ;;  %11824 = vst [vmem:[#allocation243_spill] sm:$0xff] %v9876_v4  ;;  %v9883_v28 = vor.u32 %v6875_v45, %v5892_v22 }
 0x378   :  { %v3412_v25 = vpop.f32.mrf.mxu2  ;;  %v3076_v27 = vpop.f32.mrf.mxu0  ;;  %11827 = vst [vmem:[#allocation246_spill] sm:$0xff] %v9883_v28 }
 0x379   :  { %v3413_v20 = vadd.f32 %v3412_v25, %v3244_v3  ;;  %v3581_v29 = vpop.f32.mrf.mxu3  ;;  %v3077_v21 = vadd.f32 %v3076_v27, %v8349_v49  ;;  %v3245_v54 = vpop.f32.mrf.mxu1  ;;  %v6874_v3 = vld [vmem:[%s11336_s0 + $0x594] sm:$0xf] }
 0x37a   :  { %v5884_v49 = vld [vmem:[%s11336_s0 + $0x5b0] sm:$0xf0] }
 0x37b   :  { %v9850_v18 = vadd.f32 %v3581_v29, %v3413_v20  ;;  %v3246_v23 = vadd.f32 %v3245_v54, %v3077_v21  ;;  %v9878_v27 = vor.u32 %v6874_v3, %v5884_v49  ;;  %v9880_v21 = vor.u32 %v6879_v6, %v5890_v13  ;;  %v7002_v3 = vld [vmem:[%s11335_s1 + $0x194] sm:$0xf]  ;;  %v6388_v49 = vld [vmem:[%s11335_s1 + $0x198] sm:$0xf0] }
 0x37c   :  { %v6391_v45 = vor.u32 %v7002_v3, %v6388_v49  ;;  %v5916_v3 = vld [vmem:[%s11336_s0 + $0x5f0] sm:$0xf0]  ;;  %v5922_v49 = vld [vmem:[%s11336_s0 + $0x5d8] sm:$0xf] }
 0x37d   :  { %11823 = vst [vmem:[#allocation242_spill] sm:$0xff] %v9850_v18 }
 0x37e   :  { %11825 = vst [vmem:[#allocation244_spill] sm:$0xff] %v9878_v27  ;;  %4189 = vmatpush.bf16.msra.mxu3 %v6391_v45  ;;  %v5924_v45 = vld [vmem:[%s11336_s0 + $0x5f8] sm:$0xf0] }
 0x37f   :  { %11826 = vst [vmem:[#allocation245_spill] sm:$0xff] %v9880_v21 }
 0x380   :  { %v3414_v58 = vpop.f32.mrf.mxu2  ;;  %v3079_v29 = vpop.f32.mrf.mxu0 }
 0x381   :  { %v3415_v25 = vadd.f32 %v3414_v58, %v3246_v23  ;;  %v3583_v20 = vpop.f32.mrf.mxu3  ;;  %v3080_v54 = vadd.f32 %v3079_v29, %v8374_v19  ;;  %v3248_v18 = vpop.f32.mrf.mxu1  ;;  %v6986_v23 = vld [vmem:[%s11335_s1 + $0x114] sm:$0xf]  ;;  %v6324_v19 = vld [vmem:[%s11335_s1 + $0x118] sm:$0xf0] }
 0x382   :  { %v6327_v33 = vor.u32 %v6986_v23, %v6324_v19  ;;  %v6970_v23 = vld [vmem:[%s11335_s1 + $0x94] sm:$0xf]  ;;  %v6260_v19 = vld [vmem:[%s11335_s1 + $0x98] sm:$0xf0] }
 0x383   :  { %v9885_v32 = vadd.f32 %v3583_v20, %v3415_v25  ;;  %v3249_v39 = vadd.f32 %v3248_v18, %v3080_v54  ;;  %3118 = vmatmul.bf16.gmra.mxu0 %v9876_v4  ;;  %v6954_v18 = vld [vmem:[%s11335_s1 + $0x14] sm:$0xf]  ;;  %v11993_v4 = vld [vmem:[#allocation74_spill] sm:$0xff] }
 0x384   :  { %3287 = vmatmul.bf16.gmra.mxu1 %v9878_v27  ;;  %v6199_v6 = vor.u32 %v6954_v18, %v6196_v41  ;;  %4020 = vmatpush.bf16.msra.mxu2 %v6327_v33  ;;  %v5914_v33 = vld [vmem:[%s11336_s0 + $0x5d0] sm:$0xf]  ;;  %v6882_v41 = vld [vmem:[%s11336_s0 + $0x5d4] sm:$0xf] }
 0x385   :  { %11828 = vst [vmem:[#allocation247_spill] sm:$0xff] %v9885_v32  ;;  %3456 = vmatmul.bf16.gmra.mxu2 %v9880_v21 }
 0x386   :  { %3625 = vmatmul.bf16.gmra.mxu3 %v9883_v28  ;;  %3682 = vmatpush.bf16.msra.mxu0 %v6199_v6  ;;  %v6883_v6 = vld [vmem:[%s11336_s0 + $0x5dc] sm:$0xf] }
 0x387   :  { %v9949_v28 = vor.u32 %v6883_v6, %v5924_v45  ;;  %v6894_v6 = vld [vmem:[%s11336_s0 + $0x62c] sm:$0xf0]  ;;  %v5954_v45 = vld [vmem:[%s11336_s0 + $0x618] sm:$0xf] }
 0x388   :  { %v3417_v13 = vpop.f32.mrf.mxu2  ;;  %v3081_v25 = vpop.f32.mrf.mxu0 }
 0x389   :  { %v3418_v22 = vadd.f32 %v3417_v13, %v3249_v39  ;;  %v3586_v58 = vpop.f32.mrf.mxu3  ;;  %v3082_v20 = vadd.f32 %v3081_v25, %v8415_v38  ;;  %v3250_v29 = vpop.f32.mrf.mxu1  ;;  %v6263_v39 = vor.u32 %v6970_v23, %v6260_v19  ;;  %v6886_v38 = vld [vmem:[%s11336_s0 + $0x5ec] sm:$0xf0]  ;;  %v6887_v13 = vld [vmem:[%s11336_s0 + $0x5f4] sm:$0xf0]  ;;  %v9944_v23 = vor.u32 %v6882_v41, %v5916_v3  ;;  %11833 = vst [vmem:[#allocation252_spill] sm:$0xff] %v9949_v28 }
 0x38a   :  { %v9946_v19 = vor.u32 %v6887_v13, %v5922_v49 }
 0x38b   :  { %v9910_v54 = vadd.f32 %v3586_v58, %v3418_v22  ;;  %v3251_v18 = vadd.f32 %v3250_v29, %v3082_v20  ;;  %3851 = vmatpush.bf16.msra.mxu1 %v6263_v39  ;;  %v9942_v58 = vor.u32 %v6886_v38, %v5914_v33  ;;  %11831 = vst [vmem:[#allocation250_spill] sm:$0xff] %v9944_v23 }
 0x38c   :  { %11832 = vst [vmem:[#allocation251_spill] sm:$0xff] %v9946_v19 }
 0x38d   :  { %11829 = vst [vmem:[#allocation248_spill] sm:$0xff] %v9910_v54 }
 0x38e   :  { %11830 = vst [vmem:[#allocation249_spill] sm:$0xff] %v9942_v58 }
 0x390   :  { %v3419_v22 = vpop.f32.mrf.mxu2  ;;  %v3084_v29 = vpop.f32.mrf.mxu0 }
 0x391   :  { %v3420_v25 = vadd.f32 %v3419_v22, %v3251_v18  ;;  %v3588_v20 = vpop.f32.mrf.mxu3  ;;  %v3085_v39 = vadd.f32 %v3084_v29, %v8422_v5  ;;  %v3253_v54 = vpop.f32.mrf.mxu1  ;;  %v6895_v22 = vld [vmem:[%s11336_s0 + $0x634] sm:$0xf0] }
 0x393   :  { %v9951_v21 = vadd.f32 %v3588_v20, %v3420_v25  ;;  %v3254_v27 = vadd.f32 %v3253_v54, %v3085_v39  ;;  %3123 = vmatmul.bf16.gmra.mxu0 %v9942_v58  ;;  %v5946_v54 = vld [vmem:[%s11336_s0 + $0x610] sm:$0xf]  ;;  %v6891_v25 = vld [vmem:[%s11336_s0 + $0x61c] sm:$0xf]  ;;  %v11989_v58 = vld [vmem:[#allocation70_spill] sm:$0xff] }
 0x394   :  { %3292 = vmatmul.bf16.gmra.mxu1 %v9944_v23  ;;  %v5956_v20 = vld [vmem:[%s11336_s0 + $0x638] sm:$0xf0]  ;;  %v9984_v39 = vor.u32 %v6894_v6, %v5946_v54 }
 0x395   :  { %11834 = vst [vmem:[#allocation253_spill] sm:$0xff] %v9951_v21  ;;  %3461 = vmatmul.bf16.gmra.mxu2 %v9946_v19 }
 0x396   :  { %3630 = vmatmul.bf16.gmra.mxu3 %v9949_v28  ;;  %11836 = vst [vmem:[#allocation255_spill] sm:$0xff] %v9984_v39  ;;  %v9991_v28 = vor.u32 %v6891_v25, %v5956_v20  ;;  %v6902_v25 = vld [vmem:[%s11336_s0 + $0x66c] sm:$0xf0]  ;;  %v5986_v20 = vld [vmem:[%s11336_s0 + $0x658] sm:$0xf] }
 0x398   :  { %v3422_v18 = vpop.f32.mrf.mxu2  ;;  %v3086_v41 = vpop.f32.mrf.mxu0  ;;  %11839 = vst [vmem:[#allocation258_spill] sm:$0xff] %v9991_v28 }
 0x399   :  { %v3423_v33 = vadd.f32 %v3422_v18, %v3254_v27  ;;  %v3591_v38 = vpop.f32.mrf.mxu3  ;;  %v3087_v5 = vadd.f32 %v3086_v41, %v8457_v36  ;;  %v3255_v3 = vpop.f32.mrf.mxu1  ;;  %v6890_v27 = vld [vmem:[%s11336_s0 + $0x614] sm:$0xf] }
 0x39a   :  { %v5948_v36 = vld [vmem:[%s11336_s0 + $0x630] sm:$0xf0] }
 0x39b   :  { %v9958_v49 = vadd.f32 %v3591_v38, %v3423_v33  ;;  %v3256_v13 = vadd.f32 %v3255_v3, %v3087_v5  ;;  %v9986_v41 = vor.u32 %v6890_v27, %v5948_v36  ;;  %v9988_v5 = vor.u32 %v6895_v22, %v5954_v45 }
 0x39d   :  { %11835 = vst [vmem:[#allocation254_spill] sm:$0xff] %v9958_v49 }
 0x39e   :  { %11837 = vst [vmem:[#allocation256_spill] sm:$0xff] %v9986_v41 }
 0x39f   :  { %11838 = vst [vmem:[#allocation257_spill] sm:$0xff] %v9988_v5 }
 0x3a0   :  { %v3424_v29 = vpop.f32.mrf.mxu2  ;;  %v3089_v38 = vpop.f32.mrf.mxu0 }
 0x3a1   :  { %v3425_v18 = vadd.f32 %v3424_v29, %v3256_v13  ;;  %v3593_v33 = vpop.f32.mrf.mxu3  ;;  %v3090_v3 = vadd.f32 %v3089_v38, %v8464_v46  ;;  %v3258_v49 = vpop.f32.mrf.mxu1  ;;  %v6903_v29 = vld [vmem:[%s11336_s0 + $0x674] sm:$0xf0] }
 0x3a3   :  { %v9993_v19 = vadd.f32 %v3593_v33, %v3425_v18  ;;  %v3259_v23 = vadd.f32 %v3258_v49, %v3090_v3  ;;  %3128 = vmatmul.bf16.gmra.mxu0 %v9984_v39  ;;  %v5978_v49 = vld [vmem:[%s11336_s0 + $0x650] sm:$0xf]  ;;  %v6899_v18 = vld [vmem:[%s11336_s0 + $0x65c] sm:$0xf]  ;;  %v11985_v39 = vld [vmem:[#allocation66_spill] sm:$0xff] }
 0x3a4   :  { %3297 = vmatmul.bf16.gmra.mxu1 %v9986_v41  ;;  %v5988_v33 = vld [vmem:[%s11336_s0 + $0x678] sm:$0xf0]  ;;  %v10026_v3 = vor.u32 %v6902_v25, %v5978_v49 }
 0x3a5   :  { %11840 = vst [vmem:[#allocation259_spill] sm:$0xff] %v9993_v19  ;;  %3466 = vmatmul.bf16.gmra.mxu2 %v9988_v5  ;;  %v11984_v19 = vld [vmem:[#allocation65_spill] sm:$0xff] }
 0x3a6   :  { %3635 = vmatmul.bf16.gmra.mxu3 %v9991_v28  ;;  %11842 = vst [vmem:[#allocation261_spill] sm:$0xff] %v10026_v3  ;;  %v10033_v28 = vor.u32 %v6899_v18, %v5988_v33  ;;  %v6910_v18 = vld [vmem:[%s11336_s0 + $0x6ac] sm:$0xf0]  ;;  %v6018_v33 = vld [vmem:[%s11336_s0 + $0x698] sm:$0xf] }
 0x3a8   :  { %v3427_v13 = vpop.f32.mrf.mxu2  ;;  %v3091_v27 = vpop.f32.mrf.mxu0  ;;  %11845 = vst [vmem:[#allocation264_spill] sm:$0xff] %v10033_v28 }
 0x3a9   :  { %v3428_v54 = vadd.f32 %v3427_v13, %v3259_v23  ;;  %v3596_v6 = vpop.f32.mrf.mxu3  ;;  %v3092_v46 = vadd.f32 %v3091_v27, %v8499_v14  ;;  %v3260_v36 = vpop.f32.mrf.mxu1  ;;  %v6898_v23 = vld [vmem:[%s11336_s0 + $0x654] sm:$0xf] }
 0x3aa   :  { %v5980_v14 = vld [vmem:[%s11336_s0 + $0x670] sm:$0xf0] }
 0x3ab   :  { %v10000_v45 = vadd.f32 %v3596_v6, %v3428_v54  ;;  %v3261_v22 = vadd.f32 %v3260_v36, %v3092_v46  ;;  %v10028_v27 = vor.u32 %v6898_v23, %v5980_v14  ;;  %v10030_v46 = vor.u32 %v6903_v29, %v5986_v20 }
 0x3ad   :  { %11841 = vst [vmem:[#allocation260_spill] sm:$0xff] %v10000_v45 }
 0x3ae   :  { %11843 = vst [vmem:[#allocation262_spill] sm:$0xff] %v10028_v27 }
 0x3af   :  { %11844 = vst [vmem:[#allocation263_spill] sm:$0xff] %v10030_v46 }
 0x3b0   :  { %v3429_v38 = vpop.f32.mrf.mxu2  ;;  %v3094_v6 = vpop.f32.mrf.mxu0 }
 0x3b1   :  { %v3430_v13 = vadd.f32 %v3429_v38, %v3261_v22  ;;  %v3598_v54 = vpop.f32.mrf.mxu3  ;;  %v3095_v36 = vadd.f32 %v3094_v6, %v8506_v50  ;;  %v3263_v45 = vpop.f32.mrf.mxu1  ;;  %v6911_v38 = vld [vmem:[%s11336_s0 + $0x6b4] sm:$0xf0] }
 0x3b3   :  { %v10035_v5 = vadd.f32 %v3598_v54, %v3430_v13  ;;  %v3264_v41 = vadd.f32 %v3263_v45, %v3095_v36  ;;  %3133 = vmatmul.bf16.gmra.mxu0 %v10026_v3  ;;  %v6010_v45 = vld [vmem:[%s11336_s0 + $0x690] sm:$0xf]  ;;  %v6907_v13 = vld [vmem:[%s11336_s0 + $0x69c] sm:$0xf] }
 0x3b4   :  { %3302 = vmatmul.bf16.gmra.mxu1 %v10028_v27  ;;  %v6020_v54 = vld [vmem:[%s11336_s0 + $0x6b8] sm:$0xf0]  ;;  %v10068_v36 = vor.u32 %v6910_v18, %v6010_v45  ;;  %v6188_v18 = vld [vmem:[%s11335_s1 + $0x8] sm:$0xf0]  ;;  %v11983_v3 = vld [vmem:[#allocation64_spill] sm:$0xff] }
 0x3b5   :  { %11846 = vst [vmem:[#allocation265_spill] sm:$0xff] %v10035_v5  ;;  %3471 = vmatmul.bf16.gmra.mxu2 %v10030_v46  ;;  %v11982_v5 = vld [vmem:[#allocation63_spill] sm:$0xff] }
 0x3b6   :  { %3640 = vmatmul.bf16.gmra.mxu3 %v10033_v28  ;;  %11848 = vst [vmem:[#allocation267_spill] sm:$0xff] %v10068_v36  ;;  %v10075_v28 = vor.u32 %v6907_v13, %v6020_v54 }
 0x3b8   :  { %v3432_v22 = vpop.f32.mrf.mxu2  ;;  %v3096_v23 = vpop.f32.mrf.mxu0  ;;  %11851 = vst [vmem:[#allocation270_spill] sm:$0xff] %v10075_v28 }
 0x3b9   :  { %v3433_v49 = vadd.f32 %v3432_v22, %v3264_v41  ;;  %v3601_v25 = vpop.f32.mrf.mxu3  ;;  %v3097_v50 = vadd.f32 %v3096_v23, %v8541_v12  ;;  %v3265_v14 = vpop.f32.mrf.mxu1  ;;  %v6906_v41 = vld [vmem:[%s11336_s0 + $0x694] sm:$0xf] }
 0x3ba   :  { %v6012_v12 = vld [vmem:[%s11336_s0 + $0x6b0] sm:$0xf0] }
 0x3bb   :  { %v10042_v20 = vadd.f32 %v3601_v25, %v3433_v49  ;;  %v3266_v29 = vadd.f32 %v3265_v14, %v3097_v50  ;;  %v10070_v23 = vor.u32 %v6906_v41, %v6012_v12  ;;  %v10072_v50 = vor.u32 %v6911_v38, %v6018_v33  ;;  %v7000_v41 = vld [vmem:[%s11335_s1 + $0x184] sm:$0xf]  ;;  %v6380_v12 = vld [vmem:[%s11335_s1 + $0x188] sm:$0xf0] }
 0x3bc   :  { %v6383_v13 = vor.u32 %v7000_v41, %v6380_v12  ;;  %v6044_v41 = vld [vmem:[%s11336_s0 + $0x6f0] sm:$0xf0]  ;;  %v6050_v12 = vld [vmem:[%s11336_s0 + $0x6d8] sm:$0xf] }
 0x3bd   :  { %11847 = vst [vmem:[#allocation266_spill] sm:$0xff] %v10042_v20 }
 0x3be   :  { %11849 = vst [vmem:[#allocation268_spill] sm:$0xff] %v10070_v23  ;;  %4190 = vmatpush.bf16.msra.mxu3 %v6383_v13  ;;  %v6052_v13 = vld [vmem:[%s11336_s0 + $0x6f8] sm:$0xf0] }
 0x3bf   :  { %11850 = vst [vmem:[#allocation269_spill] sm:$0xff] %v10072_v50 }
 0x3c0   :  { %v3434_v6 = vpop.f32.mrf.mxu2  ;;  %v3099_v25 = vpop.f32.mrf.mxu0 }
 0x3c1   :  { %v3435_v22 = vadd.f32 %v3434_v6, %v3266_v29  ;;  %v3603_v49 = vpop.f32.mrf.mxu3  ;;  %v3100_v14 = vadd.f32 %v3099_v25, %v8566_v30  ;;  %v3268_v20 = vpop.f32.mrf.mxu1  ;;  %v6984_v29 = vld [vmem:[%s11335_s1 + $0x104] sm:$0xf]  ;;  %v6316_v30 = vld [vmem:[%s11335_s1 + $0x108] sm:$0xf0] }
 0x3c2   :  { %v6319_v45 = vor.u32 %v6984_v29, %v6316_v30  ;;  %v6968_v29 = vld [vmem:[%s11335_s1 + $0x84] sm:$0xf]  ;;  %v6252_v30 = vld [vmem:[%s11335_s1 + $0x88] sm:$0xf0] }
 0x3c3   :  { %v10077_v46 = vadd.f32 %v3603_v49, %v3435_v22  ;;  %v3269_v27 = vadd.f32 %v3268_v20, %v3100_v14  ;;  %3138 = vmatmul.bf16.gmra.mxu0 %v10068_v36  ;;  %v6952_v20 = vld [vmem:[%s11335_s1 + $0x4] sm:$0xf] }
 0x3c4   :  { %3307 = vmatmul.bf16.gmra.mxu1 %v10070_v23  ;;  %v6191_v38 = vor.u32 %v6952_v20, %v6188_v18  ;;  %4021 = vmatpush.bf16.msra.mxu2 %v6319_v45  ;;  %v6042_v45 = vld [vmem:[%s11336_s0 + $0x6d0] sm:$0xf]  ;;  %v6914_v18 = vld [vmem:[%s11336_s0 + $0x6d4] sm:$0xf]  ;;  %v11977_v36 = vld [vmem:[#allocation58_spill] sm:$0xff] }
 0x3c5   :  { %11852 = vst [vmem:[#allocation271_spill] sm:$0xff] %v10077_v46  ;;  %3476 = vmatmul.bf16.gmra.mxu2 %v10072_v50 }
 0x3c6   :  { %3645 = vmatmul.bf16.gmra.mxu3 %v10075_v28  ;;  %3683 = vmatpush.bf16.msra.mxu0 %v6191_v38  ;;  %v6915_v38 = vld [vmem:[%s11336_s0 + $0x6dc] sm:$0xf] }
 0x3c7   :  { %v10141_v28 = vor.u32 %v6915_v38, %v6052_v13  ;;  %v6926_v38 = vld [vmem:[%s11336_s0 + $0x72c] sm:$0xf0]  ;;  %v6082_v13 = vld [vmem:[%s11336_s0 + $0x718] sm:$0xf] }
 0x3c8   :  { %v3437_v33 = vpop.f32.mrf.mxu2  ;;  %v3101_v22 = vpop.f32.mrf.mxu0 }
 0x3c9   :  { %v3438_v54 = vadd.f32 %v3437_v33, %v3269_v27  ;;  %v3606_v6 = vpop.f32.mrf.mxu3  ;;  %v3102_v49 = vadd.f32 %v3101_v22, %v8607_v2  ;;  %v3270_v25 = vpop.f32.mrf.mxu1  ;;  %v6255_v27 = vor.u32 %v6968_v29, %v6252_v30  ;;  %v6918_v2 = vld [vmem:[%s11336_s0 + $0x6ec] sm:$0xf0]  ;;  %v6919_v33 = vld [vmem:[%s11336_s0 + $0x6f4] sm:$0xf0]  ;;  %v10136_v29 = vor.u32 %v6914_v18, %v6044_v41  ;;  %11857 = vst [vmem:[#allocation276_spill] sm:$0xff] %v10141_v28 }
 0x3ca   :  { %v10138_v30 = vor.u32 %v6919_v33, %v6050_v12 }
 0x3cb   :  { %v10102_v14 = vadd.f32 %v3606_v6, %v3438_v54  ;;  %v3271_v20 = vadd.f32 %v3270_v25, %v3102_v49  ;;  %3852 = vmatpush.bf16.msra.mxu1 %v6255_v27  ;;  %v10134_v6 = vor.u32 %v6918_v2, %v6042_v45  ;;  %11855 = vst [vmem:[#allocation274_spill] sm:$0xff] %v10136_v29 }
 0x3cc   :  { %11856 = vst [vmem:[#allocation275_spill] sm:$0xff] %v10138_v30 }
 0x3cd   :  { %11853 = vst [vmem:[#allocation272_spill] sm:$0xff] %v10102_v14 }
 0x3ce   :  { %11854 = vst [vmem:[#allocation273_spill] sm:$0xff] %v10134_v6 }
 0x3d0   :  { %v3439_v54 = vpop.f32.mrf.mxu2  ;;  %v3104_v25 = vpop.f32.mrf.mxu0 }
 0x3d1   :  { %v3440_v22 = vadd.f32 %v3439_v54, %v3271_v20  ;;  %v3608_v49 = vpop.f32.mrf.mxu3  ;;  %v3105_v27 = vadd.f32 %v3104_v25, %v8614_v37  ;;  %v3273_v14 = vpop.f32.mrf.mxu1  ;;  %v6927_v54 = vld [vmem:[%s11336_s0 + $0x734] sm:$0xf0] }
 0x3d3   :  { %v10143_v50 = vadd.f32 %v3608_v49, %v3440_v22  ;;  %v3274_v23 = vadd.f32 %v3273_v14, %v3105_v27  ;;  %3143 = vmatmul.bf16.gmra.mxu0 %v10134_v6  ;;  %v6074_v14 = vld [vmem:[%s11336_s0 + $0x710] sm:$0xf]  ;;  %v6923_v22 = vld [vmem:[%s11336_s0 + $0x71c] sm:$0xf]  ;;  %v11973_v6 = vld [vmem:[#allocation54_spill] sm:$0xff] }
 0x3d4   :  { %3312 = vmatmul.bf16.gmra.mxu1 %v10136_v29  ;;  %v6084_v49 = vld [vmem:[%s11336_s0 + $0x738] sm:$0xf0]  ;;  %v10176_v27 = vor.u32 %v6926_v38, %v6074_v14 }
 0x3d5   :  { %11858 = vst [vmem:[#allocation277_spill] sm:$0xff] %v10143_v50  ;;  %3481 = vmatmul.bf16.gmra.mxu2 %v10138_v30 }
 0x3d6   :  { %3650 = vmatmul.bf16.gmra.mxu3 %v10141_v28  ;;  %11860 = vst [vmem:[#allocation279_spill] sm:$0xff] %v10176_v27  ;;  %v10183_v28 = vor.u32 %v6923_v22, %v6084_v49  ;;  %v6934_v22 = vld [vmem:[%s11336_s0 + $0x76c] sm:$0xf0]  ;;  %v6114_v49 = vld [vmem:[%s11336_s0 + $0x758] sm:$0xf] }
 0x3d8   :  { %v3442_v20 = vpop.f32.mrf.mxu2  ;;  %v3106_v18 = vpop.f32.mrf.mxu0  ;;  %11863 = vst [vmem:[#allocation282_spill] sm:$0xff] %v10183_v28 }
 0x3d9   :  { %v3443_v45 = vadd.f32 %v3442_v20, %v3274_v23  ;;  %v3611_v2 = vpop.f32.mrf.mxu3  ;;  %v3107_v37 = vadd.f32 %v3106_v18, %v8649_v0  ;;  %v3275_v41 = vpop.f32.mrf.mxu1  ;;  %v6922_v23 = vld [vmem:[%s11336_s0 + $0x714] sm:$0xf] }
 0x3da   :  { %v6076_v0 = vld [vmem:[%s11336_s0 + $0x730] sm:$0xf0] }
 0x3db   :  { %v10150_v12 = vadd.f32 %v3611_v2, %v3443_v45  ;;  %v3276_v33 = vadd.f32 %v3275_v41, %v3107_v37  ;;  %v10178_v18 = vor.u32 %v6922_v23, %v6076_v0  ;;  %v10180_v37 = vor.u32 %v6927_v54, %v6082_v13 }
 0x3dd   :  { %11859 = vst [vmem:[#allocation278_spill] sm:$0xff] %v10150_v12 }
 0x3de   :  { %11861 = vst [vmem:[#allocation280_spill] sm:$0xff] %v10178_v18 }
 0x3df   :  { %11862 = vst [vmem:[#allocation281_spill] sm:$0xff] %v10180_v37 }
 0x3e0   :  { %v3444_v25 = vpop.f32.mrf.mxu2  ;;  %v3109_v2 = vpop.f32.mrf.mxu0 }
 0x3e1   :  { %v3445_v20 = vadd.f32 %v3444_v25, %v3276_v33  ;;  %v3613_v45 = vpop.f32.mrf.mxu3  ;;  %v3110_v41 = vadd.f32 %v3109_v2, %v8656_v34  ;;  %v3278_v12 = vpop.f32.mrf.mxu1  ;;  %v6935_v25 = vld [vmem:[%s11336_s0 + $0x774] sm:$0xf0] }
 0x3e3   :  { %v10185_v30 = vadd.f32 %v3613_v45, %v3445_v20  ;;  %v3279_v29 = vadd.f32 %v3278_v12, %v3110_v41  ;;  %3148 = vmatmul.bf16.gmra.mxu0 %v10176_v27  ;;  %v6106_v12 = vld [vmem:[%s11336_s0 + $0x750] sm:$0xf]  ;;  %v6931_v20 = vld [vmem:[%s11336_s0 + $0x75c] sm:$0xf]  ;;  %v11969_v27 = vld [vmem:[#allocation50_spill] sm:$0xff] }
 0x3e4   :  { %3317 = vmatmul.bf16.gmra.mxu1 %v10178_v18  ;;  %v6116_v45 = vld [vmem:[%s11336_s0 + $0x778] sm:$0xf0]  ;;  %v10218_v41 = vor.u32 %v6934_v22, %v6106_v12 }
 0x3e5   :  { %11864 = vst [vmem:[#allocation283_spill] sm:$0xff] %v10185_v30  ;;  %3486 = vmatmul.bf16.gmra.mxu2 %v10180_v37  ;;  %v10225_v37 = vor.u32 %v6931_v20, %v6116_v45 }
 0x3e6   :  { %3655 = vmatmul.bf16.gmra.mxu3 %v10183_v28  ;;  %11866 = vst [vmem:[#allocation285_spill] sm:$0xff] %v10218_v41 }
 0x3e8   :  { %v3447_v33 = vpop.f32.mrf.mxu2  ;;  %v3111_v23 = vpop.f32.mrf.mxu0 }
 0x3e9   :  { %v3448_v14 = vadd.f32 %v3447_v33, %v3279_v29  ;;  %v3616_v38 = vpop.f32.mrf.mxu3  ;;  %v3112_v34 = vadd.f32 %v3111_v23, %v8691_v52  ;;  %v3280_v0 = vpop.f32.mrf.mxu1  ;;  %v6930_v29 = vld [vmem:[%s11336_s0 + $0x754] sm:$0xf] }
 0x3ea   :  { %v6108_v52 = vld [vmem:[%s11336_s0 + $0x770] sm:$0xf0] }
 0x3eb   :  { %v10192_v13 = vadd.f32 %v3616_v38, %v3448_v14  ;;  %v3281_v54 = vadd.f32 %v3280_v0, %v3112_v34  ;;  %v10220_v23 = vor.u32 %v6930_v29, %v6108_v52  ;;  %v10222_v34 = vor.u32 %v6935_v25, %v6114_v49  ;;  %v11869_v0 = vld [vmem:[#allocation122_spill] sm:$0xff]  ;;  %v11872_v52 = vld [vmem:[#allocation127_spill] sm:$0xff] }
 0x3ec   :  { %11870 = vst [vmem:[#allocation122_spill] sm:$0xff] %v10225_v37 }
 0x3ed   :  { %11865 = vst [vmem:[#allocation284_spill] sm:$0xff] %v10192_v13 }
 0x3ee   :  { %11867 = vst [vmem:[#allocation286_spill] sm:$0xff] %v10220_v23 }
 0x3ef   :  { %11868 = vst [vmem:[#allocation287_spill] sm:$0xff] %v10222_v34 }
 0x3f0   :  { %v3449_v2 = vpop.f32.mrf.mxu2  ;;  %v3114_v38 = vpop.f32.mrf.mxu0 }
 0x3f1   :  { %v3450_v33 = vadd.f32 %v3449_v2, %v3281_v54  ;;  %v3618_v14 = vpop.f32.mrf.mxu3  ;;  %v3115_v13 = vadd.f32 %v3114_v38, %v11869_v0  ;;  %v3283_v28 = vpop.f32.mrf.mxu1  ;;  %v6140_v2 = vld [vmem:[%s11336_s0 + $0x7b0] sm:$0xf0]  ;;  %v6939_v38 = vld [vmem:[%s11336_s0 + $0x79c] sm:$0xf] }
 0x3f2   :  { %v6148_v0 = vld [vmem:[%s11336_s0 + $0x7b8] sm:$0xf0] }
 0x3f3   :  { %v10227_v18 = vadd.f32 %v3618_v14, %v3450_v33  ;;  %v3284_v30 = vadd.f32 %v3283_v28, %v3115_v13  ;;  %3153 = vmatmul.bf16.gmra.mxu0 %v10218_v41  ;;  %v6138_v28 = vld [vmem:[%s11336_s0 + $0x790] sm:$0xf]  ;;  %v6146_v33 = vld [vmem:[%s11336_s0 + $0x798] sm:$0xf] }
 0x3f4   :  { %3322 = vmatmul.bf16.gmra.mxu1 %v10220_v23  ;;  %v6942_v13 = vld [vmem:[%s11336_s0 + $0x7ac] sm:$0xf0]  ;;  %v6943_v14 = vld [vmem:[%s11336_s0 + $0x7b4] sm:$0xf0]  ;;  %v10267_v23 = vor.u32 %v6939_v38, %v6148_v0 }
 0x3f5   :  { %11871 = vst [vmem:[#allocation288_spill] sm:$0xff] %v10227_v18  ;;  %3491 = vmatmul.bf16.gmra.mxu2 %v10222_v34 }
 0x3f6   :  { %3660 = vmatmul.bf16.gmra.mxu3 %v10225_v37 }
 0x3f8   :  { %v3452_v54 = vpop.f32.mrf.mxu2  ;;  %v3116_v29 = vpop.f32.mrf.mxu0 }
 0x3f9   :  { %v3453_v12 = vadd.f32 %v3452_v54, %v3284_v30  ;;  %v3621_v22 = vpop.f32.mrf.mxu3  ;;  %v3117_v49 = vadd.f32 %v3116_v29, %v11872_v52  ;;  %v3285_v25 = vpop.f32.mrf.mxu1  ;;  %v6938_v30 = vld [vmem:[%s11336_s0 + $0x794] sm:$0xf] }
 0x3fb   :  { %v10234_v20 = vadd.f32 %v3621_v22, %v3453_v12  ;;  %v3286_v45 = vadd.f32 %v3285_v25, %v3117_v49  ;;  %v10260_v12 = vor.u32 %v6942_v13, %v6138_v28  ;;  %v10262_v49 = vor.u32 %v6938_v30, %v6140_v2  ;;  %v6500_v28 = vld [vmem:[%s11335_s1 + $0x278] sm:$0xf0]  ;;  %v7078_v13 = vld [vmem:[%s11335_s1 + $0x3f4] sm:$0xf] }
 0x3fc   :  { %v10264_v25 = vor.u32 %v6943_v14, %v6146_v33  ;;  %v6692_v30 = vld [vmem:[%s11335_s1 + $0x3f8] sm:$0xf0] }
 0x3fd   :  { %11873 = vst [vmem:[#allocation127_spill] sm:$0xff] %v10234_v20  ;;  %v11877_v20 = vld [vmem:[#allocation128_spill] sm:$0xff]  ;;  %v6695_v14 = vor.u32 %v7078_v13, %v6692_v30 }
 0x3fe   :  { %11874 = vst [vmem:[#allocation289_spill] sm:$0xff] %v10260_v12  ;;  %v6950_v13 = vld [vmem:[%s11336_s0 + $0x7ec] sm:$0xf0]  ;;  %v6946_v30 = vld [vmem:[%s11336_s0 + $0x7d4] sm:$0xf] }
 0x3ff   :  { %11875 = vst [vmem:[#allocation290_spill] sm:$0xff] %v10262_v49  ;;  %4859 = vmatpush.bf16.msrb.mxu3 %v6695_v14  ;;  %v6951_v14 = vld [vmem:[%s11336_s0 + $0x7f4] sm:$0xf0] }
 0x400   :  { %v3454_v54 = vpop.f32.mrf.mxu2  ;;  %v3119_v52 = vpop.f32.mrf.mxu0  ;;  %11876 = vst [vmem:[#allocation291_spill] sm:$0xff] %v10264_v25 }
 0x401   :  { %v3455_v22 = vadd.f32 %v3454_v54, %v3286_v45  ;;  %v3623_v29 = vpop.f32.mrf.mxu3  ;;  %v3120_v37 = vadd.f32 %v3119_v52, %v11877_v20  ;;  %v3288_v34 = vpop.f32.mrf.mxu1  ;;  %11878 = vst [vmem:[#allocation128_spill] sm:$0xff] %v10267_v23  ;;  %v7062_v45 = vld [vmem:[%s11335_s1 + $0x374] sm:$0xf]  ;;  %v6628_v20 = vld [vmem:[%s11335_s1 + $0x378] sm:$0xf0] }
 0x403   :  { %v10269_v18 = vadd.f32 %v3623_v29, %v3455_v22  ;;  %v3289_v41 = vadd.f32 %v3288_v34, %v3120_v37  ;;  %3158 = vmatmul.bf16.gmra.mxu0 %v10260_v12  ;;  %v7030_v37 = vld [vmem:[%s11335_s1 + $0x274] sm:$0xf]  ;;  %v6631_v34 = vor.u32 %v7062_v45, %v6628_v20  ;;  %v11880_v22 = vld [vmem:[#allocation133_spill] sm:$0xff] }
 0x404   :  { %3327 = vmatmul.bf16.gmra.mxu1 %v10262_v49  ;;  %v6503_v33 = vor.u32 %v7030_v37, %v6500_v28  ;;  %v7046_v20 = vld [vmem:[%s11335_s1 + $0x2f4] sm:$0xf]  ;;  %v6564_v37 = vld [vmem:[%s11335_s1 + $0x2f8] sm:$0xf0] }
 0x405   :  { %11879 = vst [vmem:[#allocation292_spill] sm:$0xff] %v10269_v18  ;;  %3496 = vmatmul.bf16.gmra.mxu2 %v10264_v25 }
 0x406   :  { %3665 = vmatmul.bf16.gmra.mxu3 %v10267_v23  ;;  %4690 = vmatpush.bf16.msrb.mxu2 %v6631_v34  ;;  %v6170_v34 = vld [vmem:[%s11336_s0 + $0x7d0] sm:$0xf]  ;;  %v11885_v23 = vld [vmem:[#allocation134_spill] sm:$0xff] }
 0x407   :  { %4352 = vmatpush.bf16.msrb.mxu0 %v6503_v33  ;;  %v6178_v33 = vld [vmem:[%s11336_s0 + $0x7d8] sm:$0xf] }
 0x408   :  { %v3457_v2 = vpop.f32.mrf.mxu2  ;;  %v3121_v54 = vpop.f32.mrf.mxu0 }
 0x409   :  { %v3458_v38 = vadd.f32 %v3457_v2, %v3289_v41  ;;  %v3626_v0 = vpop.f32.mrf.mxu3  ;;  %v3122_v29 = vadd.f32 %v3121_v54, %v11880_v22  ;;  %v3290_v52 = vpop.f32.mrf.mxu1  ;;  %v6567_v41 = vor.u32 %v7046_v20, %v6564_v37  ;;  %v6172_v2 = vld [vmem:[%s11336_s0 + $0x7f0] sm:$0xf0]  ;;  %v10326_v22 = vor.u32 %v6950_v13, %v6170_v34 }
 0x40a   :  { %v10328_v37 = vor.u32 %v6946_v30, %v6172_v2  ;;  %v11888_v2 = vld [vmem:[#allocation139_spill] sm:$0xff] }
 0x40b   :  { %v10294_v45 = vadd.f32 %v3626_v0, %v3458_v38  ;;  %v3291_v28 = vadd.f32 %v3290_v52, %v3122_v29  ;;  %4521 = vmatpush.bf16.msrb.mxu1 %v6567_v41  ;;  %v6947_v38 = vld [vmem:[%s11336_s0 + $0x7dc] sm:$0xf]  ;;  %11882 = vst [vmem:[#allocation293_spill] sm:$0xff] %v10326_v22 }
 0x40c   :  { %v6180_v0 = vld [vmem:[%s11336_s0 + $0x7f8] sm:$0xf0]  ;;  %11883 = vst [vmem:[#allocation294_spill] sm:$0xff] %v10328_v37 }
 0x40d   :  { %11881 = vst [vmem:[#allocation133_spill] sm:$0xff] %v10294_v45  ;;  %v10330_v45 = vor.u32 %v6951_v14, %v6178_v33  ;;  %v10333_v49 = vor.u32 %v6947_v38, %v6180_v0 }
 0x40f   :  { %11884 = vst [vmem:[#allocation295_spill] sm:$0xff] %v10330_v45 }
 0x410   :  { %v3459_v54 = vpop.f32.mrf.mxu2  ;;  %v3124_v20 = vpop.f32.mrf.mxu0  ;;  %11886 = vst [vmem:[#allocation134_spill] sm:$0xff] %v10333_v49 }
 0x411   :  { %v3460_v29 = vadd.f32 %v3459_v54, %v3291_v28  ;;  %v3628_v52 = vpop.f32.mrf.mxu3  ;;  %v3125_v41 = vadd.f32 %v3124_v20, %v11885_v23  ;;  %v3293_v25 = vpop.f32.mrf.mxu1 }
 0x413   :  { %v10335_v18 = vadd.f32 %v3628_v52, %v3460_v29  ;;  %v3294_v12 = vadd.f32 %v3293_v25, %v3125_v41  ;;  %3163 = vmatmul.bf16.gmra.mxu0 %v10326_v22  ;;  %v11890_v52 = vld [vmem:[#allocation140_spill] sm:$0xff]  ;;  %v11968_v22 = vld [vmem:[#allocation49_spill] sm:$0xff] }
 0x414   :  { %3332 = vmatmul.bf16.gmra.mxu1 %v10328_v37  ;;  %v11892_v37 = vld [vmem:[#allocation2_spill] sm:$0xff] }
 0x415   :  { %11887 = vst [vmem:[#allocation296_spill] sm:$0xff] %v10335_v18  ;;  %3501 = vmatmul.bf16.gmra.mxu2 %v10330_v45  ;;  %v11967_v18 = vld [vmem:[#allocation48_spill] sm:$0xff] }
 0x416   :  { %3670 = vmatmul.bf16.gmra.mxu3 %v10333_v49 }
 0x418   :  { %v3462_v28 = vpop.f32.mrf.mxu2  ;;  %v3126_v30 = vpop.f32.mrf.mxu0 }
 0x419   :  { %v3463_v34 = vadd.f32 %v3462_v28, %v3294_v12  ;;  %v3631_v13 = vpop.f32.mrf.mxu3  ;;  %v3127_v23 = vadd.f32 %v3126_v30, %v11888_v2  ;;  %v3295_v33 = vpop.f32.mrf.mxu1  ;;  %v11893_v12 = vld [vmem:[#allocation3_spill] sm:$0xff]  ;;  %v11894_v28 = vld [vmem:[#allocation4_spill] sm:$0xff]  ;;  %v11895_v30 = vld [vmem:[#allocation5_spill] sm:$0xff] }
 0x41b   :  { %v10342_v14 = vadd.f32 %v3631_v13, %v3463_v34  ;;  %v3296_v38 = vadd.f32 %v3295_v33, %v3127_v23  ;;  %v11896_v33 = vld [vmem:[#allocation145_spill] sm:$0xff] }
 0x41d   :  { %11889 = vst [vmem:[#allocation139_spill] sm:$0xff] %v10342_v14  ;;  %v11900_v14 = vld [vmem:[#allocation6_spill] sm:$0xff] }
 0x420   :  { %v3464_v0 = vpop.f32.mrf.mxu2  ;;  %v3129_v29 = vpop.f32.mrf.mxu0 }
 0x421   :  { %v3465_v25 = vadd.f32 %v3464_v0, %v3296_v38  ;;  %v3633_v54 = vpop.f32.mrf.mxu3  ;;  %v3130_v20 = vadd.f32 %v3129_v29, %v11890_v52  ;;  %v3298_v41 = vpop.f32.mrf.mxu1 }
 0x423   :  { %v10345_v45 = vadd.f32 %v3633_v54, %v3465_v25  ;;  %v3299_v49 = vadd.f32 %v3298_v41, %v3130_v20  ;;  %3684 = vmatmul.bf16.vlgmr.msra.gmra.mxu0 %v11892_v37  ;;  %v11898_v41 = vld [vmem:[#allocation146_spill] sm:$0xff] }
 0x424   :  { %3853 = vmatmul.bf16.vlgmr.msra.gmra.mxu1 %v11893_v12 }
 0x425   :  { %11891 = vst [vmem:[#allocation140_spill] sm:$0xff] %v10345_v45  ;;  %4022 = vmatmul.bf16.vlgmr.msra.gmra.mxu2 %v11894_v28 }
 0x426   :  { %4191 = vmatmul.bf16.vlgmr.msra.gmra.mxu3 %v11895_v30 }
 0x428   :  { %v3467_v34 = vpop.f32.mrf.mxu2  ;;  %v3131_v23 = vpop.f32.mrf.mxu0 }
 0x429   :  { %v3468_v13 = vadd.f32 %v3467_v34, %v3299_v49  ;;  %v3636_v2 = vpop.f32.mrf.mxu3  ;;  %v3132_v38 = vadd.f32 %v3131_v23, %v11896_v33  ;;  %v3300_v0 = vpop.f32.mrf.mxu1  ;;  %v11901_v49 = vld [vmem:[#allocation7_spill] sm:$0xff]  ;;  %v11902_v34 = vld [vmem:[#allocation8_spill] sm:$0xff]  ;;  %v11903_v23 = vld [vmem:[#allocation9_spill] sm:$0xff] }
 0x42b   :  { %v10352_v29 = vadd.f32 %v3636_v2, %v3468_v13  ;;  %v3301_v25 = vadd.f32 %v3300_v0, %v3132_v38  ;;  %v11904_v0 = vld [vmem:[#allocation151_spill] sm:$0xff] }
 0x42d   :  { %11897 = vst [vmem:[#allocation2_spill] sm:$0xff] %v10352_v29  ;;  %v11908_v29 = vld [vmem:[#allocation10_spill] sm:$0xff] }
 0x430   :  { %v3469_v54 = vpop.f32.mrf.mxu2  ;;  %v3134_v37 = vpop.f32.mrf.mxu0 }
 0x431   :  { %v3470_v52 = vadd.f32 %v3469_v54, %v3301_v25  ;;  %v3638_v20 = vpop.f32.mrf.mxu3  ;;  %v3135_v12 = vadd.f32 %v3134_v37, %v11898_v41  ;;  %v3303_v45 = vpop.f32.mrf.mxu1 }
 0x433   :  { %v10355_v28 = vadd.f32 %v3638_v20, %v3470_v52  ;;  %v3304_v30 = vadd.f32 %v3303_v45, %v3135_v12  ;;  %3689 = vmatmul.bf16.gmra.mxu0 %v11900_v14  ;;  %v11906_v12 = vld [vmem:[#allocation152_spill] sm:$0xff] }
 0x434   :  { %3858 = vmatmul.bf16.gmra.mxu1 %v11901_v49 }
 0x435   :  { %11899 = vst [vmem:[#allocation3_spill] sm:$0xff] %v10355_v28  ;;  %4027 = vmatmul.bf16.gmra.mxu2 %v11902_v34 }
 0x436   :  { %4196 = vmatmul.bf16.gmra.mxu3 %v11903_v23 }
 0x438   :  { %v3472_v13 = vpop.f32.mrf.mxu2  ;;  %v3136_v38 = vpop.f32.mrf.mxu0 }
 0x439   :  { %v3473_v2 = vadd.f32 %v3472_v13, %v3304_v30  ;;  %v3641_v33 = vpop.f32.mrf.mxu3  ;;  %v3137_v25 = vadd.f32 %v3136_v38, %v11904_v0  ;;  %v3305_v54 = vpop.f32.mrf.mxu1  ;;  %v11909_v30 = vld [vmem:[#allocation11_spill] sm:$0xff]  ;;  %v11910_v13 = vld [vmem:[#allocation12_spill] sm:$0xff]  ;;  %v11911_v38 = vld [vmem:[#allocation13_spill] sm:$0xff] }
 0x43b   :  { %v10362_v37 = vadd.f32 %v3641_v33, %v3473_v2  ;;  %v3306_v52 = vadd.f32 %v3305_v54, %v3137_v25  ;;  %v7060_v2 = vld [vmem:[%s11335_s1 + $0x364] sm:$0xf]  ;;  %v6620_v33 = vld [vmem:[%s11335_s1 + $0x368] sm:$0xf0] }
 0x43c   :  { %v6623_v0 = vor.u32 %v7060_v2, %v6620_v33  ;;  %v7076_v25 = vld [vmem:[%s11335_s1 + $0x3e4] sm:$0xf]  ;;  %v6684_v54 = vld [vmem:[%s11335_s1 + $0x3e8] sm:$0xf0] }
 0x43d   :  { %11905 = vst [vmem:[#allocation4_spill] sm:$0xff] %v10362_v37  ;;  %v7044_v2 = vld [vmem:[%s11335_s1 + $0x2e4] sm:$0xf]  ;;  %v6556_v33 = vld [vmem:[%s11335_s1 + $0x2e8] sm:$0xf0] }
 0x43e   :  { %4691 = vmatpush.bf16.msrb.mxu2 %v6623_v0  ;;  %v11924_v37 = vld [vmem:[#allocation18_spill] sm:$0xff] }
 0x440   :  { %v3474_v20 = vpop.f32.mrf.mxu2  ;;  %v3139_v14 = vpop.f32.mrf.mxu0 }
 0x441   :  { %v3475_v45 = vadd.f32 %v3474_v20, %v3306_v52  ;;  %v3643_v41 = vpop.f32.mrf.mxu3  ;;  %v3140_v49 = vadd.f32 %v3139_v14, %v11906_v12  ;;  %v3308_v28 = vpop.f32.mrf.mxu1 }
 0x443   :  { %v10365_v34 = vadd.f32 %v3643_v41, %v3475_v45  ;;  %v3309_v23 = vadd.f32 %v3308_v28, %v3140_v49  ;;  %3694 = vmatmul.bf16.gmra.mxu0 %v11908_v29  ;;  %v7028_v28 = vld [vmem:[%s11335_s1 + $0x264] sm:$0xf]  ;;  %v6492_v29 = vld [vmem:[%s11335_s1 + $0x268] sm:$0xf0]  ;;  %v6687_v45 = vor.u32 %v7076_v25, %v6684_v54  ;;  %v11912_v49 = vld [vmem:[#allocation157_spill] sm:$0xff] }
 0x444   :  { %3863 = vmatmul.bf16.gmra.mxu1 %v11909_v30  ;;  %v6495_v20 = vor.u32 %v7028_v28, %v6492_v29 }
 0x445   :  { %11907 = vst [vmem:[#allocation5_spill] sm:$0xff] %v10365_v34  ;;  %4032 = vmatmul.bf16.gmra.mxu2 %v11910_v13  ;;  %4860 = vmatpush.bf16.msrb.mxu3 %v6687_v45  ;;  %v11919_v34 = vld [vmem:[#allocation17_spill] sm:$0xff] }
 0x446   :  { %4201 = vmatmul.bf16.gmra.mxu3 %v11911_v38  ;;  %4353 = vmatpush.bf16.msrb.mxu0 %v6495_v20 }
 0x448   :  { %v3477_v52 = vpop.f32.mrf.mxu2  ;;  %v3141_v12 = vpop.f32.mrf.mxu0 }
 0x449   :  { %v3478_v41 = vadd.f32 %v3477_v52, %v3309_v23  ;;  %v3646_v14 = vpop.f32.mrf.mxu3  ;;  %v3142_v30 = vadd.f32 %v3141_v12, %v11912_v49  ;;  %v3310_v13 = vpop.f32.mrf.mxu1  ;;  %v6559_v23 = vor.u32 %v7044_v2, %v6556_v33  ;;  %v11914_v52 = vld [vmem:[#allocation158_spill] sm:$0xff]  ;;  %v11917_v49 = vld [vmem:[#allocation15_spill] sm:$0xff] }
 0x44a   :  { %v11916_v12 = vld [vmem:[#allocation14_spill] sm:$0xff] }
 0x44b   :  { %v10390_v38 = vadd.f32 %v3646_v14, %v3478_v41  ;;  %v3311_v28 = vadd.f32 %v3310_v13, %v3142_v30  ;;  %4522 = vmatpush.bf16.msrb.mxu1 %v6559_v23 }
 0x44d   :  { %11913 = vst [vmem:[#allocation145_spill] sm:$0xff] %v10390_v38  ;;  %v11918_v38 = vld [vmem:[#allocation16_spill] sm:$0xff] }
 0x450   :  { %v3479_v29 = vpop.f32.mrf.mxu2  ;;  %v3144_v54 = vpop.f32.mrf.mxu0 }
 0x451   :  { %v3480_v0 = vadd.f32 %v3479_v29, %v3311_v28  ;;  %v3648_v25 = vpop.f32.mrf.mxu3  ;;  %v3145_v20 = vadd.f32 %v3144_v54, %v11914_v52  ;;  %v3313_v45 = vpop.f32.mrf.mxu1  ;;  %v11920_v28 = vld [vmem:[#allocation163_spill] sm:$0xff] }
 0x453   :  { %v10399_v41 = vadd.f32 %v3648_v25, %v3480_v0  ;;  %v3314_v14 = vadd.f32 %v3313_v45, %v3145_v20  ;;  %3699 = vmatmul.bf16.gmra.mxu0 %v11916_v12  ;;  %v11922_v12 = vld [vmem:[#allocation164_spill] sm:$0xff] }
 0x454   :  { %3868 = vmatmul.bf16.gmra.mxu1 %v11917_v49 }
 0x455   :  { %11915 = vst [vmem:[#allocation146_spill] sm:$0xff] %v10399_v41  ;;  %4037 = vmatmul.bf16.gmra.mxu2 %v11918_v38 }
 0x456   :  { %4206 = vmatmul.bf16.gmra.mxu3 %v11919_v34 }
 0x458   :  { %v3482_v30 = vpop.f32.mrf.mxu2  ;;  %v3146_v33 = vpop.f32.mrf.mxu0 }
 0x459   :  { %v3483_v13 = vadd.f32 %v3482_v30, %v3314_v14  ;;  %v3651_v2 = vpop.f32.mrf.mxu3  ;;  %v3147_v23 = vadd.f32 %v3146_v33, %v11920_v28  ;;  %v3315_v29 = vpop.f32.mrf.mxu1  ;;  %v11925_v14 = vld [vmem:[#allocation19_spill] sm:$0xff]  ;;  %v11926_v30 = vld [vmem:[#allocation20_spill] sm:$0xff]  ;;  %v11927_v33 = vld [vmem:[#allocation21_spill] sm:$0xff] }
 0x45b   :  { %v10406_v54 = vadd.f32 %v3651_v2, %v3483_v13  ;;  %v3316_v0 = vadd.f32 %v3315_v29, %v3147_v23  ;;  %v11928_v29 = vld [vmem:[#allocation169_spill] sm:$0xff] }
 0x45d   :  { %11921 = vst [vmem:[#allocation6_spill] sm:$0xff] %v10406_v54  ;;  %v11932_v54 = vld [vmem:[#allocation22_spill] sm:$0xff] }
 0x460   :  { %v3484_v25 = vpop.f32.mrf.mxu2  ;;  %v3149_v45 = vpop.f32.mrf.mxu0 }
 0x461   :  { %v3485_v52 = vadd.f32 %v3484_v25, %v3316_v0  ;;  %v3653_v20 = vpop.f32.mrf.mxu3  ;;  %v3150_v49 = vadd.f32 %v3149_v45, %v11922_v12  ;;  %v3318_v41 = vpop.f32.mrf.mxu1 }
 0x463   :  { %v10409_v38 = vadd.f32 %v3653_v20, %v3485_v52  ;;  %v3319_v34 = vadd.f32 %v3318_v41, %v3150_v49  ;;  %3704 = vmatmul.bf16.gmra.mxu0 %v11924_v37  ;;  %v11930_v49 = vld [vmem:[#allocation170_spill] sm:$0xff] }
 0x464   :  { %3873 = vmatmul.bf16.gmra.mxu1 %v11925_v14 }
 0x465   :  { %11923 = vst [vmem:[#allocation7_spill] sm:$0xff] %v10409_v38  ;;  %4042 = vmatmul.bf16.gmra.mxu2 %v11926_v30 }
 0x466   :  { %4211 = vmatmul.bf16.gmra.mxu3 %v11927_v33 }
 0x468   :  { %v3487_v13 = vpop.f32.mrf.mxu2  ;;  %v3151_v23 = vpop.f32.mrf.mxu0 }
 0x469   :  { %v3488_v2 = vadd.f32 %v3487_v13, %v3319_v34  ;;  %v3656_v28 = vpop.f32.mrf.mxu3  ;;  %v3152_v0 = vadd.f32 %v3151_v23, %v11928_v29  ;;  %v3320_v25 = vpop.f32.mrf.mxu1  ;;  %v11933_v34 = vld [vmem:[#allocation23_spill] sm:$0xff]  ;;  %v11934_v13 = vld [vmem:[#allocation24_spill] sm:$0xff]  ;;  %v11935_v23 = vld [vmem:[#allocation25_spill] sm:$0xff] }
 0x46b   :  { %v10416_v45 = vadd.f32 %v3656_v28, %v3488_v2  ;;  %v3321_v52 = vadd.f32 %v3320_v25, %v3152_v0  ;;  %v11936_v25 = vld [vmem:[#allocation175_spill] sm:$0xff] }
 0x46d   :  { %11929 = vst [vmem:[#allocation8_spill] sm:$0xff] %v10416_v45  ;;  %v11940_v45 = vld [vmem:[#allocation26_spill] sm:$0xff] }
 0x470   :  { %v3489_v20 = vpop.f32.mrf.mxu2  ;;  %v3154_v37 = vpop.f32.mrf.mxu0 }
 0x471   :  { %v3490_v41 = vadd.f32 %v3489_v20, %v3321_v52  ;;  %v3658_v12 = vpop.f32.mrf.mxu3  ;;  %v3155_v14 = vadd.f32 %v3154_v37, %v11930_v49  ;;  %v3323_v38 = vpop.f32.mrf.mxu1 }
 0x473   :  { %v10419_v30 = vadd.f32 %v3658_v12, %v3490_v41  ;;  %v3324_v33 = vadd.f32 %v3323_v38, %v3155_v14  ;;  %3709 = vmatmul.bf16.gmra.mxu0 %v11932_v54  ;;  %v11938_v14 = vld [vmem:[#allocation176_spill] sm:$0xff] }
 0x474   :  { %3878 = vmatmul.bf16.gmra.mxu1 %v11933_v34 }
 0x475   :  { %11931 = vst [vmem:[#allocation9_spill] sm:$0xff] %v10419_v30  ;;  %4047 = vmatmul.bf16.gmra.mxu2 %v11934_v13 }
 0x476   :  { %4216 = vmatmul.bf16.gmra.mxu3 %v11935_v23 }
 0x478   :  { %v3492_v2 = vpop.f32.mrf.mxu2  ;;  %v3156_v0 = vpop.f32.mrf.mxu0 }
 0x479   :  { %v3493_v28 = vadd.f32 %v3492_v2, %v3324_v33  ;;  %v3661_v29 = vpop.f32.mrf.mxu3  ;;  %v3157_v52 = vadd.f32 %v3156_v0, %v11936_v25  ;;  %v3325_v20 = vpop.f32.mrf.mxu1  ;;  %v11941_v33 = vld [vmem:[#allocation27_spill] sm:$0xff]  ;;  %v11942_v2 = vld [vmem:[#allocation28_spill] sm:$0xff]  ;;  %v11943_v0 = vld [vmem:[#allocation29_spill] sm:$0xff] }
 0x47b   :  { %v10426_v37 = vadd.f32 %v3661_v29, %v3493_v28  ;;  %v3326_v41 = vadd.f32 %v3325_v20, %v3157_v52  ;;  %v7058_v28 = vld [vmem:[%s11335_s1 + $0x354] sm:$0xf]  ;;  %v6612_v29 = vld [vmem:[%s11335_s1 + $0x358] sm:$0xf0] }
 0x47c   :  { %v6615_v25 = vor.u32 %v7058_v28, %v6612_v29  ;;  %v7074_v52 = vld [vmem:[%s11335_s1 + $0x3d4] sm:$0xf]  ;;  %v6676_v20 = vld [vmem:[%s11335_s1 + $0x3d8] sm:$0xf0] }
 0x47d   :  { %11937 = vst [vmem:[#allocation151_spill] sm:$0xff] %v10426_v37  ;;  %v6548_v28 = vld [vmem:[%s11335_s1 + $0x2d8] sm:$0xf0]  ;;  %v11966_v37 = vld [vmem:[#allocation47_spill] sm:$0xff] }
 0x47e   :  { %4692 = vmatpush.bf16.msrb.mxu2 %v6615_v25 }
 0x480   :  { %v3494_v12 = vpop.f32.mrf.mxu2  ;;  %v3159_v54 = vpop.f32.mrf.mxu0 }
 0x481   :  { %v3495_v38 = vadd.f32 %v3494_v12, %v3326_v41  ;;  %v3663_v49 = vpop.f32.mrf.mxu3  ;;  %v3160_v34 = vadd.f32 %v3159_v54, %v11938_v14  ;;  %v3328_v30 = vpop.f32.mrf.mxu1 }
 0x483   :  { %v10429_v13 = vadd.f32 %v3663_v49, %v3495_v38  ;;  %v3329_v23 = vadd.f32 %v3328_v30, %v3160_v34  ;;  %3714 = vmatmul.bf16.gmra.mxu0 %v11940_v45  ;;  %v7026_v30 = vld [vmem:[%s11335_s1 + $0x254] sm:$0xf]  ;;  %v6484_v45 = vld [vmem:[%s11335_s1 + $0x258] sm:$0xf0]  ;;  %v6679_v38 = vor.u32 %v7074_v52, %v6676_v20 }
 0x484   :  { %3883 = vmatmul.bf16.gmra.mxu1 %v11941_v33  ;;  %v6487_v12 = vor.u32 %v7026_v30, %v6484_v45  ;;  %v11945_v52 = vld [vmem:[#allocation181_spill] sm:$0xff] }
 0x485   :  { %11939 = vst [vmem:[#allocation152_spill] sm:$0xff] %v10429_v13  ;;  %4052 = vmatmul.bf16.gmra.mxu2 %v11942_v2  ;;  %4861 = vmatpush.bf16.msrb.mxu3 %v6679_v38  ;;  %v11961_v13 = vld [vmem:[#allocation42_spill] sm:$0xff] }
 0x486   :  { %4221 = vmatmul.bf16.gmra.mxu3 %v11943_v0  ;;  %4354 = vmatpush.bf16.msrb.mxu0 %v6487_v12  ;;  %v7042_v0 = vld [vmem:[%s11335_s1 + $0x2d4] sm:$0xf] }
 0x488   :  { %v3497_v41 = vpop.f32.mrf.mxu2  ;;  %v3161_v14 = vpop.f32.mrf.mxu0 }
 0x489   :  { %v3498_v49 = vadd.f32 %v3497_v41, %v3329_v23  ;;  %v3666_v54 = vpop.f32.mrf.mxu3  ;;  %v3162_v34 = vadd.f32 %v3161_v14, %v9183_v48  ;;  %v3330_v33 = vpop.f32.mrf.mxu1  ;;  %v6551_v23 = vor.u32 %v7042_v0, %v6548_v28  ;;  %v11949_v14 = vld [vmem:[#allocation32_spill] sm:$0xff] }
 0x48b   :  { %v10454_v2 = vadd.f32 %v3666_v54, %v3498_v49  ;;  %v3331_v29 = vadd.f32 %v3330_v33, %v3162_v34  ;;  %4523 = vmatpush.bf16.msrb.mxu1 %v6551_v23  ;;  %v11947_v49 = vld [vmem:[#allocation30_spill] sm:$0xff]  ;;  %v11948_v54 = vld [vmem:[#allocation31_spill] sm:$0xff] }
 0x48d   :  { %11944 = vst [vmem:[#allocation10_spill] sm:$0xff] %v10454_v2  ;;  %v11950_v2 = vld [vmem:[#allocation33_spill] sm:$0xff] }
 0x490   :  { %v3499_v30 = vpop.f32.mrf.mxu2  ;;  %v3164_v48 = vpop.f32.mrf.mxu0 }
 0x491   :  { %v3500_v25 = vadd.f32 %v3499_v30, %v3331_v29  ;;  %v3668_v45 = vpop.f32.mrf.mxu3  ;;  %v3165_v20 = vadd.f32 %v3164_v48, %v11945_v52  ;;  %v3333_v41 = vpop.f32.mrf.mxu1 }
 0x493   :  { %v10463_v12 = vadd.f32 %v3668_v45, %v3500_v25  ;;  %v3334_v38 = vadd.f32 %v3333_v41, %v3165_v20  ;;  %3719 = vmatmul.bf16.gmra.mxu0 %v11947_v49  ;;  %v7080_v45 = vld [vmem:[%s11337_s2] sm:$0x3] }
 0x494   :  { %3888 = vmatmul.bf16.gmra.mxu1 %v11948_v54  ;;  %v10475_v48 = vperm.slane %v7080_v45, 1 }
 0x495   :  { %11946 = vst [vmem:[#allocation11_spill] sm:$0xff] %v10463_v12  ;;  %4057 = vmatmul.bf16.gmra.mxu2 %v11949_v14  ;;  %v11953_v14 = vld [vmem:[#allocation34_spill] sm:$0xff] }
 0x496   :  { %4226 = vmatmul.bf16.gmra.mxu3 %v11950_v2 }
 0x498   :  { %v3502_v34 = vpop.f32.mrf.mxu2  ;;  %v3166_v28 = vpop.f32.mrf.mxu0 }
 0x499   :  { %v3503_v33 = vadd.f32 %v3502_v34, %v3334_v38  ;;  %v3671_v0 = vpop.f32.mrf.mxu3  ;;  %v3167_v29 = vadd.f32 %v3166_v28, %v9225_v31  ;;  %v3335_v23 = vpop.f32.mrf.mxu1  ;;  %v11954_v34 = vld [vmem:[#allocation35_spill] sm:$0xff] }
 0x49b   :  { %v10470_v30 = vadd.f32 %v3671_v0, %v3503_v33  ;;  %v3336_v25 = vadd.f32 %v3335_v23, %v3167_v29  ;;  %v11955_v33 = vld [vmem:[#allocation36_spill] sm:$0xff]  ;;  %v11956_v0 = vld [vmem:[#allocation37_spill] sm:$0xff] }
 0x49d   :  { %11951 = vst [vmem:[#allocation12_spill] sm:$0xff] %v10470_v30  ;;  %v11957_v30 = vld [vmem:[#allocation38_spill] sm:$0xff] }
 0x4a0   :  { %v3504_v52 = vpop.f32.mrf.mxu2  ;;  %v3685_v2 = vpop.f32.mrf.mxu0 }
 0x4a1   :  { %v3505_v20 = vadd.f32 %v3504_v52, %v3336_v25  ;;  %v3673_v41 = vpop.f32.mrf.mxu3  ;;  %v3686_v38 = vadd.f32 %v3685_v2, %v10475_v48  ;;  %v3854_v49 = vpop.f32.mrf.mxu1 }
 0x4a3   :  { %v10478_v54 = vadd.f32 %v3673_v41, %v3505_v20  ;;  %v3855_v31 = vadd.f32 %v3854_v49, %v3686_v38  ;;  %3724 = vmatmul.bf16.gmra.mxu0 %v11953_v14 }
 0x4a4   :  { %3893 = vmatmul.bf16.gmra.mxu1 %v11954_v34 }
 0x4a5   :  { %11952 = vst [vmem:[#allocation13_spill] sm:$0xff] %v10478_v54  ;;  %4062 = vmatmul.bf16.gmra.mxu2 %v11955_v33 }
 0x4a6   :  { %4231 = vmatmul.bf16.gmra.mxu3 %v11956_v0 }
 0x4a8   :  { %v4023_v28 = vpop.f32.mrf.mxu2  ;;  %v3687_v25 = vpop.f32.mrf.mxu0 }
 0x4a9   :  { %v4024_v29 = vadd.f32 %v4023_v28, %v3855_v31  ;;  %v4192_v23 = vpop.f32.mrf.mxu3  ;;  %v3688_v45 = vadd.f32 %v3687_v25, %v10475_v48  ;;  %v3856_v52 = vpop.f32.mrf.mxu1  ;;  %v11958_v31 = vld [vmem:[#allocation39_spill] sm:$0xff]  ;;  %v11959_v28 = vld [vmem:[#allocation40_spill] sm:$0xff]  ;;  %v11960_v25 = vld [vmem:[#allocation41_spill] sm:$0xff] }
 0x4ab   :  { %v10485_v2 = vadd.f32 %v4192_v23, %v4024_v29  ;;  %v3857_v20 = vadd.f32 %v3856_v52, %v3688_v45 }
 0x4b0   :  { %v4025_v41 = vpop.f32.mrf.mxu2  ;;  %v3690_v14 = vpop.f32.mrf.mxu0 }
 0x4b1   :  { %v4026_v38 = vadd.f32 %v4025_v41, %v3857_v20  ;;  %v4194_v49 = vpop.f32.mrf.mxu3  ;;  %v3691_v34 = vadd.f32 %v3690_v14, %v10475_v48  ;;  %v3859_v54 = vpop.f32.mrf.mxu1 }
 0x4b3   :  { %v10488_v33 = vadd.f32 %v4194_v49, %v4026_v38  ;;  %v3860_v0 = vadd.f32 %v3859_v54, %v3691_v34  ;;  %3729 = vmatmul.bf16.gmra.mxu0 %v11957_v30 }
 0x4b4   :  { %3898 = vmatmul.bf16.gmra.mxu1 %v11958_v31 }
 0x4b5   :  { %4067 = vmatmul.bf16.gmra.mxu2 %v11959_v28 }
 0x4b6   :  { %4236 = vmatmul.bf16.gmra.mxu3 %v11960_v25 }
 0x4b8   :  { %v4028_v29 = vpop.f32.mrf.mxu2  ;;  %v3692_v52 = vpop.f32.mrf.mxu0 }
 0x4b9   :  { %v4029_v23 = vadd.f32 %v4028_v29, %v3860_v0  ;;  %v4197_v45 = vpop.f32.mrf.mxu3  ;;  %v3693_v20 = vadd.f32 %v3692_v52, %v10475_v48  ;;  %v3861_v41 = vpop.f32.mrf.mxu1  ;;  %v11962_v0 = vld [vmem:[#allocation43_spill] sm:$0xff]  ;;  %v11963_v29 = vld [vmem:[#allocation44_spill] sm:$0xff]  ;;  %v11964_v52 = vld [vmem:[#allocation45_spill] sm:$0xff] }
 0x4bb   :  { %v10495_v14 = vadd.f32 %v4197_v45, %v4029_v23  ;;  %v3862_v38 = vadd.f32 %v3861_v41, %v3693_v20  ;;  %v7056_v23 = vld [vmem:[%s11335_s1 + $0x344] sm:$0xf]  ;;  %v6604_v45 = vld [vmem:[%s11335_s1 + $0x348] sm:$0xf0] }
 0x4bc   :  { %v6607_v20 = vor.u32 %v7056_v23, %v6604_v45  ;;  %v7072_v41 = vld [vmem:[%s11335_s1 + $0x3c4] sm:$0xf] }
 0x4bd   :  { %v7040_v45 = vld [vmem:[%s11335_s1 + $0x2c4] sm:$0xf] }
 0x4be   :  { %4693 = vmatpush.bf16.msrb.mxu2 %v6607_v20 }
 0x4c0   :  { %v4030_v49 = vpop.f32.mrf.mxu2  ;;  %v3695_v30 = vpop.f32.mrf.mxu0 }
 0x4c1   :  { %v4031_v54 = vadd.f32 %v4030_v49, %v3862_v38  ;;  %v4199_v34 = vpop.f32.mrf.mxu3  ;;  %v3696_v31 = vadd.f32 %v3695_v30, %v10475_v48  ;;  %v3864_v12 = vpop.f32.mrf.mxu1  ;;  %v6668_v38 = vld [vmem:[%s11335_s1 + $0x3c8] sm:$0xf0] }
 0x4c3   :  { %v10498_v28 = vadd.f32 %v4199_v34, %v4031_v54  ;;  %v3865_v25 = vadd.f32 %v3864_v12, %v3696_v31  ;;  %3734 = vmatmul.bf16.gmra.mxu0 %v11961_v13  ;;  %v7024_v12 = vld [vmem:[%s11335_s1 + $0x244] sm:$0xf]  ;;  %v6476_v13 = vld [vmem:[%s11335_s1 + $0x248] sm:$0xf0]  ;;  %v6671_v34 = vor.u32 %v7072_v41, %v6668_v38 }
 0x4c4   :  { %3903 = vmatmul.bf16.gmra.mxu1 %v11962_v0  ;;  %v6479_v54 = vor.u32 %v7024_v12, %v6476_v13  ;;  %v6540_v12 = vld [vmem:[%s11335_s1 + $0x2c8] sm:$0xf0] }
 0x4c5   :  { %4072 = vmatmul.bf16.gmra.mxu2 %v11963_v29  ;;  %4862 = vmatpush.bf16.msrb.mxu3 %v6671_v34 }
 0x4c6   :  { %4241 = vmatmul.bf16.gmra.mxu3 %v11964_v52  ;;  %4355 = vmatpush.bf16.msrb.mxu0 %v6479_v54 }
 0x4c8   :  { %v4033_v49 = vpop.f32.mrf.mxu2  ;;  %v3697_v0 = vpop.f32.mrf.mxu0 }
 0x4c9   :  { %v4034_v30 = vadd.f32 %v4033_v49, %v3865_v25  ;;  %v4202_v31 = vpop.f32.mrf.mxu3  ;;  %v3698_v29 = vadd.f32 %v3697_v0, %v10475_v48  ;;  %v3866_v52 = vpop.f32.mrf.mxu1  ;;  %v6543_v25 = vor.u32 %v7040_v45, %v6540_v12  ;;  %v11965_v0 = vld [vmem:[#allocation46_spill] sm:$0xff] }
 0x4cb   :  { %v10523_v23 = vadd.f32 %v4202_v31, %v4034_v30  ;;  %v3867_v13 = vadd.f32 %v3866_v52, %v3698_v29  ;;  %4524 = vmatpush.bf16.msrb.mxu1 %v6543_v25 }
 0x4d0   :  { %v4035_v41 = vpop.f32.mrf.mxu2  ;;  %v3700_v49 = vpop.f32.mrf.mxu0 }
 0x4d1   :  { %v4036_v20 = vadd.f32 %v4035_v41, %v3867_v13  ;;  %v4204_v38 = vpop.f32.mrf.mxu3  ;;  %v3701_v54 = vadd.f32 %v3700_v49, %v10475_v48  ;;  %v3869_v34 = vpop.f32.mrf.mxu1 }
 0x4d3   :  { %v10532_v30 = vadd.f32 %v4204_v38, %v4036_v20  ;;  %v3870_v31 = vadd.f32 %v3869_v34, %v3701_v54  ;;  %3739 = vmatmul.bf16.gmra.mxu0 %v11965_v0 }
 0x4d4   :  { %3908 = vmatmul.bf16.gmra.mxu1 %v11966_v37 }
 0x4d5   :  { %4077 = vmatmul.bf16.gmra.mxu2 %v11967_v18 }
 0x4d6   :  { %4246 = vmatmul.bf16.gmra.mxu3 %v11968_v22 }
 0x4d8   :  { %v4038_v29 = vpop.f32.mrf.mxu2  ;;  %v3702_v12 = vpop.f32.mrf.mxu0 }
 0x4d9   :  { %v4039_v52 = vadd.f32 %v4038_v29, %v3870_v31  ;;  %v4207_v45 = vpop.f32.mrf.mxu3  ;;  %v3703_v13 = vadd.f32 %v3702_v12, %v10475_v48  ;;  %v3871_v25 = vpop.f32.mrf.mxu1  ;;  %v11970_v31 = vld [vmem:[#allocation51_spill] sm:$0xff]  ;;  %v11971_v29 = vld [vmem:[#allocation52_spill] sm:$0xff]  ;;  %v11972_v12 = vld [vmem:[#allocation53_spill] sm:$0xff] }
 0x4db   :  { %v10539_v41 = vadd.f32 %v4207_v45, %v4039_v52  ;;  %v3872_v20 = vadd.f32 %v3871_v25, %v3703_v13 }
 0x4e0   :  { %v4040_v38 = vpop.f32.mrf.mxu2  ;;  %v3705_v34 = vpop.f32.mrf.mxu0 }
 0x4e1   :  { %v4041_v49 = vadd.f32 %v4040_v38, %v3872_v20  ;;  %v4209_v54 = vpop.f32.mrf.mxu3  ;;  %v3706_v37 = vadd.f32 %v3705_v34, %v10475_v48  ;;  %v3874_v0 = vpop.f32.mrf.mxu1 }
 0x4e3   :  { %v10542_v18 = vadd.f32 %v4209_v54, %v4041_v49  ;;  %v3875_v22 = vadd.f32 %v3874_v0, %v3706_v37  ;;  %3744 = vmatmul.bf16.gmra.mxu0 %v11969_v27 }
 0x4e4   :  { %3913 = vmatmul.bf16.gmra.mxu1 %v11970_v31 }
 0x4e5   :  { %4082 = vmatmul.bf16.gmra.mxu2 %v11971_v29 }
 0x4e6   :  { %4251 = vmatmul.bf16.gmra.mxu3 %v11972_v12 }
 0x4e8   :  { %v4043_v52 = vpop.f32.mrf.mxu2  ;;  %v3707_v25 = vpop.f32.mrf.mxu0 }
 0x4e9   :  { %v4044_v45 = vadd.f32 %v4043_v52, %v3875_v22  ;;  %v4212_v13 = vpop.f32.mrf.mxu3  ;;  %v3708_v20 = vadd.f32 %v3707_v25, %v10475_v48  ;;  %v3876_v38 = vpop.f32.mrf.mxu1  ;;  %v11974_v22 = vld [vmem:[#allocation55_spill] sm:$0xff]  ;;  %v11975_v52 = vld [vmem:[#allocation56_spill] sm:$0xff]  ;;  %v11976_v25 = vld [vmem:[#allocation57_spill] sm:$0xff] }
 0x4eb   :  { %v10549_v34 = vadd.f32 %v4212_v13, %v4044_v45  ;;  %v3877_v49 = vadd.f32 %v3876_v38, %v3708_v20 }
 0x4f0   :  { %v4045_v54 = vpop.f32.mrf.mxu2  ;;  %v3710_v27 = vpop.f32.mrf.mxu0 }
 0x4f1   :  { %v4046_v37 = vadd.f32 %v4045_v54, %v3877_v49  ;;  %v4214_v0 = vpop.f32.mrf.mxu3  ;;  %v3711_v31 = vadd.f32 %v3710_v27, %v10475_v48  ;;  %v3879_v50 = vpop.f32.mrf.mxu1 }
 0x4f3   :  { %v10552_v29 = vadd.f32 %v4214_v0, %v4046_v37  ;;  %v3880_v12 = vadd.f32 %v3879_v50, %v3711_v31  ;;  %3749 = vmatmul.bf16.gmra.mxu0 %v11973_v6 }
 0x4f4   :  { %3918 = vmatmul.bf16.gmra.mxu1 %v11974_v22 }
 0x4f5   :  { %4087 = vmatmul.bf16.gmra.mxu2 %v11975_v52 }
 0x4f6   :  { %4256 = vmatmul.bf16.gmra.mxu3 %v11976_v25 }
 0x4f8   :  { %v4048_v45 = vpop.f32.mrf.mxu2  ;;  %v3712_v38 = vpop.f32.mrf.mxu0 }
 0x4f9   :  { %v4049_v13 = vadd.f32 %v4048_v45, %v3880_v12  ;;  %v4217_v20 = vpop.f32.mrf.mxu3  ;;  %v3713_v49 = vadd.f32 %v3712_v38, %v10475_v48  ;;  %v3881_v54 = vpop.f32.mrf.mxu1  ;;  %v11978_v12 = vld [vmem:[#allocation59_spill] sm:$0xff]  ;;  %v11979_v45 = vld [vmem:[#allocation60_spill] sm:$0xff]  ;;  %v11980_v38 = vld [vmem:[#allocation61_spill] sm:$0xff] }
 0x4fb   :  { %v10559_v27 = vadd.f32 %v4217_v20, %v4049_v13  ;;  %v3882_v37 = vadd.f32 %v3881_v54, %v3713_v49  ;;  %v7054_v13 = vld [vmem:[%s11335_s1 + $0x334] sm:$0xf]  ;;  %v6596_v20 = vld [vmem:[%s11335_s1 + $0x338] sm:$0xf0] }
 0x4fc   :  { %v6599_v49 = vor.u32 %v7054_v13, %v6596_v20  ;;  %v7070_v54 = vld [vmem:[%s11335_s1 + $0x3b4] sm:$0xf] }
 0x4fd   :  { %v7038_v20 = vld [vmem:[%s11335_s1 + $0x2b4] sm:$0xf] }
 0x4fe   :  { %4694 = vmatpush.bf16.msrb.mxu2 %v6599_v49 }
 0x500   :  { %v4050_v0 = vpop.f32.mrf.mxu2  ;;  %v3715_v6 = vpop.f32.mrf.mxu0 }
 0x501   :  { %v4051_v50 = vadd.f32 %v4050_v0, %v3882_v37  ;;  %v4219_v31 = vpop.f32.mrf.mxu3  ;;  %v3716_v22 = vadd.f32 %v3715_v6, %v10475_v48  ;;  %v3884_v46 = vpop.f32.mrf.mxu1  ;;  %v6660_v37 = vld [vmem:[%s11335_s1 + $0x3b8] sm:$0xf0] }
 0x503   :  { %v10562_v52 = vadd.f32 %v4219_v31, %v4051_v50  ;;  %v3885_v25 = vadd.f32 %v3884_v46, %v3716_v22  ;;  %3754 = vmatmul.bf16.gmra.mxu0 %v11977_v36  ;;  %v7022_v46 = vld [vmem:[%s11335_s1 + $0x234] sm:$0xf]  ;;  %v6468_v36 = vld [vmem:[%s11335_s1 + $0x238] sm:$0xf0]  ;;  %v6663_v31 = vor.u32 %v7070_v54, %v6660_v37 }
 0x504   :  { %3923 = vmatmul.bf16.gmra.mxu1 %v11978_v12  ;;  %v6471_v50 = vor.u32 %v7022_v46, %v6468_v36  ;;  %v6532_v46 = vld [vmem:[%s11335_s1 + $0x2b8] sm:$0xf0] }
 0x505   :  { %4092 = vmatmul.bf16.gmra.mxu2 %v11979_v45  ;;  %4863 = vmatpush.bf16.msrb.mxu3 %v6663_v31 }
 0x506   :  { %4261 = vmatmul.bf16.gmra.mxu3 %v11980_v38  ;;  %4356 = vmatpush.bf16.msrb.mxu0 %v6471_v50 }
 0x508   :  { %v4053_v0 = vpop.f32.mrf.mxu2  ;;  %v3717_v12 = vpop.f32.mrf.mxu0 }
 0x509   :  { %v4054_v6 = vadd.f32 %v4053_v0, %v3885_v25  ;;  %v4222_v22 = vpop.f32.mrf.mxu3  ;;  %v3718_v45 = vadd.f32 %v3717_v12, %v10475_v48  ;;  %v3886_v38 = vpop.f32.mrf.mxu1  ;;  %v6535_v25 = vor.u32 %v7038_v20, %v6532_v46  ;;  %v11981_v12 = vld [vmem:[#allocation62_spill] sm:$0xff] }
 0x50b   :  { %v10587_v13 = vadd.f32 %v4222_v22, %v4054_v6  ;;  %v3887_v36 = vadd.f32 %v3886_v38, %v3718_v45  ;;  %4525 = vmatpush.bf16.msrb.mxu1 %v6535_v25 }
 0x510   :  { %v4055_v54 = vpop.f32.mrf.mxu2  ;;  %v3720_v0 = vpop.f32.mrf.mxu0 }
 0x511   :  { %v4056_v49 = vadd.f32 %v4055_v54, %v3887_v36  ;;  %v4224_v37 = vpop.f32.mrf.mxu3  ;;  %v3721_v50 = vadd.f32 %v3720_v0, %v10475_v48  ;;  %v3889_v31 = vpop.f32.mrf.mxu1 }
 0x513   :  { %v10596_v6 = vadd.f32 %v4224_v37, %v4056_v49  ;;  %v3890_v22 = vadd.f32 %v3889_v31, %v3721_v50  ;;  %3759 = vmatmul.bf16.gmra.mxu0 %v11981_v12 }
 0x514   :  { %3928 = vmatmul.bf16.gmra.mxu1 %v11982_v5 }
 0x515   :  { %4097 = vmatmul.bf16.gmra.mxu2 %v11983_v3 }
 0x516   :  { %4266 = vmatmul.bf16.gmra.mxu3 %v11984_v19 }
 0x518   :  { %v4058_v45 = vpop.f32.mrf.mxu2  ;;  %v3722_v46 = vpop.f32.mrf.mxu0 }
 0x519   :  { %v4059_v38 = vadd.f32 %v4058_v45, %v3890_v22  ;;  %v4227_v20 = vpop.f32.mrf.mxu3  ;;  %v3723_v36 = vadd.f32 %v3722_v46, %v10475_v48  ;;  %v3891_v25 = vpop.f32.mrf.mxu1  ;;  %v11986_v22 = vld [vmem:[#allocation67_spill] sm:$0xff]  ;;  %v11987_v45 = vld [vmem:[#allocation68_spill] sm:$0xff]  ;;  %v11988_v46 = vld [vmem:[#allocation69_spill] sm:$0xff] }
 0x51b   :  { %v10603_v54 = vadd.f32 %v4227_v20, %v4059_v38  ;;  %v3892_v49 = vadd.f32 %v3891_v25, %v3723_v36 }
 0x520   :  { %v4060_v37 = vpop.f32.mrf.mxu2  ;;  %v3725_v31 = vpop.f32.mrf.mxu0 }
 0x521   :  { %v4061_v0 = vadd.f32 %v4060_v37, %v3892_v49  ;;  %v4229_v50 = vpop.f32.mrf.mxu3  ;;  %v3726_v5 = vadd.f32 %v3725_v31, %v10475_v48  ;;  %v3894_v12 = vpop.f32.mrf.mxu1 }
 0x523   :  { %v10606_v3 = vadd.f32 %v4229_v50, %v4061_v0  ;;  %v3895_v19 = vadd.f32 %v3894_v12, %v3726_v5  ;;  %3764 = vmatmul.bf16.gmra.mxu0 %v11985_v39 }
 0x524   :  { %3933 = vmatmul.bf16.gmra.mxu1 %v11986_v22 }
 0x525   :  { %4102 = vmatmul.bf16.gmra.mxu2 %v11987_v45 }
 0x526   :  { %4271 = vmatmul.bf16.gmra.mxu3 %v11988_v46 }
 0x528   :  { %v4063_v38 = vpop.f32.mrf.mxu2  ;;  %v3727_v25 = vpop.f32.mrf.mxu0 }
 0x529   :  { %v4064_v20 = vadd.f32 %v4063_v38, %v3895_v19  ;;  %v4232_v36 = vpop.f32.mrf.mxu3  ;;  %v3728_v49 = vadd.f32 %v3727_v25, %v10475_v48  ;;  %v3896_v37 = vpop.f32.mrf.mxu1  ;;  %v11990_v19 = vld [vmem:[#allocation71_spill] sm:$0xff]  ;;  %v11991_v38 = vld [vmem:[#allocation72_spill] sm:$0xff]  ;;  %v11992_v25 = vld [vmem:[#allocation73_spill] sm:$0xff] }
 0x52b   :  { %v10613_v31 = vadd.f32 %v4232_v36, %v4064_v20  ;;  %v3897_v0 = vadd.f32 %v3896_v37, %v3728_v49 }
 0x530   :  { %v4065_v50 = vpop.f32.mrf.mxu2  ;;  %v3730_v39 = vpop.f32.mrf.mxu0 }
 0x531   :  { %v4066_v5 = vadd.f32 %v4065_v50, %v3897_v0  ;;  %v4234_v12 = vpop.f32.mrf.mxu3  ;;  %v3731_v22 = vadd.f32 %v3730_v39, %v10475_v48  ;;  %v3899_v21 = vpop.f32.mrf.mxu1 }
 0x533   :  { %v10616_v45 = vadd.f32 %v4234_v12, %v4066_v5  ;;  %v3900_v46 = vadd.f32 %v3899_v21, %v3731_v22  ;;  %3769 = vmatmul.bf16.gmra.mxu0 %v11989_v58 }
 0x534   :  { %3938 = vmatmul.bf16.gmra.mxu1 %v11990_v19 }
 0x535   :  { %4107 = vmatmul.bf16.gmra.mxu2 %v11991_v38 }
 0x536   :  { %4276 = vmatmul.bf16.gmra.mxu3 %v11992_v25 }
 0x538   :  { %v4068_v20 = vpop.f32.mrf.mxu2  ;;  %v3732_v37 = vpop.f32.mrf.mxu0 }
 0x539   :  { %v4069_v36 = vadd.f32 %v4068_v20, %v3900_v46  ;;  %v4237_v49 = vpop.f32.mrf.mxu3  ;;  %v3733_v0 = vadd.f32 %v3732_v37, %v10475_v48  ;;  %v3901_v50 = vpop.f32.mrf.mxu1  ;;  %v11994_v46 = vld [vmem:[#allocation75_spill] sm:$0xff]  ;;  %v11995_v20 = vld [vmem:[#allocation76_spill] sm:$0xff]  ;;  %v11996_v37 = vld [vmem:[#allocation77_spill] sm:$0xff] }
 0x53b   :  { %v10623_v39 = vadd.f32 %v4237_v49, %v4069_v36  ;;  %v3902_v5 = vadd.f32 %v3901_v50, %v3733_v0  ;;  %v7052_v36 = vld [vmem:[%s11335_s1 + $0x324] sm:$0xf]  ;;  %v6588_v49 = vld [vmem:[%s11335_s1 + $0x328] sm:$0xf0] }
 0x53c   :  { %v6591_v0 = vor.u32 %v7052_v36, %v6588_v49  ;;  %v7068_v50 = vld [vmem:[%s11335_s1 + $0x3a4] sm:$0xf] }
 0x53d   :  { %v7036_v49 = vld [vmem:[%s11335_s1 + $0x2a4] sm:$0xf] }
 0x53e   :  { %4695 = vmatpush.bf16.msrb.mxu2 %v6591_v0 }
 0x540   :  { %v4070_v12 = vpop.f32.mrf.mxu2  ;;  %v3735_v58 = vpop.f32.mrf.mxu0 }
 0x541   :  { %v4071_v21 = vadd.f32 %v4070_v12, %v3902_v5  ;;  %v4239_v22 = vpop.f32.mrf.mxu3  ;;  %v3736_v19 = vadd.f32 %v3735_v58, %v10475_v48  ;;  %v3904_v32 = vpop.f32.mrf.mxu1  ;;  %v6652_v5 = vld [vmem:[%s11335_s1 + $0x3a8] sm:$0xf0] }
 0x543   :  { %v10626_v38 = vadd.f32 %v4239_v22, %v4071_v21  ;;  %v3905_v25 = vadd.f32 %v3904_v32, %v3736_v19  ;;  %3774 = vmatmul.bf16.gmra.mxu0 %v11993_v4  ;;  %v7020_v32 = vld [vmem:[%s11335_s1 + $0x224] sm:$0xf]  ;;  %v6460_v4 = vld [vmem:[%s11335_s1 + $0x228] sm:$0xf0]  ;;  %v6655_v22 = vor.u32 %v7068_v50, %v6652_v5 }
 0x544   :  { %3943 = vmatmul.bf16.gmra.mxu1 %v11994_v46  ;;  %v6463_v21 = vor.u32 %v7020_v32, %v6460_v4  ;;  %v6524_v32 = vld [vmem:[%s11335_s1 + $0x2a8] sm:$0xf0] }
 0x545   :  { %4112 = vmatmul.bf16.gmra.mxu2 %v11995_v20  ;;  %4864 = vmatpush.bf16.msrb.mxu3 %v6655_v22 }
 0x546   :  { %4281 = vmatmul.bf16.gmra.mxu3 %v11996_v37  ;;  %4357 = vmatpush.bf16.msrb.mxu0 %v6463_v21 }
 0x548   :  { %v4073_v12 = vpop.f32.mrf.mxu2  ;;  %v3737_v46 = vpop.f32.mrf.mxu0 }
 0x549   :  { %v4074_v58 = vadd.f32 %v4073_v12, %v3905_v25  ;;  %v4242_v19 = vpop.f32.mrf.mxu3  ;;  %v3738_v20 = vadd.f32 %v3737_v46, %v10475_v48  ;;  %v3906_v37 = vpop.f32.mrf.mxu1  ;;  %v6527_v25 = vor.u32 %v7036_v49, %v6524_v32  ;;  %v11997_v46 = vld [vmem:[#allocation78_spill] sm:$0xff] }
 0x54b   :  { %v10651_v36 = vadd.f32 %v4242_v19, %v4074_v58  ;;  %v3907_v4 = vadd.f32 %v3906_v37, %v3738_v20  ;;  %4526 = vmatpush.bf16.msrb.mxu1 %v6527_v25 }
 0x550   :  { %v4075_v50 = vpop.f32.mrf.mxu2  ;;  %v3740_v12 = vpop.f32.mrf.mxu0 }
 0x551   :  { %v4076_v0 = vadd.f32 %v4075_v50, %v3907_v4  ;;  %v4244_v5 = vpop.f32.mrf.mxu3  ;;  %v3741_v21 = vadd.f32 %v3740_v12, %v10475_v48  ;;  %v3909_v22 = vpop.f32.mrf.mxu1 }
 0x553   :  { %v10660_v58 = vadd.f32 %v4244_v5, %v4076_v0  ;;  %v3910_v19 = vadd.f32 %v3909_v22, %v3741_v21  ;;  %3779 = vmatmul.bf16.gmra.mxu0 %v11997_v46 }
 0x554   :  { %3948 = vmatmul.bf16.gmra.mxu1 %v11998_v57 }
 0x555   :  { %4117 = vmatmul.bf16.gmra.mxu2 %v11999_v7 }
 0x556   :  { %4286 = vmatmul.bf16.gmra.mxu3 %v12000_v63 }
 0x558   :  { %v4078_v20 = vpop.f32.mrf.mxu2  ;;  %v3742_v32 = vpop.f32.mrf.mxu0 }
 0x559   :  { %v4079_v37 = vadd.f32 %v4078_v20, %v3910_v19  ;;  %v4247_v49 = vpop.f32.mrf.mxu3  ;;  %v3743_v4 = vadd.f32 %v3742_v32, %v10475_v48  ;;  %v3911_v25 = vpop.f32.mrf.mxu1  ;;  %v12003_v19 = vld [vmem:[#allocation83_spill] sm:$0xff]  ;;  %v12004_v20 = vld [vmem:[#allocation84_spill] sm:$0xff]  ;;  %v12005_v32 = vld [vmem:[#allocation85_spill] sm:$0xff] }
 0x55b   :  { %v10667_v50 = vadd.f32 %v4247_v49, %v4079_v37  ;;  %v3912_v0 = vadd.f32 %v3911_v25, %v3743_v4 }
 0x560   :  { %v4080_v5 = vpop.f32.mrf.mxu2  ;;  %v3745_v22 = vpop.f32.mrf.mxu0 }
 0x561   :  { %v4081_v12 = vadd.f32 %v4080_v5, %v3912_v0  ;;  %v4249_v21 = vpop.f32.mrf.mxu3  ;;  %v3746_v57 = vadd.f32 %v3745_v22, %v10475_v48  ;;  %v3914_v46 = vpop.f32.mrf.mxu1 }
 0x563   :  { %v10670_v7 = vadd.f32 %v4249_v21, %v4081_v12  ;;  %v3915_v63 = vadd.f32 %v3914_v46, %v3746_v57  ;;  %3784 = vmatmul.bf16.gmra.mxu0 %v12002_v35 }
 0x564   :  { %3953 = vmatmul.bf16.gmra.mxu1 %v12003_v19 }
 0x565   :  { %12001 = vst [vmem:[#allocation157_spill] sm:$0xff] %v10670_v7  ;;  %4122 = vmatmul.bf16.gmra.mxu2 %v12004_v20 }
 0x566   :  { %4291 = vmatmul.bf16.gmra.mxu3 %v12005_v32 }
 0x568   :  { %v4083_v37 = vpop.f32.mrf.mxu2  ;;  %v3747_v25 = vpop.f32.mrf.mxu0 }
 0x569   :  { %v4084_v49 = vadd.f32 %v4083_v37, %v3915_v63  ;;  %v4252_v4 = vpop.f32.mrf.mxu3  ;;  %v3748_v0 = vadd.f32 %v3747_v25, %v10475_v48  ;;  %v3916_v5 = vpop.f32.mrf.mxu1  ;;  %v12009_v63 = vld [vmem:[#allocation87_spill] sm:$0xff]  ;;  %v12010_v37 = vld [vmem:[#allocation88_spill] sm:$0xff]  ;;  %v12011_v25 = vld [vmem:[#allocation89_spill] sm:$0xff] }
 0x56b   :  { %v10677_v22 = vadd.f32 %v4252_v4, %v4084_v49  ;;  %v3917_v12 = vadd.f32 %v3916_v5, %v3748_v0 }
 0x56d   :  { %12006 = vst [vmem:[#allocation158_spill] sm:$0xff] %v10677_v22  ;;  %v12014_v22 = vld [vmem:[#allocation90_spill] sm:$0xff] }
 0x570   :  { %v4085_v21 = vpop.f32.mrf.mxu2  ;;  %v3750_v35 = vpop.f32.mrf.mxu0 }
 0x571   :  { %v4086_v57 = vadd.f32 %v4085_v21, %v3917_v12  ;;  %v4254_v46 = vpop.f32.mrf.mxu3  ;;  %v3751_v19 = vadd.f32 %v3750_v35, %v10475_v48  ;;  %v3919_v7 = vpop.f32.mrf.mxu1 }
 0x573   :  { %v10680_v20 = vadd.f32 %v4254_v46, %v4086_v57  ;;  %v3920_v32 = vadd.f32 %v3919_v7, %v3751_v19  ;;  %3789 = vmatmul.bf16.gmra.mxu0 %v12008_v24 }
 0x574   :  { %3958 = vmatmul.bf16.gmra.mxu1 %v12009_v63 }
 0x575   :  { %12007 = vst [vmem:[#allocation14_spill] sm:$0xff] %v10680_v20  ;;  %4127 = vmatmul.bf16.gmra.mxu2 %v12010_v37 }
 0x576   :  { %4296 = vmatmul.bf16.gmra.mxu3 %v12011_v25 }
 0x578   :  { %v4088_v49 = vpop.f32.mrf.mxu2  ;;  %v3752_v5 = vpop.f32.mrf.mxu0 }
 0x579   :  { %v4089_v4 = vadd.f32 %v4088_v49, %v3920_v32  ;;  %v4257_v0 = vpop.f32.mrf.mxu3  ;;  %v3753_v12 = vadd.f32 %v3752_v5, %v10475_v48  ;;  %v3921_v21 = vpop.f32.mrf.mxu1  ;;  %v12015_v32 = vld [vmem:[#allocation91_spill] sm:$0xff]  ;;  %v12016_v49 = vld [vmem:[#allocation92_spill] sm:$0xff]  ;;  %v12017_v5 = vld [vmem:[#allocation93_spill] sm:$0xff] }
 0x57b   :  { %v10687_v35 = vadd.f32 %v4257_v0, %v4089_v4  ;;  %v3922_v57 = vadd.f32 %v3921_v21, %v3753_v12  ;;  %v7050_v4 = vld [vmem:[%s11335_s1 + $0x314] sm:$0xf]  ;;  %v6580_v0 = vld [vmem:[%s11335_s1 + $0x318] sm:$0xf0] }
 0x57c   :  { %v6583_v12 = vor.u32 %v7050_v4, %v6580_v0  ;;  %v7066_v21 = vld [vmem:[%s11335_s1 + $0x394] sm:$0xf] }
 0x57d   :  { %12012 = vst [vmem:[#allocation15_spill] sm:$0xff] %v10687_v35  ;;  %v7034_v0 = vld [vmem:[%s11335_s1 + $0x294] sm:$0xf]  ;;  %v12023_v35 = vld [vmem:[#allocation97_spill] sm:$0xff] }
 0x57e   :  { %4696 = vmatpush.bf16.msrb.mxu2 %v6583_v12 }
 0x580   :  { %v4090_v46 = vpop.f32.mrf.mxu2  ;;  %v3755_v24 = vpop.f32.mrf.mxu0 }
 0x581   :  { %v4091_v7 = vadd.f32 %v4090_v46, %v3922_v57  ;;  %v4259_v19 = vpop.f32.mrf.mxu3  ;;  %v3756_v63 = vadd.f32 %v3755_v24, %v10475_v48  ;;  %v3924_v20 = vpop.f32.mrf.mxu1  ;;  %v6644_v57 = vld [vmem:[%s11335_s1 + $0x398] sm:$0xf0] }
 0x583   :  { %v10690_v37 = vadd.f32 %v4259_v19, %v4091_v7  ;;  %v3925_v25 = vadd.f32 %v3924_v20, %v3756_v63  ;;  %3794 = vmatmul.bf16.gmra.mxu0 %v12014_v22  ;;  %v7018_v20 = vld [vmem:[%s11335_s1 + $0x214] sm:$0xf]  ;;  %v6452_v22 = vld [vmem:[%s11335_s1 + $0x218] sm:$0xf0]  ;;  %v6647_v19 = vor.u32 %v7066_v21, %v6644_v57 }
 0x584   :  { %3963 = vmatmul.bf16.gmra.mxu1 %v12015_v32  ;;  %v6455_v7 = vor.u32 %v7018_v20, %v6452_v22  ;;  %v6516_v20 = vld [vmem:[%s11335_s1 + $0x298] sm:$0xf0] }
 0x585   :  { %12013 = vst [vmem:[#allocation16_spill] sm:$0xff] %v10690_v37  ;;  %4132 = vmatmul.bf16.gmra.mxu2 %v12016_v49  ;;  %4865 = vmatpush.bf16.msrb.mxu3 %v6647_v19  ;;  %v12022_v37 = vld [vmem:[#allocation96_spill] sm:$0xff] }
 0x586   :  { %4301 = vmatmul.bf16.gmra.mxu3 %v12017_v5  ;;  %4358 = vmatpush.bf16.msrb.mxu0 %v6455_v7 }
 0x588   :  { %v4093_v46 = vpop.f32.mrf.mxu2  ;;  %v3757_v32 = vpop.f32.mrf.mxu0 }
 0x589   :  { %v4094_v24 = vadd.f32 %v4093_v46, %v3925_v25  ;;  %v4262_v63 = vpop.f32.mrf.mxu3  ;;  %v3758_v49 = vadd.f32 %v3757_v32, %v10475_v48  ;;  %v3926_v5 = vpop.f32.mrf.mxu1  ;;  %v6519_v25 = vor.u32 %v7034_v0, %v6516_v20  ;;  %v12020_v32 = vld [vmem:[#allocation94_spill] sm:$0xff] }
 0x58b   :  { %v10715_v4 = vadd.f32 %v4262_v63, %v4094_v24  ;;  %v3927_v22 = vadd.f32 %v3926_v5, %v3758_v49  ;;  %4527 = vmatpush.bf16.msrb.mxu1 %v6519_v25 }
 0x58d   :  { %12018 = vst [vmem:[#allocation17_spill] sm:$0xff] %v10715_v4  ;;  %v12021_v4 = vld [vmem:[#allocation95_spill] sm:$0xff] }
 0x590   :  { %v4095_v21 = vpop.f32.mrf.mxu2  ;;  %v3760_v46 = vpop.f32.mrf.mxu0 }
 0x591   :  { %v4096_v12 = vadd.f32 %v4095_v21, %v3927_v22  ;;  %v4264_v57 = vpop.f32.mrf.mxu3  ;;  %v3761_v7 = vadd.f32 %v3760_v46, %v10475_v48  ;;  %v3929_v19 = vpop.f32.mrf.mxu1 }
 0x593   :  { %v10724_v24 = vadd.f32 %v4264_v57, %v4096_v12  ;;  %v3930_v63 = vadd.f32 %v3929_v19, %v3761_v7  ;;  %3799 = vmatmul.bf16.gmra.mxu0 %v12020_v32 }
 0x594   :  { %3968 = vmatmul.bf16.gmra.mxu1 %v12021_v4 }
 0x595   :  { %12019 = vst [vmem:[#allocation163_spill] sm:$0xff] %v10724_v24  ;;  %4137 = vmatmul.bf16.gmra.mxu2 %v12022_v37  ;;  %v12026_v24 = vld [vmem:[#allocation98_spill] sm:$0xff] }
 0x596   :  { %4306 = vmatmul.bf16.gmra.mxu3 %v12023_v35 }
 0x598   :  { %v4098_v49 = vpop.f32.mrf.mxu2  ;;  %v3762_v20 = vpop.f32.mrf.mxu0 }
 0x599   :  { %v4099_v5 = vadd.f32 %v4098_v49, %v3930_v63  ;;  %v4267_v0 = vpop.f32.mrf.mxu3  ;;  %v3763_v22 = vadd.f32 %v3762_v20, %v10475_v48  ;;  %v3931_v25 = vpop.f32.mrf.mxu1  ;;  %v12027_v63 = vld [vmem:[#allocation99_spill] sm:$0xff]  ;;  %v12028_v49 = vld [vmem:[#allocation100_spill] sm:$0xff]  ;;  %v12029_v20 = vld [vmem:[#allocation101_spill] sm:$0xff] }
 0x59b   :  { %v10731_v21 = vadd.f32 %v4267_v0, %v4099_v5  ;;  %v3932_v12 = vadd.f32 %v3931_v25, %v3763_v22 }
 0x59d   :  { %12024 = vst [vmem:[#allocation164_spill] sm:$0xff] %v10731_v21  ;;  %v12032_v21 = vld [vmem:[#allocation102_spill] sm:$0xff] }
 0x5a0   :  { %v4100_v57 = vpop.f32.mrf.mxu2  ;;  %v3765_v19 = vpop.f32.mrf.mxu0 }
 0x5a1   :  { %v4101_v46 = vadd.f32 %v4100_v57, %v3932_v12  ;;  %v4269_v7 = vpop.f32.mrf.mxu3  ;;  %v3766_v4 = vadd.f32 %v3765_v19, %v10475_v48  ;;  %v3934_v32 = vpop.f32.mrf.mxu1 }
 0x5a3   :  { %v10734_v37 = vadd.f32 %v4269_v7, %v4101_v46  ;;  %v3935_v35 = vadd.f32 %v3934_v32, %v3766_v4  ;;  %3804 = vmatmul.bf16.gmra.mxu0 %v12026_v24 }
 0x5a4   :  { %3973 = vmatmul.bf16.gmra.mxu1 %v12027_v63 }
 0x5a5   :  { %12025 = vst [vmem:[#allocation18_spill] sm:$0xff] %v10734_v37  ;;  %4142 = vmatmul.bf16.gmra.mxu2 %v12028_v49 }
 0x5a6   :  { %4311 = vmatmul.bf16.gmra.mxu3 %v12029_v20 }
 0x5a8   :  { %v4103_v5 = vpop.f32.mrf.mxu2  ;;  %v3767_v25 = vpop.f32.mrf.mxu0 }
 0x5a9   :  { %v4104_v0 = vadd.f32 %v4103_v5, %v3935_v35  ;;  %v4272_v22 = vpop.f32.mrf.mxu3  ;;  %v3768_v12 = vadd.f32 %v3767_v25, %v10475_v48  ;;  %v3936_v57 = vpop.f32.mrf.mxu1  ;;  %v12033_v35 = vld [vmem:[#allocation103_spill] sm:$0xff]  ;;  %v12034_v5 = vld [vmem:[#allocation104_spill] sm:$0xff]  ;;  %v12035_v25 = vld [vmem:[#allocation105_spill] sm:$0xff] }
 0x5ab   :  { %v10741_v19 = vadd.f32 %v4272_v22, %v4104_v0  ;;  %v3937_v46 = vadd.f32 %v3936_v57, %v3768_v12 }
 0x5ad   :  { %12030 = vst [vmem:[#allocation19_spill] sm:$0xff] %v10741_v19  ;;  %v12038_v19 = vld [vmem:[#allocation106_spill] sm:$0xff] }
 0x5b0   :  { %v4105_v7 = vpop.f32.mrf.mxu2  ;;  %v3770_v24 = vpop.f32.mrf.mxu0 }
 0x5b1   :  { %v4106_v4 = vadd.f32 %v4105_v7, %v3937_v46  ;;  %v4274_v32 = vpop.f32.mrf.mxu3  ;;  %v3771_v63 = vadd.f32 %v3770_v24, %v10475_v48  ;;  %v3939_v37 = vpop.f32.mrf.mxu1 }
 0x5b3   :  { %v10744_v49 = vadd.f32 %v4274_v32, %v4106_v4  ;;  %v3940_v20 = vadd.f32 %v3939_v37, %v3771_v63  ;;  %3809 = vmatmul.bf16.gmra.mxu0 %v12032_v21 }
 0x5b4   :  { %3978 = vmatmul.bf16.gmra.mxu1 %v12033_v35 }
 0x5b5   :  { %12031 = vst [vmem:[#allocation20_spill] sm:$0xff] %v10744_v49  ;;  %4147 = vmatmul.bf16.gmra.mxu2 %v12034_v5 }
 0x5b6   :  { %4316 = vmatmul.bf16.gmra.mxu3 %v12035_v25 }
 0x5b8   :  { %v4108_v0 = vpop.f32.mrf.mxu2  ;;  %v3772_v57 = vpop.f32.mrf.mxu0 }
 0x5b9   :  { %v4109_v22 = vadd.f32 %v4108_v0, %v3940_v20  ;;  %v4277_v12 = vpop.f32.mrf.mxu3  ;;  %v3773_v46 = vadd.f32 %v3772_v57, %v10475_v48  ;;  %v3941_v7 = vpop.f32.mrf.mxu1  ;;  %v12039_v20 = vld [vmem:[#allocation107_spill] sm:$0xff]  ;;  %v12040_v0 = vld [vmem:[#allocation108_spill] sm:$0xff]  ;;  %v12041_v57 = vld [vmem:[#allocation109_spill] sm:$0xff] }
 0x5bb   :  { %v10751_v24 = vadd.f32 %v4277_v12, %v4109_v22  ;;  %v3942_v4 = vadd.f32 %v3941_v7, %v3773_v46  ;;  %v7048_v22 = vld [vmem:[%s11335_s1 + $0x304] sm:$0xf]  ;;  %v6572_v12 = vld [vmem:[%s11335_s1 + $0x308] sm:$0xf0] }
 0x5bc   :  { %v6575_v46 = vor.u32 %v7048_v22, %v6572_v12  ;;  %v7064_v7 = vld [vmem:[%s11335_s1 + $0x384] sm:$0xf] }
 0x5bd   :  { %12036 = vst [vmem:[#allocation21_spill] sm:$0xff] %v10751_v24  ;;  %v7032_v12 = vld [vmem:[%s11335_s1 + $0x284] sm:$0xf]  ;;  %v12047_v24 = vld [vmem:[#allocation113_spill] sm:$0xff] }
 0x5be   :  { %4697 = vmatpush.bf16.msrb.mxu2 %v6575_v46 }
 0x5c0   :  { %v4110_v32 = vpop.f32.mrf.mxu2  ;;  %v3775_v21 = vpop.f32.mrf.mxu0 }
 0x5c1   :  { %v4111_v37 = vadd.f32 %v4110_v32, %v3942_v4  ;;  %v4279_v63 = vpop.f32.mrf.mxu3  ;;  %v3776_v35 = vadd.f32 %v3775_v21, %v10475_v48  ;;  %v3944_v49 = vpop.f32.mrf.mxu1  ;;  %v6636_v4 = vld [vmem:[%s11335_s1 + $0x388] sm:$0xf0] }
 0x5c3   :  { %v10754_v5 = vadd.f32 %v4279_v63, %v4111_v37  ;;  %v3945_v25 = vadd.f32 %v3944_v49, %v3776_v35  ;;  %3814 = vmatmul.bf16.gmra.mxu0 %v12038_v19  ;;  %v7016_v49 = vld [vmem:[%s11335_s1 + $0x204] sm:$0xf]  ;;  %v6444_v19 = vld [vmem:[%s11335_s1 + $0x208] sm:$0xf0]  ;;  %v6639_v63 = vor.u32 %v7064_v7, %v6636_v4 }
 0x5c4   :  { %3983 = vmatmul.bf16.gmra.mxu1 %v12039_v20  ;;  %v6447_v37 = vor.u32 %v7016_v49, %v6444_v19  ;;  %v6508_v49 = vld [vmem:[%s11335_s1 + $0x288] sm:$0xf0] }
 0x5c5   :  { %12037 = vst [vmem:[#allocation169_spill] sm:$0xff] %v10754_v5  ;;  %4152 = vmatmul.bf16.gmra.mxu2 %v12040_v0  ;;  %4866 = vmatpush.bf16.msrb.mxu3 %v6639_v63  ;;  %v12046_v5 = vld [vmem:[#allocation112_spill] sm:$0xff] }
 0x5c6   :  { %4321 = vmatmul.bf16.gmra.mxu3 %v12041_v57  ;;  %4359 = vmatpush.bf16.msrb.mxu0 %v6447_v37 }
 0x5c8   :  { %v4113_v32 = vpop.f32.mrf.mxu2  ;;  %v3777_v20 = vpop.f32.mrf.mxu0 }
 0x5c9   :  { %v4114_v21 = vadd.f32 %v4113_v32, %v3945_v25  ;;  %v4282_v35 = vpop.f32.mrf.mxu3  ;;  %v3778_v0 = vadd.f32 %v3777_v20, %v10475_v48  ;;  %v3946_v57 = vpop.f32.mrf.mxu1  ;;  %v6511_v25 = vor.u32 %v7032_v12, %v6508_v49  ;;  %v12044_v20 = vld [vmem:[#allocation110_spill] sm:$0xff] }
 0x5cb   :  { %v10779_v22 = vadd.f32 %v4282_v35, %v4114_v21  ;;  %v3947_v19 = vadd.f32 %v3946_v57, %v3778_v0  ;;  %4528 = vmatpush.bf16.msrb.mxu1 %v6511_v25 }
 0x5cd   :  { %12042 = vst [vmem:[#allocation170_spill] sm:$0xff] %v10779_v22  ;;  %v12045_v22 = vld [vmem:[#allocation111_spill] sm:$0xff] }
 0x5d0   :  { %v4115_v7 = vpop.f32.mrf.mxu2  ;;  %v3780_v32 = vpop.f32.mrf.mxu0 }
 0x5d1   :  { %v4116_v46 = vadd.f32 %v4115_v7, %v3947_v19  ;;  %v4284_v4 = vpop.f32.mrf.mxu3  ;;  %v3781_v37 = vadd.f32 %v3780_v32, %v10475_v48  ;;  %v3949_v63 = vpop.f32.mrf.mxu1 }
 0x5d3   :  { %v10788_v21 = vadd.f32 %v4284_v4, %v4116_v46  ;;  %v3950_v35 = vadd.f32 %v3949_v63, %v3781_v37  ;;  %3819 = vmatmul.bf16.gmra.mxu0 %v12044_v20 }
 0x5d4   :  { %3988 = vmatmul.bf16.gmra.mxu1 %v12045_v22 }
 0x5d5   :  { %12043 = vst [vmem:[#allocation22_spill] sm:$0xff] %v10788_v21  ;;  %4157 = vmatmul.bf16.gmra.mxu2 %v12046_v5  ;;  %v12050_v21 = vld [vmem:[#allocation114_spill] sm:$0xff] }
 0x5d6   :  { %4326 = vmatmul.bf16.gmra.mxu3 %v12047_v24 }
 0x5d8   :  { %v4118_v0 = vpop.f32.mrf.mxu2  ;;  %v3782_v49 = vpop.f32.mrf.mxu0 }
 0x5d9   :  { %v4119_v57 = vadd.f32 %v4118_v0, %v3950_v35  ;;  %v4287_v12 = vpop.f32.mrf.mxu3  ;;  %v3783_v19 = vadd.f32 %v3782_v49, %v10475_v48  ;;  %v3951_v25 = vpop.f32.mrf.mxu1  ;;  %v12051_v35 = vld [vmem:[#allocation115_spill] sm:$0xff]  ;;  %v12052_v0 = vld [vmem:[#allocation116_spill] sm:$0xff]  ;;  %v12053_v49 = vld [vmem:[#allocation117_spill] sm:$0xff] }
 0x5db   :  { %v10795_v7 = vadd.f32 %v4287_v12, %v4119_v57  ;;  %v3952_v46 = vadd.f32 %v3951_v25, %v3783_v19 }
 0x5dd   :  { %12048 = vst [vmem:[#allocation23_spill] sm:$0xff] %v10795_v7  ;;  %v12056_v7 = vld [vmem:[#allocation118_spill] sm:$0xff] }
 0x5e0   :  { %v4120_v4 = vpop.f32.mrf.mxu2  ;;  %v3785_v63 = vpop.f32.mrf.mxu0 }
 0x5e1   :  { %v4121_v32 = vadd.f32 %v4120_v4, %v3952_v46  ;;  %v4289_v37 = vpop.f32.mrf.mxu3  ;;  %v3786_v22 = vadd.f32 %v3785_v63, %v10475_v48  ;;  %v3954_v20 = vpop.f32.mrf.mxu1 }
 0x5e3   :  { %v10798_v5 = vadd.f32 %v4289_v37, %v4121_v32  ;;  %v3955_v24 = vadd.f32 %v3954_v20, %v3786_v22  ;;  %3824 = vmatmul.bf16.gmra.mxu0 %v12050_v21 }
 0x5e4   :  { %3993 = vmatmul.bf16.gmra.mxu1 %v12051_v35 }
 0x5e5   :  { %12049 = vst [vmem:[#allocation24_spill] sm:$0xff] %v10798_v5  ;;  %4162 = vmatmul.bf16.gmra.mxu2 %v12052_v0 }
 0x5e6   :  { %4331 = vmatmul.bf16.gmra.mxu3 %v12053_v49 }
 0x5e8   :  { %v4123_v57 = vpop.f32.mrf.mxu2  ;;  %v3787_v25 = vpop.f32.mrf.mxu0 }
 0x5e9   :  { %v4124_v12 = vadd.f32 %v4123_v57, %v3955_v24  ;;  %v4292_v19 = vpop.f32.mrf.mxu3  ;;  %v3788_v46 = vadd.f32 %v3787_v25, %v10475_v48  ;;  %v3956_v4 = vpop.f32.mrf.mxu1  ;;  %v12057_v24 = vld [vmem:[#allocation119_spill] sm:$0xff]  ;;  %v12058_v57 = vld [vmem:[#allocation120_spill] sm:$0xff]  ;;  %v12059_v25 = vld [vmem:[#allocation121_spill] sm:$0xff] }
 0x5eb   :  { %v10805_v63 = vadd.f32 %v4292_v19, %v4124_v12  ;;  %v3957_v32 = vadd.f32 %v3956_v4, %v3788_v46 }
 0x5ed   :  { %12054 = vst [vmem:[#allocation25_spill] sm:$0xff] %v10805_v63  ;;  %v12062_v63 = vld [vmem:[#allocation123_spill] sm:$0xff] }
 0x5f0   :  { %v4125_v37 = vpop.f32.mrf.mxu2  ;;  %v3790_v21 = vpop.f32.mrf.mxu0 }
 0x5f1   :  { %v4126_v22 = vadd.f32 %v4125_v37, %v3957_v32  ;;  %v4294_v20 = vpop.f32.mrf.mxu3  ;;  %v3791_v35 = vadd.f32 %v3790_v21, %v10475_v48  ;;  %v3959_v5 = vpop.f32.mrf.mxu1 }
 0x5f3   :  { %v10808_v0 = vadd.f32 %v4294_v20, %v4126_v22  ;;  %v3960_v49 = vadd.f32 %v3959_v5, %v3791_v35  ;;  %3829 = vmatmul.bf16.gmra.mxu0 %v12056_v7 }
 0x5f4   :  { %3998 = vmatmul.bf16.gmra.mxu1 %v12057_v24 }
 0x5f5   :  { %12055 = vst [vmem:[#allocation175_spill] sm:$0xff] %v10808_v0  ;;  %4167 = vmatmul.bf16.gmra.mxu2 %v12058_v57 }
 0x5f6   :  { %4336 = vmatmul.bf16.gmra.mxu3 %v12059_v25 }
 0x5f8   :  { %v4128_v12 = vpop.f32.mrf.mxu2  ;;  %v3792_v4 = vpop.f32.mrf.mxu0 }
 0x5f9   :  { %v4129_v19 = vadd.f32 %v4128_v12, %v3960_v49  ;;  %v4297_v46 = vpop.f32.mrf.mxu3  ;;  %v3793_v32 = vadd.f32 %v3792_v4, %v10475_v48  ;;  %v3961_v37 = vpop.f32.mrf.mxu1  ;;  %v12063_v49 = vld [vmem:[#allocation124_spill] sm:$0xff]  ;;  %v12064_v12 = vld [vmem:[#allocation125_spill] sm:$0xff]  ;;  %v12065_v4 = vld [vmem:[#allocation126_spill] sm:$0xff] }
 0x5fb   :  { %v10815_v21 = vadd.f32 %v4297_v46, %v4129_v19  ;;  %v3962_v22 = vadd.f32 %v3961_v37, %v3793_v32 }
 0x5fd   :  { %12060 = vst [vmem:[#allocation176_spill] sm:$0xff] %v10815_v21  ;;  %v12068_v21 = vld [vmem:[#allocation129_spill] sm:$0xff] }
 0x600   :  { %v4130_v20 = vpop.f32.mrf.mxu2  ;;  %v3795_v7 = vpop.f32.mrf.mxu0 }
 0x601   :  { %v4131_v5 = vadd.f32 %v4130_v20, %v3962_v22  ;;  %v4299_v35 = vpop.f32.mrf.mxu3  ;;  %v3796_v24 = vadd.f32 %v3795_v7, %v10475_v48  ;;  %v3964_v0 = vpop.f32.mrf.mxu1 }
 0x603   :  { %v10818_v57 = vadd.f32 %v4299_v35, %v4131_v5  ;;  %v3965_v25 = vadd.f32 %v3964_v0, %v3796_v24  ;;  %3834 = vmatmul.bf16.gmra.mxu0 %v12062_v63 }
 0x604   :  { %4003 = vmatmul.bf16.gmra.mxu1 %v12063_v49 }
 0x605   :  { %12061 = vst [vmem:[#allocation26_spill] sm:$0xff] %v10818_v57  ;;  %4172 = vmatmul.bf16.gmra.mxu2 %v12064_v12 }
 0x606   :  { %4341 = vmatmul.bf16.gmra.mxu3 %v12065_v4 }
 0x608   :  { %v4133_v19 = vpop.f32.mrf.mxu2  ;;  %v3797_v37 = vpop.f32.mrf.mxu0 }
 0x609   :  { %v4134_v46 = vadd.f32 %v4133_v19, %v3965_v25  ;;  %v4302_v32 = vpop.f32.mrf.mxu3  ;;  %v3798_v22 = vadd.f32 %v3797_v37, %v10475_v48  ;;  %v3966_v20 = vpop.f32.mrf.mxu1  ;;  %v12069_v25 = vld [vmem:[#allocation130_spill] sm:$0xff]  ;;  %v12070_v19 = vld [vmem:[#allocation131_spill] sm:$0xff]  ;;  %v12071_v37 = vld [vmem:[#allocation132_spill] sm:$0xff] }
 0x60b   :  { %v10825_v7 = vadd.f32 %v4302_v32, %v4134_v46  ;;  %v3967_v5 = vadd.f32 %v3966_v20, %v3798_v22 }
 0x60d   :  { %12066 = vst [vmem:[#allocation27_spill] sm:$0xff] %v10825_v7  ;;  %v12074_v7 = vld [vmem:[#allocation135_spill] sm:$0xff] }
 0x610   :  { %v4135_v35 = vpop.f32.mrf.mxu2  ;;  %v3800_v63 = vpop.f32.mrf.mxu0 }
 0x611   :  { %v4136_v0 = vadd.f32 %v4135_v35, %v3967_v5  ;;  %v4304_v24 = vpop.f32.mrf.mxu3  ;;  %v3801_v49 = vadd.f32 %v3800_v63, %v10475_v48  ;;  %v3969_v57 = vpop.f32.mrf.mxu1 }
 0x613   :  { %v10828_v12 = vadd.f32 %v4304_v24, %v4136_v0  ;;  %v3970_v4 = vadd.f32 %v3969_v57, %v3801_v49  ;;  %3839 = vmatmul.bf16.gmra.mxu0 %v12068_v21 }
 0x614   :  { %4008 = vmatmul.bf16.gmra.mxu1 %v12069_v25 }
 0x615   :  { %12067 = vst [vmem:[#allocation28_spill] sm:$0xff] %v10828_v12  ;;  %4177 = vmatmul.bf16.gmra.mxu2 %v12070_v19 }
 0x616   :  { %4346 = vmatmul.bf16.gmra.mxu3 %v12071_v37 }
 0x618   :  { %v4138_v46 = vpop.f32.mrf.mxu2  ;;  %v3802_v20 = vpop.f32.mrf.mxu0 }
 0x619   :  { %v4139_v32 = vadd.f32 %v4138_v46, %v3970_v4  ;;  %v4307_v22 = vpop.f32.mrf.mxu3  ;;  %v3803_v5 = vadd.f32 %v3802_v20, %v10475_v48  ;;  %v3971_v35 = vpop.f32.mrf.mxu1  ;;  %v12075_v4 = vld [vmem:[#allocation136_spill] sm:$0xff]  ;;  %v12076_v46 = vld [vmem:[#allocation137_spill] sm:$0xff]  ;;  %v12077_v20 = vld [vmem:[#allocation138_spill] sm:$0xff] }
 0x61b   :  { %v10835_v63 = vadd.f32 %v4307_v22, %v4139_v32  ;;  %v3972_v0 = vadd.f32 %v3971_v35, %v3803_v5 }
 0x61d   :  { %12072 = vst [vmem:[#allocation29_spill] sm:$0xff] %v10835_v63  ;;  %v12080_v63 = vld [vmem:[#allocation141_spill] sm:$0xff] }
 0x620   :  { %v4140_v24 = vpop.f32.mrf.mxu2  ;;  %v3805_v21 = vpop.f32.mrf.mxu0 }
 0x621   :  { %v4141_v57 = vadd.f32 %v4140_v24, %v3972_v0  ;;  %v4309_v49 = vpop.f32.mrf.mxu3  ;;  %v3806_v25 = vadd.f32 %v3805_v21, %v10475_v48  ;;  %v3974_v12 = vpop.f32.mrf.mxu1 }
 0x623   :  { %v10838_v19 = vadd.f32 %v4309_v49, %v4141_v57  ;;  %v3975_v37 = vadd.f32 %v3974_v12, %v3806_v25  ;;  %4360 = vmatmul.bf16.vlgmr.msrb.gmra.mxu0 %v12074_v7 }
 0x624   :  { %4529 = vmatmul.bf16.vlgmr.msrb.gmra.mxu1 %v12075_v4 }
 0x625   :  { %12073 = vst [vmem:[#allocation181_spill] sm:$0xff] %v10838_v19  ;;  %4698 = vmatmul.bf16.vlgmr.msrb.gmra.mxu2 %v12076_v46 }
 0x626   :  { %4867 = vmatmul.bf16.vlgmr.msrb.gmra.mxu3 %v12077_v20 }
 0x628   :  { %v4143_v32 = vpop.f32.mrf.mxu2  ;;  %v3807_v35 = vpop.f32.mrf.mxu0 }
 0x629   :  { %v4144_v22 = vadd.f32 %v4143_v32, %v3975_v37  ;;  %v4312_v5 = vpop.f32.mrf.mxu3  ;;  %v3808_v0 = vadd.f32 %v3807_v35, %v10475_v48  ;;  %v3976_v24 = vpop.f32.mrf.mxu1  ;;  %v12081_v37 = vld [vmem:[#allocation142_spill] sm:$0xff]  ;;  %v12082_v32 = vld [vmem:[#allocation143_spill] sm:$0xff]  ;;  %v12083_v35 = vld [vmem:[#allocation144_spill] sm:$0xff] }
 0x62b   :  { %v10845_v21 = vadd.f32 %v4312_v5, %v4144_v22  ;;  %v3977_v57 = vadd.f32 %v3976_v24, %v3808_v0 }
 0x62d   :  { %12078 = vst [vmem:[#allocation30_spill] sm:$0xff] %v10845_v21  ;;  %v12086_v21 = vld [vmem:[#allocation147_spill] sm:$0xff] }
 0x630   :  { %v4145_v49 = vpop.f32.mrf.mxu2  ;;  %v3810_v7 = vpop.f32.mrf.mxu0 }
 0x631   :  { %v4146_v12 = vadd.f32 %v4145_v49, %v3977_v57  ;;  %v4314_v25 = vpop.f32.mrf.mxu3  ;;  %v3811_v4 = vadd.f32 %v3810_v7, %v10475_v48  ;;  %v3979_v19 = vpop.f32.mrf.mxu1 }
 0x633   :  { %v10848_v46 = vadd.f32 %v4314_v25, %v4146_v12  ;;  %v3980_v20 = vadd.f32 %v3979_v19, %v3811_v4  ;;  %4365 = vmatmul.bf16.gmra.mxu0 %v12080_v63 }
 0x634   :  { %4534 = vmatmul.bf16.gmra.mxu1 %v12081_v37 }
 0x635   :  { %12079 = vst [vmem:[#allocation31_spill] sm:$0xff] %v10848_v46  ;;  %4703 = vmatmul.bf16.gmra.mxu2 %v12082_v32 }
 0x636   :  { %4872 = vmatmul.bf16.gmra.mxu3 %v12083_v35 }
 0x638   :  { %v4148_v22 = vpop.f32.mrf.mxu2  ;;  %v3812_v24 = vpop.f32.mrf.mxu0 }
 0x639   :  { %v4149_v5 = vadd.f32 %v4148_v22, %v3980_v20  ;;  %v4317_v0 = vpop.f32.mrf.mxu3  ;;  %v3813_v57 = vadd.f32 %v3812_v24, %v10475_v48  ;;  %v3981_v49 = vpop.f32.mrf.mxu1  ;;  %v12087_v20 = vld [vmem:[#allocation148_spill] sm:$0xff]  ;;  %v12088_v22 = vld [vmem:[#allocation149_spill] sm:$0xff]  ;;  %v12089_v24 = vld [vmem:[#allocation150_spill] sm:$0xff] }
 0x63b   :  { %v10855_v7 = vadd.f32 %v4317_v0, %v4149_v5  ;;  %v3982_v12 = vadd.f32 %v3981_v49, %v3813_v57 }
 0x63d   :  { %12084 = vst [vmem:[#allocation32_spill] sm:$0xff] %v10855_v7  ;;  %v12092_v7 = vld [vmem:[#allocation153_spill] sm:$0xff] }
 0x640   :  { %v4150_v25 = vpop.f32.mrf.mxu2  ;;  %v3815_v63 = vpop.f32.mrf.mxu0 }
 0x641   :  { %v4151_v19 = vadd.f32 %v4150_v25, %v3982_v12  ;;  %v4319_v4 = vpop.f32.mrf.mxu3  ;;  %v3816_v37 = vadd.f32 %v3815_v63, %v10475_v48  ;;  %v3984_v46 = vpop.f32.mrf.mxu1 }
 0x643   :  { %v10858_v32 = vadd.f32 %v4319_v4, %v4151_v19  ;;  %v3985_v35 = vadd.f32 %v3984_v46, %v3816_v37  ;;  %4370 = vmatmul.bf16.gmra.mxu0 %v12086_v21 }
 0x644   :  { %4539 = vmatmul.bf16.gmra.mxu1 %v12087_v20 }
 0x645   :  { %12085 = vst [vmem:[#allocation33_spill] sm:$0xff] %v10858_v32  ;;  %4708 = vmatmul.bf16.gmra.mxu2 %v12088_v22 }
 0x646   :  { %4877 = vmatmul.bf16.gmra.mxu3 %v12089_v24 }
 0x648   :  { %v4153_v5 = vpop.f32.mrf.mxu2  ;;  %v3817_v49 = vpop.f32.mrf.mxu0 }
 0x649   :  { %v4154_v0 = vadd.f32 %v4153_v5, %v3985_v35  ;;  %v4322_v57 = vpop.f32.mrf.mxu3  ;;  %v3818_v12 = vadd.f32 %v3817_v49, %v10475_v48  ;;  %v3986_v25 = vpop.f32.mrf.mxu1  ;;  %v12093_v35 = vld [vmem:[#allocation154_spill] sm:$0xff]  ;;  %v12094_v5 = vld [vmem:[#allocation155_spill] sm:$0xff]  ;;  %v12095_v49 = vld [vmem:[#allocation156_spill] sm:$0xff] }
 0x64b   :  { %v10865_v63 = vadd.f32 %v4322_v57, %v4154_v0  ;;  %v3987_v19 = vadd.f32 %v3986_v25, %v3818_v12 }
 0x64d   :  { %12090 = vst [vmem:[#allocation34_spill] sm:$0xff] %v10865_v63  ;;  %v12098_v63 = vld [vmem:[#allocation159_spill] sm:$0xff] }
 0x650   :  { %v4155_v4 = vpop.f32.mrf.mxu2  ;;  %v3820_v21 = vpop.f32.mrf.mxu0 }
 0x651   :  { %v4156_v46 = vadd.f32 %v4155_v4, %v3987_v19  ;;  %v4324_v37 = vpop.f32.mrf.mxu3  ;;  %v3821_v20 = vadd.f32 %v3820_v21, %v10475_v48  ;;  %v3989_v32 = vpop.f32.mrf.mxu1 }
 0x653   :  { %v10868_v22 = vadd.f32 %v4324_v37, %v4156_v46  ;;  %v3990_v24 = vadd.f32 %v3989_v32, %v3821_v20  ;;  %4375 = vmatmul.bf16.gmra.mxu0 %v12092_v7 }
 0x654   :  { %4544 = vmatmul.bf16.gmra.mxu1 %v12093_v35 }
 0x655   :  { %12091 = vst [vmem:[#allocation35_spill] sm:$0xff] %v10868_v22  ;;  %4713 = vmatmul.bf16.gmra.mxu2 %v12094_v5 }
 0x656   :  { %4882 = vmatmul.bf16.gmra.mxu3 %v12095_v49 }
 0x658   :  { %v4158_v0 = vpop.f32.mrf.mxu2  ;;  %v3822_v25 = vpop.f32.mrf.mxu0 }
 0x659   :  { %v4159_v57 = vadd.f32 %v4158_v0, %v3990_v24  ;;  %v4327_v12 = vpop.f32.mrf.mxu3  ;;  %v3823_v19 = vadd.f32 %v3822_v25, %v10475_v48  ;;  %v3991_v4 = vpop.f32.mrf.mxu1  ;;  %v12099_v24 = vld [vmem:[#allocation160_spill] sm:$0xff]  ;;  %v12100_v0 = vld [vmem:[#allocation161_spill] sm:$0xff]  ;;  %v12101_v25 = vld [vmem:[#allocation162_spill] sm:$0xff] }
 0x65b   :  { %v10875_v21 = vadd.f32 %v4327_v12, %v4159_v57  ;;  %v3992_v46 = vadd.f32 %v3991_v4, %v3823_v19 }
 0x65d   :  { %12096 = vst [vmem:[#allocation36_spill] sm:$0xff] %v10875_v21  ;;  %v12104_v21 = vld [vmem:[#allocation165_spill] sm:$0xff] }
 0x660   :  { %v4160_v37 = vpop.f32.mrf.mxu2  ;;  %v3825_v7 = vpop.f32.mrf.mxu0 }
 0x661   :  { %v4161_v32 = vadd.f32 %v4160_v37, %v3992_v46  ;;  %v4329_v20 = vpop.f32.mrf.mxu3  ;;  %v3826_v35 = vadd.f32 %v3825_v7, %v10475_v48  ;;  %v3994_v22 = vpop.f32.mrf.mxu1 }
 0x663   :  { %v10878_v5 = vadd.f32 %v4329_v20, %v4161_v32  ;;  %v3995_v49 = vadd.f32 %v3994_v22, %v3826_v35  ;;  %4380 = vmatmul.bf16.gmra.mxu0 %v12098_v63 }
 0x664   :  { %4549 = vmatmul.bf16.gmra.mxu1 %v12099_v24 }
 0x665   :  { %12097 = vst [vmem:[#allocation37_spill] sm:$0xff] %v10878_v5  ;;  %4718 = vmatmul.bf16.gmra.mxu2 %v12100_v0 }
 0x666   :  { %4887 = vmatmul.bf16.gmra.mxu3 %v12101_v25 }
 0x668   :  { %v4163_v57 = vpop.f32.mrf.mxu2  ;;  %v3827_v4 = vpop.f32.mrf.mxu0 }
 0x669   :  { %v4164_v12 = vadd.f32 %v4163_v57, %v3995_v49  ;;  %v4332_v19 = vpop.f32.mrf.mxu3  ;;  %v3828_v46 = vadd.f32 %v3827_v4, %v10475_v48  ;;  %v3996_v37 = vpop.f32.mrf.mxu1  ;;  %v12105_v49 = vld [vmem:[#allocation166_spill] sm:$0xff]  ;;  %v12106_v57 = vld [vmem:[#allocation167_spill] sm:$0xff]  ;;  %v12107_v4 = vld [vmem:[#allocation168_spill] sm:$0xff] }
 0x66b   :  { %v10885_v7 = vadd.f32 %v4332_v19, %v4164_v12  ;;  %v3997_v32 = vadd.f32 %v3996_v37, %v3828_v46 }
 0x66d   :  { %12102 = vst [vmem:[#allocation38_spill] sm:$0xff] %v10885_v7  ;;  %v12110_v7 = vld [vmem:[#allocation171_spill] sm:$0xff] }
 0x670   :  { %v4165_v20 = vpop.f32.mrf.mxu2  ;;  %v3830_v63 = vpop.f32.mrf.mxu0 }
 0x671   :  { %v4166_v22 = vadd.f32 %v4165_v20, %v3997_v32  ;;  %v4334_v35 = vpop.f32.mrf.mxu3  ;;  %v3831_v24 = vadd.f32 %v3830_v63, %v10475_v48  ;;  %v3999_v5 = vpop.f32.mrf.mxu1 }
 0x673   :  { %v10888_v0 = vadd.f32 %v4334_v35, %v4166_v22  ;;  %v4000_v25 = vadd.f32 %v3999_v5, %v3831_v24  ;;  %4385 = vmatmul.bf16.gmra.mxu0 %v12104_v21 }
 0x674   :  { %4554 = vmatmul.bf16.gmra.mxu1 %v12105_v49 }
 0x675   :  { %12103 = vst [vmem:[#allocation39_spill] sm:$0xff] %v10888_v0  ;;  %4723 = vmatmul.bf16.gmra.mxu2 %v12106_v57 }
 0x676   :  { %4892 = vmatmul.bf16.gmra.mxu3 %v12107_v4 }
 0x678   :  { %v4168_v12 = vpop.f32.mrf.mxu2  ;;  %v3832_v37 = vpop.f32.mrf.mxu0 }
 0x679   :  { %v4169_v19 = vadd.f32 %v4168_v12, %v4000_v25  ;;  %v4337_v46 = vpop.f32.mrf.mxu3  ;;  %v3833_v32 = vadd.f32 %v3832_v37, %v10475_v48  ;;  %v4001_v20 = vpop.f32.mrf.mxu1  ;;  %v12111_v25 = vld [vmem:[#allocation172_spill] sm:$0xff]  ;;  %v12112_v12 = vld [vmem:[#allocation173_spill] sm:$0xff]  ;;  %v12113_v37 = vld [vmem:[#allocation174_spill] sm:$0xff] }
 0x67b   :  { %v10895_v63 = vadd.f32 %v4337_v46, %v4169_v19  ;;  %v4002_v22 = vadd.f32 %v4001_v20, %v3833_v32 }
 0x67d   :  { %12108 = vst [vmem:[#allocation40_spill] sm:$0xff] %v10895_v63  ;;  %v12115_v63 = vld [vmem:[#allocation177_spill] sm:$0xff] }
 0x680   :  { %v4170_v35 = vpop.f32.mrf.mxu2  ;;  %v3835_v21 = vpop.f32.mrf.mxu0 }
 0x681   :  { %v4171_v5 = vadd.f32 %v4170_v35, %v4002_v22  ;;  %v4339_v24 = vpop.f32.mrf.mxu3  ;;  %v3836_v49 = vadd.f32 %v3835_v21, %v10475_v48  ;;  %v4004_v0 = vpop.f32.mrf.mxu1 }
 0x683   :  { %v10898_v57 = vadd.f32 %v4339_v24, %v4171_v5  ;;  %v4005_v4 = vadd.f32 %v4004_v0, %v3836_v49  ;;  %4390 = vmatmul.bf16.gmra.mxu0 %v12110_v7 }
 0x684   :  { %4559 = vmatmul.bf16.gmra.mxu1 %v12111_v25 }
 0x685   :  { %12109 = vst [vmem:[#allocation41_spill] sm:$0xff] %v10898_v57  ;;  %4728 = vmatmul.bf16.gmra.mxu2 %v12112_v12 }
 0x686   :  { %4897 = vmatmul.bf16.gmra.mxu3 %v12113_v37 }
 0x688   :  { %v4173_v19 = vpop.f32.mrf.mxu2  ;;  %v3837_v20 = vpop.f32.mrf.mxu0 }
 0x689   :  { %v4174_v46 = vadd.f32 %v4173_v19, %v4005_v4  ;;  %v4342_v32 = vpop.f32.mrf.mxu3  ;;  %v3838_v22 = vadd.f32 %v3837_v20, %v10475_v48  ;;  %v4006_v35 = vpop.f32.mrf.mxu1  ;;  %v12116_v4 = vld [vmem:[#allocation178_spill] sm:$0xff]  ;;  %v12117_v19 = vld [vmem:[#allocation179_spill] sm:$0xff]  ;;  %v12118_v20 = vld [vmem:[#allocation180_spill] sm:$0xff] }
 0x68b   :  { %v10905_v21 = vadd.f32 %v4342_v32, %v4174_v46  ;;  %v4007_v5 = vadd.f32 %v4006_v35, %v3838_v22 }
 0x690   :  { %v4175_v24 = vpop.f32.mrf.mxu2  ;;  %v3840_v7 = vpop.f32.mrf.mxu0 }
 0x691   :  { %v4176_v0 = vadd.f32 %v4175_v24, %v4007_v5  ;;  %v4344_v49 = vpop.f32.mrf.mxu3  ;;  %v3841_v25 = vadd.f32 %v3840_v7, %v10475_v48  ;;  %v4009_v57 = vpop.f32.mrf.mxu1 }
 0x693   :  { %v10908_v12 = vadd.f32 %v4344_v49, %v4176_v0  ;;  %v4010_v37 = vadd.f32 %v4009_v57, %v3841_v25  ;;  %4395 = vmatmul.bf16.gmra.mxu0 %v12115_v63 }
 0x694   :  { %4564 = vmatmul.bf16.gmra.mxu1 %v12116_v4 }
 0x695   :  { %12114 = vst [vmem:[#allocation42_spill] sm:$0xff] %v10908_v12  ;;  %4733 = vmatmul.bf16.gmra.mxu2 %v12117_v19 }
 0x696   :  { %4902 = vmatmul.bf16.gmra.mxu3 %v12118_v20  ;;  %v12120_v20 = vld [vmem:[#allocation183_spill] sm:$0xff] }
 0x698   :  { %v4178_v46 = vpop.f32.mrf.mxu2  ;;  %v3842_v35 = vpop.f32.mrf.mxu0 }
 0x699   :  { %v4179_v32 = vadd.f32 %v4178_v46, %v4010_v37  ;;  %v4347_v22 = vpop.f32.mrf.mxu3  ;;  %v3843_v5 = vadd.f32 %v3842_v35, %v10475_v48  ;;  %v4011_v24 = vpop.f32.mrf.mxu1  ;;  %v12119_v37 = vld [vmem:[#allocation182_spill] sm:$0xff]  ;;  %v12121_v48 = vld [vmem:[#allocation184_spill] sm:$0xff] }
 0x69b   :  { %v10915_v7 = vadd.f32 %v4347_v22, %v4179_v32  ;;  %v4012_v0 = vadd.f32 %v4011_v24, %v3843_v5 }
 0x6a0   :  { %v4180_v49 = vpop.f32.mrf.mxu2  ;;  %v4361_v63 = vpop.f32.mrf.mxu0 }
 0x6a1   :  { %v4181_v57 = vadd.f32 %v4180_v49, %v4012_v0  ;;  %v4349_v25 = vpop.f32.mrf.mxu3  ;;  %v4530_v12 = vpop.f32.mrf.mxu1  ;;  %v4362_v19 = vadd.f32 %v4361_v63, %v10485_v2 }
 0x6a3   :  { %v10917_v4 = vadd.f32 %v4349_v25, %v4181_v57  ;;  %4400 = vmatmul.bf16.gmra.mxu0 %v9216_v55  ;;  %v4531_v46 = vadd.f32 %v4530_v12, %v4362_v19  ;;  %v12122_v57 = vld [vmem:[#allocation185_spill] sm:$0xff] }
 0x6a4   :  { %4569 = vmatmul.bf16.gmra.mxu1 %v12119_v37 }
 0x6a5   :  { %4738 = vmatmul.bf16.gmra.mxu2 %v12120_v20 }
 0x6a6   :  { %4907 = vmatmul.bf16.gmra.mxu3 %v12121_v48 }
 0x6a8   :  { %v4699_v32 = vpop.f32.mrf.mxu2  ;;  %v4363_v5 = vpop.f32.mrf.mxu0 }
 0x6a9   :  { %v4700_v22 = vadd.f32 %v4699_v32, %v4531_v46  ;;  %v4868_v35 = vpop.f32.mrf.mxu3  ;;  %v4532_v24 = vpop.f32.mrf.mxu1  ;;  %v4364_v49 = vadd.f32 %v4363_v5, %v10488_v33  ;;  %v12123_v33 = vld [vmem:[#allocation186_spill] sm:$0xff]  ;;  %v12124_v32 = vld [vmem:[#allocation187_spill] sm:$0xff] }
 0x6ab   :  { %v4869_v0 = vadd.f32 %v4868_v35, %v4700_v22  ;;  %v4533_v55 = vadd.f32 %v4532_v24, %v4364_v49  ;;  %v12125_v22 = vld [vmem:[#allocation188_spill] sm:$0xff] }
 0x6ad   :  { %v5028_v25 = vpack.c.bf16 %v4869_v0, %v12122_v57 }
 0x6af   :  { %5092 = vst [vmem:[%s11338_s3] sm:$0xff] %v5028_v25 }
 0x6b0   :  { %v4701_v2 = vpop.f32.mrf.mxu2  ;;  %v4366_v20 = vpop.f32.mrf.mxu0 }
 0x6b1   :  { %v4702_v63 = vadd.f32 %v4701_v2, %v4533_v55  ;;  %v4870_v37 = vpop.f32.mrf.mxu3  ;;  %v4535_v12 = vpop.f32.mrf.mxu1  ;;  %v4367_v48 = vadd.f32 %v4366_v20, %v10495_v14 }
 0x6b3   :  { %v4871_v19 = vadd.f32 %v4870_v37, %v4702_v63  ;;  %4405 = vmatmul.bf16.gmra.mxu0 %v9258_v9  ;;  %v4536_v35 = vadd.f32 %v4535_v12, %v4367_v48 }
 0x6b4   :  { %4574 = vmatmul.bf16.gmra.mxu1 %v12123_v33  ;;  %v12128_v33 = vld [vmem:[#allocation191_spill] sm:$0xff] }
 0x6b5   :  { %v5029_v46 = vpack.c.bf16 %v4871_v19, %v9267_v15  ;;  %4743 = vmatmul.bf16.gmra.mxu2 %v12124_v32  ;;  %v12126_v15 = vld [vmem:[#allocation189_spill] sm:$0xff]  ;;  %v12129_v32 = vld [vmem:[#allocation192_spill] sm:$0xff] }
 0x6b6   :  { %4912 = vmatmul.bf16.gmra.mxu3 %v12125_v22 }
 0x6b7   :  { %5093 = vst [vmem:[%s11338_s3 + $0x8] sm:$0xff] %v5029_v46 }
 0x6b8   :  { %v4704_v5 = vpop.f32.mrf.mxu2  ;;  %v4368_v49 = vpop.f32.mrf.mxu0 }
 0x6b9   :  { %v4705_v24 = vadd.f32 %v4704_v5, %v4536_v35  ;;  %v4873_v0 = vpop.f32.mrf.mxu3  ;;  %v4537_v14 = vpop.f32.mrf.mxu1  ;;  %v4369_v9 = vadd.f32 %v4368_v49, %v10498_v28  ;;  %v12127_v28 = vld [vmem:[#allocation190_spill] sm:$0xff] }
 0x6bb   :  { %v4874_v57 = vadd.f32 %v4873_v0, %v4705_v24  ;;  %v4538_v55 = vadd.f32 %v4537_v14, %v4369_v9 }
 0x6bd   :  { %v5030_v25 = vpack.c.bf16 %v4874_v57, %v12126_v15 }
 0x6bf   :  { %5094 = vst [vmem:[%s11338_s3 + $0x10] sm:$0xff] %v5030_v25 }
 0x6c0   :  { %v4706_v2 = vpop.f32.mrf.mxu2  ;;  %v4371_v20 = vpop.f32.mrf.mxu0 }
 0x6c1   :  { %v4707_v63 = vadd.f32 %v4706_v2, %v4538_v55  ;;  %v4875_v37 = vpop.f32.mrf.mxu3  ;;  %v4540_v12 = vpop.f32.mrf.mxu1  ;;  %v4372_v48 = vadd.f32 %v4371_v20, %v10523_v23 }
 0x6c3   :  { %v4876_v19 = vadd.f32 %v4875_v37, %v4707_v63  ;;  %4410 = vmatmul.bf16.gmra.mxu0 %v9300_v61  ;;  %v4541_v22 = vadd.f32 %v4540_v12, %v4372_v48  ;;  %v12132_v12 = vld [vmem:[#allocation195_spill] sm:$0xff] }
 0x6c4   :  { %4579 = vmatmul.bf16.gmra.mxu1 %v12127_v28 }
 0x6c5   :  { %v5031_v46 = vpack.c.bf16 %v4876_v19, %v9309_v40  ;;  %4748 = vmatmul.bf16.gmra.mxu2 %v12128_v33  ;;  %v12130_v40 = vld [vmem:[#allocation193_spill] sm:$0xff]  ;;  %v12133_v19 = vld [vmem:[#allocation196_spill] sm:$0xff] }
 0x6c6   :  { %4917 = vmatmul.bf16.gmra.mxu3 %v12129_v32 }
 0x6c7   :  { %5095 = vst [vmem:[%s11338_s3 + $0x18] sm:$0xff] %v5031_v46 }
 0x6c8   :  { %v4709_v35 = vpop.f32.mrf.mxu2  ;;  %v4373_v0 = vpop.f32.mrf.mxu0 }
 0x6c9   :  { %v4710_v5 = vadd.f32 %v4709_v35, %v4541_v22  ;;  %v4878_v24 = vpop.f32.mrf.mxu3  ;;  %v4542_v23 = vpop.f32.mrf.mxu1  ;;  %v4374_v61 = vadd.f32 %v4373_v0, %v10532_v30  ;;  %v12131_v30 = vld [vmem:[#allocation194_spill] sm:$0xff] }
 0x6cb   :  { %v4879_v49 = vadd.f32 %v4878_v24, %v4710_v5  ;;  %v4543_v57 = vadd.f32 %v4542_v23, %v4374_v61 }
 0x6cd   :  { %v5032_v14 = vpack.c.bf16 %v4879_v49, %v12130_v40 }
 0x6cf   :  { %5096 = vst [vmem:[%s11338_s3 + $0x20] sm:$0xff] %v5032_v14 }
 0x6d0   :  { %v4711_v9 = vpop.f32.mrf.mxu2  ;;  %v4376_v55 = vpop.f32.mrf.mxu0 }
 0x6d1   :  { %v4712_v15 = vadd.f32 %v4711_v9, %v4543_v57  ;;  %v4880_v25 = vpop.f32.mrf.mxu3  ;;  %v4545_v2 = vpop.f32.mrf.mxu1  ;;  %v4377_v37 = vadd.f32 %v4376_v55, %v10539_v41  ;;  %v12136_v9 = vld [vmem:[#allocation199_spill] sm:$0xff] }
 0x6d3   :  { %v4881_v63 = vadd.f32 %v4880_v25, %v4712_v15  ;;  %4415 = vmatmul.bf16.gmra.mxu0 %v9366_v53  ;;  %v4546_v48 = vadd.f32 %v4545_v2, %v4377_v37  ;;  %v12137_v15 = vld [vmem:[#allocation200_spill] sm:$0xff] }
 0x6d4   :  { %4584 = vmatmul.bf16.gmra.mxu1 %v12131_v30 }
 0x6d5   :  { %v5033_v20 = vpack.c.bf16 %v4881_v63, %v9375_v42  ;;  %4753 = vmatmul.bf16.gmra.mxu2 %v12132_v12  ;;  %v12134_v42 = vld [vmem:[#allocation197_spill] sm:$0xff] }
 0x6d6   :  { %4922 = vmatmul.bf16.gmra.mxu3 %v12133_v19 }
 0x6d7   :  { %5097 = vst [vmem:[%s11338_s3 + $0x28] sm:$0xff] %v5033_v20 }
 0x6d8   :  { %v4714_v46 = vpop.f32.mrf.mxu2  ;;  %v4378_v32 = vpop.f32.mrf.mxu0 }
 0x6d9   :  { %v4715_v28 = vadd.f32 %v4714_v46, %v4546_v48  ;;  %v4883_v33 = vpop.f32.mrf.mxu3  ;;  %v4547_v41 = vpop.f32.mrf.mxu1  ;;  %v4379_v53 = vadd.f32 %v4378_v32, %v10542_v18  ;;  %v12135_v18 = vld [vmem:[#allocation198_spill] sm:$0xff] }
 0x6db   :  { %v4884_v22 = vadd.f32 %v4883_v33, %v4715_v28  ;;  %v4548_v5 = vadd.f32 %v4547_v41, %v4379_v53  ;;  %v12140_v53 = vld [vmem:[#allocation203_spill] sm:$0xff] }
 0x6dd   :  { %v5034_v35 = vpack.c.bf16 %v4884_v22, %v12134_v42  ;;  %v12141_v42 = vld [vmem:[#allocation204_spill] sm:$0xff] }
 0x6df   :  { %5098 = vst [vmem:[%s11338_s3 + $0x30] sm:$0xff] %v5034_v35 }
 0x6e0   :  { %v4716_v24 = vpop.f32.mrf.mxu2  ;;  %v4381_v49 = vpop.f32.mrf.mxu0 }
 0x6e1   :  { %v4717_v0 = vadd.f32 %v4716_v24, %v4548_v5  ;;  %v4885_v23 = vpop.f32.mrf.mxu3  ;;  %v4550_v61 = vpop.f32.mrf.mxu1  ;;  %v4382_v14 = vadd.f32 %v4381_v49, %v10549_v34 }
 0x6e3   :  { %v4886_v40 = vadd.f32 %v4885_v23, %v4717_v0  ;;  %4420 = vmatmul.bf16.gmra.mxu0 %v9408_v1  ;;  %v4551_v25 = vadd.f32 %v4550_v61, %v4382_v14 }
 0x6e4   :  { %4589 = vmatmul.bf16.gmra.mxu1 %v12135_v18 }
 0x6e5   :  { %v5035_v57 = vpack.c.bf16 %v4886_v40, %v9417_v43  ;;  %4758 = vmatmul.bf16.gmra.mxu2 %v12136_v9  ;;  %v12138_v43 = vld [vmem:[#allocation201_spill] sm:$0xff] }
 0x6e6   :  { %4927 = vmatmul.bf16.gmra.mxu3 %v12137_v15 }
 0x6e7   :  { %5099 = vst [vmem:[%s11338_s3 + $0x38] sm:$0xff] %v5035_v57 }
 0x6e8   :  { %v4719_v55 = vpop.f32.mrf.mxu2  ;;  %v4383_v37 = vpop.f32.mrf.mxu0 }
 0x6e9   :  { %v4720_v2 = vadd.f32 %v4719_v55, %v4551_v25  ;;  %v4888_v63 = vpop.f32.mrf.mxu3  ;;  %v4552_v34 = vpop.f32.mrf.mxu1  ;;  %v4384_v1 = vadd.f32 %v4383_v37, %v10552_v29  ;;  %v12139_v29 = vld [vmem:[#allocation202_spill] sm:$0xff]  ;;  %v12145_v37 = vld [vmem:[#allocation208_spill] sm:$0xff] }
 0x6eb   :  { %v4889_v20 = vadd.f32 %v4888_v63, %v4720_v2  ;;  %v4553_v12 = vadd.f32 %v4552_v34, %v4384_v1  ;;  %v12144_v63 = vld [vmem:[#allocation207_spill] sm:$0xff] }
 0x6ed   :  { %v5036_v30 = vpack.c.bf16 %v4889_v20, %v12138_v43 }
 0x6ef   :  { %5100 = vst [vmem:[%s11338_s3 + $0x40] sm:$0xff] %v5036_v30 }
 0x6f0   :  { %v4721_v19 = vpop.f32.mrf.mxu2  ;;  %v4386_v28 = vpop.f32.mrf.mxu0 }
 0x6f1   :  { %v4722_v48 = vadd.f32 %v4721_v19, %v4553_v12  ;;  %v4890_v46 = vpop.f32.mrf.mxu3  ;;  %v4555_v33 = vpop.f32.mrf.mxu1  ;;  %v4387_v41 = vadd.f32 %v4386_v28, %v10559_v27 }
 0x6f3   :  { %v4891_v32 = vadd.f32 %v4890_v46, %v4722_v48  ;;  %4425 = vmatmul.bf16.gmra.mxu0 %v9450_v26  ;;  %v4556_v35 = vadd.f32 %v4555_v33, %v4387_v41 }
 0x6f4   :  { %4594 = vmatmul.bf16.gmra.mxu1 %v12139_v29 }
 0x6f5   :  { %v5037_v22 = vpack.c.bf16 %v4891_v32, %v9459_v10  ;;  %4763 = vmatmul.bf16.gmra.mxu2 %v12140_v53  ;;  %v12142_v10 = vld [vmem:[#allocation205_spill] sm:$0xff] }
 0x6f6   :  { %4932 = vmatmul.bf16.gmra.mxu3 %v12141_v42  ;;  %v12148_v42 = vld [vmem:[#allocation211_spill] sm:$0xff] }
 0x6f7   :  { %5101 = vst [vmem:[%s11338_s3 + $0x48] sm:$0xff] %v5037_v22 }
 0x6f8   :  { %v4724_v5 = vpop.f32.mrf.mxu2  ;;  %v4388_v23 = vpop.f32.mrf.mxu0 }
 0x6f9   :  { %v4725_v24 = vadd.f32 %v4724_v5, %v4556_v35  ;;  %v4893_v0 = vpop.f32.mrf.mxu3  ;;  %v4557_v27 = vpop.f32.mrf.mxu1  ;;  %v4389_v26 = vadd.f32 %v4388_v23, %v10562_v52  ;;  %v12143_v52 = vld [vmem:[#allocation206_spill] sm:$0xff]  ;;  %v12149_v35 = vld [vmem:[#allocation212_spill] sm:$0xff] }
 0x6fb   :  { %v4894_v49 = vadd.f32 %v4893_v0, %v4725_v24  ;;  %v4558_v40 = vadd.f32 %v4557_v27, %v4389_v26 }
 0x6fd   :  { %v5038_v61 = vpack.c.bf16 %v4894_v49, %v12142_v10 }
 0x6ff   :  { %5102 = vst [vmem:[%s11338_s3 + $0x50] sm:$0xff] %v5038_v61 }
 0x700   :  { %v4726_v14 = vpop.f32.mrf.mxu2  ;;  %v4391_v9 = vpop.f32.mrf.mxu0 }
 0x701   :  { %v4727_v57 = vadd.f32 %v4726_v14, %v4558_v40  ;;  %v4895_v18 = vpop.f32.mrf.mxu3  ;;  %v4560_v15 = vpop.f32.mrf.mxu1  ;;  %v4392_v55 = vadd.f32 %v4391_v9, %v10587_v13 }
 0x703   :  { %v4896_v25 = vadd.f32 %v4895_v18, %v4727_v57  ;;  %4430 = vmatmul.bf16.gmra.mxu0 %v9492_v8  ;;  %v4561_v34 = vadd.f32 %v4560_v15, %v4392_v55  ;;  %v12152_v55 = vld [vmem:[#allocation215_spill] sm:$0xff] }
 0x704   :  { %4599 = vmatmul.bf16.gmra.mxu1 %v12143_v52 }
 0x705   :  { %v5039_v2 = vpack.c.bf16 %v4896_v25, %v9501_v44  ;;  %4768 = vmatmul.bf16.gmra.mxu2 %v12144_v63  ;;  %v12146_v44 = vld [vmem:[#allocation209_spill] sm:$0xff] }
 0x706   :  { %4937 = vmatmul.bf16.gmra.mxu3 %v12145_v37 }
 0x707   :  { %5103 = vst [vmem:[%s11338_s3 + $0x58] sm:$0xff] %v5039_v2  ;;  %v12153_v2 = vld [vmem:[#allocation216_spill] sm:$0xff] }
 0x708   :  { %v4729_v20 = vpop.f32.mrf.mxu2  ;;  %v4393_v30 = vpop.f32.mrf.mxu0 }
 0x709   :  { %v4730_v1 = vadd.f32 %v4729_v20, %v4561_v34  ;;  %v4898_v43 = vpop.f32.mrf.mxu3  ;;  %v4562_v13 = vpop.f32.mrf.mxu1  ;;  %v4394_v8 = vadd.f32 %v4393_v30, %v10596_v6  ;;  %v12147_v6 = vld [vmem:[#allocation210_spill] sm:$0xff] }
 0x70b   :  { %v4899_v12 = vadd.f32 %v4898_v43, %v4730_v1  ;;  %v4563_v48 = vadd.f32 %v4562_v13, %v4394_v8 }
 0x70d   :  { %v5040_v19 = vpack.c.bf16 %v4899_v12, %v12146_v44 }
 0x70f   :  { %5104 = vst [vmem:[%s11338_s3 + $0x60] sm:$0xff] %v5040_v19 }
 0x710   :  { %v4731_v46 = vpop.f32.mrf.mxu2  ;;  %v4396_v32 = vpop.f32.mrf.mxu0 }
 0x711   :  { %v4732_v28 = vadd.f32 %v4731_v46, %v4563_v48  ;;  %v4900_v33 = vpop.f32.mrf.mxu3  ;;  %v4565_v41 = vpop.f32.mrf.mxu1  ;;  %v4397_v29 = vadd.f32 %v4396_v32, %v10603_v54  ;;  %v12157_v32 = vld [vmem:[#allocation220_spill] sm:$0xff] }
 0x713   :  { %v4901_v22 = vadd.f32 %v4900_v33, %v4732_v28  ;;  %4435 = vmatmul.bf16.gmra.mxu0 %v9558_v47  ;;  %v4566_v5 = vadd.f32 %v4565_v41, %v4397_v29  ;;  %v12156_v33 = vld [vmem:[#allocation219_spill] sm:$0xff] }
 0x714   :  { %4604 = vmatmul.bf16.gmra.mxu1 %v12147_v6 }
 0x715   :  { %v5041_v53 = vpack.c.bf16 %v4901_v22, %v9567_v60  ;;  %4773 = vmatmul.bf16.gmra.mxu2 %v12148_v42  ;;  %v12150_v60 = vld [vmem:[#allocation213_spill] sm:$0xff] }
 0x716   :  { %4942 = vmatmul.bf16.gmra.mxu3 %v12149_v35 }
 0x717   :  { %5105 = vst [vmem:[%s11338_s3 + $0x68] sm:$0xff] %v5041_v53 }
 0x718   :  { %v4734_v24 = vpop.f32.mrf.mxu2  ;;  %v4398_v27 = vpop.f32.mrf.mxu0 }
 0x719   :  { %v4735_v0 = vadd.f32 %v4734_v24, %v4566_v5  ;;  %v4903_v23 = vpop.f32.mrf.mxu3  ;;  %v4567_v54 = vpop.f32.mrf.mxu1  ;;  %v4399_v47 = vadd.f32 %v4398_v27, %v10606_v3  ;;  %v12151_v3 = vld [vmem:[#allocation214_spill] sm:$0xff] }
 0x71b   :  { %v4904_v49 = vadd.f32 %v4903_v23, %v4735_v0  ;;  %v4568_v10 = vadd.f32 %v4567_v54, %v4399_v47 }
 0x71d   :  { %v5042_v26 = vpack.c.bf16 %v4904_v49, %v12150_v60 }
 0x71f   :  { %5106 = vst [vmem:[%s11338_s3 + $0x70] sm:$0xff] %v5042_v26  ;;  %v12160_v26 = vld [vmem:[#allocation223_spill] sm:$0xff] }
 0x720   :  { %v4736_v61 = vpop.f32.mrf.mxu2  ;;  %v4401_v57 = vpop.f32.mrf.mxu0 }
 0x721   :  { %v4737_v40 = vadd.f32 %v4736_v61, %v4568_v10  ;;  %v4905_v14 = vpop.f32.mrf.mxu3  ;;  %v4570_v18 = vpop.f32.mrf.mxu1  ;;  %v4402_v15 = vadd.f32 %v4401_v57, %v10613_v31  ;;  %v12161_v10 = vld [vmem:[#allocation224_spill] sm:$0xff] }
 0x723   :  { %v4906_v9 = vadd.f32 %v4905_v14, %v4737_v40  ;;  %4440 = vmatmul.bf16.gmra.mxu0 %v9600_v51  ;;  %v4571_v52 = vadd.f32 %v4570_v18, %v4402_v15 }
 0x724   :  { %4609 = vmatmul.bf16.gmra.mxu1 %v12151_v3 }
 0x725   :  { %v5043_v25 = vpack.c.bf16 %v4906_v9, %v9609_v62  ;;  %4778 = vmatmul.bf16.gmra.mxu2 %v12152_v55  ;;  %v12154_v62 = vld [vmem:[#allocation217_spill] sm:$0xff] }
 0x726   :  { %4947 = vmatmul.bf16.gmra.mxu3 %v12153_v2 }
 0x727   :  { %5107 = vst [vmem:[%s11338_s3 + $0x78] sm:$0xff] %v5043_v25 }
 0x728   :  { %v4739_v63 = vpop.f32.mrf.mxu2  ;;  %v4403_v20 = vpop.f32.mrf.mxu0 }
 0x729   :  { %v4740_v37 = vadd.f32 %v4739_v63, %v4571_v52  ;;  %v4908_v34 = vpop.f32.mrf.mxu3  ;;  %v4572_v31 = vpop.f32.mrf.mxu1  ;;  %v4404_v51 = vadd.f32 %v4403_v20, %v10616_v45  ;;  %v12155_v45 = vld [vmem:[#allocation218_spill] sm:$0xff]  ;;  %v12163_v20 = vld [vmem:[#allocation229_spill] sm:$0xff] }
 0x72b   :  { %v4909_v1 = vadd.f32 %v4908_v34, %v4740_v37  ;;  %v4573_v30 = vadd.f32 %v4572_v31, %v4404_v51  ;;  %v12166_v51 = vld [vmem:[#allocation228_spill] sm:$0xff] }
 0x72d   :  { %v5044_v43 = vpack.c.bf16 %v4909_v1, %v12154_v62  ;;  %v12165_v1 = vld [vmem:[#allocation227_spill] sm:$0xff] }
 0x72f   :  { %5108 = vst [vmem:[%s11338_s3 + $0x80] sm:$0xff] %v5044_v43 }
 0x730   :  { %v4741_v13 = vpop.f32.mrf.mxu2  ;;  %v4406_v44 = vpop.f32.mrf.mxu0 }
 0x731   :  { %v4742_v12 = vadd.f32 %v4741_v13, %v4573_v30  ;;  %v4910_v8 = vpop.f32.mrf.mxu3  ;;  %v4575_v19 = vpop.f32.mrf.mxu1  ;;  %v4407_v46 = vadd.f32 %v4406_v44, %v10623_v39 }
 0x733   :  { %v4911_v48 = vadd.f32 %v4910_v8, %v4742_v12  ;;  %4445 = vmatmul.bf16.gmra.mxu0 %v9642_v59  ;;  %v4576_v41 = vadd.f32 %v4575_v19, %v4407_v46  ;;  %v12168_v19 = vld [vmem:[#allocation230_spill] sm:$0xff] }
 0x734   :  { %4614 = vmatmul.bf16.gmra.mxu1 %v12155_v45 }
 0x735   :  { %v5045_v28 = vpack.c.bf16 %v4911_v48, %v9651_v16  ;;  %4783 = vmatmul.bf16.gmra.mxu2 %v12156_v33  ;;  %v12158_v16 = vld [vmem:[#allocation221_spill] sm:$0xff] }
 0x736   :  { %4952 = vmatmul.bf16.gmra.mxu3 %v12157_v32 }
 0x737   :  { %5109 = vst [vmem:[%s11338_s3 + $0x88] sm:$0xff] %v5045_v28 }
 0x738   :  { %v4744_v22 = vpop.f32.mrf.mxu2  ;;  %v4408_v6 = vpop.f32.mrf.mxu0 }
 0x739   :  { %v4745_v29 = vadd.f32 %v4744_v22, %v4576_v41  ;;  %v4913_v53 = vpop.f32.mrf.mxu3  ;;  %v4577_v39 = vpop.f32.mrf.mxu1  ;;  %v4409_v59 = vadd.f32 %v4408_v6, %v10626_v38  ;;  %v12159_v38 = vld [vmem:[#allocation222_spill] sm:$0xff]  ;;  %v12170_v6 = vld [vmem:[#allocation231_spill] sm:$0xff] }
 0x73b   :  { %v4914_v42 = vadd.f32 %v4913_v53, %v4745_v29  ;;  %v4578_v5 = vadd.f32 %v4577_v39, %v4409_v59  ;;  %v12169_v29 = vld [vmem:[#allocation158_spill] sm:$0xff]  ;;  %v12171_v39 = vld [vmem:[#allocation235_spill] sm:$0xff]  ;;  %v12172_v59 = vld [vmem:[#allocation232_spill] sm:$0xff] }
 0x73d   :  { %v5046_v35 = vpack.c.bf16 %v4914_v42, %v12158_v16  ;;  %v12173_v16 = vld [vmem:[#allocation233_spill] sm:$0xff] }
 0x73f   :  { %5110 = vst [vmem:[%s11338_s3 + $0x90] sm:$0xff] %v5046_v35  ;;  %v12174_v35 = vld [vmem:[#allocation234_spill] sm:$0xff] }
 0x740   :  { %v4746_v24 = vpop.f32.mrf.mxu2  ;;  %v4411_v27 = vpop.f32.mrf.mxu0 }
 0x741   :  { %v4747_v0 = vadd.f32 %v4746_v24, %v4578_v5  ;;  %v4915_v23 = vpop.f32.mrf.mxu3  ;;  %v4580_v54 = vpop.f32.mrf.mxu1  ;;  %v4412_v47 = vadd.f32 %v4411_v27, %v10651_v36 }
 0x743   :  { %v4916_v49 = vadd.f32 %v4915_v23, %v4747_v0  ;;  %4450 = vmatmul.bf16.gmra.mxu0 %v9684_v56  ;;  %v4581_v61 = vadd.f32 %v4580_v54, %v4412_v47  ;;  %v12175_v47 = vld [vmem:[#allocation14_spill] sm:$0xff] }
 0x744   :  { %4619 = vmatmul.bf16.gmra.mxu1 %v12159_v38  ;;  %v12176_v38 = vld [vmem:[#allocation236_spill] sm:$0xff] }
 0x745   :  { %v5047_v60 = vpack.c.bf16 %v4916_v49, %v9693_v11  ;;  %4788 = vmatmul.bf16.gmra.mxu2 %v12160_v26  ;;  %v12162_v11 = vld [vmem:[#allocation225_spill] sm:$0xff] }
 0x746   :  { %4957 = vmatmul.bf16.gmra.mxu3 %v12161_v10 }
 0x747   :  { %5111 = vst [vmem:[%s11338_s3 + $0x98] sm:$0xff] %v5047_v60 }
 0x748   :  { %v4749_v40 = vpop.f32.mrf.mxu2  ;;  %v4413_v18 = vpop.f32.mrf.mxu0 }
 0x749   :  { %v4750_v14 = vadd.f32 %v4749_v40, %v4581_v61  ;;  %v4918_v57 = vpop.f32.mrf.mxu3  ;;  %v4582_v36 = vpop.f32.mrf.mxu1  ;;  %v4414_v56 = vadd.f32 %v4413_v18, %v10660_v58  ;;  %v12164_v58 = vld [vmem:[#allocation226_spill] sm:$0xff] }
 0x74b   :  { %v4919_v9 = vadd.f32 %v4918_v57, %v4750_v14  ;;  %v4583_v25 = vadd.f32 %v4582_v36, %v4414_v56 }
 0x74d   :  { %v5048_v15 = vpack.c.bf16 %v4919_v9, %v12162_v11  ;;  %v12177_v9 = vld [vmem:[#allocation15_spill] sm:$0xff]  ;;  %v12178_v11 = vld [vmem:[#allocation237_spill] sm:$0xff] }
 0x74f   :  { %5112 = vst [vmem:[%s11338_s3 + $0xa0] sm:$0xff] %v5048_v15  ;;  %v12179_v15 = vld [vmem:[#allocation241_spill] sm:$0xff] }
 0x750   :  { %v4751_v3 = vpop.f32.mrf.mxu2  ;;  %v4416_v52 = vpop.f32.mrf.mxu0 }
 0x751   :  { %v4752_v55 = vadd.f32 %v4751_v3, %v4583_v25  ;;  %v4920_v2 = vpop.f32.mrf.mxu3  ;;  %v4585_v63 = vpop.f32.mrf.mxu1  ;;  %v4417_v34 = vadd.f32 %v4416_v52, %v10667_v50  ;;  %v12180_v3 = vld [vmem:[#allocation238_spill] sm:$0xff] }
 0x753   :  { %v4921_v37 = vadd.f32 %v4920_v2, %v4752_v55  ;;  %4455 = vmatmul.bf16.gmra.mxu0 %v9750_v17  ;;  %v4586_v62 = vadd.f32 %v4585_v63, %v4417_v34  ;;  %v12167_v17 = vld [vmem:[#allocation157_spill] sm:$0xff]  ;;  %v12181_v55 = vld [vmem:[#allocation239_spill] sm:$0xff]  ;;  %v12182_v2 = vld [vmem:[#allocation240_spill] sm:$0xff] }
 0x754   :  { %4624 = vmatmul.bf16.gmra.mxu1 %v12164_v58 }
 0x755   :  { %v5049_v31 = vpack.c.bf16 %v4921_v37, %v12163_v20  ;;  %4793 = vmatmul.bf16.gmra.mxu2 %v12165_v1  ;;  %v12183_v1 = vld [vmem:[#allocation16_spill] sm:$0xff] }
 0x756   :  { %4962 = vmatmul.bf16.gmra.mxu3 %v12166_v51 }
 0x757   :  { %5113 = vst [vmem:[%s11338_s3 + $0xa8] sm:$0xff] %v5049_v31 }
 0x758   :  { %v4754_v43 = vpop.f32.mrf.mxu2  ;;  %v4418_v12 = vpop.f32.mrf.mxu0 }
 0x759   :  { %v4755_v30 = vadd.f32 %v4754_v43, %v4586_v62  ;;  %v4923_v13 = vpop.f32.mrf.mxu3  ;;  %v4587_v50 = vpop.f32.mrf.mxu1  ;;  %v4419_v44 = vadd.f32 %v4418_v12, %v12167_v17  ;;  %v12184_v62 = vld [vmem:[#allocation242_spill] sm:$0xff] }
 0x75b   :  { %v4924_v8 = vadd.f32 %v4923_v13, %v4755_v30  ;;  %v4588_v46 = vadd.f32 %v4587_v50, %v4419_v44 }
 0x75d   :  { %v5050_v48 = vpack.c.bf16 %v4924_v8, %v12168_v19  ;;  %v12185_v19 = vld [vmem:[#allocation17_spill] sm:$0xff] }
 0x75f   :  { %5114 = vst [vmem:[%s11338_s3 + $0xb0] sm:$0xff] %v5050_v48 }
 0x760   :  { %v4756_v28 = vpop.f32.mrf.mxu2  ;;  %v4421_v32 = vpop.f32.mrf.mxu0 }
 0x761   :  { %v4757_v45 = vadd.f32 %v4756_v28, %v4588_v46  ;;  %v4925_v33 = vpop.f32.mrf.mxu3  ;;  %v4590_v41 = vpop.f32.mrf.mxu1  ;;  %v4422_v53 = vadd.f32 %v4421_v32, %v12169_v29  ;;  %v12186_v46 = vld [vmem:[#allocation243_spill] sm:$0xff]  ;;  %v12189_v32 = vld [vmem:[#allocation245_spill] sm:$0xff] }
 0x762   :  { %v12187_v28 = vld [vmem:[#allocation247_spill] sm:$0xff] }
 0x763   :  { %v4926_v22 = vadd.f32 %v4925_v33, %v4757_v45  ;;  %4460 = vmatmul.bf16.gmra.mxu0 %v12170_v6  ;;  %v4591_v5 = vadd.f32 %v4590_v41, %v4422_v53  ;;  %v12188_v33 = vld [vmem:[#allocation244_spill] sm:$0xff]  ;;  %v12190_v41 = vld [vmem:[#allocation246_spill] sm:$0xff] }
 0x764   :  { %4629 = vmatmul.bf16.gmra.mxu1 %v12172_v59 }
 0x765   :  { %v5051_v42 = vpack.c.bf16 %v4926_v22, %v12171_v39  ;;  %4798 = vmatmul.bf16.gmra.mxu2 %v12173_v16  ;;  %v12191_v16 = vld [vmem:[#allocation163_spill] sm:$0xff] }
 0x766   :  { %4967 = vmatmul.bf16.gmra.mxu3 %v12174_v35 }
 0x767   :  { %5115 = vst [vmem:[%s11338_s3 + $0xb8] sm:$0xff] %v5051_v42 }
 0x768   :  { %v4759_v24 = vpop.f32.mrf.mxu2  ;;  %v4423_v27 = vpop.f32.mrf.mxu0 }
 0x769   :  { %v4760_v0 = vadd.f32 %v4759_v24, %v4591_v5  ;;  %v4928_v23 = vpop.f32.mrf.mxu3  ;;  %v4592_v54 = vpop.f32.mrf.mxu1  ;;  %v4424_v60 = vadd.f32 %v4423_v27, %v12175_v47  ;;  %v12192_v5 = vld [vmem:[#allocation248_spill] sm:$0xff] }
 0x76b   :  { %v4929_v49 = vadd.f32 %v4928_v23, %v4760_v0  ;;  %v4593_v10 = vadd.f32 %v4592_v54, %v4424_v60 }
 0x76d   :  { %v5052_v26 = vpack.c.bf16 %v4929_v49, %v12176_v38  ;;  %v12193_v38 = vld [vmem:[#allocation164_spill] sm:$0xff] }
 0x76f   :  { %5116 = vst [vmem:[%s11338_s3 + $0xc0] sm:$0xff] %v5052_v26 }
 0x770   :  { %v4761_v61 = vpop.f32.mrf.mxu2  ;;  %v4426_v57 = vpop.f32.mrf.mxu0 }
 0x771   :  { %v4762_v40 = vadd.f32 %v4761_v61, %v4593_v10  ;;  %v4930_v14 = vpop.f32.mrf.mxu3  ;;  %v4595_v18 = vpop.f32.mrf.mxu1  ;;  %v4427_v56 = vadd.f32 %v4426_v57, %v12177_v9  ;;  %v12194_v10 = vld [vmem:[#allocation249_spill] sm:$0xff]  ;;  %v12197_v57 = vld [vmem:[#allocation251_spill] sm:$0xff] }
 0x772   :  { %v12195_v61 = vld [vmem:[#allocation253_spill] sm:$0xff] }
 0x773   :  { %v4931_v36 = vadd.f32 %v4930_v14, %v4762_v40  ;;  %4465 = vmatmul.bf16.gmra.mxu0 %v12178_v11  ;;  %v4596_v52 = vadd.f32 %v4595_v18, %v4427_v56  ;;  %v12196_v14 = vld [vmem:[#allocation250_spill] sm:$0xff]  ;;  %v12198_v18 = vld [vmem:[#allocation252_spill] sm:$0xff] }
 0x774   :  { %4634 = vmatmul.bf16.gmra.mxu1 %v12180_v3 }
 0x775   :  { %v5053_v25 = vpack.c.bf16 %v4931_v36, %v12179_v15  ;;  %4803 = vmatmul.bf16.gmra.mxu2 %v12181_v55  ;;  %v12199_v55 = vld [vmem:[#allocation18_spill] sm:$0xff] }
 0x776   :  { %4972 = vmatmul.bf16.gmra.mxu3 %v12182_v2 }
 0x777   :  { %5117 = vst [vmem:[%s11338_s3 + $0xc8] sm:$0xff] %v5053_v25 }
 0x778   :  { %v4764_v63 = vpop.f32.mrf.mxu2  ;;  %v4428_v20 = vpop.f32.mrf.mxu0 }
 0x779   :  { %v4765_v37 = vadd.f32 %v4764_v63, %v4596_v52  ;;  %v4933_v34 = vpop.f32.mrf.mxu3  ;;  %v4597_v31 = vpop.f32.mrf.mxu1  ;;  %v4429_v51 = vadd.f32 %v4428_v20, %v12183_v1  ;;  %v12200_v52 = vld [vmem:[#allocation254_spill] sm:$0xff] }
 0x77b   :  { %v4934_v58 = vadd.f32 %v4933_v34, %v4765_v37  ;;  %v4598_v30 = vadd.f32 %v4597_v31, %v4429_v51 }
 0x77d   :  { %v5054_v43 = vpack.c.bf16 %v4934_v58, %v12184_v62  ;;  %v12201_v62 = vld [vmem:[#allocation19_spill] sm:$0xff] }
 0x77f   :  { %5118 = vst [vmem:[%s11338_s3 + $0xd0] sm:$0xff] %v5054_v43 }
 0x780   :  { %v4766_v13 = vpop.f32.mrf.mxu2  ;;  %v4431_v8 = vpop.f32.mrf.mxu0 }
 0x781   :  { %v4767_v12 = vadd.f32 %v4766_v13, %v4598_v30  ;;  %v4935_v50 = vpop.f32.mrf.mxu3  ;;  %v4600_v17 = vpop.f32.mrf.mxu1  ;;  %v4432_v48 = vadd.f32 %v4431_v8, %v12185_v19  ;;  %v12202_v30 = vld [vmem:[#allocation255_spill] sm:$0xff]  ;;  %v12205_v8 = vld [vmem:[#allocation257_spill] sm:$0xff] }
 0x782   :  { %v12203_v13 = vld [vmem:[#allocation259_spill] sm:$0xff] }
 0x783   :  { %v4936_v44 = vadd.f32 %v4935_v50, %v4767_v12  ;;  %4470 = vmatmul.bf16.gmra.mxu0 %v12186_v46  ;;  %v4601_v22 = vadd.f32 %v4600_v17, %v4432_v48  ;;  %v12204_v50 = vld [vmem:[#allocation256_spill] sm:$0xff]  ;;  %v12206_v17 = vld [vmem:[#allocation258_spill] sm:$0xff] }
 0x784   :  { %4639 = vmatmul.bf16.gmra.mxu1 %v12188_v33 }
 0x785   :  { %v5055_v45 = vpack.c.bf16 %v4936_v44, %v12187_v28  ;;  %4808 = vmatmul.bf16.gmra.mxu2 %v12189_v32  ;;  %v12207_v32 = vld [vmem:[#allocation20_spill] sm:$0xff] }
 0x786   :  { %4977 = vmatmul.bf16.gmra.mxu3 %v12190_v41 }
 0x787   :  { %5119 = vst [vmem:[%s11338_s3 + $0xd8] sm:$0xff] %v5055_v45 }
 0x788   :  { %v4769_v29 = vpop.f32.mrf.mxu2  ;;  %v4433_v39 = vpop.f32.mrf.mxu0 }
 0x789   :  { %v4770_v53 = vadd.f32 %v4769_v29, %v4601_v22  ;;  %v4938_v6 = vpop.f32.mrf.mxu3  ;;  %v4602_v42 = vpop.f32.mrf.mxu1  ;;  %v4434_v35 = vadd.f32 %v4433_v39, %v12191_v16  ;;  %v12208_v22 = vld [vmem:[#allocation260_spill] sm:$0xff] }
 0x78b   :  { %v4939_v59 = vadd.f32 %v4938_v6, %v4770_v53  ;;  %v4603_v0 = vadd.f32 %v4602_v42, %v4434_v35 }
 0x78d   :  { %v5056_v24 = vpack.c.bf16 %v4939_v59, %v12192_v5  ;;  %v12209_v5 = vld [vmem:[#allocation21_spill] sm:$0xff] }
 0x78f   :  { %5120 = vst [vmem:[%s11338_s3 + $0xe0] sm:$0xff] %v5056_v24 }
 0x790   :  { %v4771_v23 = vpop.f32.mrf.mxu2  ;;  %v4436_v49 = vpop.f32.mrf.mxu0 }
 0x791   :  { %v4772_v27 = vadd.f32 %v4771_v23, %v4603_v0  ;;  %v4940_v54 = vpop.f32.mrf.mxu3  ;;  %v4605_v47 = vpop.f32.mrf.mxu1  ;;  %v4437_v26 = vadd.f32 %v4436_v49, %v12193_v38  ;;  %v12210_v0 = vld [vmem:[#allocation261_spill] sm:$0xff]  ;;  %v12213_v49 = vld [vmem:[#allocation263_spill] sm:$0xff] }
 0x792   :  { %v12211_v23 = vld [vmem:[#allocation265_spill] sm:$0xff] }
 0x793   :  { %v4941_v60 = vadd.f32 %v4940_v54, %v4772_v27  ;;  %4475 = vmatmul.bf16.gmra.mxu0 %v12194_v10  ;;  %v4606_v36 = vadd.f32 %v4605_v47, %v4437_v26  ;;  %v12212_v54 = vld [vmem:[#allocation262_spill] sm:$0xff]  ;;  %v12214_v47 = vld [vmem:[#allocation264_spill] sm:$0xff] }
 0x794   :  { %4644 = vmatmul.bf16.gmra.mxu1 %v12196_v14 }
 0x795   :  { %v5057_v40 = vpack.c.bf16 %v4941_v60, %v12195_v61  ;;  %4813 = vmatmul.bf16.gmra.mxu2 %v12197_v57  ;;  %v12215_v57 = vld [vmem:[#allocation169_spill] sm:$0xff] }
 0x796   :  { %4982 = vmatmul.bf16.gmra.mxu3 %v12198_v18 }
 0x797   :  { %5121 = vst [vmem:[%s11338_s3 + $0xe8] sm:$0xff] %v5057_v40 }
 0x798   :  { %v4774_v9 = vpop.f32.mrf.mxu2  ;;  %v4438_v15 = vpop.f32.mrf.mxu0 }
 0x799   :  { %v4775_v56 = vadd.f32 %v4774_v9, %v4606_v36  ;;  %v4943_v11 = vpop.f32.mrf.mxu3  ;;  %v4607_v25 = vpop.f32.mrf.mxu1  ;;  %v4439_v2 = vadd.f32 %v4438_v15, %v12199_v55  ;;  %v12216_v36 = vld [vmem:[#allocation266_spill] sm:$0xff] }
 0x79b   :  { %v4944_v3 = vadd.f32 %v4943_v11, %v4775_v56  ;;  %v4608_v37 = vadd.f32 %v4607_v25, %v4439_v2 }
 0x79d   :  { %v5058_v63 = vpack.c.bf16 %v4944_v3, %v12200_v52  ;;  %v12217_v52 = vld [vmem:[#allocation170_spill] sm:$0xff] }
 0x79f   :  { %5122 = vst [vmem:[%s11338_s3 + $0xf0] sm:$0xff] %v5058_v63 }
 0x7a0   :  { %v4776_v34 = vpop.f32.mrf.mxu2  ;;  %v4441_v58 = vpop.f32.mrf.mxu0 }
 0x7a1   :  { %v4777_v20 = vadd.f32 %v4776_v34, %v4608_v37  ;;  %v4945_v31 = vpop.f32.mrf.mxu3  ;;  %v4610_v1 = vpop.f32.mrf.mxu1  ;;  %v4442_v43 = vadd.f32 %v4441_v58, %v12201_v62  ;;  %v12218_v37 = vld [vmem:[#allocation267_spill] sm:$0xff]  ;;  %v12221_v58 = vld [vmem:[#allocation269_spill] sm:$0xff] }
 0x7a2   :  { %v12219_v34 = vld [vmem:[#allocation271_spill] sm:$0xff] }
 0x7a3   :  { %v4946_v51 = vadd.f32 %v4945_v31, %v4777_v20  ;;  %4480 = vmatmul.bf16.gmra.mxu0 %v12202_v30  ;;  %v4611_v44 = vadd.f32 %v4610_v1, %v4442_v43  ;;  %v12220_v31 = vld [vmem:[#allocation268_spill] sm:$0xff]  ;;  %v12222_v1 = vld [vmem:[#allocation270_spill] sm:$0xff] }
 0x7a4   :  { %4649 = vmatmul.bf16.gmra.mxu1 %v12204_v50 }
 0x7a5   :  { %v5059_v12 = vpack.c.bf16 %v4946_v51, %v12203_v13  ;;  %4818 = vmatmul.bf16.gmra.mxu2 %v12205_v8  ;;  %v12223_v8 = vld [vmem:[#allocation22_spill] sm:$0xff] }
 0x7a6   :  { %4987 = vmatmul.bf16.gmra.mxu3 %v12206_v17 }
 0x7a7   :  { %5123 = vst [vmem:[%s11338_s3 + $0xf8] sm:$0xff] %v5059_v12 }
 0x7a8   :  { %v4779_v19 = vpop.f32.mrf.mxu2  ;;  %v4443_v28 = vpop.f32.mrf.mxu0 }
 0x7a9   :  { %v4780_v48 = vadd.f32 %v4779_v19, %v4611_v44  ;;  %v4948_v46 = vpop.f32.mrf.mxu3  ;;  %v4612_v45 = vpop.f32.mrf.mxu1  ;;  %v4444_v41 = vadd.f32 %v4443_v28, %v12207_v32  ;;  %v12224_v44 = vld [vmem:[#allocation272_spill] sm:$0xff] }
 0x7ab   :  { %v4949_v33 = vadd.f32 %v4948_v46, %v4780_v48  ;;  %v4613_v53 = vadd.f32 %v4612_v45, %v4444_v41 }
 0x7ad   :  { %v5060_v29 = vpack.c.bf16 %v4949_v33, %v12208_v22  ;;  %v12225_v22 = vld [vmem:[#allocation23_spill] sm:$0xff] }
 0x7af   :  { %5124 = vst [vmem:[%s11338_s3 + $0x100] sm:$0xff] %v5060_v29 }
 0x7b0   :  { %v4781_v6 = vpop.f32.mrf.mxu2  ;;  %v4446_v59 = vpop.f32.mrf.mxu0 }
 0x7b1   :  { %v4782_v39 = vadd.f32 %v4781_v6, %v4613_v53  ;;  %v4950_v42 = vpop.f32.mrf.mxu3  ;;  %v4615_v16 = vpop.f32.mrf.mxu1  ;;  %v4447_v24 = vadd.f32 %v4446_v59, %v12209_v5  ;;  %v12226_v53 = vld [vmem:[#allocation273_spill] sm:$0xff]  ;;  %v12229_v59 = vld [vmem:[#allocation275_spill] sm:$0xff] }
 0x7b2   :  { %v12227_v6 = vld [vmem:[#allocation277_spill] sm:$0xff] }
 0x7b3   :  { %v4951_v35 = vadd.f32 %v4950_v42, %v4782_v39  ;;  %4485 = vmatmul.bf16.gmra.mxu0 %v12210_v0  ;;  %v4616_v60 = vadd.f32 %v4615_v16, %v4447_v24  ;;  %v12228_v42 = vld [vmem:[#allocation274_spill] sm:$0xff]  ;;  %v12230_v16 = vld [vmem:[#allocation276_spill] sm:$0xff] }
 0x7b4   :  { %4654 = vmatmul.bf16.gmra.mxu1 %v12212_v54 }
 0x7b5   :  { %v5061_v27 = vpack.c.bf16 %v4951_v35, %v12211_v23  ;;  %4823 = vmatmul.bf16.gmra.mxu2 %v12213_v49  ;;  %v12231_v49 = vld [vmem:[#allocation24_spill] sm:$0xff] }
 0x7b6   :  { %4992 = vmatmul.bf16.gmra.mxu3 %v12214_v47 }
 0x7b7   :  { %5125 = vst [vmem:[%s11338_s3 + $0x108] sm:$0xff] %v5061_v27 }
 0x7b8   :  { %v4784_v38 = vpop.f32.mrf.mxu2  ;;  %v4448_v61 = vpop.f32.mrf.mxu0 }
 0x7b9   :  { %v4785_v26 = vadd.f32 %v4784_v38, %v4616_v60  ;;  %v4953_v10 = vpop.f32.mrf.mxu3  ;;  %v4617_v40 = vpop.f32.mrf.mxu1  ;;  %v4449_v18 = vadd.f32 %v4448_v61, %v12215_v57  ;;  %v12232_v60 = vld [vmem:[#allocation278_spill] sm:$0xff] }
 0x7bb   :  { %v4954_v14 = vadd.f32 %v4953_v10, %v4785_v26  ;;  %v4618_v56 = vadd.f32 %v4617_v40, %v4449_v18 }
 0x7bd   :  { %v5062_v9 = vpack.c.bf16 %v4954_v14, %v12216_v36  ;;  %v12233_v36 = vld [vmem:[#allocation25_spill] sm:$0xff] }
 0x7bf   :  { %5126 = vst [vmem:[%s11338_s3 + $0x110] sm:$0xff] %v5062_v9 }
 0x7c0   :  { %v4786_v11 = vpop.f32.mrf.mxu2  ;;  %v4451_v3 = vpop.f32.mrf.mxu0 }
 0x7c1   :  { %v4787_v15 = vadd.f32 %v4786_v11, %v4618_v56  ;;  %v4955_v25 = vpop.f32.mrf.mxu3  ;;  %v4620_v55 = vpop.f32.mrf.mxu1  ;;  %v4452_v63 = vadd.f32 %v4451_v3, %v12217_v52  ;;  %v12234_v56 = vld [vmem:[#allocation279_spill] sm:$0xff]  ;;  %v12237_v3 = vld [vmem:[#allocation281_spill] sm:$0xff] }
 0x7c2   :  { %v12235_v11 = vld [vmem:[#allocation283_spill] sm:$0xff] }
 0x7c3   :  { %v4956_v2 = vadd.f32 %v4955_v25, %v4787_v15  ;;  %4490 = vmatmul.bf16.gmra.mxu0 %v12218_v37  ;;  %v4621_v51 = vadd.f32 %v4620_v55, %v4452_v63  ;;  %v12236_v25 = vld [vmem:[#allocation280_spill] sm:$0xff]  ;;  %v12238_v55 = vld [vmem:[#allocation282_spill] sm:$0xff] }
 0x7c4   :  { %4659 = vmatmul.bf16.gmra.mxu1 %v12220_v31 }
 0x7c5   :  { %v5063_v20 = vpack.c.bf16 %v4956_v2, %v12219_v34  ;;  %4828 = vmatmul.bf16.gmra.mxu2 %v12221_v58  ;;  %v12239_v58 = vld [vmem:[#allocation175_spill] sm:$0xff] }
 0x7c6   :  { %4997 = vmatmul.bf16.gmra.mxu3 %v12222_v1 }
 0x7c7   :  { %5127 = vst [vmem:[%s11338_s3 + $0x118] sm:$0xff] %v5063_v20 }
 0x7c8   :  { %v4789_v62 = vpop.f32.mrf.mxu2  ;;  %v4453_v13 = vpop.f32.mrf.mxu0 }
 0x7c9   :  { %v4790_v43 = vadd.f32 %v4789_v62, %v4621_v51  ;;  %v4958_v30 = vpop.f32.mrf.mxu3  ;;  %v4622_v12 = vpop.f32.mrf.mxu1  ;;  %v4454_v17 = vadd.f32 %v4453_v13, %v12223_v8  ;;  %v12240_v51 = vld [vmem:[#allocation284_spill] sm:$0xff] }
 0x7cb   :  { %v4959_v50 = vadd.f32 %v4958_v30, %v4790_v43  ;;  %v4623_v48 = vadd.f32 %v4622_v12, %v4454_v17 }
 0x7cd   :  { %v5064_v19 = vpack.c.bf16 %v4959_v50, %v12224_v44  ;;  %v12241_v44 = vld [vmem:[#allocation176_spill] sm:$0xff] }
 0x7cf   :  { %5128 = vst [vmem:[%s11338_s3 + $0x120] sm:$0xff] %v5064_v19 }
 0x7d0   :  { %v4791_v46 = vpop.f32.mrf.mxu2  ;;  %v4456_v33 = vpop.f32.mrf.mxu0 }
 0x7d1   :  { %v4792_v28 = vadd.f32 %v4791_v46, %v4623_v48  ;;  %v4960_v45 = vpop.f32.mrf.mxu3  ;;  %v4625_v32 = vpop.f32.mrf.mxu1  ;;  %v4457_v29 = vadd.f32 %v4456_v33, %v12225_v22  ;;  %v12242_v48 = vld [vmem:[#allocation285_spill] sm:$0xff]  ;;  %v12243_v46 = vld [vmem:[#allocation288_spill] sm:$0xff]  ;;  %v12245_v33 = vld [vmem:[#allocation287_spill] sm:$0xff] }
 0x7d3   :  { %v4961_v41 = vadd.f32 %v4960_v45, %v4792_v28  ;;  %4495 = vmatmul.bf16.gmra.mxu0 %v12226_v53  ;;  %v4626_v35 = vadd.f32 %v4625_v32, %v4457_v29  ;;  %v12244_v45 = vld [vmem:[#allocation286_spill] sm:$0xff] }
 0x7d4   :  { %4664 = vmatmul.bf16.gmra.mxu1 %v12228_v42  ;;  %v12246_v32 = vld [vmem:[#allocation122_spill] sm:$0xff] }
 0x7d5   :  { %v5065_v39 = vpack.c.bf16 %v4961_v41, %v12227_v6  ;;  %4833 = vmatmul.bf16.gmra.mxu2 %v12229_v59  ;;  %v12247_v59 = vld [vmem:[#allocation26_spill] sm:$0xff] }
 0x7d6   :  { %5002 = vmatmul.bf16.gmra.mxu3 %v12230_v16 }
 0x7d7   :  { %5129 = vst [vmem:[%s11338_s3 + $0x128] sm:$0xff] %v5065_v39 }
 0x7d8   :  { %v4794_v5 = vpop.f32.mrf.mxu2  ;;  %v4458_v23 = vpop.f32.mrf.mxu0 }
 0x7d9   :  { %v4795_v24 = vadd.f32 %v4794_v5, %v4626_v35  ;;  %v4963_v0 = vpop.f32.mrf.mxu3  ;;  %v4627_v27 = vpop.f32.mrf.mxu1  ;;  %v4459_v47 = vadd.f32 %v4458_v23, %v12231_v49  ;;  %v12248_v35 = vld [vmem:[#allocation127_spill] sm:$0xff] }
 0x7db   :  { %v4964_v54 = vadd.f32 %v4963_v0, %v4795_v24  ;;  %v4628_v26 = vadd.f32 %v4627_v27, %v4459_v47 }
 0x7dd   :  { %v5066_v38 = vpack.c.bf16 %v4964_v54, %v12232_v60  ;;  %v12249_v60 = vld [vmem:[#allocation27_spill] sm:$0xff] }
 0x7df   :  { %5130 = vst [vmem:[%s11338_s3 + $0x130] sm:$0xff] %v5066_v38 }
 0x7e0   :  { %v4796_v10 = vpop.f32.mrf.mxu2  ;;  %v4461_v14 = vpop.f32.mrf.mxu0 }
 0x7e1   :  { %v4797_v61 = vadd.f32 %v4796_v10, %v4628_v26  ;;  %v4965_v40 = vpop.f32.mrf.mxu3  ;;  %v4630_v57 = vpop.f32.mrf.mxu1  ;;  %v4462_v9 = vadd.f32 %v4461_v14, %v12233_v36  ;;  %v12250_v26 = vld [vmem:[#allocation289_spill] sm:$0xff]  ;;  %v12251_v10 = vld [vmem:[#allocation292_spill] sm:$0xff]  ;;  %v12253_v14 = vld [vmem:[#allocation291_spill] sm:$0xff] }
 0x7e3   :  { %v4966_v18 = vadd.f32 %v4965_v40, %v4797_v61  ;;  %4500 = vmatmul.bf16.gmra.mxu0 %v12234_v56  ;;  %v4631_v2 = vadd.f32 %v4630_v57, %v4462_v9  ;;  %v12252_v40 = vld [vmem:[#allocation290_spill] sm:$0xff]  ;;  %v12254_v57 = vld [vmem:[#allocation128_spill] sm:$0xff] }
 0x7e4   :  { %4669 = vmatmul.bf16.gmra.mxu1 %v12236_v25 }
 0x7e5   :  { %v5067_v15 = vpack.c.bf16 %v4966_v18, %v12235_v11  ;;  %4838 = vmatmul.bf16.gmra.mxu2 %v12237_v3  ;;  %v12255_v3 = vld [vmem:[#allocation28_spill] sm:$0xff] }
 0x7e6   :  { %5007 = vmatmul.bf16.gmra.mxu3 %v12238_v55 }
 0x7e7   :  { %5131 = vst [vmem:[%s11338_s3 + $0x138] sm:$0xff] %v5067_v15 }
 0x7e8   :  { %v4799_v52 = vpop.f32.mrf.mxu2  ;;  %v4463_v34 = vpop.f32.mrf.mxu0 }
 0x7e9   :  { %v4800_v63 = vadd.f32 %v4799_v52, %v4631_v2  ;;  %v4968_v37 = vpop.f32.mrf.mxu3  ;;  %v4632_v20 = vpop.f32.mrf.mxu1  ;;  %v4464_v1 = vadd.f32 %v4463_v34, %v12239_v58  ;;  %v12256_v2 = vld [vmem:[#allocation133_spill] sm:$0xff] }
 0x7eb   :  { %v4969_v31 = vadd.f32 %v4968_v37, %v4800_v63  ;;  %v4633_v43 = vadd.f32 %v4632_v20, %v4464_v1 }
 0x7ed   :  { %v5068_v62 = vpack.c.bf16 %v4969_v31, %v12240_v51  ;;  %v12257_v51 = vld [vmem:[#allocation29_spill] sm:$0xff] }
 0x7ef   :  { %5132 = vst [vmem:[%s11338_s3 + $0x140] sm:$0xff] %v5068_v62 }
 0x7f0   :  { %v4801_v30 = vpop.f32.mrf.mxu2  ;;  %v4466_v50 = vpop.f32.mrf.mxu0 }
 0x7f1   :  { %v4802_v13 = vadd.f32 %v4801_v30, %v4633_v43  ;;  %v4970_v12 = vpop.f32.mrf.mxu3  ;;  %v4635_v8 = vpop.f32.mrf.mxu1  ;;  %v4467_v19 = vadd.f32 %v4466_v50, %v12241_v44  ;;  %v12258_v43 = vld [vmem:[#allocation293_spill] sm:$0xff]  ;;  %v12259_v30 = vld [vmem:[#allocation296_spill] sm:$0xff]  ;;  %v12261_v50 = vld [vmem:[#allocation295_spill] sm:$0xff] }
 0x7f3   :  { %v4971_v17 = vadd.f32 %v4970_v12, %v4802_v13  ;;  %4505 = vmatmul.bf16.gmra.mxu0 %v12242_v48  ;;  %v4636_v41 = vadd.f32 %v4635_v8, %v4467_v19  ;;  %v12260_v12 = vld [vmem:[#allocation294_spill] sm:$0xff] }
 0x7f4   :  { %4674 = vmatmul.bf16.gmra.mxu1 %v12244_v45  ;;  %v12262_v8 = vld [vmem:[#allocation134_spill] sm:$0xff] }
 0x7f5   :  { %v5069_v28 = vpack.c.bf16 %v4971_v17, %v12243_v46  ;;  %4843 = vmatmul.bf16.gmra.mxu2 %v12245_v33  ;;  %v12263_v33 = vld [vmem:[#allocation181_spill] sm:$0xff] }
 0x7f6   :  { %5012 = vmatmul.bf16.gmra.mxu3 %v12246_v32 }
 0x7f7   :  { %5133 = vst [vmem:[%s11338_s3 + $0x148] sm:$0xff] %v5069_v28 }
 0x7f8   :  { %v4804_v22 = vpop.f32.mrf.mxu2  ;;  %v4468_v6 = vpop.f32.mrf.mxu0 }
 0x7f9   :  { %v4805_v29 = vadd.f32 %v4804_v22, %v4636_v41  ;;  %v4973_v53 = vpop.f32.mrf.mxu3  ;;  %v4637_v39 = vpop.f32.mrf.mxu1  ;;  %v4469_v16 = vadd.f32 %v4468_v6, %v12247_v59  ;;  %v12264_v41 = vld [vmem:[#allocation139_spill] sm:$0xff] }
 0x7fb   :  { %v4974_v42 = vadd.f32 %v4973_v53, %v4805_v29  ;;  %v4638_v24 = vadd.f32 %v4637_v39, %v4469_v16 }
 0x7fd   :  { %v5070_v5 = vpack.c.bf16 %v4974_v42, %v12248_v35  ;;  %v12265_v35 = vld [vmem:[#allocation30_spill] sm:$0xff] }
 0x7ff   :  { %5134 = vst [vmem:[%s11338_s3 + $0x150] sm:$0xff] %v5070_v5 }
 0x800   :  { %v4806_v0 = vpop.f32.mrf.mxu2  ;;  %v4471_v54 = vpop.f32.mrf.mxu0 }
 0x801   :  { %v4807_v23 = vadd.f32 %v4806_v0, %v4638_v24  ;;  %v4975_v27 = vpop.f32.mrf.mxu3  ;;  %v4640_v49 = vpop.f32.mrf.mxu1  ;;  %v4472_v38 = vadd.f32 %v4471_v54, %v12249_v60  ;;  %v12266_v24 = vld [vmem:[#allocation140_spill] sm:$0xff] }
 0x803   :  { %v4976_v47 = vadd.f32 %v4975_v27, %v4807_v23  ;;  %4510 = vmatmul.bf16.gmra.mxu0 %v12250_v26  ;;  %v4641_v18 = vadd.f32 %v4640_v49, %v4472_v38  ;;  %v12267_v26 = vld [vmem:[#allocation31_spill] sm:$0xff] }
 0x804   :  { %4679 = vmatmul.bf16.gmra.mxu1 %v12252_v40 }
 0x805   :  { %v5071_v61 = vpack.c.bf16 %v4976_v47, %v12251_v10  ;;  %4848 = vmatmul.bf16.gmra.mxu2 %v12253_v14 }
 0x806   :  { %5017 = vmatmul.bf16.gmra.mxu3 %v12254_v57 }
 0x807   :  { %5135 = vst [vmem:[%s11338_s3 + $0x158] sm:$0xff] %v5071_v61  ;;  %v12268_v61 = vld [vmem:[#allocation2_spill] sm:$0xff] }
 0x808   :  { %v4809_v36 = vpop.f32.mrf.mxu2  ;;  %v4473_v11 = vpop.f32.mrf.mxu0 }
 0x809   :  { %v4810_v9 = vadd.f32 %v4809_v36, %v4641_v18  ;;  %v4978_v56 = vpop.f32.mrf.mxu3  ;;  %v4642_v15 = vpop.f32.mrf.mxu1  ;;  %v4474_v55 = vadd.f32 %v4473_v11, %v12255_v3  ;;  %v12270_v3 = vld [vmem:[#allocation3_spill] sm:$0xff] }
 0x80b   :  { %v4979_v25 = vadd.f32 %v4978_v56, %v4810_v9  ;;  %v4643_v63 = vadd.f32 %v4642_v15, %v4474_v55  ;;  %v12269_v15 = vld [vmem:[#allocation32_spill] sm:$0xff] }
 0x80d   :  { %v5072_v52 = vpack.c.bf16 %v4979_v25, %v12256_v2 }
 0x80f   :  { %5136 = vst [vmem:[%s11338_s3 + $0x160] sm:$0xff] %v5072_v52 }
 0x810   :  { %v4811_v37 = vpop.f32.mrf.mxu2  ;;  %v4476_v31 = vpop.f32.mrf.mxu0 }
 0x811   :  { %v4812_v34 = vadd.f32 %v4811_v37, %v4643_v63  ;;  %v4980_v20 = vpop.f32.mrf.mxu3  ;;  %v4645_v58 = vpop.f32.mrf.mxu1  ;;  %v4477_v62 = vadd.f32 %v4476_v31, %v12257_v51  ;;  %v12272_v51 = vld [vmem:[#allocation4_spill] sm:$0xff] }
 0x813   :  { %v4981_v1 = vadd.f32 %v4980_v20, %v4812_v34  ;;  %4515 = vmatmul.bf16.gmra.mxu0 %v12258_v43  ;;  %v4646_v17 = vadd.f32 %v4645_v58, %v4477_v62  ;;  %v12271_v58 = vld [vmem:[#allocation33_spill] sm:$0xff] }
 0x814   :  { %4684 = vmatmul.bf16.gmra.mxu1 %v12260_v12 }
 0x815   :  { %v5073_v13 = vpack.c.bf16 %v4981_v1, %v12259_v30  ;;  %4853 = vmatmul.bf16.gmra.mxu2 %v12261_v50 }
 0x816   :  { %5022 = vmatmul.bf16.gmra.mxu3 %v12262_v8 }
 0x817   :  { %5137 = vst [vmem:[%s11338_s3 + $0x168] sm:$0xff] %v5073_v13 }
 0x818   :  { %v4814_v44 = vpop.f32.mrf.mxu2  ;;  %v4478_v46 = vpop.f32.mrf.mxu0 }
 0x819   :  { %v4815_v19 = vadd.f32 %v4814_v44, %v4646_v17  ;;  %v4983_v48 = vpop.f32.mrf.mxu3  ;;  %v4647_v28 = vpop.f32.mrf.mxu1  ;;  %v4479_v32 = vadd.f32 %v4478_v46, %v12263_v33  ;;  %v12273_v44 = vld [vmem:[#allocation34_spill] sm:$0xff] }
 0x81b   :  { %v4984_v45 = vadd.f32 %v4983_v48, %v4815_v19  ;;  %v4648_v29 = vadd.f32 %v4647_v28, %v4479_v32  ;;  %v12274_v48 = vld [vmem:[#allocation5_spill] sm:$0xff] }
 0x81d   :  { %v5074_v22 = vpack.c.bf16 %v4984_v45, %v12264_v41 }
 0x81f   :  { %5138 = vst [vmem:[%s11338_s3 + $0x170] sm:$0xff] %v5074_v22 }
 0x820   :  { %v4816_v53 = vpop.f32.mrf.mxu2  ;;  %v4481_v42 = vpop.f32.mrf.mxu0 }
 0x821   :  { %v4817_v6 = vadd.f32 %v4816_v53, %v4648_v29  ;;  %v4985_v39 = vpop.f32.mrf.mxu3  ;;  %v4650_v59 = vpop.f32.mrf.mxu1  ;;  %v4482_v5 = vadd.f32 %v4481_v42, %v12265_v35  ;;  %v12275_v53 = vld [vmem:[#allocation35_spill] sm:$0xff] }
 0x823   :  { %v4986_v16 = vadd.f32 %v4985_v39, %v4817_v6  ;;  %v4651_v23 = vadd.f32 %v4650_v59, %v4482_v5  ;;  %v12276_v39 = vld [vmem:[#allocation145_spill] sm:$0xff] }
 0x825   :  { %v5075_v0 = vpack.c.bf16 %v4986_v16, %v12266_v24 }
 0x827   :  { %5139 = vst [vmem:[%s11338_s3 + $0x178] sm:$0xff] %v5075_v0 }
 0x828   :  { %v4819_v27 = vpop.f32.mrf.mxu2  ;;  %v4483_v47 = vpop.f32.mrf.mxu0 }
 0x829   :  { %v4820_v54 = vadd.f32 %v4819_v27, %v4651_v23  ;;  %v4988_v49 = vpop.f32.mrf.mxu3  ;;  %v4652_v60 = vpop.f32.mrf.mxu1  ;;  %v4484_v10 = vadd.f32 %v4483_v47, %v12267_v26  ;;  %v12277_v27 = vld [vmem:[#allocation36_spill] sm:$0xff] }
 0x82b   :  { %v4989_v38 = vadd.f32 %v4988_v49, %v4820_v54  ;;  %v4653_v14 = vadd.f32 %v4652_v60, %v4484_v10  ;;  %v12278_v49 = vld [vmem:[#allocation146_spill] sm:$0xff] }
 0x82d   :  { %v5076_v40 = vpack.c.bf16 %v4989_v38, %v12268_v61 }
 0x82f   :  { %5140 = vst [vmem:[%s11338_s3 + $0x180] sm:$0xff] %v5076_v40 }
 0x830   :  { %v4821_v57 = vpop.f32.mrf.mxu2  ;;  %v4486_v9 = vpop.f32.mrf.mxu0 }
 0x831   :  { %v4822_v18 = vadd.f32 %v4821_v57, %v4653_v14  ;;  %v4990_v36 = vpop.f32.mrf.mxu3  ;;  %v4655_v56 = vpop.f32.mrf.mxu1  ;;  %v4487_v25 = vadd.f32 %v4486_v9, %v12269_v15  ;;  %v12279_v57 = vld [vmem:[#allocation37_spill] sm:$0xff] }
 0x833   :  { %v4991_v11 = vadd.f32 %v4990_v36, %v4822_v18  ;;  %v4656_v2 = vadd.f32 %v4655_v56, %v4487_v25  ;;  %v12280_v36 = vld [vmem:[#allocation6_spill] sm:$0xff] }
 0x835   :  { %v5077_v55 = vpack.c.bf16 %v4991_v11, %v12270_v3 }
 0x837   :  { %5141 = vst [vmem:[%s11338_s3 + $0x188] sm:$0xff] %v5077_v55 }
 0x838   :  { %v4824_v52 = vpop.f32.mrf.mxu2  ;;  %v4488_v34 = vpop.f32.mrf.mxu0 }
 0x839   :  { %v4825_v63 = vadd.f32 %v4824_v52, %v4656_v2  ;;  %v4993_v37 = vpop.f32.mrf.mxu3  ;;  %v4657_v20 = vpop.f32.mrf.mxu1  ;;  %v4489_v1 = vadd.f32 %v4488_v34, %v12271_v58  ;;  %v12281_v52 = vld [vmem:[#allocation38_spill] sm:$0xff] }
 0x83b   :  { %v4994_v31 = vadd.f32 %v4993_v37, %v4825_v63  ;;  %v4658_v43 = vadd.f32 %v4657_v20, %v4489_v1  ;;  %v12282_v37 = vld [vmem:[#allocation7_spill] sm:$0xff] }
 0x83d   :  { %v5078_v62 = vpack.c.bf16 %v4994_v31, %v12272_v51 }
 0x83f   :  { %5142 = vst [vmem:[%s11338_s3 + $0x190] sm:$0xff] %v5078_v62 }
 0x840   :  { %v4826_v30 = vpop.f32.mrf.mxu2  ;;  %v4491_v50 = vpop.f32.mrf.mxu0 }
 0x841   :  { %v4827_v13 = vadd.f32 %v4826_v30, %v4658_v43  ;;  %v4995_v12 = vpop.f32.mrf.mxu3  ;;  %v4660_v8 = vpop.f32.mrf.mxu1  ;;  %v4492_v19 = vadd.f32 %v4491_v50, %v12273_v44  ;;  %v12283_v30 = vld [vmem:[#allocation39_spill] sm:$0xff] }
 0x843   :  { %v4996_v17 = vadd.f32 %v4995_v12, %v4827_v13  ;;  %v4661_v28 = vadd.f32 %v4660_v8, %v4492_v19  ;;  %v12284_v12 = vld [vmem:[#allocation8_spill] sm:$0xff] }
 0x845   :  { %v5079_v46 = vpack.c.bf16 %v4996_v17, %v12274_v48 }
 0x847   :  { %5143 = vst [vmem:[%s11338_s3 + $0x198] sm:$0xff] %v5079_v46 }
 0x848   :  { %v4829_v45 = vpop.f32.mrf.mxu2  ;;  %v4493_v41 = vpop.f32.mrf.mxu0 }
 0x849   :  { %v4830_v33 = vadd.f32 %v4829_v45, %v4661_v28  ;;  %v4998_v32 = vpop.f32.mrf.mxu3  ;;  %v4662_v22 = vpop.f32.mrf.mxu1  ;;  %v4494_v6 = vadd.f32 %v4493_v41, %v12275_v53  ;;  %v12285_v45 = vld [vmem:[#allocation40_spill] sm:$0xff] }
 0x84b   :  { %v4999_v29 = vadd.f32 %v4998_v32, %v4830_v33  ;;  %v4663_v59 = vadd.f32 %v4662_v22, %v4494_v6  ;;  %v12286_v32 = vld [vmem:[#allocation9_spill] sm:$0xff] }
 0x84d   :  { %v5080_v42 = vpack.c.bf16 %v4999_v29, %v12276_v39 }
 0x84f   :  { %5144 = vst [vmem:[%s11338_s3 + $0x1a0] sm:$0xff] %v5080_v42 }
 0x850   :  { %v4831_v16 = vpop.f32.mrf.mxu2  ;;  %v4496_v24 = vpop.f32.mrf.mxu0 }
 0x851   :  { %v4832_v35 = vadd.f32 %v4831_v16, %v4663_v59  ;;  %v5000_v5 = vpop.f32.mrf.mxu3  ;;  %v4665_v0 = vpop.f32.mrf.mxu1  ;;  %v4497_v54 = vadd.f32 %v4496_v24, %v12277_v27  ;;  %v12287_v16 = vld [vmem:[#allocation41_spill] sm:$0xff] }
 0x853   :  { %v5001_v23 = vadd.f32 %v5000_v5, %v4832_v35  ;;  %v4666_v60 = vadd.f32 %v4665_v0, %v4497_v54  ;;  %v12288_v5 = vld [vmem:[#allocation151_spill] sm:$0xff] }
 0x855   :  { %v5081_v47 = vpack.c.bf16 %v5001_v23, %v12278_v49 }
 0x857   :  { %5145 = vst [vmem:[%s11338_s3 + $0x1a8] sm:$0xff] %v5081_v47 }
 0x858   :  { %v4834_v38 = vpop.f32.mrf.mxu2  ;;  %v4498_v61 = vpop.f32.mrf.mxu0 }
 0x859   :  { %v4835_v26 = vadd.f32 %v4834_v38, %v4666_v60  ;;  %v5003_v10 = vpop.f32.mrf.mxu3  ;;  %v4667_v40 = vpop.f32.mrf.mxu1  ;;  %v4499_v18 = vadd.f32 %v4498_v61, %v12279_v57 }
 0x85b   :  { %v5004_v14 = vadd.f32 %v5003_v10, %v4835_v26  ;;  %v4668_v56 = vadd.f32 %v4667_v40, %v4499_v18  ;;  %v12289_v26 = vld [vmem:[#allocation152_spill] sm:$0xff] }
 0x85d   :  { %v5082_v9 = vpack.c.bf16 %v5004_v14, %v12280_v36 }
 0x85f   :  { %5146 = vst [vmem:[%s11338_s3 + $0x1b0] sm:$0xff] %v5082_v9 }
 0x860   :  { %v4836_v11 = vpop.f32.mrf.mxu2  ;;  %v4501_v3 = vpop.f32.mrf.mxu0 }
 0x861   :  { %v4837_v15 = vadd.f32 %v4836_v11, %v4668_v56  ;;  %v5005_v25 = vpop.f32.mrf.mxu3  ;;  %v4670_v55 = vpop.f32.mrf.mxu1  ;;  %v4502_v63 = vadd.f32 %v4501_v3, %v12281_v52  ;;  %v12290_v56 = vld [vmem:[#allocation42_spill] sm:$0xff] }
 0x863   :  { %v5006_v2 = vadd.f32 %v5005_v25, %v4837_v15  ;;  %v4671_v20 = vadd.f32 %v4670_v55, %v4502_v63  ;;  %v12291_v15 = vld [vmem:[#allocation10_spill] sm:$0xff] }
 0x865   :  { %v5083_v34 = vpack.c.bf16 %v5006_v2, %v12282_v37 }
 0x867   :  { %5147 = vst [vmem:[%s11338_s3 + $0x1b8] sm:$0xff] %v5083_v34 }
 0x868   :  { %v4839_v31 = vpop.f32.mrf.mxu2  ;;  %v4503_v51 = vpop.f32.mrf.mxu0 }
 0x869   :  { %v4840_v58 = vadd.f32 %v4839_v31, %v4671_v20  ;;  %v5008_v1 = vpop.f32.mrf.mxu3  ;;  %v4672_v62 = vpop.f32.mrf.mxu1  ;;  %v4504_v13 = vadd.f32 %v4503_v51, %v12283_v30  ;;  %v12292_v20 = vld [vmem:[#allocation11_spill] sm:$0xff] }
 0x86b   :  { %v5009_v43 = vadd.f32 %v5008_v1, %v4840_v58  ;;  %v4673_v8 = vadd.f32 %v4672_v62, %v4504_v13 }
 0x86d   :  { %v5084_v50 = vpack.c.bf16 %v5009_v43, %v12284_v12  ;;  %v12293_v12 = vld [vmem:[#allocation12_spill] sm:$0xff] }
 0x86f   :  { %5148 = vst [vmem:[%s11338_s3 + $0x1c0] sm:$0xff] %v5084_v50 }
 0x870   :  { %v4841_v17 = vpop.f32.mrf.mxu2  ;;  %v4506_v48 = vpop.f32.mrf.mxu0 }
 0x871   :  { %v4842_v44 = vadd.f32 %v4841_v17, %v4673_v8  ;;  %v5010_v19 = vpop.f32.mrf.mxu3  ;;  %v4675_v46 = vpop.f32.mrf.mxu1  ;;  %v4507_v33 = vadd.f32 %v4506_v48, %v12285_v45 }
 0x873   :  { %v5011_v28 = vadd.f32 %v5010_v19, %v4842_v44  ;;  %v4676_v22 = vadd.f32 %v4675_v46, %v4507_v33  ;;  %v12294_v46 = vld [vmem:[#allocation13_spill] sm:$0xff] }
 0x875   :  { %v5085_v41 = vpack.c.bf16 %v5011_v28, %v12286_v32 }
 0x877   :  { %5149 = vst [vmem:[%s11338_s3 + $0x1c8] sm:$0xff] %v5085_v41 }
 0x878   :  { %v4844_v29 = vpop.f32.mrf.mxu2  ;;  %v4508_v39 = vpop.f32.mrf.mxu0 }
 0x879   :  { %v4845_v53 = vadd.f32 %v4844_v29, %v4676_v22  ;;  %v5013_v6 = vpop.f32.mrf.mxu3  ;;  %v4677_v42 = vpop.f32.mrf.mxu1  ;;  %v4509_v35 = vadd.f32 %v4508_v39, %v12287_v16 }
 0x87b   :  { %v5014_v59 = vadd.f32 %v5013_v6, %v4845_v53  ;;  %v4678_v0 = vadd.f32 %v4677_v42, %v4509_v35 }
 0x87d   :  { %v5086_v24 = vpack.c.bf16 %v5014_v59, %v12288_v5 }
 0x87f   :  { %5150 = vst [vmem:[%s11338_s3 + $0x1d0] sm:$0xff] %v5086_v24 }
 0x880   :  { %v4846_v23 = vpop.f32.mrf.mxu2  ;;  %v4511_v49 = vpop.f32.mrf.mxu0 }
 0x881   :  { %v4847_v27 = vadd.f32 %v4846_v23, %v4678_v0  ;;  %v5015_v54 = vpop.f32.mrf.mxu3  ;;  %v4680_v47 = vpop.f32.mrf.mxu1  ;;  %v4512_v38 = vadd.f32 %v4511_v49, %v10905_v21 }
 0x883   :  { %v5016_v60 = vadd.f32 %v5015_v54, %v4847_v27  ;;  %v4681_v61 = vadd.f32 %v4680_v47, %v4512_v38 }
 0x885   :  { %v5087_v10 = vpack.c.bf16 %v5016_v60, %v12289_v26 }
 0x887   :  { %5151 = vst [vmem:[%s11338_s3 + $0x1d8] sm:$0xff] %v5087_v10 }
 0x888   :  { %v4849_v40 = vpop.f32.mrf.mxu2  ;;  %v4513_v18 = vpop.f32.mrf.mxu0 }
 0x889   :  { %v4850_v14 = vadd.f32 %v4849_v40, %v4681_v61  ;;  %v5018_v57 = vpop.f32.mrf.mxu3  ;;  %v4682_v36 = vpop.f32.mrf.mxu1  ;;  %v4514_v11 = vadd.f32 %v4513_v18, %v12290_v56 }
 0x88b   :  { %v5019_v9 = vadd.f32 %v5018_v57, %v4850_v14  ;;  %v4683_v21 = vadd.f32 %v4682_v36, %v4514_v11 }
 0x88d   :  { %v5088_v25 = vpack.c.bf16 %v5019_v9, %v12291_v15 }
 0x88f   :  { %5152 = vst [vmem:[%s11338_s3 + $0x1e0] sm:$0xff] %v5088_v25 }
 0x890   :  { %v4851_v3 = vpop.f32.mrf.mxu2  ;;  %v4516_v52 = vpop.f32.mrf.mxu0 }
 0x891   :  { %v4852_v55 = vadd.f32 %v4851_v3, %v4683_v21  ;;  %v5020_v2 = vpop.f32.mrf.mxu3  ;;  %v4517_v37 = vadd.f32 %v4516_v52, %v10915_v7  ;;  %v4685_v34 = vpop.f32.mrf.mxu1 }
 0x893   :  { %v5021_v63 = vadd.f32 %v5020_v2, %v4852_v55  ;;  %v4686_v58 = vadd.f32 %v4685_v34, %v4517_v37 }
 0x895   :  { %v5089_v31 = vpack.c.bf16 %v5021_v63, %v12292_v20 }
 0x897   :  { %5153 = vst [vmem:[%s11338_s3 + $0x1e8] sm:$0xff] %v5089_v31 }
 0x898   :  { %v4854_v1 = vpop.f32.mrf.mxu2  ;;  %v4518_v43 = vpop.f32.mrf.mxu0 }
 0x899   :  { %v4855_v51 = vadd.f32 %v4854_v1, %v4686_v58  ;;  %v5023_v62 = vpop.f32.mrf.mxu3  ;;  %v4519_v13 = vadd.f32 %v4518_v43, %v10917_v4  ;;  %v4687_v8 = vpop.f32.mrf.mxu1 }
 0x89b   :  { %v5024_v30 = vadd.f32 %v5023_v62, %v4855_v51  ;;  %v4688_v7 = vadd.f32 %v4687_v8, %v4519_v13 }
 0x89d   :  { %v5090_v50 = vpack.c.bf16 %v5024_v30, %v12293_v12 }
 0x89f   :  { %5154 = vst [vmem:[%s11338_s3 + $0x1f0] sm:$0xff] %v5090_v50 }
 0x8a0   :  { %v4856_v17 = vpop.f32.mrf.mxu2 }
 0x8a1   :  { %v4857_v44 = vadd.f32 %v4856_v17, %v4688_v7  ;;  %v5025_v19 = vpop.f32.mrf.mxu3 }
 0x8a3   :  { %v5026_v48 = vadd.f32 %v5025_v19, %v4857_v44 }
 0x8a5   :  { %v5091_v28 = vpack.c.bf16 %v5026_v48, %v12294_v46 }
 0x8a7   :  { %5155 = vst [vmem:[%s11338_s3 + $0x1f8] sm:$0xff] %v5091_v28 }

</bundles_post_ra>
